<compile_context>
chip_gen: v7x
topology: tpu7x:2x2x1
jax: 0.10.0
libtpu: 0.0.40
codegen_flags: <defaults>
</compile_context>

<pallas_src>
import functools

import jax
import jax.numpy as jnp
from jax.experimental import pallas as pl
from jax.experimental.pallas import tpu as pltpu

DROPOUT_P = 0.3
LEAKY_SLOPE = 0.2
LANE = 128


def _round_up(x, m):
    return (x + m - 1) // m * m


def _leaky_relu(x, slope=LEAKY_SLOPE):
    return jnp.where(x >= 0, x, slope * x)


def generator_kernel(x_ref, m1_ref, m2_ref, m3_ref,
                     w1_ref, b1_ref, w2_ref, b2_ref,
                     w3_ref, b3_ref, w4_ref, b4_ref,
                     o_ref):
    """One batch tile: 4 MXU matmuls + VPU leaky-relu/dropout, f32 accumulation."""
    x = x_ref[...]

    h = jnp.dot(x.astype(jnp.bfloat16), w1_ref[...],
                preferred_element_type=jnp.float32) + b1_ref[...]
    h = _leaky_relu(h) * m1_ref[...]          # mask already carries 1/(1-p) scale

    h = jnp.dot(h.astype(jnp.bfloat16), w2_ref[...],
                preferred_element_type=jnp.float32) + b2_ref[...]
    h = _leaky_relu(h) * m2_ref[...]

    h = jnp.dot(h.astype(jnp.bfloat16), w3_ref[...],
                preferred_element_type=jnp.float32) + b3_ref[...]
    h = _leaky_relu(h) * m3_ref[...]

    h = jnp.dot(h.astype(jnp.bfloat16), w4_ref[...],
                preferred_element_type=jnp.float32) + b4_ref[...]
    # exp() goes to the EUP; plain jnp sigmoid keeps lowering portable.
    o_ref[...] = 1.0 / (1.0 + jnp.exp(-h))


@functools.partial(jax.jit, static_argnames=("block_m",))
def generator_forward(x, params, dropout_masks, *, block_m=128):
    """x: [B, g_input_dim] f32. params: dict of W/b. dropout_masks: 3 scaled f32 masks."""
    B, _ = x.shape
    d_out = params["w4"].shape[1]

    bm = min(block_m, _round_up(B, 8))
    Bp = _round_up(B, bm)                 # batch padded to a whole number of tiles
    Np = _round_up(d_out, LANE)           # lane-dense output (multiple of 128)

    def pad_rows(a):
        return jnp.pad(a, ((0, Bp - B), (0, 0))) if Bp != B else a

    xp = pad_rows(x)
    m1, m2, m3 = (pad_rows(m) for m in dropout_masks)

    # bf16 weights: half the HBM bytes, native MXU input dtype. Biases stay f32.
    w1 = params["w1"].astype(jnp.bfloat16)
    w2 = params["w2"].astype(jnp.bfloat16)
    w3 = params["w3"].astype(jnp.bfloat16)
    w4 = params["w4"].astype(jnp.bfloat16)
    b1, b2, b3, b4 = (params[f"b{i}"] for i in (1, 2, 3, 4))
    if Np != d_out:
        w4 = jnp.pad(w4, ((0, 0), (0, Np - d_out)))
        b4 = jnp.pad(b4, ((0, 0), (0, Np - d_out)))

    grid = (Bp // bm,)

    def tile_rows(arr):   # per-batch-tile operands (activations, masks)
        return pl.BlockSpec((bm, arr.shape[1]), lambda i: (i, 0))

    def resident(arr):    # weights/biases: constant index_map -> stay in VMEM
        return pl.BlockSpec(arr.shape, lambda i: (0,) * arr.ndim)

    in_specs = [
        tile_rows(xp),
        tile_rows(m1), tile_rows(m2), tile_rows(m3),
        resident(w1), resident(b1),
        resident(w2), resident(b2),
        resident(w3), resident(b3),
        resident(w4), resident(b4),
    ]

    out = pl.pallas_call(
        generator_kernel,
        out_shape=jax.ShapeDtypeStruct((Bp, Np), jnp.float32),
        grid_spec=pltpu.PrefetchScalarGridSpec(
            num_scalar_prefetch=0,
            grid=grid,
            in_specs=in_specs,
            out_specs=pl.BlockSpec((bm, Np), lambda i: (i, 0)),
        ),
        compiler_params=pltpu.CompilerParams(
            dimension_semantics=("parallel",),   # batch tiles independent (v7x: 2 TCs)
            vmem_limit_bytes=32 * 1024 * 1024,
        ),
    )(xp, m1, m2, m3, w1, b1, w2, b2, w3, b3, w4, b4)

    return out[:B, :d_out]


def make_dropout_masks(key, batch, hidden_dims, p=DROPOUT_P):
    """Per-layer dropout masks, pre-scaled: value is 0 (dropped) or 1/(1-p) (kept)."""
    keys = jax.random.split(key, len(hidden_dims))
    scale = 1.0 / (1.0 - p)
    return tuple(
        jax.random.bernoulli(k, 1.0 - p, (batch, h)).astype(jnp.float32) * scale
        for k, h in zip(keys, hidden_dims)
    )


def init_generator_params(key, g_input_dim, g_output_dim):
    """Deterministic init mirroring nn.Linear's default U(-1/sqrt(fan_in), +)."""
    dims = [g_input_dim, 256, 512, 1024, g_output_dim]
    params = {}
    for layer in range(4):
        fan_in, fan_out = dims[layer], dims[layer + 1]
        key, kw, kb = jax.random.split(key, 3)
        bound = 1.0 / (fan_in ** 0.5)
        # Stored as [in, out] so the kernel computes x @ W directly.
        params[f"w{layer + 1}"] = jax.random.uniform(
            kw, (fan_in, fan_out), jnp.float32, -bound, bound)
        # Biases kept 2-D (1, out) for TPU-friendly layout; broadcasts over batch.
        params[f"b{layer + 1}"] = jax.random.uniform(
            kb, (1, fan_out), jnp.float32, -bound, bound)
    return params


def reference_forward(x, params, masks):
    """Pure-JAX reference with identical bf16/f32 numerics for validation."""
    h = x
    for layer, m in zip((1, 2, 3), masks):
        w = params[f"w{layer}"].astype(jnp.bfloat16)
        h = jnp.dot(h.astype(jnp.bfloat16), w,
                    preferred_element_type=jnp.float32) + params[f"b{layer}"]
        h = jnp.where(h >= 0, h, LEAKY_SLOPE * h) * m
    w4 = params["w4"].astype(jnp.bfloat16)
    h = jnp.dot(h.astype(jnp.bfloat16), w4,
                preferred_element_type=jnp.float32) + params["b4"]
    return 1.0 / (1.0 + jnp.exp(-h))


if __name__ == "__main__":
    key = jax.random.PRNGKey(0)
    k_params, k_x, k_drop = jax.random.split(key, 3)

    # MNIST GAN shapes: latent 100, image 28*28=784; batch large enough to fill MXU rows.
    B, G_INPUT_DIM, G_OUTPUT_DIM = 256, 100, 784

    params = init_generator_params(k_params, G_INPUT_DIM, G_OUTPUT_DIM)
    x = jax.random.normal(k_x, (B, G_INPUT_DIM), jnp.float32)
    hidden_dims = (params["w1"].shape[1], params["w2"].shape[1], params["w3"].shape[1])
    masks = make_dropout_masks(k_drop, B, hidden_dims)

    out = generator_forward(x, params, masks)
    out = jax.block_until_ready(out)

    assert out.shape == (B, G_OUTPUT_DIM)
    assert out.dtype == jnp.float32
    assert bool(jnp.all((out >= 0.0) & (out <= 1.0)))   # sigmoid range

    ref = reference_forward(x, params, masks)
    assert bool(jnp.allclose(out, ref, atol=2e-2, rtol=0.0))

    print("KERNEL_OK")
</pallas_src>

<mosaic_0001>
module attributes {stable_mosaic.version = 11 : i64} {
  func.func @generator_kernel(%arg0: i32, %arg1: memref<128x100xf32, #tpu.memory_space<vmem>>, %arg2: memref<128x256xf32, #tpu.memory_space<vmem>>, %arg3: memref<128x512xf32, #tpu.memory_space<vmem>>, %arg4: memref<128x1024xf32, #tpu.memory_space<vmem>>, %arg5: memref<100x256xbf16, #tpu.memory_space<vmem>>, %arg6: memref<1x256xf32, #tpu.memory_space<vmem>>, %arg7: memref<256x512xbf16, #tpu.memory_space<vmem>>, %arg8: memref<1x512xf32, #tpu.memory_space<vmem>>, %arg9: memref<512x1024xbf16, #tpu.memory_space<vmem>>, %arg10: memref<1x1024xf32, #tpu.memory_space<vmem>>, %arg11: memref<1024x896xbf16, #tpu.memory_space<vmem>>, %arg12: memref<1x896xf32, #tpu.memory_space<vmem>>, %arg13: memref<128x896xf32, #tpu.memory_space<vmem>>) attributes {dimension_semantics = [#tpu.dimension_semantics<parallel>], iteration_bounds = array<i64: 2>, scalar_prefetch = 0 : i64, scratch_operands = 0 : i64, tpu.core_type = #tpu.core_type<tc>, window_params = [{transform_indices = @transform_0, window_bounds = array<i64: 128, 100>}, {transform_indices = @transform_1, window_bounds = array<i64: 128, 256>}, {transform_indices = @transform_2, window_bounds = array<i64: 128, 512>}, {transform_indices = @transform_3, window_bounds = array<i64: 128, 1024>}, {pipeline_mode = #tpu.pipeline_mode<synchronous>, transform_indices = @transform_4, window_bounds = array<i64: 100, 256>}, {pipeline_mode = #tpu.pipeline_mode<synchronous>, transform_indices = @transform_5, window_bounds = array<i64: 1, 256>}, {pipeline_mode = #tpu.pipeline_mode<synchronous>, transform_indices = @transform_6, window_bounds = array<i64: 256, 512>}, {pipeline_mode = #tpu.pipeline_mode<synchronous>, transform_indices = @transform_7, window_bounds = array<i64: 1, 512>}, {pipeline_mode = #tpu.pipeline_mode<synchronous>, transform_indices = @transform_8, window_bounds = array<i64: 512, 1024>}, {pipeline_mode = #tpu.pipeline_mode<synchronous>, transform_indices = @transform_9, window_bounds = array<i64: 1, 1024>}, {pipeline_mode = #tpu.pipeline_mode<synchronous>, transform_indices = @transform_10, window_bounds = array<i64: 1024, 896>}, {pipeline_mode = #tpu.pipeline_mode<synchronous>, transform_indices = @transform_11, window_bounds = array<i64: 1, 896>}, {transform_indices = @transform_12, window_bounds = array<i64: 128, 896>}]} {
    %c0 = arith.constant 0 : index
    %c0_0 = arith.constant 0 : index
    %0 = vector.load %arg1[%c0, %c0_0] : memref<128x100xf32, #tpu.memory_space<vmem>>, vector<128x100xf32>
    %1 = arith.truncf %0 : vector<128x100xf32> to vector<128x100xbf16>
    %c0_1 = arith.constant 0 : index
    %c0_2 = arith.constant 0 : index
    %2 = vector.load %arg5[%c0_1, %c0_2] : memref<100x256xbf16, #tpu.memory_space<vmem>>, vector<100x256xbf16>
    %cst = arith.constant dense<0.000000e+00> : vector<128x256xf32>
    %3 = tpu.matmul %1, %2, %cst {dimension_numbers = #tpu.dot_dimension_numbers<[1], [0], [0], [1], [0, 0, 1, 1], [], []>} : vector<128x100xbf16>, vector<100x256xbf16>, vector<128x256xf32> -> vector<128x256xf32>
    %c0_3 = arith.constant 0 : index
    %c0_4 = arith.constant 0 : index
    %4 = vector.load %arg6[%c0_3, %c0_4] : memref<1x256xf32, #tpu.memory_space<vmem>>, vector<1x256xf32>
    %5 = vector.broadcast %4 : vector<1x256xf32> to vector<128x256xf32>
    %6 = arith.addf %3, %5 : vector<128x256xf32>
    %cst_5 = arith.constant 0.000000e+00 : f32
    %7 = vector.broadcast %cst_5 : f32 to vector<128x256xf32>
    %8 = arith.cmpf oge, %6, %7 : vector<128x256xf32>
    %cst_6 = arith.constant 2.000000e-01 : f32
    %9 = vector.broadcast %cst_6 : f32 to vector<128x256xf32>
    %10 = arith.mulf %9, %6 : vector<128x256xf32>
    %11 = arith.select %8, %6, %10 : vector<128x256xi1>, vector<128x256xf32>
    %c0_7 = arith.constant 0 : index
    %c0_8 = arith.constant 0 : index
    %12 = vector.load %arg2[%c0_7, %c0_8] : memref<128x256xf32, #tpu.memory_space<vmem>>, vector<128x256xf32>
    %13 = arith.mulf %11, %12 : vector<128x256xf32>
    %14 = arith.truncf %13 : vector<128x256xf32> to vector<128x256xbf16>
    %c0_9 = arith.constant 0 : index
    %c0_10 = arith.constant 0 : index
    %15 = vector.load %arg7[%c0_9, %c0_10] : memref<256x512xbf16, #tpu.memory_space<vmem>>, vector<256x512xbf16>
    %cst_11 = arith.constant dense<0.000000e+00> : vector<128x512xf32>
    %16 = tpu.matmul %14, %15, %cst_11 {dimension_numbers = #tpu.dot_dimension_numbers<[1], [0], [0], [1], [0, 0, 1, 1], [], []>} : vector<128x256xbf16>, vector<256x512xbf16>, vector<128x512xf32> -> vector<128x512xf32>
    %c0_12 = arith.constant 0 : index
    %c0_13 = arith.constant 0 : index
    %17 = vector.load %arg8[%c0_12, %c0_13] : memref<1x512xf32, #tpu.memory_space<vmem>>, vector<1x512xf32>
    %18 = vector.broadcast %17 : vector<1x512xf32> to vector<128x512xf32>
    %19 = arith.addf %16, %18 : vector<128x512xf32>
    %cst_14 = arith.constant 0.000000e+00 : f32
    %20 = vector.broadcast %cst_14 : f32 to vector<128x512xf32>
    %21 = arith.cmpf oge, %19, %20 : vector<128x512xf32>
    %cst_15 = arith.constant 2.000000e-01 : f32
    %22 = vector.broadcast %cst_15 : f32 to vector<128x512xf32>
    %23 = arith.mulf %22, %19 : vector<128x512xf32>
    %24 = arith.select %21, %19, %23 : vector<128x512xi1>, vector<128x512xf32>
    %c0_16 = arith.constant 0 : index
    %c0_17 = arith.constant 0 : index
    %25 = vector.load %arg3[%c0_16, %c0_17] : memref<128x512xf32, #tpu.memory_space<vmem>>, vector<128x512xf32>
    %26 = arith.mulf %24, %25 : vector<128x512xf32>
    %27 = arith.truncf %26 : vector<128x512xf32> to vector<128x512xbf16>
    %c0_18 = arith.constant 0 : index
    %c0_19 = arith.constant 0 : index
    %28 = vector.load %arg9[%c0_18, %c0_19] : memref<512x1024xbf16, #tpu.memory_space<vmem>>, vector<512x1024xbf16>
    %cst_20 = arith.constant dense<0.000000e+00> : vector<128x1024xf32>
    %29 = tpu.matmul %27, %28, %cst_20 {dimension_numbers = #tpu.dot_dimension_numbers<[1], [0], [0], [1], [0, 0, 1, 1], [], []>} : vector<128x512xbf16>, vector<512x1024xbf16>, vector<128x1024xf32> -> vector<128x1024xf32>
    %c0_21 = arith.constant 0 : index
    %c0_22 = arith.constant 0 : index
    %30 = vector.load %arg10[%c0_21, %c0_22] : memref<1x1024xf32, #tpu.memory_space<vmem>>, vector<1x1024xf32>
    %31 = vector.broadcast %30 : vector<1x1024xf32> to vector<128x1024xf32>
    %32 = arith.addf %29, %31 : vector<128x1024xf32>
    %cst_23 = arith.constant 0.000000e+00 : f32
    %33 = vector.broadcast %cst_23 : f32 to vector<128x1024xf32>
    %34 = arith.cmpf oge, %32, %33 : vector<128x1024xf32>
    %cst_24 = arith.constant 2.000000e-01 : f32
    %35 = vector.broadcast %cst_24 : f32 to vector<128x1024xf32>
    %36 = arith.mulf %35, %32 : vector<128x1024xf32>
    %37 = arith.select %34, %32, %36 : vector<128x1024xi1>, vector<128x1024xf32>
    %c0_25 = arith.constant 0 : index
    %c0_26 = arith.constant 0 : index
    %38 = vector.load %arg4[%c0_25, %c0_26] : memref<128x1024xf32, #tpu.memory_space<vmem>>, vector<128x1024xf32>
    %39 = arith.mulf %37, %38 : vector<128x1024xf32>
    %40 = arith.truncf %39 : vector<128x1024xf32> to vector<128x1024xbf16>
    %c0_27 = arith.constant 0 : index
    %c0_28 = arith.constant 0 : index
    %41 = vector.load %arg11[%c0_27, %c0_28] : memref<1024x896xbf16, #tpu.memory_space<vmem>>, vector<1024x896xbf16>
    %cst_29 = arith.constant dense<0.000000e+00> : vector<128x896xf32>
    %42 = tpu.matmul %40, %41, %cst_29 {dimension_numbers = #tpu.dot_dimension_numbers<[1], [0], [0], [1], [0, 0, 1, 1], [], []>} : vector<128x1024xbf16>, vector<1024x896xbf16>, vector<128x896xf32> -> vector<128x896xf32>
    %c0_30 = arith.constant 0 : index
    %c0_31 = arith.constant 0 : index
    %43 = vector.load %arg12[%c0_30, %c0_31] : memref<1x896xf32, #tpu.memory_space<vmem>>, vector<1x896xf32>
    %44 = vector.broadcast %43 : vector<1x896xf32> to vector<128x896xf32>
    %45 = arith.addf %42, %44 : vector<128x896xf32>
    %cst_32 = arith.constant 0.000000e+00 : f32
    %46 = vector.broadcast %cst_32 : f32 to vector<128x896xf32>
    %47 = arith.subf %46, %45 : vector<128x896xf32>
    %48 = math.exp %47 : vector<128x896xf32>
    %cst_33 = arith.constant 1.000000e+00 : f32
    %49 = vector.broadcast %cst_33 : f32 to vector<128x896xf32>
    %50 = arith.addf %49, %48 : vector<128x896xf32>
    %cst_34 = arith.constant 1.000000e+00 : f32
    %51 = vector.broadcast %cst_34 : f32 to vector<128x896xf32>
    %52 = arith.divf %51, %50 : vector<128x896xf32>
    %c0_35 = arith.constant 0 : index
    %c0_36 = arith.constant 0 : index
    %53 = vector.load %arg13[%c0_35, %c0_36] : memref<128x896xf32, #tpu.memory_space<vmem>>, vector<128x896xf32>
    tpu.vector_store %arg13[%c0_35, %c0_36], %52 {strides = array<i32>} : memref<128x896xf32, #tpu.memory_space<vmem>>, vector<128x896xf32>,
    return
  }
  func.func @transform_0(%arg0: i32) -> (i32, i32) {
    %c0_i32 = arith.constant 0 : i32
    %c0_i32_0 = arith.constant 0 : i32
    return %arg0, %c0_i32 : i32, i32
  }
  func.func @transform_1(%arg0: i32) -> (i32, i32) {
    %c0_i32 = arith.constant 0 : i32
    %c0_i32_0 = arith.constant 0 : i32
    return %arg0, %c0_i32 : i32, i32
  }
  func.func @transform_2(%arg0: i32) -> (i32, i32) {
    %c0_i32 = arith.constant 0 : i32
    %c0_i32_0 = arith.constant 0 : i32
    return %arg0, %c0_i32 : i32, i32
  }
  func.func @transform_3(%arg0: i32) -> (i32, i32) {
    %c0_i32 = arith.constant 0 : i32
    %c0_i32_0 = arith.constant 0 : i32
    return %arg0, %c0_i32 : i32, i32
  }
  func.func @transform_4(%arg0: i32) -> (i32, i32) {
    %c0_i32 = arith.constant 0 : i32
    %c0_i32_0 = arith.constant 0 : i32
    %c0_i32_1 = arith.constant 0 : i32
    return %c0_i32, %c0_i32_0 : i32, i32
  }
  func.func @transform_5(%arg0: i32) -> (i32, i32) {
    %c0_i32 = arith.constant 0 : i32
    %c0_i32_0 = arith.constant 0 : i32
    %c0_i32_1 = arith.constant 0 : i32
    return %c0_i32, %c0_i32_0 : i32, i32
  }
  func.func @transform_6(%arg0: i32) -> (i32, i32) {
    %c0_i32 = arith.constant 0 : i32
    %c0_i32_0 = arith.constant 0 : i32
    %c0_i32_1 = arith.constant 0 : i32
    return %c0_i32, %c0_i32_0 : i32, i32
  }
  func.func @transform_7(%arg0: i32) -> (i32, i32) {
    %c0_i32 = arith.constant 0 : i32
    %c0_i32_0 = arith.constant 0 : i32
    %c0_i32_1 = arith.constant 0 : i32
    return %c0_i32, %c0_i32_0 : i32, i32
  }
  func.func @transform_8(%arg0: i32) -> (i32, i32) {
    %c0_i32 = arith.constant 0 : i32
    %c0_i32_0 = arith.constant 0 : i32
    %c0_i32_1 = arith.constant 0 : i32
    return %c0_i32, %c0_i32_0 : i32, i32
  }
  func.func @transform_9(%arg0: i32) -> (i32, i32) {
    %c0_i32 = arith.constant 0 : i32
    %c0_i32_0 = arith.constant 0 : i32
    %c0_i32_1 = arith.constant 0 : i32
    return %c0_i32, %c0_i32_0 : i32, i32
  }
  func.func @transform_10(%arg0: i32) -> (i32, i32) {
    %c0_i32 = arith.constant 0 : i32
    %c0_i32_0 = arith.constant 0 : i32
    %c0_i32_1 = arith.constant 0 : i32
    return %c0_i32, %c0_i32_0 : i32, i32
  }
  func.func @transform_11(%arg0: i32) -> (i32, i32) {
    %c0_i32 = arith.constant 0 : i32
    %c0_i32_0 = arith.constant 0 : i32
    %c0_i32_1 = arith.constant 0 : i32
    return %c0_i32, %c0_i32_0 : i32, i32
  }
  func.func @transform_12(%arg0: i32) -> (i32, i32) {
    %c0_i32 = arith.constant 0 : i32
    %c0_i32_0 = arith.constant 0 : i32
    return %arg0, %c0_i32 : i32, i32
  }
}

</mosaic_0001>

<bundles_post_ra>
// kernel: generator_forward.1
= control target key start
LH: loop header
LB: loop body
LE: loop exit
PB: predicated region body
PF: predicated region fallthrough
CT: control target
= control target key end

     0   :  { %s13611_s21 = smov 0   ;;  %s19406_s0 = inlined_call_operand.vmem [shape: f32[256,100], index: 0, kind: input, shape index: {}]   ;;  %s19407_s1 = inlined_call_operand.vmem [shape: f32[256,256], index: 1, kind: input, shape index: {}]   ;;  %s19408_s2 = inlined_call_operand.vmem [shape: f32[256,512], index: 2, kind: input, shape index: {}]   ;;  %s19409_s3 = inlined_call_operand.vmem [shape: f32[256,1024], index: 3, kind: input, shape index: {}]   ;;  %s19410_s4 = inlined_call_operand.vmem [shape: bf16[100,256], index: 4, kind: input, shape index: {}]   ;;  %s19411_s5 = inlined_call_operand.vmem [shape: f32[1,256], index: 5, kind: input, shape index: {}]   ;;  %s19412_s6 = inlined_call_operand.vmem [shape: bf16[256,512], index: 6, kind: input, shape index: {}]   ;;  %s19413_s7 = inlined_call_operand.vmem [shape: f32[1,512], index: 7, kind: input, shape index: {}]   ;;  %s19414_s8 = inlined_call_operand.vmem [shape: bf16[512,1024], index: 8, kind: input, shape index: {}]   ;;  %s19415_s9 = inlined_call_operand.vmem [shape: f32[1,1024], index: 9, kind: input, shape index: {}]   ;;  %s19416_s10 = inlined_call_operand.vmem [shape: bf16[1024,896], index: 10, kind: input, shape index: {}]   ;;  %s19417_s11 = inlined_call_operand.vmem [shape: f32[1,896], index: 11, kind: input, shape index: {}]   ;;  %s19418_s12 = inlined_call_operand.vmem [shape: f32[256,896], index: 12, kind: output, shape index: {}]  }
   0x1 LB: > { %s10575_s22 = sadd.s32 4294967295, %s13543_s21   ;;  %p10579_p0 = scmp.ge.s32.totalorder %s13543_s21, 1  ;;  %s13543_s21 = sphi %s13611_s21, %s22_s21  }
   0x2   : > { %p399_p1 = scmp.lt.s32.totalorder %s13543_s21, 3 }
   0x4   : > { %p400_p2 = pnand %p10579_p0, %p399_p1 }
   0x6   : > { %403 = sbr.rel (%p400_p2) target bundleno = 1631 (0x65f), region = 68 }
   0xd   : > { %v12311_v0 = vld [vmem:[%s19410_s4 + $0x4] ss:$8 sps:$4 sm:$0xff]   ;;  %v12313_v1 = vld [vmem:[%s19410_s4] ss:$8 sps:$4 sm:$0xff]   ;;  %v13545_v2 = vmov 0   ;;  %s10580_s15 = sshll.u32 %s10575_s22, 4 }
   0xe   : > { %673 = vmatprep.mubr.bf16.mxu0 %v13545_v2  ;;  %641 = vmatprep.subr.bf16.mxu0 %v12311_v0  ;;  %v12314_v3 = vld [vmem:[%s19410_s4 + $0x14] ss:$8 sps:$4 sm:$0xff]   ;;  %v12316_v4 = vld [vmem:[%s19410_s4 + $0x10] ss:$8 sps:$4 sm:$0xff]   ;;  %v12317_v5 = vld [vmem:[%s19410_s4 + $0x24] ss:$8 sps:$4 sm:$0xff]  }
   0xf   : > { %642 = vmatpush1.bf16.msra.mxu0 %v12313_v1  ;;  %v12319_v6 = vld [vmem:[%s19410_s4 + $0x20] ss:$8 sps:$4 sm:$0xff]   ;;  %p461_p3 = scmp.lt.s32.totalorder %s10580_s15, 31  ;;  %v12320_v7 = vld [vmem:[%s19410_s4 + $0x34] ss:$8 sps:$4 sm:$0xff]   ;;  %vm634_vm0 = vcmask 1041408  }
  0x10   : > { %643 = vmatprep.subr.bf16.mxu0 %v12314_v3  ;;  %v12322_v8 = vld [vmem:[%s19410_s4 + $0x30] ss:$8 sps:$4 sm:$0xff]   ;;  %v12323_v9 = vld [vmem:[%s19410_s4 + $0x44] ss:$8 sps:$4 sm:$0xff]   ;;  %v12325_v10 = vld [vmem:[%s19410_s4 + $0x40] ss:$8 sps:$4 sm:$0xff]  }
  0x11   : > { %s19913_s15 = smov (!%p461_p3, %s10580_s15), 31  ;;  %v12331_v11 = vld [vmem:[%s19412_s6 + $0x4] ss:$16 sps:$4 sm:$0xff]   ;;  %v12336_v14 = vld [vmem:[%s19412_s6] ss:$16 sps:$4 sm:$0xff]   ;;  %vm609_vm1 = vcmask 818176  }
  0x12   : > { %v12326_v12 = vld [vmem:[%s19410_s4 + $0x54] ss:$8 sps:$4 sm:$0xff]   ;;  %v531_v13 = vld [vmem:[%s19410_s4 + $0x60] sm:$0x33]  ;;  %s10581_s16 = sshll.u32 %s19913_s15, 3  ;;  %1336 = vmatprep.subr.bf16.mxu1 %v12331_v11  ;;  %s11386_s20 = sshll.u32 %s19913_s15, 4 }
  0x13   : > { %644 = vmatpush1.bf16.msra.mxu0 %v12316_v4  ;;  %v12337_v15 = vld [vmem:[%s19412_s6 + $0x24] ss:$16 sps:$4 sm:$0xff]   ;;  %v12328_v16 = vld [vmem:[%s19410_s4 + $0x50] ss:$8 sps:$4 sm:$0xff]   ;;  %s13674_s26 = scalar_lea.vmem %s19406_s0, %s10581_s16  ;;  %1337 = vmatpush1.bf16.msra.mxu1 %v12336_v14  ;;  %v10606_v19 = vcombine.high %v531_v13, %v531_v13  ;;  %v10605_v20 = vcombine.low %v531_v13, %v531_v13  ;;  %v12335_v26 = vld [vmem:[%s19412_s6 + $0xc] ss:$16 sps:$4 sm:$0xff]   ;;  %s13936_s24 = scalar_lea.vmem %s19407_s1, %s11386_s20 }
  0x14   : > { %645 = vmatprep.subr.bf16.mxu0 %v12317_v5  ;;  %v12342_v17 = vld [vmem:[%s19412_s6 + $0x20] ss:$16 sps:$4 sm:$0xff]   ;;  %1338 = vmatprep.subr.bf16.mxu1 %v12337_v15  ;;  %v12343_v18 = vld [vmem:[%s19412_s6 + $0x44] ss:$16 sps:$4 sm:$0xff]   ;;  %v496_v23 = vld [vmem:[%s13674_s26 + $0x8] sm:$0xff]  ;;  %s11388_s29 = sshll.u32 %s19913_s15, 6 }
  0x15   : > { %v495_v21 = vld [vmem:[%s13674_s26] sm:$0xff]  ;;  %v636_v25 = vsel %vm634_vm0, %v10605_v20, 0  ;;  %v12333_v28 = vld [vmem:[%s19412_s6 + $0x8] ss:$16 sps:$4 sm:$0xff]   ;;  %v12341_v30 = vld [vmem:[%s19412_s6 + $0x2c] ss:$16 sps:$4 sm:$0xff]   ;;  %s16338_s13 = scalar_lea.vmem %s19409_s3, %s11388_s29 }
  0x16   : > { %v12348_v22 = vld [vmem:[%s19412_s6 + $0x40] ss:$16 sps:$4 sm:$0xff]   ;;  %v12349_v24 = vld [vmem:[%s19412_s6 + $0x64] ss:$16 sps:$4 sm:$0xff]   ;;  %v511_v27 = vpack.c.bf16 %v496_v23, %v495_v21  ;;  %v498_v33 = vld [vmem:[%s13674_s26 + $0x18] sm:$0xff]  ;;  %s12301_s25 = smul.u32 56, %s19913_s15 }
  0x17   : > { %646 = vmatpush1.bf16.msra.mxu0 %v12319_v6  ;;  %1339 = vmatpush1.bf16.msra.mxu1 %v12342_v17  ;;  %v12354_v29 = vld [vmem:[%s19412_s6 + $0x60] ss:$16 sps:$4 sm:$0xff]   ;;  %v12355_v31 = vld [vmem:[%s19412_s6 + $0x84] ss:$16 sps:$4 sm:$0xff]   ;;  %v12339_v35 = vld [vmem:[%s19412_s6 + $0x28] ss:$16 sps:$4 sm:$0xff]  }
  0x18   : > { %647 = vmatprep.subr.bf16.mxu0 %v12320_v7  ;;  %1340 = vmatprep.subr.bf16.mxu1 %v12343_v18  ;;  %v497_v32 = vld [vmem:[%s13674_s26 + $0x10] sm:$0xff]  ;;  %v12347_v37 = vld [vmem:[%s19412_s6 + $0x4c] ss:$16 sps:$4 sm:$0xff]   ;;  %v12345_v39 = vld [vmem:[%s19412_s6 + $0x48] ss:$16 sps:$4 sm:$0xff]   ;;  %s18747_s16 = scalar_lea.vmem %s19418_s12, %s12301_s25 }
  0x19   : > { %v12360_v34 = vld [vmem:[%s19412_s6 + $0x80] ss:$16 sps:$4 sm:$0xff]   ;;  %v12361_v36 = vld [vmem:[%s19412_s6 + $0xa4] ss:$16 sps:$4 sm:$0xff]   ;;  %v512_v38 = vpack.c.bf16 %v498_v33, %v497_v32  ;;  %v12353_v41 = vld [vmem:[%s19412_s6 + $0x6c] ss:$16 sps:$4 sm:$0xff]  }
  0x1a   : > { %v12366_v40 = vld [vmem:[%s19412_s6 + $0xa0] ss:$16 sps:$4 sm:$0xff]   ;;  %v12367_v42 = vld [vmem:[%s19412_s6 + $0xc4] ss:$16 sps:$4 sm:$0xff]   ;;  %v500_v44 = vld [vmem:[%s13674_s26 + $0x28] sm:$0xff] }
  0x1b   : > { %648 = vmatpush1.bf16.msra.mxu0 %v12322_v8  ;;  %1341 = vmatpush1.bf16.msra.mxu1 %v12348_v22  ;;  %v499_v43 = vld [vmem:[%s13674_s26 + $0x20] sm:$0xff]  ;;  %v12351_v46 = vld [vmem:[%s19412_s6 + $0x68] ss:$16 sps:$4 sm:$0xff]   ;;  %v12359_v48 = vld [vmem:[%s19412_s6 + $0x8c] ss:$16 sps:$4 sm:$0xff]  }
  0x1c   : > { %649 = vmatprep.subr.bf16.mxu0 %v12323_v9  ;;  %1342 = vmatprep.subr.bf16.mxu1 %v12349_v24  ;;  %v12372_v45 = vld [vmem:[%s19412_s6 + $0xc0] ss:$16 sps:$4 sm:$0xff]   ;;  %v12373_v47 = vld [vmem:[%s19412_s6 + $0xe4] ss:$16 sps:$4 sm:$0xff]   ;;  %v513_v49 = vpack.c.bf16 %v500_v44, %v499_v43  ;;  %v12357_v50 = vld [vmem:[%s19412_s6 + $0x88] ss:$16 sps:$4 sm:$0xff]  }
  0x1d   : > { %v12378_v51 = vld [vmem:[%s19412_s6 + $0xe0] ss:$16 sps:$4 sm:$0xff]   ;;  %v12365_v52 = vld [vmem:[%s19412_s6 + $0xac] ss:$16 sps:$4 sm:$0xff]   ;;  %v12379_v53 = vld [vmem:[%s19412_s6 + $0x104] ss:$16 sps:$4 sm:$0xff]  }
  0x1e   : > { %v501_v54 = vld [vmem:[%s13674_s26 + $0x30] sm:$0xff]  ;;  %v502_v55 = vld [vmem:[%s13674_s26 + $0x38] sm:$0xff]  ;;  %v503_v3 = vld [vmem:[%s13674_s26 + $0x40] sm:$0xff] }
  0x1f   : > { %650 = vmatpush1.bf16.msra.mxu0 %v12325_v10  ;;  %1343 = vmatpush1.bf16.msra.mxu1 %v12354_v29  ;;  %v12384_v56 = vld [vmem:[%s19412_s6 + $0x100] ss:$16 sps:$4 sm:$0xff]   ;;  %v12363_v57 = vld [vmem:[%s19412_s6 + $0xa8] ss:$16 sps:$4 sm:$0xff]   ;;  %v12385_v58 = vld [vmem:[%s19412_s6 + $0x124] ss:$16 sps:$4 sm:$0xff]   ;;  %v514_v62 = vpack.c.bf16 %v502_v55, %v501_v54 }
  0x20   : > { %651 = vmatprep.subr.bf16.mxu0 %v12326_v12  ;;  %1344 = vmatprep.subr.bf16.mxu1 %v12355_v31  ;;  %v12371_v59 = vld [vmem:[%s19412_s6 + $0xcc] ss:$16 sps:$4 sm:$0xff]   ;;  %v12390_v60 = vld [vmem:[%s19412_s6 + $0x120] ss:$16 sps:$4 sm:$0xff]   ;;  %v12369_v61 = vld [vmem:[%s19412_s6 + $0xc8] ss:$16 sps:$4 sm:$0xff]  }
  0x21   : > { %v12377_v63 = vld [vmem:[%s19412_s6 + $0xec] ss:$16 sps:$4 sm:$0xff]   ;;  %v12391_v0 = vld [vmem:[%s19412_s6 + $0x144] ss:$16 sps:$4 sm:$0xff]   ;;  %v12396_v1 = vld [vmem:[%s19412_s6 + $0x140] ss:$16 sps:$4 sm:$0xff]  }
  0x22   : > { %v504_v4 = vld [vmem:[%s13674_s26 + $0x48] sm:$0xff]  ;;  %v12397_v6 = vld [vmem:[%s19412_s6 + $0x164] ss:$16 sps:$4 sm:$0xff]   ;;  %v12402_v8 = vld [vmem:[%s19412_s6 + $0x160] ss:$16 sps:$4 sm:$0xff]  }
  0x23   : > { %652 = vmatpush1.bf16.msra.mxu0 %v12328_v16  ;;  %1345 = vmatpush1.bf16.msra.mxu1 %v12360_v34  ;;  %v12375_v5 = vld [vmem:[%s19412_s6 + $0xe8] ss:$16 sps:$4 sm:$0xff]   ;;  %v12383_v7 = vld [vmem:[%s19412_s6 + $0x10c] ss:$16 sps:$4 sm:$0xff]   ;;  %v515_v10 = vpack.c.bf16 %v504_v4, %v503_v3  ;;  %v12403_v12 = vld [vmem:[%s19412_s6 + $0x184] ss:$16 sps:$4 sm:$0xff]  }
  0x24   : > { %10607 = vmatprep.subr.msk.bf16.mxu0 %vm634_vm0, %v10606_v19  ;;  %1346 = vmatprep.subr.bf16.mxu1 %v12361_v36  ;;  %v12381_v9 = vld [vmem:[%s19412_s6 + $0x108] ss:$16 sps:$4 sm:$0xff]   ;;  %v12389_v11 = vld [vmem:[%s19412_s6 + $0x12c] ss:$16 sps:$4 sm:$0xff]   ;;  %v12408_v13 = vld [vmem:[%s19412_s6 + $0x180] ss:$16 sps:$4 sm:$0xff]  }
  0x25   : > { %v505_v14 = vld [vmem:[%s13674_s26 + $0x50] sm:$0xff]  ;;  %v506_v15 = vld [vmem:[%s13674_s26 + $0x58] sm:$0xff]  ;;  %v507_v21 = vld [vmem:[%s13674_s26 + $0x60] sm:$0xff] }
  0x26   : > { %v12387_v16 = vld [vmem:[%s19412_s6 + $0x128] ss:$16 sps:$4 sm:$0xff]   ;;  %v12395_v17 = vld [vmem:[%s19412_s6 + $0x14c] ss:$16 sps:$4 sm:$0xff]   ;;  %v516_v19 = vpack.c.bf16 %v506_v15, %v505_v14  ;;  %v12415_v33 = vld [vmem:[%s19412_s6 + $0x1c4] ss:$16 sps:$4 sm:$0xff]  }
  0x27   : > { %654 = vmatpush1.bf16.msra.mxu0 %v636_v25  ;;  %1347 = vmatpush1.bf16.msra.mxu1 %v12366_v40  ;;  %v12393_v18 = vld [vmem:[%s19412_s6 + $0x148] ss:$16 sps:$4 sm:$0xff]   ;;  %v12401_v20 = vld [vmem:[%s19412_s6 + $0x16c] ss:$16 sps:$4 sm:$0xff]   ;;  %v12420_v36 = vld [vmem:[%s19412_s6 + $0x1c0] ss:$16 sps:$4 sm:$0xff]  }
  0x28   : > { %1449 = vmatprep.subr.bf16.mxu0 %v12335_v26  ;;  %1348 = vmatprep.subr.bf16.mxu1 %v12367_v42  ;;  %v508_v22 = vld [vmem:[%s13674_s26 + $0x68] sm:$0xff]  ;;  %v12426_v40 = vld [vmem:[%s19412_s6 + $0x1e0] ss:$16 sps:$4 sm:$0xff]  }
  0x29   : > { %v12399_v23 = vld [vmem:[%s19412_s6 + $0x168] ss:$16 sps:$4 sm:$0xff]   ;;  %v12407_v24 = vld [vmem:[%s19412_s6 + $0x18c] ss:$16 sps:$4 sm:$0xff]   ;;  %v517_v26 = vpack.c.bf16 %v508_v22, %v507_v21  ;;  %v13898_v42 = vld [vmem:[%s19414_s8 + $0x20] sm:$0xff] }
  0x2a   : > { %10608 = vmatmul.mubr.msk.bf16.vlgmr.msra.gmra.mrb[0].mxu0 %vm609_vm1, %v511_v27  ;;  %v12405_v25 = vld [vmem:[%s19412_s6 + $0x188] ss:$16 sps:$4 sm:$0xff]   ;;  %v509_v27 = vld [vmem:[%s13674_s26 + $0x70] sm:$0xff]  ;;  %v12413_v31 = vld [vmem:[%s19412_s6 + $0x1ac] ss:$16 sps:$4 sm:$0xff]  }
  0x2b   : > { %683 = vmatprep.mubr.bf16.mxu0 %v13545_v2  ;;  %1450 = vmatpush1.bf16.msra.mxu0 %v12333_v28  ;;  %v510_v28 = vld [vmem:[%s13674_s26 + $0x78] sm:$0xff]  ;;  %v13903_v43 = vld [vmem:[%s19414_s8 + $0x8] sm:$0xff]  ;;  %v852_v3 = vld [vmem:[%s13936_s24 + $0x10] sm:$0xff]  ;;  %s11387_s26 = sshll.u32 %s19913_s15, 5 }
  0x2c   : > { %1451 = vmatprep.subr.bf16.mxu0 %v12341_v30  ;;  %1349 = vmatpush1.bf16.msra.mxu1 %v12372_v45  ;;  %v518_v29 = vpack.c.bf16 %v510_v28, %v509_v27  ;;  %v12409_v30 = vld [vmem:[%s19412_s6 + $0x1a4] ss:$16 sps:$4 sm:$0xff]   ;;  %v12411_v32 = vld [vmem:[%s19412_s6 + $0x1a8] ss:$16 sps:$4 sm:$0xff]   ;;  %v12419_v34 = vld [vmem:[%s19412_s6 + $0x1cc] ss:$16 sps:$4 sm:$0xff]   ;;  %s14799_s22 = scalar_lea.vmem %s19408_s2, %s11387_s26 }
  0x2d   : > { %1350 = vmatprep.subr.bf16.mxu1 %v12373_v47  ;;  %v855_v28 = vld [vmem:[%s13936_s24 + $0x28] sm:$0xff] }
  0x2f   : > { %1452 = vmatpush1.bf16.msra.mxu0 %v12339_v35  ;;  %v12417_v35 = vld [vmem:[%s19412_s6 + $0x1c8] ss:$16 sps:$4 sm:$0xff]  }
  0x30   : > { %1453 = vmatprep.subr.bf16.mxu0 %v12347_v37  ;;  %1351 = vmatpush1.bf16.msra.mxu1 %v12378_v51  ;;  %v12421_v37 = vld [vmem:[%s19412_s6 + $0x1e4] ss:$16 sps:$4 sm:$0xff]   ;;  %v532_v51 = vld [vmem:[%s19411_s5] sm:$0x3] }
  0x31   : > { %1352 = vmatprep.subr.bf16.mxu1 %v12379_v53 }
  0x32   : > { %10609 = vmatmul.mubr.msk.bf16.gmra.mrb[4].mxu0 %vm609_vm1, %v512_v38  ;;  %v12425_v38 = vld [vmem:[%s19412_s6 + $0x1ec] ss:$16 sps:$4 sm:$0xff]  }
  0x33   : > { %693 = vmatprep.mubr.bf16.mxu0 %v13545_v2  ;;  %1454 = vmatpush1.bf16.msra.mxu0 %v12345_v39  ;;  %v12423_v39 = vld [vmem:[%s19412_s6 + $0x1e8] ss:$16 sps:$4 sm:$0xff]  }
  0x34   : > { %1455 = vmatprep.subr.bf16.mxu0 %v12353_v41  ;;  %1353 = vmatpush1.bf16.msra.mxu1 %v12384_v56  ;;  %v13893_v41 = vld [vmem:[%s19414_s8] sm:$0xff] }
  0x35   : > { %1354 = vmatprep.subr.bf16.mxu1 %v12385_v58  ;;  %v10680_v44 = vcombine.low %v13893_v41, %v13898_v42  ;;  %v10681_v45 = vcombine.high %v13893_v41, %v13898_v42 }
  0x37   : > { %1456 = vmatpush1.bf16.msra.mxu0 %v12351_v46  ;;  %v13912_v46 = vld [vmem:[%s19414_s8 + $0x28] sm:$0xff] }
  0x38   : > { %1457 = vmatprep.subr.bf16.mxu0 %v12359_v48  ;;  %1355 = vmatpush1.bf16.msra.mxu1 %v12390_v60  ;;  %v10682_v47 = vcombine.low %v13903_v43, %v13912_v46  ;;  %v10683_v48 = vcombine.high %v13903_v43, %v13912_v46  ;;  %v14040_v46 = vld [vmem:[%s19414_s8 + $0xe8] sm:$0xff] }
  0x39   : > { %1356 = vmatprep.subr.bf16.mxu1 %v12391_v0 }
  0x3a   : > { %10610 = vmatmul.mubr.msk.bf16.gmra.mrb[8].mxu0 %vm609_vm1, %v513_v49  ;;  %v534_v49 = vlaneseq }
  0x3b   : > { %703 = vmatprep.mubr.bf16.mxu0 %v13545_v2  ;;  %1458 = vmatpush1.bf16.msra.mxu0 %v12357_v50 }
  0x3c   : > { %1459 = vmatprep.subr.bf16.mxu0 %v12365_v52  ;;  %1357 = vmatpush1.bf16.msra.mxu1 %v12396_v1  ;;  %v13918_v50 = vshrl.u32 %v534_v49, 7 }
  0x3d   : > { %1358 = vmatprep.subr.bf16.mxu1 %v12397_v6  ;;  %v853_v6 = vld [vmem:[%s13936_s24 + $0x18] sm:$0xff] }
  0x3e   : > { %19619 = vst [vmem:[#allocation2_spill] sm:$0xff] %v13918_v50  ;;  %v13924_v52 = vsub.s32 0, %v13918_v50  ;;  %v13927_v53 = vsub.s32 1, %v13918_v50 }
  0x3f   : > { %1460 = vmatpush1.bf16.msra.mxu0 %v12363_v57 }
  0x40   : > { %1461 = vmatprep.subr.bf16.mxu0 %v12371_v59  ;;  %1359 = vmatpush1.bf16.msra.mxu1 %v12402_v8  ;;  %19620 = vst [vmem:[#allocation3_spill] sm:$0xff] %v13924_v52  ;;  %19621 = vst [vmem:[#allocation4_spill] sm:$0xff] %v13927_v53  ;;  %v13931_v54 = vrot.slane %v532_v51, %v13924_v52  ;;  %v13939_v55 = vrot.slane %v532_v51, %v13927_v53  ;;  %v850_v59 = vld [vmem:[%s13936_s24] sm:$0xff] }
  0x41   : > { %1360 = vmatprep.subr.bf16.mxu1 %v12403_v12 }
  0x42   : > { %10611 = vmatmul.mubr.msk.bf16.gmra.mrb[12].mxu0 %vm609_vm1, %v514_v62  ;;  %v851_v62 = vld [vmem:[%s13936_s24 + $0x8] sm:$0xff] }
  0x43   : > { %713 = vmatprep.mubr.bf16.mxu0 %v13545_v2  ;;  %1462 = vmatpush1.bf16.msra.mxu0 %v12369_v61 }
  0x44   : > { %1463 = vmatprep.subr.bf16.mxu0 %v12377_v63  ;;  %1361 = vmatpush1.bf16.msra.mxu1 %v12408_v13 }
  0x45   : > { %1362 = vmatprep.subr.bf16.mxu1 %v12409_v30 }
  0x47   : > { %1464 = vmatpush1.bf16.msra.mxu0 %v12375_v5 }
  0x48   : > { %1465 = vmatprep.subr.bf16.mxu0 %v12383_v7 }
  0x4a   : > { %10612 = vmatmul.mubr.msk.bf16.gmra.mrb[16].mxu0 %vm609_vm1, %v515_v10  ;;  %v13957_v10 = vld [vmem:[%s19414_s8 + $0x60] sm:$0xff] }
  0x4b   : > { %723 = vmatprep.mubr.bf16.mxu0 %v13545_v2  ;;  %1466 = vmatpush1.bf16.msra.mxu0 %v12381_v9  ;;  %v13952_v9 = vld [vmem:[%s19414_s8 + $0x40] sm:$0xff] }
  0x4c   : > { %1467 = vmatprep.subr.bf16.mxu0 %v12389_v11  ;;  %v10689_v30 = vcombine.high %v13952_v9, %v13957_v10 }
  0x4f   : > { %1468 = vmatpush1.bf16.msra.mxu0 %v12387_v16  ;;  %v13962_v16 = vld [vmem:[%s19414_s8 + $0x48] sm:$0xff] }
  0x50   : > { %1469 = vmatprep.subr.bf16.mxu0 %v12395_v17  ;;  %v13967_v17 = vld [vmem:[%s19414_s8 + $0x68] sm:$0xff] }
  0x52   : > { %10613 = vmatmul.mubr.msk.bf16.gmra.mrb[20].mxu0 %vm609_vm1, %v516_v19 }
  0x53   : > { %733 = vmatprep.mubr.bf16.mxu0 %v13545_v2  ;;  %1470 = vmatpush1.bf16.msra.mxu0 %v12393_v18 }
  0x54   : > { %1471 = vmatprep.subr.bf16.mxu0 %v12401_v20 }
  0x57   : > { %1472 = vmatpush1.bf16.msra.mxu0 %v12399_v23 }
  0x58   : > { %1473 = vmatprep.subr.bf16.mxu0 %v12407_v24  ;;  %v854_v24 = vld [vmem:[%s13936_s24 + $0x20] sm:$0xff] }
  0x5a   : > { %10614 = vmatmul.mubr.msk.bf16.gmra.mrb[24].mxu0 %vm609_vm1, %v517_v26 }
  0x5b   : > { %743 = vmatprep.mubr.bf16.mxu0 %v13545_v2  ;;  %1474 = vmatpush1.bf16.msra.mxu0 %v12405_v25  ;;  %v12414_v2 = vld [vmem:[%s19412_s6 + $0x1a0] ss:$16 sps:$4 sm:$0xff]  }
  0x5c   : > { %1475 = vmatprep.subr.bf16.mxu0 %v12413_v31  ;;  %1363 = vmatpush1.bf16.msra.mxu1 %v12414_v2  ;;  %v13980_v31 = vld [vmem:[%s19414_s8 + $0x80] sm:$0xff] }
  0x5d   : > { %1364 = vmatprep.subr.bf16.mxu1 %v12415_v33 }
  0x5f   : > { %1476 = vmatpush1.bf16.msra.mxu0 %v12411_v32  ;;  %v13985_v32 = vld [vmem:[%s19414_s8 + $0xa0] sm:$0xff] }
  0x60   : > { %1477 = vmatprep.subr.bf16.mxu0 %v12419_v34  ;;  %1365 = vmatpush1.bf16.msra.mxu1 %v12420_v36  ;;  %v856_v36 = vld [vmem:[%s13936_s24 + $0x30] sm:$0xff]  ;;  %v10696_v42 = vcombine.low %v13980_v31, %v13985_v32 }
  0x61   : > { %1366 = vmatprep.subr.bf16.mxu1 %v12421_v37  ;;  %v13992_v37 = vld [vmem:[%s19414_s8 + $0x88] sm:$0xff] }
  0x62   : > { %10615 = vmatmul.mubr.msk.bf16.gmra.mrb[28].mxu0 %vm609_vm1, %v518_v29  ;;  %v10688_v29 = vcombine.low %v13952_v9, %v13957_v10 }
  0x63   : > { %1478 = vmatpush1.bf16.msra.mxu0 %v12417_v35 }
  0x64   : > { %1479 = vmatprep.subr.bf16.mxu0 %v12425_v38  ;;  %1367 = vmatpush1.bf16.msra.mxu1 %v12426_v40  ;;  %v13997_v38 = vld [vmem:[%s19414_s8 + $0xa8] sm:$0xff] }
  0x65   : > { %3492 = vmatprep.subr.bf16.mxu1 %v10681_v45  ;;  %v857_v45 = vld [vmem:[%s13936_s24 + $0x38] sm:$0xff]  ;;  %v10698_v43 = vcombine.low %v13992_v37, %v13997_v38 }
  0x67   : > { %1480 = vmatpush1.bf16.msra.mxu0 %v12423_v39 }
  0x68   : > { %3718 = vmatprep.subr.bf16.mxu0 %v10683_v48  ;;  %v10691_v48 = vcombine.high %v13962_v16, %v13967_v17 }
  0xfd   : > { %v675_v56 = vpop.f32.mrb[0].mxu0 }
  0xfe   : > { %v676_v57 = vadd.f32 %v675_v56, %v13931_v54  ;;  %v677_v58 = vpop.f32.mrb[1].mxu0  ;;  %v10690_v56 = vcombine.low %v13962_v16, %v13967_v17  ;;  %v858_v16 = vld [vmem:[%s13936_s24 + $0x40] sm:$0xff] }
  0xff   : > { %v678_v60 = vadd.f32 %v677_v58, %v13939_v55  ;;  %v679_v61 = vpop.f32.mrb[2].mxu0  ;;  %v14014_v58 = vld [vmem:[%s19414_s8 + $0xe0] sm:$0xff] }
 0x100   : > { %vm754_vm2 = vcmp.ge.f32.partialorder %v676_v57, 0.0  ;;  %v786_v63 = vmul.f32 0.2, %v676_v57  ;;  %v680_v0 = vadd.f32 %v679_v61, %v13931_v54  ;;  %v681_v1 = vpop.f32.mrb[3].mxu0 }
 0x101   : > { %v787_v4 = vmul.f32 0.2, %v678_v60  ;;  %v682_v5 = vadd.f32 %v681_v1, %v13939_v55  ;;  %vm755_vm3 = vcmp.ge.f32.partialorder %v678_v60, 0.0 }
 0x102   : > { %vm756_vm4 = vcmp.ge.f32.partialorder %v680_v0, 0.0  ;;  %v788_v7 = vmul.f32 0.2, %v680_v0  ;;  %v818_v8 = vsel %vm754_vm2, %v676_v57, %v786_v63  ;;  %v14009_v57 = vld [vmem:[%s19414_s8 + $0xc0] sm:$0xff] }
 0x103   : > { %v789_v11 = vmul.f32 0.2, %v682_v5  ;;  %vm757_vm5 = vcmp.ge.f32.partialorder %v682_v5, 0.0  ;;  %v819_v12 = vsel %vm755_vm3, %v678_v60, %v787_v4  ;;  %v882_v13 = vmul.f32 %v850_v59, %v818_v8 }
 0x104   : > { %v883_v14 = vmul.f32 %v851_v62, %v819_v12  ;;  %v820_v15 = vsel %vm756_vm4, %v680_v0, %v788_v7  ;;  %v10697_v0 = vcombine.high %v13980_v31, %v13985_v32  ;;  %v10704_v10 = vcombine.low %v14009_v57, %v14014_v58  ;;  %v861_v31 = vld [vmem:[%s13936_s24 + $0x58] sm:$0xff] }
 0x105   : > { %v685_v18 = vpop.f32.mrb[4].mxu0  ;;  %v821_v19 = vsel %vm757_vm5, %v682_v5, %v789_v11  ;;  %v884_v20 = vmul.f32 %v852_v3, %v820_v15  ;;  %v10699_v5 = vcombine.high %v13992_v37, %v13997_v38  ;;  %v10705_v11 = vcombine.high %v14009_v57, %v14014_v58  ;;  %v14131_v57 = vld [vmem:[%s19414_s8 + $0x1a0] sm:$0xff] }
 0x106   : > { %v686_v21 = vadd.f32 %v685_v18, %v13931_v54  ;;  %v687_v22 = vpop.f32.mrb[5].mxu0  ;;  %v885_v23 = vmul.f32 %v853_v6, %v821_v19  ;;  %v859_v19 = vld [vmem:[%s13936_s24 + $0x48] sm:$0xff] }
 0x107   : > { %v688_v25 = vadd.f32 %v687_v22, %v13939_v55  ;;  %v689_v26 = vpop.f32.mrb[6].mxu0  ;;  %v914_v27 = vpack.c.bf16 %v884_v20, %v882_v13  ;;  %v14061_v22 = vld [vmem:[%s19414_s8 + $0x120] sm:$0xff] }
 0x108   : > { %vm758_vm6 = vcmp.ge.f32.partialorder %v686_v21, 0.0  ;;  %v790_v2 = vmul.f32 0.2, %v686_v21  ;;  %v690_v33 = vadd.f32 %v689_v26, %v13931_v54  ;;  %v691_v34 = vpop.f32.mrb[7].mxu0  ;;  %v915_v35 = vpack.c.bf16 %v885_v23, %v883_v14 }
 0x109   : > { %vm759_vm7 = vcmp.ge.f32.partialorder %v688_v25, 0.0  ;;  %v791_v39 = vmul.f32 0.2, %v688_v25  ;;  %v692_v40 = vadd.f32 %v691_v34, %v13939_v55 }
 0x10a   : > { %vm760_vm8 = vcmp.ge.f32.partialorder %v690_v33, 0.0  ;;  %v792_v49 = vmul.f32 0.2, %v690_v33  ;;  %1368 = vmatprep.mubr.bf16.mxu1 %v915_v35  ;;  %1481 = vmatprep.mubr.bf16.mxu0 %v915_v35  ;;  %v822_v51 = vsel %vm758_vm6, %v686_v21, %v790_v2  ;;  %v14056_v21 = vld [vmem:[%s19414_s8 + $0x100] sm:$0xff] }
 0x10b   : > { %vm761_vm9 = vcmp.ge.f32.partialorder %v692_v40, 0.0  ;;  %v793_v59 = vmul.f32 0.2, %v692_v40  ;;  %1369 = vmatmul.mubr.bf16.vlgmr.msra.gmra.mrb[0].mxu1 %v914_v27  ;;  %1482 = vmatmul.mubr.bf16.vlgmr.msra.gmra.mrb[32].mxu0 %v914_v27  ;;  %v823_v60 = vsel %vm759_vm7, %v688_v25, %v791_v39  ;;  %v886_v61 = vmul.f32 %v854_v24, %v822_v51  ;;  %v860_v25 = vld [vmem:[%s13936_s24 + $0x50] sm:$0xff]  ;;  %v14070_v27 = vld [vmem:[%s19414_s8 + $0x108] sm:$0xff]  ;;  %v14085_v35 = vld [vmem:[%s19414_s8 + $0x140] sm:$0xff] }
 0x10c   : > { %v887_v62 = vmul.f32 %v855_v28, %v823_v60  ;;  %v824_v63 = vsel %vm760_vm8, %v690_v33, %v792_v49  ;;  %3493 = vmatpush1.bf16.msra.mxu1 %v10680_v44  ;;  %3719 = vmatpush1.bf16.msra.mxu0 %v10682_v47  ;;  %v14035_v44 = vld [vmem:[%s19414_s8 + $0xc8] sm:$0xff]  ;;  %v10713_v34 = vcombine.high %v14056_v21, %v14061_v22 }
 0x10d   : > { %v695_v1 = vpop.f32.mrb[8].mxu0  ;;  %v825_v3 = vsel %vm761_vm9, %v692_v40, %v793_v59  ;;  %v888_v4 = vmul.f32 %v856_v36, %v824_v63  ;;  %3494 = vmatprep.subr.bf16.mxu1 %v10689_v30  ;;  %3720 = vmatprep.subr.bf16.mxu0 %v10691_v48  ;;  %v10707_v20 = vcombine.high %v14035_v44, %v14040_v46  ;;  %v14075_v28 = vld [vmem:[%s19414_s8 + $0x128] sm:$0xff]  ;;  %v14090_v36 = vld [vmem:[%s19414_s8 + $0x160] sm:$0xff] }
 0x10e   : > { %v696_v6 = vadd.f32 %v695_v1, %v13931_v54  ;;  %v697_v7 = vpop.f32.mrb[9].mxu0  ;;  %v889_v41 = vmul.f32 %v857_v45, %v825_v3  ;;  %v10706_v26 = vcombine.low %v14035_v44, %v14040_v46  ;;  %v10715_v40 = vcombine.high %v14070_v27, %v14075_v28  ;;  %v14102_v59 = vld [vmem:[%s19414_s8 + $0x148] sm:$0xff]  ;;  %v14126_v46 = vld [vmem:[%s19414_s8 + $0x180] sm:$0xff] }
 0x10f   : > { %v698_v47 = vadd.f32 %v697_v7, %v13939_v55  ;;  %v699_v8 = vpop.f32.mrb[10].mxu0  ;;  %v916_v9 = vpack.c.bf16 %v888_v4, %v886_v61  ;;  %v10712_v51 = vcombine.low %v14056_v21, %v14061_v22  ;;  %v14107_v60 = vld [vmem:[%s19414_s8 + $0x168] sm:$0xff]  ;;  %v10721_v1 = vcombine.high %v14085_v35, %v14090_v36  ;;  %v862_v7 = vld [vmem:[%s13936_s24 + $0x60] sm:$0xff] }
 0x110   : > { %vm762_vm10 = vcmp.ge.f32.partialorder %v696_v6, 0.0  ;;  %v794_v12 = vmul.f32 0.2, %v696_v6  ;;  %v700_v13 = vadd.f32 %v699_v8, %v13931_v54  ;;  %v701_v14 = vpop.f32.mrb[11].mxu0  ;;  %v917_v15 = vpack.c.bf16 %v889_v41, %v887_v62  ;;  %3495 = vmatpush1.bf16.msra.mxu1 %v10688_v29  ;;  %3721 = vmatpush1.bf16.msra.mxu0 %v10690_v56  ;;  %v864_v8 = vld [vmem:[%s13936_s24 + $0x70] sm:$0xff] }
 0x111   : > { %vm763_vm11 = vcmp.ge.f32.partialorder %v698_v47, 0.0  ;;  %v795_v17 = vmul.f32 0.2, %v698_v47  ;;  %v702_v18 = vadd.f32 %v701_v14, %v13939_v55  ;;  %3496 = vmatprep.subr.bf16.mxu1 %v10697_v0  ;;  %3722 = vmatprep.subr.bf16.mxu0 %v10699_v5  ;;  %v10714_v56 = vcombine.low %v14070_v27, %v14075_v28  ;;  %v865_v14 = vld [vmem:[%s13936_s24 + $0x78] sm:$0xff] }
 0x112   : > { %vm764_vm12 = vcmp.ge.f32.partialorder %v700_v13, 0.0  ;;  %v796_v23 = vmul.f32 0.2, %v700_v13  ;;  %1378 = vmatprep.mubr.bf16.mxu1 %v917_v15  ;;  %1491 = vmatprep.mubr.bf16.mxu0 %v917_v15  ;;  %v826_v24 = vsel %vm762_vm10, %v696_v6, %v794_v12  ;;  %v10720_v0 = vcombine.low %v14085_v35, %v14090_v36  ;;  %v14201_v35 = vld [vmem:[%s19414_s8 + $0x220] sm:$0xff] }
 0x113   : > { %vm765_vm13 = vcmp.ge.f32.partialorder %v702_v18, 0.0  ;;  %v797_v29 = vmul.f32 0.2, %v702_v18  ;;  %1379 = vmatmul.mubr.bf16.gmra.mrb[4].mxu1 %v916_v9  ;;  %1492 = vmatmul.mubr.bf16.gmra.mrb[36].mxu0 %v916_v9  ;;  %v827_v30 = vsel %vm763_vm11, %v698_v47, %v795_v17  ;;  %v890_v32 = vmul.f32 %v858_v16, %v826_v24 }
 0x114   : > { %v891_v2 = vmul.f32 %v859_v19, %v827_v30  ;;  %v828_v33 = vsel %vm764_vm12, %v700_v13, %v796_v23  ;;  %3497 = vmatpush1.bf16.msra.mxu1 %v10696_v42  ;;  %3723 = vmatpush1.bf16.msra.mxu0 %v10698_v43  ;;  %v863_v43 = vld [vmem:[%s13936_s24 + $0x68] sm:$0xff]  ;;  %v10723_v44 = vcombine.high %v14102_v59, %v14107_v60  ;;  %v14155_v19 = vld [vmem:[%s19414_s8 + $0x1c0] sm:$0xff] }
 0x115   : > { %v705_v37 = vpop.f32.mrb[12].mxu0  ;;  %v829_v38 = vsel %vm765_vm13, %v702_v18, %v797_v29  ;;  %v892_v39 = vmul.f32 %v860_v25, %v828_v33  ;;  %3498 = vmatprep.subr.bf16.mxu1 %v10705_v11  ;;  %3724 = vmatprep.subr.bf16.mxu0 %v10707_v20  ;;  %v10722_v9 = vcombine.low %v14102_v59, %v14107_v60  ;;  %v14145_v11 = vld [vmem:[%s19414_s8 + $0x1a8] sm:$0xff]  ;;  %v14160_v20 = vld [vmem:[%s19414_s8 + $0x1e0] sm:$0xff] }
 0x116   : > { %v706_v45 = vadd.f32 %v705_v37, %v13931_v54  ;;  %v707_v48 = vpop.f32.mrb[13].mxu0  ;;  %v893_v49 = vmul.f32 %v861_v31, %v829_v38  ;;  %v10729_v18 = vcombine.high %v14126_v46, %v14131_v57  ;;  %v10728_v28 = vcombine.low %v14126_v46, %v14131_v57  ;;  %v14172_v30 = vld [vmem:[%s19414_s8 + $0x1c8] sm:$0xff]  ;;  %v14196_v60 = vld [vmem:[%s19414_s8 + $0x200] sm:$0xff] }
 0x117   : > { %v708_v61 = vadd.f32 %v707_v48, %v13939_v55  ;;  %v709_v62 = vpop.f32.mrb[14].mxu0  ;;  %v918_v63 = vpack.c.bf16 %v892_v39, %v890_v32  ;;  %v14177_v31 = vld [vmem:[%s19414_s8 + $0x1e8] sm:$0xff]  ;;  %v10737_v37 = vcombine.high %v14155_v19, %v14160_v20  ;;  %v866_v48 = vld [vmem:[%s13936_s24 + $0x80] sm:$0xff] }
 0x118   : > { %vm766_vm14 = vcmp.ge.f32.partialorder %v706_v45, 0.0  ;;  %v798_v3 = vmul.f32 0.2, %v706_v45  ;;  %v710_v4 = vadd.f32 %v709_v62, %v13931_v54  ;;  %v711_v5 = vpop.f32.mrb[15].mxu0  ;;  %v919_v6 = vpack.c.bf16 %v893_v49, %v891_v2  ;;  %3499 = vmatpush1.bf16.msra.mxu1 %v10704_v10  ;;  %3725 = vmatpush1.bf16.msra.mxu0 %v10706_v26  ;;  %v14140_v10 = vld [vmem:[%s19414_s8 + $0x188] sm:$0xff]  ;;  %v868_v62 = vld [vmem:[%s13936_s24 + $0x90] sm:$0xff] }
 0x119   : > { %vm767_vm15 = vcmp.ge.f32.partialorder %v708_v61, 0.0  ;;  %v799_v41 = vmul.f32 0.2, %v708_v61  ;;  %v712_v42 = vadd.f32 %v711_v5, %v13939_v55  ;;  %3500 = vmatprep.subr.bf16.mxu1 %v10713_v34  ;;  %3726 = vmatprep.subr.bf16.mxu0 %v10715_v40  ;;  %v10731_v24 = vcombine.high %v14140_v10, %v14145_v11  ;;  %v869_v5 = vld [vmem:[%s13936_s24 + $0x98] sm:$0xff] }
 0x11a   : > { %vm768_vm0 = vcmp.ge.f32.partialorder %v710_v4, 0.0  ;;  %v800_v58 = vmul.f32 0.2, %v710_v4  ;;  %1388 = vmatprep.mubr.bf16.mxu1 %v919_v6  ;;  %1501 = vmatprep.mubr.bf16.mxu0 %v919_v6  ;;  %v830_v47 = vsel %vm766_vm14, %v706_v45, %v798_v3  ;;  %v10730_v29 = vcombine.low %v14140_v10, %v14145_v11 }
 0x11b   : > { %vm769_vm1 = vcmp.ge.f32.partialorder %v712_v42, 0.0  ;;  %v801_v12 = vmul.f32 0.2, %v712_v42  ;;  %1389 = vmatmul.mubr.bf16.gmra.mrb[8].mxu1 %v918_v63  ;;  %1502 = vmatmul.mubr.bf16.gmra.mrb[40].mxu0 %v918_v63  ;;  %v831_v13 = vsel %vm767_vm15, %v708_v61, %v799_v41  ;;  %v894_v15 = vmul.f32 %v862_v7, %v830_v47 }
 0x11c   : > { %v895_v16 = vmul.f32 %v863_v43, %v831_v13  ;;  %v832_v17 = vsel %vm768_vm0, %v710_v4, %v800_v58  ;;  %3501 = vmatpush1.bf16.msra.mxu1 %v10712_v51  ;;  %3727 = vmatpush1.bf16.msra.mxu0 %v10714_v56  ;;  %v10736_v34 = vcombine.low %v14155_v19, %v14160_v20  ;;  %v867_v56 = vld [vmem:[%s13936_s24 + $0x88] sm:$0xff]  ;;  %v14225_v43 = vld [vmem:[%s19414_s8 + $0x240] sm:$0xff] }
 0x11d   : > { %v715_v21 = vpop.f32.mrb[16].mxu0  ;;  %v833_v22 = vsel %vm769_vm1, %v712_v42, %v801_v12  ;;  %v896_v23 = vmul.f32 %v864_v8, %v832_v17  ;;  %3502 = vmatprep.subr.bf16.mxu1 %v10721_v1  ;;  %3728 = vmatprep.subr.bf16.mxu0 %v10723_v44  ;;  %v10739_v59 = vcombine.high %v14172_v30, %v14177_v31  ;;  %v14215_v1 = vld [vmem:[%s19414_s8 + $0x228] sm:$0xff]  ;;  %v14230_v44 = vld [vmem:[%s19414_s8 + $0x260] sm:$0xff] }
 0x11e   : > { %v716_v25 = vadd.f32 %v715_v21, %v13931_v54  ;;  %v717_v26 = vpop.f32.mrb[17].mxu0  ;;  %v897_v27 = vmul.f32 %v865_v14, %v833_v22  ;;  %v10738_v63 = vcombine.low %v14172_v30, %v14177_v31  ;;  %v10745_v42 = vcombine.high %v14196_v60, %v14201_v35  ;;  %v14242_v13 = vld [vmem:[%s19414_s8 + $0x248] sm:$0xff]  ;;  %v14266_v31 = vld [vmem:[%s19414_s8 + $0x280] sm:$0xff] }
 0x11f   : > { %v718_v32 = vadd.f32 %v717_v26, %v13939_v55  ;;  %v719_v2 = vpop.f32.mrb[18].mxu0  ;;  %v920_v33 = vpack.c.bf16 %v896_v23, %v894_v15  ;;  %v10744_v11 = vcombine.low %v14196_v60, %v14201_v35  ;;  %v14247_v14 = vld [vmem:[%s19414_s8 + $0x268] sm:$0xff]  ;;  %v10753_v21 = vcombine.high %v14225_v43, %v14230_v44  ;;  %v870_v26 = vld [vmem:[%s13936_s24 + $0xa0] sm:$0xff] }
 0x120   : > { %vm770_vm2 = vcmp.ge.f32.partialorder %v716_v25, 0.0  ;;  %v802_v38 = vmul.f32 0.2, %v716_v25  ;;  %v720_v39 = vadd.f32 %v719_v2, %v13931_v54  ;;  %v721_v40 = vpop.f32.mrb[19].mxu0  ;;  %v921_v45 = vpack.c.bf16 %v897_v27, %v895_v16  ;;  %3503 = vmatpush1.bf16.msra.mxu1 %v10720_v0  ;;  %3729 = vmatpush1.bf16.msra.mxu0 %v10722_v9  ;;  %v14210_v0 = vld [vmem:[%s19414_s8 + $0x208] sm:$0xff]  ;;  %v14271_v19 = vld [vmem:[%s19414_s8 + $0x2a0] sm:$0xff] }
 0x121   : > { %vm771_vm3 = vcmp.ge.f32.partialorder %v718_v32, 0.0  ;;  %v803_v49 = vmul.f32 0.2, %v718_v32  ;;  %v722_v51 = vadd.f32 %v721_v40, %v13939_v55  ;;  %3504 = vmatprep.subr.bf16.mxu1 %v10729_v18  ;;  %3730 = vmatprep.subr.bf16.mxu0 %v10731_v24  ;;  %v10747_v47 = vcombine.high %v14210_v0, %v14215_v1  ;;  %v872_v2 = vld [vmem:[%s13936_s24 + $0xb0] sm:$0xff]  ;;  %v873_v40 = vld [vmem:[%s13936_s24 + $0xb8] sm:$0xff] }
 0x122   : > { %vm772_vm4 = vcmp.ge.f32.partialorder %v720_v39, 0.0  ;;  %v804_v36 = vmul.f32 0.2, %v720_v39  ;;  %1398 = vmatprep.mubr.bf16.mxu1 %v921_v45  ;;  %1511 = vmatprep.mubr.bf16.mxu0 %v921_v45  ;;  %v834_v61 = vsel %vm770_vm2, %v716_v25, %v802_v38  ;;  %v10746_v12 = vcombine.low %v14210_v0, %v14215_v1 }
 0x123   : > { %vm773_vm5 = vcmp.ge.f32.partialorder %v722_v51, 0.0  ;;  %v805_v3 = vmul.f32 0.2, %v722_v51  ;;  %1399 = vmatmul.mubr.bf16.gmra.mrb[12].mxu1 %v920_v33  ;;  %1512 = vmatmul.mubr.bf16.gmra.mrb[44].mxu0 %v920_v33  ;;  %v835_v4 = vsel %vm771_vm3, %v718_v32, %v803_v49  ;;  %v898_v6 = vmul.f32 %v866_v48, %v834_v61 }
 0x124   : > { %v899_v7 = vmul.f32 %v867_v56, %v835_v4  ;;  %v836_v41 = vsel %vm772_vm4, %v720_v39, %v804_v36  ;;  %3505 = vmatpush1.bf16.msra.mxu1 %v10728_v28  ;;  %3731 = vmatpush1.bf16.msra.mxu0 %v10730_v29  ;;  %v10752_v18 = vcombine.low %v14225_v43, %v14230_v44  ;;  %v871_v29 = vld [vmem:[%s13936_s24 + $0xa8] sm:$0xff]  ;;  %v14295_v56 = vld [vmem:[%s19414_s8 + $0x2c0] sm:$0xff] }
 0x125   : > { %v725_v46 = vpop.f32.mrb[20].mxu0  ;;  %v837_v57 = vsel %vm773_vm5, %v722_v51, %v805_v3  ;;  %v900_v58 = vmul.f32 %v868_v62, %v836_v41  ;;  %3506 = vmatprep.subr.bf16.mxu1 %v10737_v37  ;;  %3732 = vmatprep.subr.bf16.mxu0 %v10739_v59  ;;  %v10755_v30 = vcombine.high %v14242_v13, %v14247_v14  ;;  %v14285_v37 = vld [vmem:[%s19414_s8 + $0x2a8] sm:$0xff]  ;;  %v14300_v59 = vld [vmem:[%s19414_s8 + $0x2e0] sm:$0xff] }
 0x126   : > { %v726_v8 = vadd.f32 %v725_v46, %v13931_v54  ;;  %v727_v9 = vpop.f32.mrb[21].mxu0  ;;  %v901_v10 = vmul.f32 %v869_v5, %v837_v57  ;;  %v10754_v33 = vcombine.low %v14242_v13, %v14247_v14  ;;  %v10761_v51 = vcombine.high %v14266_v31, %v14271_v19  ;;  %v14312_v4 = vld [vmem:[%s19414_s8 + $0x2c8] sm:$0xff]  ;;  %v14336_v14 = vld [vmem:[%s19414_s8 + $0x300] sm:$0xff] }
 0x127   : > { %v728_v15 = vadd.f32 %v727_v9, %v13939_v55  ;;  %v729_v16 = vpop.f32.mrb[22].mxu0  ;;  %v922_v17 = vpack.c.bf16 %v900_v58, %v898_v6  ;;  %v10760_v1 = vcombine.low %v14266_v31, %v14271_v19  ;;  %v14317_v5 = vld [vmem:[%s19414_s8 + $0x2e8] sm:$0xff]  ;;  %v10769_v46 = vcombine.high %v14295_v56, %v14300_v59  ;;  %v874_v9 = vld [vmem:[%s13936_s24 + $0xc0] sm:$0xff] }
 0x128   : > { %vm774_vm6 = vcmp.ge.f32.partialorder %v726_v8, 0.0  ;;  %v806_v22 = vmul.f32 0.2, %v726_v8  ;;  %v730_v23 = vadd.f32 %v729_v16, %v13931_v54  ;;  %v731_v24 = vpop.f32.mrb[23].mxu0  ;;  %v923_v25 = vpack.c.bf16 %v901_v10, %v899_v7  ;;  %3507 = vmatpush1.bf16.msra.mxu1 %v10736_v34  ;;  %3733 = vmatpush1.bf16.msra.mxu0 %v10738_v63  ;;  %v14280_v34 = vld [vmem:[%s19414_s8 + $0x288] sm:$0xff]  ;;  %v14341_v43 = vld [vmem:[%s19414_s8 + $0x320] sm:$0xff] }
 0x129   : > { %vm775_vm7 = vcmp.ge.f32.partialorder %v728_v15, 0.0  ;;  %v807_v27 = vmul.f32 0.2, %v728_v15  ;;  %v732_v28 = vadd.f32 %v731_v24, %v13939_v55  ;;  %3508 = vmatprep.subr.bf16.mxu1 %v10745_v42  ;;  %3734 = vmatprep.subr.bf16.mxu0 %v10747_v47  ;;  %v10763_v61 = vcombine.high %v14280_v34, %v14285_v37  ;;  %v876_v16 = vld [vmem:[%s13936_s24 + $0xd0] sm:$0xff]  ;;  %v877_v24 = vld [vmem:[%s13936_s24 + $0xd8] sm:$0xff] }
 0x12a   : > { %vm776_vm8 = vcmp.ge.f32.partialorder %v730_v23, 0.0  ;;  %v808_v20 = vmul.f32 0.2, %v730_v23  ;;  %1408 = vmatprep.mubr.bf16.mxu1 %v923_v25  ;;  %1521 = vmatprep.mubr.bf16.mxu0 %v923_v25  ;;  %v838_v32 = vsel %vm774_vm6, %v726_v8, %v806_v22  ;;  %v10762_v3 = vcombine.low %v14280_v34, %v14285_v37 }
 0x12b   : > { %vm777_vm9 = vcmp.ge.f32.partialorder %v732_v28, 0.0  ;;  %v809_v38 = vmul.f32 0.2, %v732_v28  ;;  %1409 = vmatmul.mubr.bf16.gmra.mrb[16].mxu1 %v922_v17  ;;  %1522 = vmatmul.mubr.bf16.gmra.mrb[48].mxu0 %v922_v17  ;;  %v839_v39 = vsel %vm775_vm7, %v728_v15, %v807_v27  ;;  %v902_v45 = vmul.f32 %v870_v26, %v838_v32 }
 0x12c   : > { %v903_v48 = vmul.f32 %v871_v29, %v839_v39  ;;  %v840_v49 = vsel %vm776_vm8, %v730_v23, %v808_v20  ;;  %3509 = vmatpush1.bf16.msra.mxu1 %v10744_v11  ;;  %3735 = vmatpush1.bf16.msra.mxu0 %v10746_v12  ;;  %v10768_v42 = vcombine.low %v14295_v56, %v14300_v59  ;;  %v875_v12 = vld [vmem:[%s13936_s24 + $0xc8] sm:$0xff] }
 0x12d   : > { %v735_v60 = vpop.f32.mrb[24].mxu0  ;;  %v841_v35 = vsel %vm777_vm9, %v732_v28, %v809_v38  ;;  %v904_v36 = vmul.f32 %v872_v2, %v840_v49  ;;  %3510 = vmatprep.subr.bf16.mxu1 %v10753_v21  ;;  %3736 = vmatprep.subr.bf16.mxu0 %v10755_v30  ;;  %v10771_v13 = vcombine.high %v14312_v4, %v14317_v5  ;;  %v2015_v21 = vld [vmem:[%s19414_s8 + $0x328] sm:$0xff] }
 0x12e   : > { %v736_v62 = vadd.f32 %v735_v60, %v13931_v54  ;;  %v737_v63 = vpop.f32.mrb[25].mxu0  ;;  %v905_v0 = vmul.f32 %v873_v40, %v841_v35  ;;  %v10770_v17 = vcombine.low %v14312_v4, %v14317_v5  ;;  %v10777_v28 = vcombine.high %v14336_v14, %v14341_v43  ;;  %v879_v60 = vld [vmem:[%s13936_s24 + $0xe8] sm:$0xff] }
 0x12f   : > { %v738_v6 = vadd.f32 %v737_v63, %v13939_v55  ;;  %v739_v7 = vpop.f32.mrb[26].mxu0  ;;  %v924_v41 = vpack.c.bf16 %v904_v36, %v902_v45  ;;  %v10776_v38 = vcombine.low %v14336_v14, %v14341_v43  ;;  %v881_v63 = vld [vmem:[%s13936_s24 + $0xf8] sm:$0xff]  ;;  %v2031_v14 = vld [vmem:[%s19414_s8 + $0x3a8] sm:$0xff] }
 0x130   : > { %vm778_vm10 = vcmp.ge.f32.partialorder %v736_v62, 0.0  ;;  %v810_v57 = vmul.f32 0.2, %v736_v62  ;;  %v740_v58 = vadd.f32 %v739_v7, %v13931_v54  ;;  %v741_v47 = vpop.f32.mrb[27].mxu0  ;;  %v925_v8 = vpack.c.bf16 %v905_v0, %v903_v48  ;;  %3511 = vmatpush1.bf16.msra.mxu1 %v10752_v18  ;;  %3737 = vmatpush1.bf16.msra.mxu0 %v10754_v33  ;;  %v2011_v18 = vld [vmem:[%s19414_s8 + $0x308] sm:$0xff] }
 0x131   : > { %vm779_vm11 = vcmp.ge.f32.partialorder %v738_v6, 0.0  ;;  %v811_v10 = vmul.f32 0.2, %v738_v6  ;;  %v742_v11 = vadd.f32 %v741_v47, %v13939_v55  ;;  %3512 = vmatprep.subr.bf16.mxu1 %v10761_v51  ;;  %3738 = vmatprep.subr.bf16.mxu0 %v10763_v61  ;;  %v10779_v19 = vcombine.high %v2011_v18, %v2015_v21  ;;  %v878_v51 = vld [vmem:[%s13936_s24 + $0xe0] sm:$0xff]  ;;  %v2023_v47 = vld [vmem:[%s19414_s8 + $0x368] sm:$0xff] }
 0x132   : > { %vm780_vm12 = vcmp.ge.f32.partialorder %v740_v58, 0.0  ;;  %v812_v44 = vmul.f32 0.2, %v740_v58  ;;  %1418 = vmatprep.mubr.bf16.mxu1 %v925_v8  ;;  %1531 = vmatprep.mubr.bf16.mxu0 %v925_v8  ;;  %v842_v15 = vsel %vm778_vm10, %v736_v62, %v810_v57  ;;  %v10778_v39 = vcombine.low %v2011_v18, %v2015_v21  ;;  %v2035_v21 = vld [vmem:[%s19414_s8 + $0x3c8] sm:$0xff] }
 0x133   : > { %vm781_vm13 = vcmp.ge.f32.partialorder %v742_v11, 0.0  ;;  %v813_v22 = vmul.f32 0.2, %v742_v11  ;;  %1419 = vmatmul.mubr.bf16.gmra.mrb[20].mxu1 %v924_v41  ;;  %1532 = vmatmul.mubr.bf16.gmra.mrb[52].mxu0 %v924_v41  ;;  %v843_v23 = vsel %vm779_vm11, %v738_v6, %v811_v10  ;;  %v906_v25 = vmul.f32 %v874_v9, %v842_v15  ;;  %v2018_v41 = vld [vmem:[%s19414_s8 + $0x340] sm:$0xff] }
 0x134   : > { %v907_v26 = vmul.f32 %v875_v12, %v843_v23  ;;  %v844_v27 = vsel %vm780_vm12, %v740_v58, %v812_v44  ;;  %3513 = vmatpush1.bf16.msra.mxu1 %v10760_v1  ;;  %3739 = vmatpush1.bf16.msra.mxu0 %v10762_v3  ;;  %v2019_v58 = vld [vmem:[%s19414_s8 + $0x348] sm:$0xff]  ;;  %v2026_v10 = vld [vmem:[%s19414_s8 + $0x380] sm:$0xff] }
 0x135   : > { %v745_v29 = vpop.f32.mrb[28].mxu0  ;;  %v845_v30 = vsel %vm781_vm13, %v742_v11, %v813_v22  ;;  %v908_v31 = vmul.f32 %v876_v16, %v844_v27  ;;  %3514 = vmatprep.subr.bf16.mxu1 %v10769_v46  ;;  %3740 = vmatprep.subr.bf16.mxu0 %v10771_v13  ;;  %v10787_v8 = vcombine.high %v2019_v58, %v2023_v47  ;;  %v2030_v11 = vld [vmem:[%s19414_s8 + $0x3a0] sm:$0xff]  ;;  %v2027_v12 = vld [vmem:[%s19414_s8 + $0x388] sm:$0xff] }
 0x136   : > { %v746_v20 = vadd.f32 %v745_v29, %v13931_v54  ;;  %v747_v32 = vpop.f32.mrb[29].mxu0  ;;  %v909_v2 = vmul.f32 %v877_v24, %v845_v30  ;;  %v10786_v9 = vcombine.low %v2019_v58, %v2023_v47  ;;  %v10793_v13 = vcombine.high %v2026_v10, %v2030_v11  ;;  %v2034_v16 = vld [vmem:[%s19414_s8 + $0x3c0] sm:$0xff]  ;;  %v2039_v22 = vld [vmem:[%s19414_s8 + $0x3e8] sm:$0xff] }
 0x137   : > { %v748_v33 = vadd.f32 %v747_v32, %v13939_v55  ;;  %v749_v34 = vpop.f32.mrb[30].mxu0  ;;  %v926_v37 = vpack.c.bf16 %v908_v31, %v906_v25  ;;  %v10792_v43 = vcombine.low %v2026_v10, %v2030_v11  ;;  %v10794_v44 = vcombine.low %v2027_v12, %v2031_v14  ;;  %v14412_v27 = vld [vmem:[%s19414_s8 + $0x420] sm:$0xff]  ;;  %v14419_v29 = vld [vmem:[%s19414_s8 + $0x408] sm:$0xff] }
 0x138   : > { %vm782_vm14 = vcmp.ge.f32.partialorder %v746_v20, 0.0  ;;  %v814_v40 = vmul.f32 0.2, %v746_v20  ;;  %v750_v45 = vadd.f32 %v749_v34, %v13931_v54  ;;  %v751_v48 = vpop.f32.mrb[31].mxu0  ;;  %v927_v49 = vpack.c.bf16 %v909_v2, %v907_v26  ;;  %3515 = vmatpush1.bf16.msra.mxu1 %v10768_v42  ;;  %3741 = vmatpush1.bf16.msra.mxu0 %v10770_v17  ;;  %v880_v54 = vld [vmem:[%s13936_s24 + $0xf0] sm:$0xff]  ;;  %v2022_v42 = vld [vmem:[%s19414_s8 + $0x360] sm:$0xff] }
 0x139   : > { %vm783_vm15 = vcmp.ge.f32.partialorder %v748_v33, 0.0  ;;  %v815_v56 = vmul.f32 0.2, %v748_v33  ;;  %v752_v59 = vadd.f32 %v751_v48, %v13939_v55  ;;  %3516 = vmatprep.subr.bf16.mxu1 %v10777_v28  ;;  %3742 = vmatprep.subr.bf16.mxu0 %v10779_v19  ;;  %v10785_v46 = vcombine.high %v2018_v41, %v2022_v42  ;;  %v2038_v17 = vld [vmem:[%s19414_s8 + $0x3e0] sm:$0xff]  ;;  %v14426_v31 = vld [vmem:[%s19414_s8 + $0x428] sm:$0xff] }
 0x13a   : > { %v846_v35 = vsel %vm782_vm14, %v746_v20, %v814_v40  ;;  %vm784_vm0 = vcmp.ge.f32.partialorder %v750_v45, 0.0  ;;  %v816_v36 = vmul.f32 0.2, %v750_v45  ;;  %1428 = vmatprep.mubr.bf16.mxu1 %v927_v49  ;;  %1541 = vmatprep.mubr.bf16.mxu0 %v927_v49  ;;  %v10784_v57 = vcombine.low %v2018_v41, %v2022_v42  ;;  %v14407_v26 = vld [vmem:[%s19414_s8 + $0x400] sm:$0xff]  ;;  %v14474_v48 = vld [vmem:[%s19414_s8 + $0x488] sm:$0xff] }
 0x13b   : > { %v847_v61 = vsel %vm783_vm15, %v748_v33, %v815_v56  ;;  %vm785_vm1 = vcmp.ge.f32.partialorder %v752_v59, 0.0  ;;  %v817_v62 = vmul.f32 0.2, %v752_v59  ;;  %1429 = vmatmul.mubr.bf16.gmra.mrb[24].mxu1 %v926_v37  ;;  %1542 = vmatmul.mubr.bf16.gmra.mrb[56].mxu0 %v926_v37  ;;  %v910_v0 = vmul.f32 %v878_v51, %v846_v35  ;;  %v994_v32 = vld [vmem:[%s19413_s7] sm:$0xf]  ;;  %v14479_v49 = vld [vmem:[%s19414_s8 + $0x4a8] sm:$0xff] }
 0x13c   : > { %v848_v1 = vsel %vm784_vm0, %v750_v45, %v816_v36  ;;  %v911_v3 = vmul.f32 %v879_v60, %v847_v61  ;;  %3517 = vmatpush1.bf16.msra.mxu1 %v10776_v38  ;;  %3743 = vmatpush1.bf16.msra.mxu0 %v10778_v39  ;;  %v10795_v15 = vcombine.high %v2027_v12, %v2031_v14  ;;  %v14436_v2 = vsub.s32 2, %v13918_v50  ;;  %v14441_v33 = vld [vmem:[%s19414_s8 + $0x440] sm:$0xff]  ;;  %v14454_v38 = vld [vmem:[%s19414_s8 + $0x448] sm:$0xff] }
 0x13d   : > { %v849_v55 = vsel %vm785_vm1, %v752_v59, %v817_v62  ;;  %v912_v4 = vmul.f32 %v880_v54, %v848_v1  ;;  %3518 = vmatprep.subr.bf16.mxu1 %v10785_v46  ;;  %3744 = vmatprep.subr.bf16.mxu0 %v10787_v8  ;;  %v10801_v18 = vcombine.high %v2034_v16, %v2038_v17  ;;  %v14446_v34 = vld [vmem:[%s19414_s8 + $0x460] sm:$0xff]  ;;  %v14449_v37 = vsub.s32 3, %v13918_v50  ;;  %v14459_v39 = vld [vmem:[%s19414_s8 + $0x468] sm:$0xff] }
 0x13e   : > { %v913_v5 = vmul.f32 %v881_v63, %v849_v55  ;;  %v10800_v23 = vcombine.low %v2034_v16, %v2038_v17  ;;  %v10802_v24 = vcombine.low %v2035_v21, %v2039_v22  ;;  %v10803_v25 = vcombine.high %v2035_v21, %v2039_v22  ;;  %19622 = vst [vmem:[#allocation5_spill] sm:$0xff] %v14436_v2  ;;  %v14464_v40 = vld [vmem:[%s19414_s8 + $0x480] sm:$0xff]  ;;  %v14494_v59 = vld [vmem:[%s19414_s8 + $0x4c8] sm:$0xff] }
 0x13f   : > { %v928_v6 = vpack.c.bf16 %v912_v4, %v910_v0  ;;  %v10809_v28 = vcombine.high %v14407_v26, %v14412_v27  ;;  %v10811_v20 = vcombine.high %v14419_v29, %v14426_v31  ;;  %19623 = vst [vmem:[#allocation6_spill] sm:$0xff] %v14449_v37  ;;  %v14469_v45 = vld [vmem:[%s19414_s8 + $0x4a0] sm:$0xff]  ;;  %v14499_v60 = vld [vmem:[%s19414_s8 + $0x4e8] sm:$0xff]  ;;  %v14512_v54 = vrot.slane %v994_v32, %v13924_v52 }
 0x140   : > { %v929_v7 = vpack.c.bf16 %v913_v5, %v911_v3  ;;  %3519 = vmatpush1.bf16.msra.mxu1 %v10784_v57  ;;  %3745 = vmatpush1.bf16.msra.mxu0 %v10786_v9  ;;  %v14484_v51 = vld [vmem:[%s19414_s8 + $0x4c0] sm:$0xff]  ;;  %v14515_v61 = vrot.slane %v994_v32, %v14436_v2  ;;  %v14520_v62 = vld [vmem:[%s19414_s8 + $0x508] sm:$0xff]  ;;  %v14533_v1 = vrot.slane %v994_v32, %v13927_v53 }
 0x141   : > { %3520 = vmatprep.subr.bf16.mxu1 %v10793_v13  ;;  %3746 = vmatprep.subr.bf16.mxu0 %v10795_v15  ;;  %v14489_v56 = vld [vmem:[%s19414_s8 + $0x4e0] sm:$0xff]  ;;  %v14525_v63 = vld [vmem:[%s19414_s8 + $0x528] sm:$0xff]  ;;  %v14536_v3 = vrot.slane %v994_v32, %v14449_v37 }
 0x142   : > { %1438 = vmatprep.mubr.bf16.mxu1 %v929_v7  ;;  %1551 = vmatprep.mubr.bf16.mxu0 %v929_v7  ;;  %v14504_v35 = vld [vmem:[%s19414_s8 + $0x500] sm:$0xff]  ;;  %v14555_v7 = vld [vmem:[%s19414_s8 + $0x568] sm:$0xff] }
 0x143   : > { %1439 = vmatmul.mubr.bf16.gmra.mrb[28].mxu1 %v928_v6  ;;  %1552 = vmatmul.mubr.bf16.gmra.mrb[60].mxu0 %v928_v6  ;;  %v14509_v36 = vld [vmem:[%s19414_s8 + $0x520] sm:$0xff]  ;;  %v14550_v6 = vld [vmem:[%s19414_s8 + $0x548] sm:$0xff]  ;;  %19624 = vst [vmem:[#allocation7_spill] sm:$0xff] %v14555_v7 }
 0x144   : > { %3521 = vmatpush1.bf16.msra.mxu1 %v10792_v43  ;;  %3747 = vmatpush1.bf16.msra.mxu0 %v10794_v44  ;;  %v14530_v0 = vld [vmem:[%s19414_s8 + $0x540] sm:$0xff]  ;;  %v14578_v8 = vld [vmem:[%s19414_s8 + $0x588] sm:$0xff] }
 0x145   : > { %3522 = vmatprep.subr.bf16.mxu1 %v10801_v18  ;;  %3748 = vmatprep.subr.bf16.mxu0 %v10803_v25  ;;  %v14545_v5 = vld [vmem:[%s19414_s8 + $0x560] sm:$0xff]  ;;  %19627 = vst [vmem:[#allocation10_spill] sm:$0xff] %v14578_v8  ;;  %v14591_v13 = vld [vmem:[%s19414_s8 + $0x5a8] sm:$0xff] }
 0x146   : > { %v14568_v58 = vld [vmem:[%s19414_s8 + $0x580] sm:$0xff]  ;;  %19628 = vst [vmem:[#allocation11_spill] sm:$0xff] %v14591_v13  ;;  %v14614_v18 = vld [vmem:[%s19414_s8 + $0x5c8] sm:$0xff] }
 0x147   : > { %19625 = vst [vmem:[#allocation8_spill] sm:$0xff] %v14568_v58  ;;  %v14573_v47 = vld [vmem:[%s19414_s8 + $0x5a0] sm:$0xff]  ;;  %19631 = vst [vmem:[#allocation14_spill] sm:$0xff] %v14614_v18  ;;  %v14619_v21 = vld [vmem:[%s19414_s8 + $0x5e8] sm:$0xff] }
 0x148   : > { %3523 = vmatpush1.bf16.msra.mxu1 %v10800_v23  ;;  %3749 = vmatpush1.bf16.msra.mxu0 %v10802_v24  ;;  %19626 = vst [vmem:[#allocation9_spill] sm:$0xff] %v14573_v47  ;;  %v14596_v14 = vld [vmem:[%s19414_s8 + $0x5c0] sm:$0xff]  ;;  %19632 = vst [vmem:[#allocation15_spill] sm:$0xff] %v14619_v21  ;;  %v14642_v32 = vld [vmem:[%s19414_s8 + $0x608] sm:$0xff] }
 0x149   : > { %3605 = vmatprep.subr.bf16.mxu1 %v10809_v28  ;;  %3831 = vmatprep.subr.bf16.mxu0 %v10811_v20  ;;  %19629 = vst [vmem:[#allocation12_spill] sm:$0xff] %v14596_v14  ;;  %v14601_v43 = vld [vmem:[%s19414_s8 + $0x5e0] sm:$0xff]  ;;  %19635 = vst [vmem:[#allocation18_spill] sm:$0xff] %v14642_v32  ;;  %v14647_v23 = vld [vmem:[%s19414_s8 + $0x628] sm:$0xff] }
 0x14a   : > { %19630 = vst [vmem:[#allocation13_spill] sm:$0xff] %v14601_v43  ;;  %v14624_v22 = vld [vmem:[%s19414_s8 + $0x600] sm:$0xff]  ;;  %19636 = vst [vmem:[#allocation19_spill] sm:$0xff] %v14647_v23  ;;  %v14670_v25 = vld [vmem:[%s19414_s8 + $0x648] sm:$0xff] }
 0x14b   : > { %19633 = vst [vmem:[#allocation16_spill] sm:$0xff] %v14624_v22  ;;  %v14637_v20 = vld [vmem:[%s19414_s8 + $0x620] sm:$0xff]  ;;  %19639 = vst [vmem:[#allocation22_spill] sm:$0xff] %v14670_v25  ;;  %v14683_v11 = vld [vmem:[%s19414_s8 + $0x668] sm:$0xff] }
 0x14c   : > { %19634 = vst [vmem:[#allocation17_spill] sm:$0xff] %v14637_v20  ;;  %v14660_v44 = vld [vmem:[%s19414_s8 + $0x640] sm:$0xff]  ;;  %19640 = vst [vmem:[#allocation23_spill] sm:$0xff] %v14683_v11  ;;  %v14706_v46 = vld [vmem:[%s19414_s8 + $0x688] sm:$0xff] }
 0x14d   : > { %19637 = vst [vmem:[#allocation20_spill] sm:$0xff] %v14660_v44  ;;  %v14665_v17 = vld [vmem:[%s19414_s8 + $0x660] sm:$0xff]  ;;  %19643 = vst [vmem:[#allocation26_spill] sm:$0xff] %v14706_v46  ;;  %v14711_v10 = vld [vmem:[%s19414_s8 + $0x6a8] sm:$0xff] }
 0x14e   : > { %19638 = vst [vmem:[#allocation21_spill] sm:$0xff] %v14665_v17  ;;  %v14688_v12 = vld [vmem:[%s19414_s8 + $0x680] sm:$0xff]  ;;  %19644 = vst [vmem:[#allocation27_spill] sm:$0xff] %v14711_v10  ;;  %v14734_v55 = vld [vmem:[%s19414_s8 + $0x6c8] sm:$0xff] }
 0x14f   : > { %19641 = vst [vmem:[#allocation24_spill] sm:$0xff] %v14688_v12  ;;  %v14693_v24 = vld [vmem:[%s19414_s8 + $0x6a0] sm:$0xff]  ;;  %19647 = vst [vmem:[#allocation30_spill] sm:$0xff] %v14734_v55  ;;  %v14739_v16 = vld [vmem:[%s19414_s8 + $0x6e8] sm:$0xff] }
 0x150   : > { %19642 = vst [vmem:[#allocation25_spill] sm:$0xff] %v14693_v24  ;;  %v14716_v28 = vld [vmem:[%s19414_s8 + $0x6c0] sm:$0xff]  ;;  %19648 = vst [vmem:[#allocation31_spill] sm:$0xff] %v14739_v16  ;;  %v14763_v57 = vld [vmem:[%s19414_s8 + $0x708] sm:$0xff] }
 0x151   : > { %19645 = vst [vmem:[#allocation28_spill] sm:$0xff] %v14716_v28  ;;  %v14729_v41 = vld [vmem:[%s19414_s8 + $0x6e0] sm:$0xff]  ;;  %19651 = vst [vmem:[#allocation34_spill] sm:$0xff] %v14763_v57  ;;  %v14776_v52 = vld [vmem:[%s19414_s8 + $0x728] sm:$0xff] }
 0x152   : > { %19646 = vst [vmem:[#allocation29_spill] sm:$0xff] %v14729_v41  ;;  %v14753_v30 = vld [vmem:[%s19414_s8 + $0x700] sm:$0xff]  ;;  %19652 = vst [vmem:[#allocation35_spill] sm:$0xff] %v14776_v52  ;;  %v14808_v46 = vld [vmem:[%s19414_s8 + $0x748] sm:$0xff] }
 0x153   : > { %19649 = vst [vmem:[#allocation32_spill] sm:$0xff] %v14753_v30  ;;  %v14758_v50 = vld [vmem:[%s19414_s8 + $0x720] sm:$0xff]  ;;  %19655 = vst [vmem:[#allocation38_spill] sm:$0xff] %v14808_v46  ;;  %v14813_v12 = vld [vmem:[%s19414_s8 + $0x768] sm:$0xff] }
 0x154   : > { %19650 = vst [vmem:[#allocation33_spill] sm:$0xff] %v14758_v50  ;;  %19656 = vst [vmem:[#allocation39_spill] sm:$0xff] %v14813_v12  ;;  %v14824_v50 = vld [vmem:[%s19414_s8 + $0x780] sm:$0xff]  ;;  %v1760_v46 = vld [vmem:[%s14799_s22 + $0x30] sm:$0xff] }
 0x155   : > { %19657 = vst [vmem:[#allocation40_spill] sm:$0xff] %v14824_v50  ;;  %v14829_v30 = vld [vmem:[%s19414_s8 + $0x7a0] sm:$0xff]  ;;  %v14878_v14 = vld [vmem:[%s19414_s8 + $0x7c8] sm:$0xff] }
 0x156   : > { %19658 = vst [vmem:[#allocation41_spill] sm:$0xff] %v14829_v30  ;;  %v1754_v41 = vld [vmem:[%s14799_s22] sm:$0xff]  ;;  %19663 = vst [vmem:[#allocation46_spill] sm:$0xff] %v14878_v14 }
 0x157   : > { %v14866_v44 = vld [vmem:[%s19414_s8 + $0x7c0] sm:$0xff] }
 0x158   : > { %19661 = vst [vmem:[#allocation44_spill] sm:$0xff] %v14866_v44  ;;  %v1762_v8 = vld [vmem:[%s14799_s22 + $0x40] sm:$0xff] }
 0x159   : > { %v1766_v58 = vld [vmem:[%s14799_s22 + $0x60] sm:$0xff] }
 0x1de   : > { %v1370_v15 = vpop.f32.mrb[0].mxu1  ;;  %v1483_v9 = vpop.f32.mrb[32].mxu0 }
 0x1df   : > { %v1371_v4 = vadd.f32 %v1370_v15, %v14512_v54  ;;  %v1484_v42 = vadd.f32 %v1483_v9, %v14515_v61  ;;  %v1372_v19 = vpop.f32.mrb[1].mxu1  ;;  %v14767_v37 = vpop.f32.mrb[33].mxu0  ;;  %v14781_v15 = vld [vmem:[%s19414_s8 + $0x740] sm:$0xff] }
 0x1e0   : > { %19653 = vst [vmem:[#allocation36_spill] sm:$0xff] %v14781_v15  ;;  %v14786_v9 = vld [vmem:[%s19414_s8 + $0x760] sm:$0xff]  ;;  %v1374_v24 = vpop.f32.mrb[2].mxu1  ;;  %v1487_v53 = vpop.f32.mrb[34].mxu0  ;;  %v1373_v16 = vadd.f32 %v1372_v19, %v14533_v1  ;;  %v14845_v19 = vld [vmem:[%s19414_s8 + $0x788] sm:$0xff] }
 0x1e1   : > { %19654 = vst [vmem:[#allocation37_spill] sm:$0xff] %v14786_v9  ;;  %vm1562_vm2 = vcmp.ge.f32.partialorder %v1371_v4, 0.0  ;;  %v1626_v11 = vmul.f32 0.2, %v1371_v4  ;;  %v1628_v10 = vmul.f32 0.2, %v1484_v42  ;;  %v1375_v25 = vadd.f32 %v1374_v24, %v14512_v54 }
 0x1e2   : > { %vm1564_vm3 = vcmp.ge.f32.partialorder %v1484_v42, 0.0  ;;  %v1488_v52 = vadd.f32 %v1487_v53, %v14515_v61  ;;  %v1376_v2 = vpop.f32.mrb[3].mxu1  ;;  %v1489_v57 = vpop.f32.mrb[35].mxu0  ;;  %19659 = vst [vmem:[#allocation42_spill] sm:$0xff] %v14845_v19  ;;  %v14850_v53 = vld [vmem:[%s19414_s8 + $0x7a8] sm:$0xff]  ;;  %v1758_v24 = vld [vmem:[%s14799_s22 + $0x20] sm:$0xff] }
 0x1e3   : > { %v1690_v55 = vsel %vm1562_vm2, %v1371_v4, %v1626_v11  ;;  %19660 = vst [vmem:[#allocation43_spill] sm:$0xff] %v14850_v53  ;;  %v1756_v4 = vld [vmem:[%s14799_s22 + $0x10] sm:$0xff]  ;;  %vm1566_vm4 = vcmp.ge.f32.partialorder %v1375_v25, 0.0  ;;  %v1630_v11 = vmul.f32 0.2, %v1375_v25  ;;  %v1692_v28 = vsel %vm1564_vm3, %v1484_v42, %v1628_v10  ;;  %v14871_v42 = vld [vmem:[%s19414_s8 + $0x7e0] sm:$0xff] }
 0x1e4   : > { %vm1568_vm5 = vcmp.ge.f32.partialorder %v1488_v52, 0.0  ;;  %v1632_v12 = vmul.f32 0.2, %v1488_v52  ;;  %v1377_v9 = vadd.f32 %v1376_v2, %v14533_v1  ;;  %v1818_v32 = vmul.f32 %v1754_v41, %v1690_v55  ;;  %19662 = vst [vmem:[#allocation45_spill] sm:$0xff] %v14871_v42 }
 0x1e5   : > { %v1627_v20 = vmul.f32 0.2, %v1373_v16  ;;  %v1694_v22 = vsel %vm1566_vm4, %v1375_v25, %v1630_v11  ;;  %v1820_v11 = vmul.f32 %v1756_v4, %v1692_v28  ;;  %vm1563_vm7 = vcmp.ge.f32.partialorder %v1373_v16, 0.0  ;;  %v1759_v28 = vld [vmem:[%s14799_s22 + $0x28] sm:$0xff] }
 0x1e6   : > { %v1380_v15 = vpop.f32.mrb[4].mxu1  ;;  %v1493_v23 = vpop.f32.mrb[36].mxu0  ;;  %v1822_v2 = vmul.f32 %v1758_v24, %v1694_v22  ;;  %v1696_v10 = vsel %vm1568_vm5, %v1488_v52, %v1632_v12  ;;  %vm1567_vm6 = vcmp.ge.f32.partialorder %v1377_v9, 0.0  ;;  %v1631_v55 = vmul.f32 0.2, %v1377_v9  ;;  %v14883_v52 = vld [vmem:[%s19414_s8 + $0x7e8] sm:$0xff] }
 0x1e7   : > { %v1382_v21 = vpop.f32.mrb[5].mxu1  ;;  %v1495_v18 = vpop.f32.mrb[37].mxu0  ;;  %v1824_v17 = vmul.f32 %v1760_v46, %v1696_v10  ;;  %19664 = vst [vmem:[#allocation47_spill] sm:$0xff] %v14883_v52  ;;  %v1486_v12 = vadd.f32 %v14767_v37, %v14536_v3  ;;  %v14895_v24 = vld [vmem:[%s19414_s8 + $0x10] sm:$0xff]  ;;  %v1490_v37 = vadd.f32 %v1489_v57, %v14536_v3  ;;  %v1494_v57 = vadd.f32 %v1493_v23, %v14515_v61 }
 0x1e8   : > { %v1384_v41 = vpop.f32.mrb[6].mxu1  ;;  %v1497_v25 = vpop.f32.mrb[38].mxu0  ;;  %v14887_v46 = vpack.c.bf16 %v1822_v2, %v1818_v32  ;;  %v1695_v22 = vsel %vm1567_vm6, %v1377_v9, %v1631_v55  ;;  %19666 = vst [vmem:[#allocation49_spill] sm:$0xff] %v14895_v24  ;;  %v14900_v10 = vld [vmem:[%s19414_s8 + $0x30] sm:$0xff]  ;;  %v1381_v32 = vadd.f32 %v1380_v15, %v14512_v54  ;;  %v14911_v2 = vld [vmem:[%s19414_s8 + $0x18] sm:$0xff] }
 0x1e9   : > { %v1386_v30 = vpop.f32.mrb[7].mxu1  ;;  %v1499_v50 = vpop.f32.mrb[39].mxu0  ;;  %19667 = vst [vmem:[#allocation50_spill] sm:$0xff] %v14900_v10  ;;  %v14902_v43 = vpack.c.bf16 %v1824_v17, %v1820_v11  ;;  %19669 = vst [vmem:[#allocation52_spill] sm:$0xff] %v14911_v2  ;;  %v14916_v55 = vld [vmem:[%s19414_s8 + $0x38] sm:$0xff]  ;;  %v1691_v17 = vsel %vm1563_vm7, %v1373_v16, %v1627_v20  ;;  %v1755_v11 = vld [vmem:[%s14799_s22 + $0x8] sm:$0xff]  ;;  %v1823_v9 = vmul.f32 %v1759_v28, %v1695_v22 }
 0x1ea   : > { %19665 = vst [vmem:[#allocation48_spill] sm:$0xff] %v14887_v46  ;;  %19670 = vst [vmem:[#allocation53_spill] sm:$0xff] %v14916_v55  ;;  %v1385_v42 = vadd.f32 %v1384_v41, %v14512_v54  ;;  %vm1565_vm8 = vcmp.ge.f32.partialorder %v1486_v12, 0.0  ;;  %v1629_v53 = vmul.f32 0.2, %v1486_v12  ;;  %v1496_v16 = vadd.f32 %v1495_v18, %v14536_v3 }
 0x1eb   : > { %19668 = vst [vmem:[#allocation51_spill] sm:$0xff] %v14902_v43  ;;  %v1383_v43 = vadd.f32 %v1382_v21, %v14533_v1  ;;  %v1819_v19 = vmul.f32 %v1755_v11, %v1691_v17  ;;  %vm1569_vm9 = vcmp.ge.f32.partialorder %v1490_v37, 0.0  ;;  %v1633_v22 = vmul.f32 0.2, %v1490_v37 }
 0x1ec   : > { %v1634_v28 = vmul.f32 0.2, %v1381_v32  ;;  %vm1570_vm10 = vcmp.ge.f32.partialorder %v1381_v32, 0.0  ;;  %vm1572_vm11 = vcmp.ge.f32.partialorder %v1494_v57, 0.0  ;;  %v1636_v21 = vmul.f32 0.2, %v1494_v57 }
 0x1ed   : > { %v1387_v41 = vadd.f32 %v1386_v30, %v14533_v1  ;;  %v1635_v10 = vmul.f32 0.2, %v1383_v43  ;;  %v1638_v18 = vmul.f32 0.2, %v1385_v42  ;;  %v1498_v24 = vadd.f32 %v1497_v25, %v14515_v61 }
 0x1ee   : > { %v1390_v20 = vpop.f32.mrb[8].mxu1  ;;  %v14930_v23 = vpop.f32.mrb[40].mxu0  ;;  %v14938_v52 = vpack.c.bf16 %v1823_v9, %v1819_v19  ;;  %v1637_v11 = vmul.f32 0.2, %v1496_v16  ;;  %vm1574_vm12 = vcmp.ge.f32.partialorder %v1385_v42, 0.0  ;;  %v1500_v30 = vadd.f32 %v1499_v50, %v14536_v3  ;;  %v1757_v9 = vld [vmem:[%s14799_s22 + $0x18] sm:$0xff] }
 0x1ef   : > { %v1392_v44 = vpop.f32.mrb[9].mxu1  ;;  %v14935_v4 = vpop.f32.mrb[41].mxu0  ;;  %vm1575_vm13 = vcmp.ge.f32.partialorder %v1387_v41, 0.0  ;;  %v1693_v25 = vsel %vm1565_vm8, %v1486_v12, %v1629_v53  ;;  %vm1571_vm14 = vcmp.ge.f32.partialorder %v1383_v43, 0.0  ;;  %vm1573_vm15 = vcmp.ge.f32.partialorder %v1496_v16, 0.0  ;;  %v1761_v50 = vld [vmem:[%s14799_s22 + $0x38] sm:$0xff] }
 0x1f0   : > { %19671 = vst [vmem:[#allocation54_spill] sm:$0xff] %v14938_v52  ;;  %v1394_v15 = vpop.f32.mrb[10].mxu1  ;;  %v14940_v17 = vpop.f32.mrb[42].mxu0  ;;  %v1639_v19 = vmul.f32 0.2, %v1387_v41  ;;  %3524 = vmatprep.mubr.bf16.mxu1 %v14938_v52  ;;  %3750 = vmatprep.mubr.bf16.mxu0 %v14938_v52  ;;  %v1697_v14 = vsel %vm1569_vm9, %v1490_v37, %v1633_v22  ;;  %v1698_v13 = vsel %vm1570_vm10, %v1381_v32, %v1634_v28  ;;  %v1764_v12 = vld [vmem:[%s14799_s22 + $0x50] sm:$0xff] }
 0x1f1   : > { %v14943_v55 = vpop.f32.mrb[11].mxu1  ;;  %v14945_v2 = vpop.f32.mrb[43].mxu0  ;;  %v1700_v53 = vsel %vm1572_vm11, %v1494_v57, %v1636_v21  ;;  %3525 = vmatmul.mubr.bf16.vlgmr.msra.gmra.mrb[32].mxu1 %v14887_v46  ;;  %3751 = vmatmul.mubr.bf16.vlgmr.msra.gmra.mrb[64].mxu0 %v14887_v46  ;;  %v1702_v47 = vsel %vm1574_vm12, %v1385_v42, %v1638_v18  ;;  %vm1576_vm0 = vcmp.ge.f32.partialorder %v1498_v24, 0.0  ;;  %v1640_v52 = vmul.f32 0.2, %v1498_v24  ;;  %v1767_v22 = vld [vmem:[%s14799_s22 + $0x68] sm:$0xff] }
 0x1f2   : > { %v1703_v37 = vsel %vm1575_vm13, %v1387_v41, %v1639_v19  ;;  %v19672_v32 = vcombine.low %v14407_v26, %v14412_v27  ;;  %v19673_v57 = vcombine.low %v14419_v29, %v14426_v31  ;;  %v1699_v28 = vsel %vm1571_vm14, %v1383_v43, %v1635_v10  ;;  %v1763_v21 = vld [vmem:[%s14799_s22 + $0x48] sm:$0xff]  ;;  %v1765_v42 = vld [vmem:[%s14799_s22 + $0x58] sm:$0xff] }
 0x1f3   : > { %v1701_v46 = vsel %vm1573_vm15, %v1496_v16, %v1637_v11  ;;  %v1641_v18 = vmul.f32 0.2, %v1500_v30  ;;  %v1391_v7 = vadd.f32 %v1390_v20, %v14512_v54  ;;  %v19674_v41 = vcombine.high %v14441_v33, %v14446_v34 }
 0x1f4   : > { %3606 = vmatpush1.bf16.msra.mxu1 %v19672_v32  ;;  %3832 = vmatpush1.bf16.msra.mxu0 %v19673_v57  ;;  %v19675_v26 = vcombine.high %v14454_v38, %v14459_v39  ;;  %v14982_v31 = vmul.f32 %v1757_v9, %v1693_v25  ;;  %v14984_v43 = vmul.f32 %v1761_v50, %v1697_v14  ;;  %vm1577_vm1 = vcmp.ge.f32.partialorder %v1500_v30, 0.0 }
 0x1f5   : > { %3607 = vmatprep.subr.bf16.mxu1 %v19674_v41  ;;  %v1393_v10 = vadd.f32 %v1392_v44, %v14533_v1  ;;  %v1826_v16 = vmul.f32 %v1762_v8, %v1698_v13  ;;  %v1830_v20 = vmul.f32 %v1766_v58, %v1702_v47  ;;  %v1831_v11 = vmul.f32 %v1767_v22, %v1703_v37  ;;  %v1768_v47 = vld [vmem:[%s14799_s22 + $0x70] sm:$0xff] }
 0x1f6   : > { %3833 = vmatprep.subr.bf16.mxu0 %v19675_v26  ;;  %v1400_v27 = vpop.f32.mrb[12].mxu1  ;;  %v14980_v29 = vpop.f32.mrb[44].mxu0  ;;  %v1395_v19 = vadd.f32 %v1394_v15, %v14512_v54  ;;  %v14992_v41 = vmul.f32 %v1764_v12, %v1700_v53  ;;  %v1827_v25 = vmul.f32 %v1763_v21, %v1699_v28  ;;  %v14994_v9 = vmul.f32 %v1765_v42, %v1701_v46  ;;  %v1769_v15 = vld [vmem:[%s14799_s22 + $0x78] sm:$0xff]  ;;  %v1774_v21 = vld [vmem:[%s14799_s22 + $0xa0] sm:$0xff]  ;;  %v1775_v26 = vld [vmem:[%s14799_s22 + $0xa8] sm:$0xff] }
 0x1f7   : > { %v14988_v32 = vpop.f32.mrb[13].mxu1  ;;  %v14990_v57 = vpop.f32.mrb[45].mxu0  ;;  %v1704_v14 = vsel %vm1576_vm0, %v1498_v24, %v1640_v52  ;;  %v19676_v44 = vcombine.low %v14441_v33, %v14446_v34  ;;  %v1705_v13 = vsel %vm1577_vm1, %v1500_v30, %v1641_v18  ;;  %v1642_v50 = vmul.f32 0.2, %v1391_v7 }
 0x1f8   : > { %v15000_v8 = vpop.f32.mrb[14].mxu1  ;;  %v15002_v58 = vpop.f32.mrb[46].mxu0  ;;  %v15009_v53 = vadd.f32 %v14930_v23, %v14515_v61  ;;  %v15013_v52 = vadd.f32 %v14935_v4, %v14536_v3  ;;  %v19677_v33 = vcombine.low %v14454_v38, %v14459_v39  ;;  %v19678_v34 = vcombine.high %v14464_v40, %v14469_v45 }
 0x1f9   : > { %3608 = vmatpush1.bf16.msra.mxu1 %v19676_v44  ;;  %v15021_v46 = vpop.f32.mrb[15].mxu1  ;;  %v15023_v24 = vpop.f32.mrb[47].mxu0  ;;  %vm1578_vm2 = vcmp.ge.f32.partialorder %v1391_v7, 0.0  ;;  %v1643_v23 = vmul.f32 0.2, %v1393_v10  ;;  %vm1582_vm3 = vcmp.ge.f32.partialorder %v1395_v19, 0.0  ;;  %v19679_v4 = vcombine.high %v14474_v48, %v14479_v49 }
 0x1fa   : > { %3834 = vmatpush1.bf16.msra.mxu0 %v19677_v33  ;;  %3609 = vmatprep.subr.bf16.mxu1 %v19678_v34  ;;  %v1646_v30 = vmul.f32 0.2, %v1395_v19  ;;  %v1508_v38 = vadd.f32 %v14940_v17, %v14515_v61  ;;  %v1397_v39 = vadd.f32 %v14943_v55, %v14533_v1  ;;  %v15032_v12 = vpack.c.bf16 %v1831_v11, %v1827_v25  ;;  %v1770_v25 = vld [vmem:[%s14799_s22 + $0x80] sm:$0xff] }
 0x1fb   : > { %3835 = vmatprep.subr.bf16.mxu0 %v19679_v4  ;;  %v15034_v37 = vpack.c.bf16 %v1830_v20, %v1826_v16  ;;  %v15036_v22 = vmul.f32 %v1768_v47, %v1704_v14  ;;  %v15038_v28 = vmul.f32 %v1769_v15, %v1705_v13  ;;  %vm1579_vm4 = vcmp.ge.f32.partialorder %v1393_v10, 0.0 }
 0x1fc   : > { %19680 = vst [vmem:[#allocation55_spill] sm:$0xff] %v15032_v12  ;;  %v1510_v42 = vadd.f32 %v14945_v2, %v14536_v3  ;;  %v19682_v17 = vcombine.low %v14464_v40, %v14469_v45  ;;  %v1710_v18 = vsel %vm1582_vm3, %v1395_v19, %v1646_v30  ;;  %vm1583_vm5 = vcmp.ge.f32.partialorder %v1397_v39, 0.0  ;;  %3534 = vmatprep.mubr.bf16.mxu1 %v15032_v12 }
 0x1fd   : > { %19681 = vst [vmem:[#allocation56_spill] sm:$0xff] %v15034_v37  ;;  %v1647_v55 = vmul.f32 0.2, %v1397_v39  ;;  %3760 = vmatprep.mubr.bf16.mxu0 %v15032_v12  ;;  %v1401_v16 = vadd.f32 %v1400_v27, %v14512_v54  ;;  %v1706_v2 = vsel %vm1578_vm2, %v1391_v7, %v1642_v50  ;;  %vm1580_vm6 = vcmp.ge.f32.partialorder %v15009_v53, 0.0  ;;  %3535 = vmatmul.mubr.bf16.gmra.mrb[36].mxu1 %v15034_v37  ;;  %v1771_v27 = vld [vmem:[%s14799_s22 + $0x88] sm:$0xff] }
 0x1fe   : > { %3610 = vmatpush1.bf16.msra.mxu1 %v19682_v17  ;;  %v15050_v20 = vpop.f32.mrb[16].mxu1  ;;  %v15052_v11 = vpop.f32.mrb[48].mxu0  ;;  %v1644_v40 = vmul.f32 0.2, %v15009_v53  ;;  %vm1581_vm7 = vcmp.ge.f32.partialorder %v15013_v52, 0.0  ;;  %3761 = vmatmul.mubr.bf16.gmra.mrb[68].mxu0 %v15034_v37  ;;  %v1707_v45 = vsel %vm1579_vm4, %v1393_v10, %v1643_v23  ;;  %vm1584_vm8 = vcmp.ge.f32.partialorder %v1508_v38, 0.0 }
 0x1ff   : > { %v1645_v19 = vmul.f32 0.2, %v15013_v52  ;;  %v1711_v14 = vsel %vm1583_vm5, %v1397_v39, %v1647_v55  ;;  %v19683_v7 = vcombine.low %v14474_v48, %v14479_v49  ;;  %v19684_v44 = vcombine.high %v14484_v51, %v14489_v56  ;;  %v15071_v47 = vpop.f32.mrb[17].mxu1  ;;  %v15073_v13 = vpop.f32.mrb[49].mxu0  ;;  %v19719_v37 = vld [vmem:[#allocation17_spill] sm:$0xff] }
 0x200   : > { %v1838_v15 = vmul.f32 %v1774_v21, %v1710_v18  ;;  %v1648_v10 = vmul.f32 0.2, %v1508_v38  ;;  %v1839_v50 = vmul.f32 %v1775_v26, %v1711_v14  ;;  %v15077_v33 = vadd.f32 %v14980_v29, %v14515_v61  ;;  %v15082_v48 = vpop.f32.mrb[18].mxu1  ;;  %v15084_v49 = vpop.f32.mrb[50].mxu0 }
 0x201   : > { %3836 = vmatpush1.bf16.msra.mxu0 %v19683_v7  ;;  %3611 = vmatprep.subr.bf16.mxu1 %v19684_v44  ;;  %v19685_v34 = vcombine.low %v14484_v51, %v14489_v56  ;;  %v1834_v23 = vmul.f32 %v1770_v25, %v1706_v2  ;;  %v1649_v30 = vmul.f32 0.2, %v1510_v42  ;;  %v1650_v4 = vmul.f32 0.2, %v1401_v16  ;;  %v15096_v56 = vpop.f32.mrb[19].mxu1  ;;  %v15098_v21 = vpop.f32.mrb[51].mxu0 }
 0x202   : > { %v15088_v39 = vadd.f32 %v14988_v32, %v14533_v1  ;;  %v19686_v29 = vcombine.high %v14494_v59, %v14499_v60  ;;  %v19687_v51 = vcombine.high %v14504_v35, %v14509_v36  ;;  %v1835_v17 = vmul.f32 %v1771_v27, %v1707_v45  ;;  %v1772_v45 = vld [vmem:[%s14799_s22 + $0x90] sm:$0xff] }
 0x203   : > { %3612 = vmatpush1.bf16.msra.mxu1 %v19685_v34  ;;  %vm1585_vm9 = vcmp.ge.f32.partialorder %v1510_v42, 0.0  ;;  %vm1586_vm10 = vcmp.ge.f32.partialorder %v1401_v16, 0.0  ;;  %v1516_v32 = vadd.f32 %v14990_v57, %v14536_v3  ;;  %v1708_v18 = vsel %vm1580_vm6, %v15009_v53, %v1644_v40  ;;  %v1773_v57 = vld [vmem:[%s14799_s22 + $0x98] sm:$0xff]  ;;  %v1776_v53 = vld [vmem:[%s14799_s22 + $0xb0] sm:$0xff] }
 0x204   : > { %3837 = vmatprep.subr.bf16.mxu0 %v19686_v29  ;;  %3613 = vmatprep.subr.bf16.mxu1 %v19687_v51  ;;  %v1709_v55 = vsel %vm1581_vm7, %v15013_v52, %v1645_v19  ;;  %v1405_v26 = vadd.f32 %v15000_v8, %v14512_v54  ;;  %v1407_v2 = vadd.f32 %v15021_v46, %v14533_v1  ;;  %vm1588_vm11 = vcmp.ge.f32.partialorder %v15077_v33, 0.0 }
 0x205   : > { %v19688_v25 = vcombine.low %v14494_v59, %v14499_v60  ;;  %v1712_v27 = vsel %vm1584_vm8, %v1508_v38, %v1648_v10  ;;  %v15120_v40 = vpack.c.bf16 %v1839_v50, %v1835_v17  ;;  %v15122_v52 = vpack.c.bf16 %v1838_v15, %v1834_v23  ;;  %v1777_v59 = vld [vmem:[%s14799_s22 + $0xb8] sm:$0xff] }
 0x206   : > { %v19691_v8 = vcombine.low %v14504_v35, %v14509_v36  ;;  %v1713_v46 = vsel %vm1585_vm9, %v1510_v42, %v1649_v30  ;;  %v1714_v60 = vsel %vm1586_vm10, %v1401_v16, %v1650_v4  ;;  %v1652_v19 = vmul.f32 0.2, %v15077_v33  ;;  %v15138_v7 = vpop.f32.mrb[20].mxu1  ;;  %v15140_v35 = vpop.f32.mrb[52].mxu0  ;;  %v1778_v36 = vld [vmem:[%s14799_s22 + $0xc0] sm:$0xff] }
 0x207   : > { %3838 = vmatpush1.bf16.msra.mxu0 %v19688_v25  ;;  %19689 = vst [vmem:[#allocation57_spill] sm:$0xff] %v15120_v40  ;;  %19690 = vst [vmem:[#allocation58_spill] sm:$0xff] %v15122_v52  ;;  %vm1587_vm12 = vcmp.ge.f32.partialorder %v15088_v39, 0.0  ;;  %v19692_v38 = vcombine.high %v14520_v62, %v14525_v63  ;;  %v19693_v14 = vcombine.high %v14530_v0, %v14545_v5  ;;  %v1651_v42 = vmul.f32 0.2, %v15088_v39  ;;  %v15154_v23 = vpop.f32.mrb[21].mxu1 }
 0x208   : > { %3614 = vmatpush1.bf16.msra.mxu1 %v19691_v8  ;;  %vm1589_vm13 = vcmp.ge.f32.partialorder %v1516_v32, 0.0  ;;  %v1653_v16 = vmul.f32 0.2, %v1516_v32  ;;  %v1518_v44 = vadd.f32 %v15002_v58, %v14515_v61  ;;  %3544 = vmatprep.mubr.bf16.mxu1 %v15120_v40  ;;  %v15148_v15 = vmul.f32 %v1772_v45, %v1708_v18  ;;  %v15156_v30 = vpop.f32.mrb[53].mxu0 }
 0x209   : > { %3839 = vmatprep.subr.bf16.mxu0 %v19692_v38  ;;  %3615 = vmatprep.subr.bf16.mxu1 %v19693_v14  ;;  %v1654_v10 = vmul.f32 0.2, %v1405_v26  ;;  %v1655_v50 = vmul.f32 0.2, %v1407_v2  ;;  %v1520_v34 = vadd.f32 %v15023_v24, %v14536_v3  ;;  %v15158_v58 = vmul.f32 %v1773_v57, %v1709_v55  ;;  %v15165_v24 = vpop.f32.mrb[22].mxu1  ;;  %v15167_v51 = vpop.f32.mrb[54].mxu0 }
 0x20a   : > { %3770 = vmatprep.mubr.bf16.mxu0 %v15120_v40  ;;  %3545 = vmatmul.mubr.bf16.gmra.mrb[40].mxu1 %v15122_v52  ;;  %v15160_v4 = vmul.f32 %v1776_v53, %v1712_v27  ;;  %vm1590_vm14 = vcmp.ge.f32.partialorder %v1405_v26, 0.0  ;;  %vm1591_vm15 = vcmp.ge.f32.partialorder %v1407_v2, 0.0  ;;  %v19694_v29 = vcombine.low %v14520_v62, %v14525_v63  ;;  %v19696_v62 = vld [vmem:[#allocation7_spill] sm:$0xff]  ;;  %v15181_v45 = vpop.f32.mrb[23].mxu1  ;;  %v15183_v57 = vpop.f32.mrb[55].mxu0  ;;  %v1780_v53 = vld [vmem:[%s14799_s22 + $0xd0] sm:$0xff] }
 0x20b   : > { %3771 = vmatmul.mubr.bf16.gmra.mrb[72].mxu0 %v15122_v52  ;;  %v15169_v17 = vmul.f32 %v1777_v59, %v1713_v46  ;;  %v15171_v18 = vmul.f32 %v1778_v36, %v1714_v60  ;;  %v1411_v55 = vadd.f32 %v15050_v20, %v14512_v54  ;;  %v19695_v25 = vcombine.low %v14530_v0, %v14545_v5  ;;  %v1779_v0 = vld [vmem:[%s14799_s22 + $0xc8] sm:$0xff]  ;;  %v19698_v46 = vld [vmem:[#allocation8_spill] sm:$0xff]  ;;  %v19699_v59 = vld [vmem:[#allocation9_spill] sm:$0xff] }
 0x20c   : > { %3840 = vmatpush1.bf16.msra.mxu0 %v19694_v29  ;;  %v19697_v63 = vcombine.high %v14550_v6, %v19696_v62  ;;  %v1716_v27 = vsel %vm1588_vm11, %v15077_v33, %v1652_v19  ;;  %v1715_v20 = vsel %vm1587_vm12, %v15088_v39, %v1651_v42  ;;  %v1717_v5 = vsel %vm1589_vm13, %v1516_v32, %v1653_v16  ;;  %v1781_v38 = vld [vmem:[%s14799_s22 + $0xd8] sm:$0xff]  ;;  %v1782_v36 = vld [vmem:[%s14799_s22 + $0xe0] sm:$0xff]  ;;  %v1783_v33 = vld [vmem:[%s14799_s22 + $0xe8] sm:$0xff] }
 0x20d   : > { %3616 = vmatpush1.bf16.msra.mxu1 %v19695_v25  ;;  %v1656_v8 = vmul.f32 0.2, %v1518_v44  ;;  %v19700_v60 = vcombine.high %v19698_v46, %v19699_v59  ;;  %v1718_v14 = vsel %vm1590_vm14, %v1405_v26, %v1654_v10  ;;  %v1719_v29 = vsel %vm1591_vm15, %v1407_v2, %v1655_v50  ;;  %v19705_v50 = vld [vmem:[#allocation11_spill] sm:$0xff]  ;;  %v19713_v52 = vld [vmem:[#allocation14_spill] sm:$0xff] }
 0x20e   : > { %3841 = vmatprep.subr.bf16.mxu0 %v19697_v63  ;;  %v1657_v19 = vmul.f32 0.2, %v1520_v34  ;;  %v1524_v25 = vadd.f32 %v15052_v11, %v14515_v61  ;;  %vm1592_vm0 = vcmp.ge.f32.partialorder %v1518_v44, 0.0  ;;  %vm1593_vm1 = vcmp.ge.f32.partialorder %v1520_v34, 0.0 }
 0x20f   : > { %3617 = vmatprep.subr.bf16.mxu1 %v19700_v60  ;;  %v1413_v39 = vadd.f32 %v15071_v47, %v14533_v1  ;;  %v1417_v32 = vadd.f32 %v15096_v56, %v14533_v1  ;;  %v19701_v26 = vcombine.low %v14550_v6, %v19696_v62  ;;  %v15211_v42 = vmul.f32 %v1780_v53, %v1716_v27  ;;  %v19704_v47 = vld [vmem:[#allocation10_spill] sm:$0xff]  ;;  %v15221_v56 = vpop.f32.mrb[24].mxu1  ;;  %v15223_v6 = vpop.f32.mrb[56].mxu0  ;;  %v1784_v53 = vld [vmem:[%s14799_s22 + $0xf0] sm:$0xff] }
 0x210   : > { %v1843_v2 = vmul.f32 %v1779_v0, %v1715_v20  ;;  %v1658_v16 = vmul.f32 0.2, %v1411_v55  ;;  %v1415_v11 = vadd.f32 %v15082_v48, %v14512_v54  ;;  %v19703_v10 = vcombine.low %v19698_v46, %v19699_v59  ;;  %v19708_v0 = vld [vmem:[#allocation12_spill] sm:$0xff]  ;;  %v19709_v48 = vld [vmem:[#allocation13_spill] sm:$0xff] }
 0x211   : > { %3842 = vmatpush1.bf16.msra.mxu0 %v19701_v26  ;;  %19702 = vst [vmem:[#allocation7_spill] sm:$0xff] %v15211_v42  ;;  %v19706_v63 = vcombine.high %v19704_v47, %v19705_v50  ;;  %v15225_v62 = vmul.f32 %v1781_v38, %v1717_v5  ;;  %v1846_v27 = vmul.f32 %v1782_v36, %v1718_v14  ;;  %vm1594_vm2 = vcmp.ge.f32.partialorder %v1411_v55, 0.0  ;;  %v1785_v26 = vld [vmem:[%s14799_s22 + $0xf8] sm:$0xff]  ;;  %v15236_v5 = vpop.f32.mrb[57].mxu0 }
 0x212   : > { %3618 = vmatpush1.bf16.msra.mxu1 %v19703_v10  ;;  %v1847_v20 = vmul.f32 %v1783_v33, %v1719_v29  ;;  %v19710_v60 = vcombine.high %v19708_v0, %v19709_v48  ;;  %v1720_v46 = vsel %vm1592_vm0, %v1518_v44, %v1656_v8  ;;  %v1721_v59 = vsel %vm1593_vm1, %v1520_v34, %v1657_v19  ;;  %v15251_v8 = vpop.f32.mrb[58].mxu0  ;;  %v1786_v19 = vld [vmem:[%s14799_s22 + $0x100] sm:$0xff]  ;;  %v19730_v42 = vld [vmem:[#allocation21_spill] sm:$0xff] }
 0x213   : > { %3843 = vmatprep.subr.bf16.mxu0 %v19706_v63  ;;  %19707 = vst [vmem:[#allocation8_spill] sm:$0xff] %v15225_v62  ;;  %vm1596_vm3 = vcmp.ge.f32.partialorder %v1524_v25, 0.0  ;;  %v1660_v10 = vmul.f32 0.2, %v1524_v25  ;;  %v15234_v63 = vpop.f32.mrb[25].mxu1  ;;  %v15240_v14 = vadd.f32 %v15073_v13, %v14536_v3  ;;  %v15244_v36 = vadd.f32 %v15084_v49, %v14515_v61  ;;  %v15265_v40 = vpop.f32.mrb[59].mxu0 }
 0x214   : > { %3619 = vmatprep.subr.bf16.mxu1 %v19710_v60  ;;  %v1659_v38 = vmul.f32 0.2, %v1413_v39  ;;  %v1663_v29 = vmul.f32 0.2, %v1417_v32  ;;  %v19711_v44 = vcombine.low %v19704_v47, %v19705_v50  ;;  %v15249_v34 = vpop.f32.mrb[26].mxu1  ;;  %v1722_v33 = vsel %vm1594_vm2, %v1411_v55, %v1658_v16  ;;  %v19714_v47 = vld [vmem:[#allocation15_spill] sm:$0xff] }
 0x215   : > { %v1662_v60 = vmul.f32 0.2, %v1415_v11  ;;  %vm1599_vm4 = vcmp.ge.f32.partialorder %v1417_v32, 0.0  ;;  %v1530_v13 = vadd.f32 %v15098_v21, %v14536_v3  ;;  %v19712_v49 = vcombine.low %v19708_v0, %v19709_v48  ;;  %v19718_v21 = vld [vmem:[#allocation16_spill] sm:$0xff] }
 0x216   : > { %3844 = vmatpush1.bf16.msra.mxu0 %v19711_v44  ;;  %v19715_v50 = vcombine.high %v19713_v52, %v19714_v47  ;;  %v15263_v44 = vpop.f32.mrb[27].mxu1  ;;  %v15267_v55 = vmul.f32 %v1784_v53, %v1720_v46  ;;  %vm1595_vm5 = vcmp.ge.f32.partialorder %v1413_v39, 0.0  ;;  %vm1598_vm6 = vcmp.ge.f32.partialorder %v1415_v11, 0.0  ;;  %v1788_v46 = vld [vmem:[%s14799_s22 + $0x110] sm:$0xff] }
 0x217   : > { %3620 = vmatpush1.bf16.msra.mxu1 %v19712_v49  ;;  %v15269_v16 = vpack.c.bf16 %v1847_v20, %v1843_v2  ;;  %v19720_v0 = vcombine.high %v19718_v21, %v19719_v37  ;;  %v15274_v48 = vmul.f32 %v1785_v26, %v1721_v59  ;;  %v1724_v49 = vsel %vm1596_vm3, %v1524_v25, %v1660_v10  ;;  %v1790_v20 = vld [vmem:[%s14799_s22 + $0x120] sm:$0xff]  ;;  %v1791_v26 = vld [vmem:[%s14799_s22 + $0x128] sm:$0xff]  ;;  %v15297_v10 = vpop.f32.mrb[28].mxu1  ;;  %v19737_v62 = vld [vmem:[#allocation24_spill] sm:$0xff] }
 0x218   : > { %3845 = vmatprep.subr.bf16.mxu0 %v19715_v50  ;;  %19716 = vst [vmem:[#allocation9_spill] sm:$0xff] %v15267_v55  ;;  %v15278_v50 = vpack.c.bf16 %v1846_v27, %v15171_v18  ;;  %v1421_v12 = vadd.f32 %v15138_v7, %v14512_v54  ;;  %v15282_v53 = vmul.f32 %v1786_v19, %v1722_v33  ;;  %vm1597_vm7 = vcmp.ge.f32.partialorder %v15240_v14, 0.0  ;;  %v15299_v33 = vpop.f32.mrb[60].mxu0 }
 0x219   : > { %19717 = vst [vmem:[#allocation10_spill] sm:$0xff] %v15269_v16  ;;  %3621 = vmatprep.subr.bf16.mxu1 %v19720_v0  ;;  %19721 = vst [vmem:[#allocation11_spill] sm:$0xff] %v15274_v48  ;;  %v1661_v2 = vmul.f32 0.2, %v15240_v14  ;;  %v1727_v59 = vsel %vm1599_vm4, %v1417_v32, %v1663_v29  ;;  %3554 = vmatprep.mubr.bf16.mxu1 %v15269_v16  ;;  %v1723_v18 = vsel %vm1595_vm5, %v1413_v39, %v1659_v38  ;;  %v1787_v32 = vld [vmem:[%s14799_s22 + $0x108] sm:$0xff] }
 0x21a   : > { %19722 = vst [vmem:[#allocation12_spill] sm:$0xff] %v15278_v50  ;;  %3780 = vmatprep.mubr.bf16.mxu0 %v15269_v16  ;;  %v1726_v7 = vsel %vm1598_vm6, %v1415_v11, %v1662_v60  ;;  %v1664_v25 = vmul.f32 0.2, %v15244_v36  ;;  %v1665_v27 = vmul.f32 0.2, %v1530_v13  ;;  %3555 = vmatmul.mubr.bf16.gmra.mrb[44].mxu1 %v15278_v50  ;;  %vm1600_vm8 = vcmp.ge.f32.partialorder %v15244_v36, 0.0 }
 0x21b   : > { %3781 = vmatmul.mubr.bf16.gmra.mrb[76].mxu0 %v15278_v50  ;;  %vm1601_vm9 = vcmp.ge.f32.partialorder %v1530_v13, 0.0  ;;  %v1534_v39 = vadd.f32 %v15140_v35, %v14515_v61  ;;  %v1423_v11 = vadd.f32 %v15154_v23, %v14533_v1  ;;  %v19723_v38 = vcombine.low %v19713_v52, %v19714_v47  ;;  %v19726_v16 = vld [vmem:[#allocation18_spill] sm:$0xff]  ;;  %v19727_v35 = vld [vmem:[#allocation19_spill] sm:$0xff]  ;;  %v19729_v23 = vld [vmem:[#allocation20_spill] sm:$0xff]  ;;  %v15323_v52 = vpop.f32.mrb[29].mxu1  ;;  %v15325_v47 = vpop.f32.mrb[61].mxu0 }
 0x21c   : > { %v19724_v29 = vcombine.low %v19718_v21, %v19719_v37  ;;  %v15313_v19 = vmul.f32 %v1788_v46, %v1724_v49  ;;  %v1855_v60 = vmul.f32 %v1791_v26, %v1727_v59  ;;  %v1666_v0 = vmul.f32 0.2, %v1421_v12  ;;  %v15331_v49 = vpop.f32.mrb[30].mxu1 }
 0x21d   : > { %3846 = vmatpush1.bf16.msra.mxu0 %v19723_v38  ;;  %v1536_v50 = vadd.f32 %v15156_v30, %v14536_v3  ;;  %v19728_v55 = vcombine.high %v19726_v16, %v19727_v35  ;;  %v19731_v48 = vcombine.high %v19729_v23, %v19730_v42  ;;  %v1854_v37 = vmul.f32 %v1790_v20, %v1726_v7  ;;  %v15342_v59 = vpop.f32.mrb[31].mxu1  ;;  %v19734_v38 = vld [vmem:[#allocation22_spill] sm:$0xff] }
 0x21e   : > { %3622 = vmatpush1.bf16.msra.mxu1 %v19724_v29  ;;  %19725 = vst [vmem:[#allocation13_spill] sm:$0xff] %v15313_v19  ;;  %vm1602_vm10 = vcmp.ge.f32.partialorder %v1421_v12, 0.0  ;;  %v1425_v21 = vadd.f32 %v15165_v24, %v14512_v54  ;;  %v1427_v30 = vadd.f32 %v15181_v45, %v14533_v1  ;;  %v1725_v46 = vsel %vm1597_vm7, %v15240_v14, %v1661_v2  ;;  %v1792_v2 = vld [vmem:[%s14799_s22 + $0x130] sm:$0xff]  ;;  %v19735_v29 = vld [vmem:[#allocation23_spill] sm:$0xff] }
 0x21f   : > { %3847 = vmatprep.subr.bf16.mxu0 %v19728_v55  ;;  %3623 = vmatprep.subr.bf16.mxu1 %v19731_v48  ;;  %v15333_v55 = vpop.f32.mrb[62].mxu0  ;;  %v1851_v48 = vmul.f32 %v1787_v32, %v1723_v18  ;;  %v1728_v20 = vsel %vm1600_vm8, %v15244_v36, %v1664_v25  ;;  %v1729_v24 = vsel %vm1601_vm9, %v1530_v13, %v1665_v27  ;;  %vm1604_vm11 = vcmp.ge.f32.partialorder %v1534_v39, 0.0  ;;  %v1789_v36 = vld [vmem:[%s14799_s22 + $0x118] sm:$0xff] }
 0x220   : > { %v15344_v45 = vpop.f32.mrb[63].mxu0  ;;  %v1668_v26 = vmul.f32 0.2, %v1534_v39  ;;  %vm1603_vm12 = vcmp.ge.f32.partialorder %v1423_v11, 0.0  ;;  %v1667_v7 = vmul.f32 0.2, %v1423_v11  ;;  %v19732_v18 = vcombine.low %v19726_v16, %v19727_v35 }
 0x221   : > { %v19733_v14 = vcombine.low %v19729_v23, %v19730_v42  ;;  %v1793_v13 = vld [vmem:[%s14799_s22 + $0x138] sm:$0xff]  ;;  %v1730_v25 = vsel %vm1602_vm10, %v1421_v12, %v1666_v0  ;;  %vm1605_vm13 = vcmp.ge.f32.partialorder %v1536_v50, 0.0  ;;  %v1669_v27 = vmul.f32 0.2, %v1536_v50 }
 0x222   : > { %3848 = vmatpush1.bf16.msra.mxu0 %v19732_v18  ;;  %v15356_v32 = vpack.c.bf16 %v1855_v60, %v1851_v48  ;;  %v19736_v19 = vcombine.high %v19734_v38, %v19735_v29  ;;  %v19738_v16 = vld [vmem:[#allocation25_spill] sm:$0xff]  ;;  %v1794_v18 = vld [vmem:[%s14799_s22 + $0x140] sm:$0xff]  ;;  %v1670_v42 = vmul.f32 0.2, %v1425_v21  ;;  %v1538_v23 = vadd.f32 %v15167_v51, %v14515_v61  ;;  %v1796_v48 = vld [vmem:[%s14799_s22 + $0x150] sm:$0xff] }
 0x223   : > { %3624 = vmatpush1.bf16.msra.mxu1 %v19733_v14  ;;  %v19739_v35 = vcombine.high %v19737_v62, %v19738_v16  ;;  %v1671_v14 = vmul.f32 0.2, %v1427_v30  ;;  %v15368_v12 = vpack.c.bf16 %v1854_v37, %v15282_v53  ;;  %vm1606_vm14 = vcmp.ge.f32.partialorder %v1425_v21, 0.0 }
 0x224   : > { %3849 = vmatprep.subr.bf16.mxu0 %v19736_v19  ;;  %vm1607_vm15 = vcmp.ge.f32.partialorder %v1427_v30, 0.0  ;;  %v1540_v19 = vadd.f32 %v15183_v57, %v14536_v3  ;;  %3564 = vmatprep.mubr.bf16.mxu1 %v15356_v32  ;;  %v1431_v60 = vadd.f32 %v15221_v56, %v14512_v54  ;;  %v15376_v51 = vmul.f32 %v1789_v36, %v1725_v46  ;;  %v1798_v36 = vld [vmem:[%s14799_s22 + $0x160] sm:$0xff] }
 0x225   : > { %3625 = vmatprep.subr.bf16.mxu1 %v19739_v35  ;;  %19740 = vst [vmem:[#allocation14_spill] sm:$0xff] %v15368_v12  ;;  %3790 = vmatprep.mubr.bf16.mxu0 %v15356_v32  ;;  %v15378_v0 = vmul.f32 %v1792_v2, %v1728_v20  ;;  %v15380_v53 = vmul.f32 %v1793_v13, %v1729_v24  ;;  %v1795_v20 = vld [vmem:[%s14799_s22 + $0x148] sm:$0xff]  ;;  %v1672_v2 = vmul.f32 0.2, %v1538_v23  ;;  %vm1608_vm0 = vcmp.ge.f32.partialorder %v1538_v23, 0.0 }
 0x226   : > { %3565 = vmatmul.mubr.bf16.gmra.mrb[48].mxu1 %v15368_v12  ;;  %3791 = vmatmul.mubr.bf16.gmra.mrb[80].mxu0 %v15368_v12  ;;  %v1858_v57 = vmul.f32 %v1794_v18, %v1730_v25  ;;  %v1732_v37 = vsel %vm1604_vm11, %v1534_v39, %v1668_v26  ;;  %v1731_v35 = vsel %vm1603_vm12, %v1423_v11, %v1667_v7  ;;  %v1799_v12 = vld [vmem:[%s14799_s22 + $0x168] sm:$0xff]  ;;  %v1673_v26 = vmul.f32 0.2, %v1540_v19 }
 0x227   : > { %v1733_v56 = vsel %vm1605_vm13, %v1536_v50, %v1669_v27  ;;  %v19741_v46 = vcombine.low %v19734_v38, %v19735_v29  ;;  %v1734_v24 = vsel %vm1606_vm14, %v1425_v21, %v1670_v42  ;;  %v1735_v13 = vsel %vm1607_vm15, %v1427_v30, %v1671_v14  ;;  %v1797_v50 = vld [vmem:[%s14799_s22 + $0x158] sm:$0xff]  ;;  %v19743_v21 = vld [vmem:[#allocation26_spill] sm:$0xff]  ;;  %v19744_v27 = vld [vmem:[#allocation27_spill] sm:$0xff] }
 0x228   : > { %v1433_v39 = vadd.f32 %v15234_v63, %v14533_v1  ;;  %v19742_v11 = vcombine.low %v19737_v62, %v19738_v16  ;;  %v1674_v7 = vmul.f32 0.2, %v1431_v60  ;;  %v1435_v25 = vadd.f32 %v15249_v34, %v14512_v54  ;;  %v19746_v30 = vld [vmem:[#allocation28_spill] sm:$0xff]  ;;  %v19747_v29 = vld [vmem:[#allocation29_spill] sm:$0xff] }
 0x229   : > { %3850 = vmatpush1.bf16.msra.mxu0 %v19741_v46  ;;  %v19745_v38 = vcombine.high %v19743_v21, %v19744_v27  ;;  %v19748_v18 = vcombine.high %v19746_v30, %v19747_v29  ;;  %vm1609_vm1 = vcmp.ge.f32.partialorder %v1540_v19, 0.0  ;;  %vm1610_vm2 = vcmp.ge.f32.partialorder %v1431_v60, 0.0 }
 0x22a   : > { %3626 = vmatpush1.bf16.msra.mxu1 %v19742_v11  ;;  %v1546_v62 = vadd.f32 %v15236_v5, %v14536_v3  ;;  %v1437_v63 = vadd.f32 %v15263_v44, %v14533_v1  ;;  %v15414_v16 = vmul.f32 %v1796_v48, %v1732_v37  ;;  %v1859_v34 = vmul.f32 %v1795_v20, %v1731_v35  ;;  %v19751_v48 = vld [vmem:[#allocation30_spill] sm:$0xff]  ;;  %v1800_v20 = vld [vmem:[%s14799_s22 + $0x170] sm:$0xff] }
 0x22b   : > { %3851 = vmatprep.subr.bf16.mxu0 %v19745_v38  ;;  %3627 = vmatprep.subr.bf16.mxu1 %v19748_v18  ;;  %v1862_v42 = vmul.f32 %v1798_v36, %v1734_v24  ;;  %v1863_v14 = vmul.f32 %v1799_v12, %v1735_v13  ;;  %v19749_v46 = vcombine.low %v19743_v21, %v19744_v27  ;;  %v1675_v44 = vmul.f32 0.2, %v1433_v39  ;;  %v19752_v12 = vld [vmem:[#allocation31_spill] sm:$0xff]  ;;  %v19754_v36 = vld [vmem:[#allocation32_spill] sm:$0xff]  ;;  %v1801_v13 = vld [vmem:[%s14799_s22 + $0x178] sm:$0xff] }
 0x22c   : > { %v15419_v11 = vmul.f32 %v1797_v50, %v1733_v56  ;;  %v1736_v38 = vsel %vm1608_vm0, %v1538_v23, %v1672_v2  ;;  %v15424_v5 = vadd.f32 %v15223_v6, %v14515_v61  ;;  %v19750_v37 = vcombine.low %v19746_v30, %v19747_v29  ;;  %v19755_v6 = vld [vmem:[#allocation33_spill] sm:$0xff]  ;;  %v1802_v30 = vld [vmem:[%s14799_s22 + $0x180] sm:$0xff] }
 0x22d   : > { %3852 = vmatpush1.bf16.msra.mxu0 %v19749_v46  ;;  %v19753_v35 = vcombine.high %v19751_v48, %v19752_v12  ;;  %v1737_v56 = vsel %vm1609_vm1, %v1540_v19, %v1673_v26  ;;  %v1738_v24 = vsel %vm1610_vm2, %v1431_v60, %v1674_v7  ;;  %vm1611_vm3 = vcmp.ge.f32.partialorder %v1433_v39, 0.0 }
 0x22e   : > { %3628 = vmatpush1.bf16.msra.mxu1 %v19750_v37  ;;  %v1678_v23 = vmul.f32 0.2, %v1435_v25  ;;  %v19756_v2 = vcombine.high %v19754_v36, %v19755_v6  ;;  %v1677_v50 = vmul.f32 0.2, %v1546_v62  ;;  %vm1614_vm4 = vcmp.ge.f32.partialorder %v1435_v25, 0.0  ;;  %v1806_v37 = vld [vmem:[%s14799_s22 + $0x1a0] sm:$0xff] }
 0x22f   : > { %3853 = vmatprep.subr.bf16.mxu0 %v19753_v35  ;;  %v1548_v21 = vadd.f32 %v15251_v8, %v14515_v61  ;;  %v1679_v27 = vmul.f32 0.2, %v1437_v63  ;;  %vm1615_vm5 = vcmp.ge.f32.partialorder %v1437_v63, 0.0  ;;  %v15442_v19 = vpack.c.bf16 %v1863_v14, %v1859_v34  ;;  %v1803_v8 = vld [vmem:[%s14799_s22 + $0x188] sm:$0xff]  ;;  %v19759_v34 = vld [vmem:[#allocation34_spill] sm:$0xff] }
 0x230   : > { %3629 = vmatprep.subr.bf16.mxu1 %v19756_v2  ;;  %v15444_v60 = vpack.c.bf16 %v1862_v42, %v1858_v57  ;;  %v1441_v26 = vadd.f32 %v15297_v10, %v14512_v54  ;;  %v19757_v7 = vcombine.low %v19751_v48, %v19752_v12  ;;  %v15451_v29 = vmul.f32 %v1800_v20, %v1736_v38  ;;  %v19760_v42 = vld [vmem:[#allocation35_spill] sm:$0xff] }
 0x231   : > { %v1739_v18 = vsel %vm1611_vm3, %v1433_v39, %v1675_v44  ;;  %vm1613_vm6 = vcmp.ge.f32.partialorder %v1546_v62, 0.0  ;;  %v1550_v46 = vadd.f32 %v15265_v40, %v14536_v3  ;;  %v19758_v57 = vcombine.low %v19754_v36, %v19755_v6  ;;  %3574 = vmatprep.mubr.bf16.mxu1 %v15442_v19  ;;  %3800 = vmatprep.mubr.bf16.mxu0 %v15442_v19  ;;  %v1807_v35 = vld [vmem:[%s14799_s22 + $0x1a8] sm:$0xff] }
 0x232   : > { %3854 = vmatpush1.bf16.msra.mxu0 %v19757_v7  ;;  %v19761_v10 = vcombine.high %v19759_v34, %v19760_v42  ;;  %v15462_v14 = vmul.f32 %v1801_v13, %v1737_v56  ;;  %v1742_v38 = vsel %vm1614_vm4, %v1435_v25, %v1678_v23  ;;  %v1443_v40 = vadd.f32 %v15323_v52, %v14533_v1  ;;  %v19764_v23 = vld [vmem:[#allocation37_spill] sm:$0xff] }
 0x233   : > { %3630 = vmatpush1.bf16.msra.mxu1 %v19758_v57  ;;  %v1866_v39 = vmul.f32 %v1802_v30, %v1738_v24  ;;  %v15471_v44 = vmul.f32 0.2, %v15424_v5  ;;  %v1680_v48 = vmul.f32 0.2, %v1548_v21  ;;  %v1743_v12 = vsel %vm1615_vm5, %v1437_v63, %v1679_v27  ;;  %3801 = vmatmul.mubr.bf16.gmra.mrb[84].mxu0 %v15444_v60  ;;  %v19763_v24 = vld [vmem:[#allocation36_spill] sm:$0xff] }
 0x234   : > { %3855 = vmatprep.subr.bf16.mxu0 %v19761_v10  ;;  %3575 = vmatmul.mubr.bf16.gmra.mrb[52].mxu1 %v15444_v60  ;;  %v1867_v25 = vmul.f32 %v1803_v8, %v1739_v18  ;;  %v15478_v20 = vsel %vm1613_vm6, %v1546_v62, %v1677_v50  ;;  %vm1616_vm7 = vcmp.ge.f32.partialorder %v1548_v21, 0.0  ;;  %v1682_v56 = vmul.f32 0.2, %v1441_v26  ;;  %v19767_v62 = vld [vmem:[#allocation38_spill] sm:$0xff]  ;;  %v19768_v50 = vld [vmem:[#allocation39_spill] sm:$0xff]  ;;  %v19770_v18 = vld [vmem:[#allocation40_spill] sm:$0xff] }
 0x235   : > { %v19762_v52 = vcombine.low %v19759_v34, %v19760_v42  ;;  %v19765_v36 = vcombine.high %v19763_v24, %v19764_v23  ;;  %v1870_v63 = vmul.f32 %v1806_v37, %v1742_v38  ;;  %v1681_v6 = vmul.f32 0.2, %v1550_v46  ;;  %v19771_v8 = vld [vmem:[#allocation41_spill] sm:$0xff] }
 0x236   : > { %vm1618_vm8 = vcmp.ge.f32.partialorder %v1441_v26, 0.0  ;;  %v1683_v2 = vmul.f32 0.2, %v1443_v40  ;;  %v19766_v13 = vcombine.low %v19763_v24, %v19764_v23  ;;  %v19769_v27 = vcombine.high %v19767_v62, %v19768_v50  ;;  %v1815_v24 = vld [vmem:[%s14799_s22 + $0x1e8] sm:$0xff] }
 0x237   : > { %3856 = vmatpush1.bf16.msra.mxu0 %v19762_v52  ;;  %3631 = vmatprep.subr.bf16.mxu1 %v19765_v36  ;;  %vm1612_vm9 = vcmp.ge.f32.partialorder %v15424_v5, 0.0  ;;  %v1871_v30 = vmul.f32 %v1807_v35, %v1743_v12  ;;  %vm1617_vm10 = vcmp.ge.f32.partialorder %v1550_v46, 0.0  ;;  %vm1619_vm11 = vcmp.ge.f32.partialorder %v1443_v40, 0.0  ;;  %v1814_v12 = vld [vmem:[%s14799_s22 + $0x1e0] sm:$0xff]  ;;  %v1811_v52 = vld [vmem:[%s14799_s22 + $0x1c8] sm:$0xff]  ;;  %v19779_v36 = vld [vmem:[#allocation45_spill] sm:$0xff] }
 0x238   : > { %3632 = vmatpush1.bf16.msra.mxu1 %v19766_v13  ;;  %3857 = vmatprep.subr.bf16.mxu0 %v19769_v27  ;;  %v1445_v7 = vadd.f32 %v15331_v49, %v14512_v54  ;;  %v19772_v57 = vcombine.high %v19770_v18, %v19771_v8  ;;  %v15499_v34 = vsel %vm1616_vm7, %v1548_v21, %v1680_v48  ;;  %v1810_v49 = vld [vmem:[%s14799_s22 + $0x1c0] sm:$0xff] }
 0x239   : > { %v15503_v42 = vadd.f32 %v15299_v33, %v14515_v61  ;;  %v15507_v10 = vadd.f32 %v15325_v47, %v14536_v3  ;;  %v1447_v38 = vadd.f32 %v15342_v59, %v14533_v1  ;;  %v1746_v54 = vsel %vm1618_vm8, %v1441_v26, %v1682_v56  ;;  %v19775_v59 = vld [vmem:[#allocation42_spill] sm:$0xff]  ;;  %v19776_v26 = vld [vmem:[#allocation43_spill] sm:$0xff] }
 0x23a   : > { %3633 = vmatprep.subr.bf16.mxu1 %v19772_v57  ;;  %vm1622_vm12 = vcmp.ge.f32.partialorder %v1445_v7, 0.0  ;;  %v1686_v37 = vmul.f32 0.2, %v1445_v7  ;;  %v1560_v21 = vadd.f32 %v15344_v45, %v14536_v3  ;;  %v19773_v48 = vcombine.low %v19767_v62, %v19768_v50 }
 0x23b   : > { %v1745_v33 = vsel %vm1617_vm10, %v1550_v46, %v1681_v6  ;;  %v1747_v35 = vsel %vm1619_vm11, %v1443_v40, %v1683_v2  ;;  %vm1623_vm13 = vcmp.ge.f32.partialorder %v1447_v38, 0.0  ;;  %v1687_v47 = vmul.f32 0.2, %v1447_v38  ;;  %v19778_v40 = vld [vmem:[#allocation44_spill] sm:$0xff] }
 0x23c   : > { %3858 = vmatpush1.bf16.msra.mxu0 %v19773_v48  ;;  %v19774_v1 = vcombine.low %v19770_v18, %v19771_v8  ;;  %v19777_v56 = vcombine.high %v19775_v59, %v19776_v26  ;;  %v1750_v3 = vsel %vm1622_vm12, %v1445_v7, %v1686_v37  ;;  %v1558_v45 = vadd.f32 %v15333_v55, %v14515_v61  ;;  %v19786_v37 = vld [vmem:[#allocation49_spill] sm:$0xff] }
 0x23d   : > { %v15528_v23 = vpack.c.bf16 %v1871_v30, %v1867_v25  ;;  %v15530_v46 = vpack.c.bf16 %v1870_v63, %v1866_v39  ;;  %v19780_v6 = vcombine.high %v19778_v40, %v19779_v36  ;;  %v1874_v2 = vmul.f32 %v1810_v49, %v1746_v54  ;;  %v1809_v39 = vld [vmem:[%s14799_s22 + $0x1b8] sm:$0xff]  ;;  %v19784_v54 = vld [vmem:[#allocation47_spill] sm:$0xff] }
 0x23e   : > { %3634 = vmatpush1.bf16.msra.mxu1 %v19774_v1  ;;  %3859 = vmatprep.subr.bf16.mxu0 %v19777_v56  ;;  %v1878_v13 = vmul.f32 %v1814_v12, %v1750_v3  ;;  %v1751_v62 = vsel %vm1623_vm13, %v1447_v38, %v1687_v47  ;;  %v15537_v50 = vpack.c.bf16 %v14984_v43, %v14982_v31  ;;  %vm1621_vm14 = vcmp.ge.f32.partialorder %v15507_v10, 0.0  ;;  %v1805_v63 = vld [vmem:[%s14799_s22 + $0x198] sm:$0xff]  ;;  %v19783_v38 = vld [vmem:[#allocation46_spill] sm:$0xff] }
 0x23f   : > { %3635 = vmatprep.subr.bf16.mxu1 %v19780_v6  ;;  %v1875_v27 = vmul.f32 %v1811_v52, %v1747_v35  ;;  %v1879_v61 = vmul.f32 %v1815_v24, %v1751_v62  ;;  %v1689_v55 = vmul.f32 0.2, %v1560_v21  ;;  %3584 = vmatprep.mubr.bf16.mxu1 %v15528_v23  ;;  %v1685_v25 = vmul.f32 0.2, %v15507_v10  ;;  %v19787_v12 = vld [vmem:[#allocation50_spill] sm:$0xff]  ;;  %v19795_v6 = vld [vmem:[#allocation52_spill] sm:$0xff] }
 0x240   : > { %3810 = vmatprep.mubr.bf16.mxu0 %v15528_v23  ;;  %vm1625_vm15 = vcmp.ge.f32.partialorder %v1560_v21, 0.0  ;;  %3585 = vmatmul.mubr.bf16.gmra.mrb[56].mxu1 %v15530_v46  ;;  %v15546_v31 = vpack.c.bf16 %v1878_v13, %v1874_v2  ;;  %v15550_v43 = vpack.c.bf16 %v15038_v28, %v14994_v9  ;;  %v1688_v30 = vmul.f32 0.2, %v1558_v45  ;;  %v1808_v28 = vld [vmem:[%s14799_s22 + $0x1b0] sm:$0xff]  ;;  %v19796_v2 = vld [vmem:[#allocation53_spill] sm:$0xff] }
 0x241   : > { %3811 = vmatmul.mubr.bf16.gmra.mrb[88].mxu0 %v15530_v46  ;;  %v15553_v7 = vpack.c.bf16 %v1879_v61, %v1875_v27  ;;  %v19781_v18 = vcombine.low %v19775_v59, %v19776_v26  ;;  %v19782_v8 = vcombine.low %v19778_v40, %v19779_v36  ;;  %v15563_v57 = vpack.c.bf16 %v15036_v22, %v14992_v41  ;;  %v19789_v41 = vld [vmem:[#allocation8_spill] sm:$0xff]  ;;  %v19790_v22 = vld [vmem:[#allocation11_spill] sm:$0xff]  ;;  %v1817_v26 = vld [vmem:[%s14799_s22 + $0x1f8] sm:$0xff] }
 0x242   : > { %v15567_v9 = vpack.c.bf16 %v15169_v17, %v15158_v58  ;;  %vm1624_vm0 = vcmp.ge.f32.partialorder %v1558_v45, 0.0  ;;  %v19785_v49 = vcombine.high %v19783_v38, %v19784_v54  ;;  %v19788_v48 = vcombine.high %v19786_v37, %v19787_v12  ;;  %v19791_v58 = vld [vmem:[#allocation7_spill] sm:$0xff]  ;;  %v19792_v17 = vld [vmem:[#allocation9_spill] sm:$0xff]  ;;  %v1812_v62 = vld [vmem:[%s14799_s22 + $0x1d0] sm:$0xff] }
 0x243   : > { %3860 = vmatpush1.bf16.msra.mxu0 %v19781_v18  ;;  %3636 = vmatpush1.bf16.msra.mxu1 %v19782_v8  ;;  %v15578_v35 = vpack.c.bf16 %v15160_v4, %v15148_v15  ;;  %v15582_v52 = vpack.c.bf16 %v19790_v22, %v19789_v41  ;;  %v15586_v47 = vpack.c.bf16 %v19792_v17, %v19791_v58  ;;  %v1684_v1 = vmul.f32 0.2, %v15503_v42  ;;  %v13516_v18 = vld [vmem:[%s19414_s8 + $0x30] sm:$0xff]  ;;  %v19798_v41 = vld [vmem:[#allocation51_spill] sm:$0xff]  ;;  %v1933_v22 = vld [vmem:[%s19414_s8 + $0x98] sm:$0xff] }
 0x244   : > { %3861 = vmatprep.subr.bf16.mxu0 %v19785_v49  ;;  %3944 = vmatprep.subr.bf16.mxu1 %v19788_v48  ;;  %v1873_v24 = vmul.f32 %v1809_v39, %v1745_v33  ;;  %v1753_v59 = vsel %vm1625_vm15, %v1560_v21, %v1689_v55  ;;  %v15595_v15 = vpack.c.bf16 %v15380_v53, %v15376_v51  ;;  %v1804_v33 = vld [vmem:[%s14799_s22 + $0x190] sm:$0xff]  ;;  %vm1620_vm1 = vcmp.ge.f32.partialorder %v15503_v42, 0.0  ;;  %v19793_v21 = vld [vmem:[#allocation13_spill] sm:$0xff] }
 0x245   : > { %3594 = vmatprep.mubr.bf16.mxu1 %v15553_v7  ;;  %3820 = vmatprep.mubr.bf16.mxu0 %v15553_v7  ;;  %v1740_v4 = vsel %vm1612_vm9, %v15424_v5, %v15471_v44  ;;  %v1869_v56 = vmul.f32 %v1805_v63, %v15478_v20  ;;  %v15606_v3 = vpack.c.bf16 %v15378_v0, %v19793_v21  ;;  %v1813_v53 = vld [vmem:[%s14799_s22 + $0x1d8] sm:$0xff]  ;;  %v1816_v5 = vld [vmem:[%s14799_s22 + $0x1f0] sm:$0xff] }
 0x246   : > { %v1872_v40 = vmul.f32 %v1808_v28, %v15499_v34  ;;  %v1749_v51 = vsel %vm1621_vm14, %v15507_v10, %v1685_v25  ;;  %v1752_v36 = vsel %vm1624_vm0, %v1558_v45, %v1688_v30  ;;  %v19794_v44 = vcombine.low %v19783_v38, %v19784_v54  ;;  %v1925_v39 = vld [vmem:[%s19414_s8 + $0x58] sm:$0xff]  ;;  %v13515_v30 = vld [vmem:[%s19414_s8 + $0x10] sm:$0xff] }
 0x247   : > { %v15620_v20 = vpack.c.bf16 %v15462_v14, %v15419_v11  ;;  %v1881_v0 = vmul.f32 %v1817_v26, %v1753_v59  ;;  %v19797_v34 = vcombine.high %v19795_v6, %v19796_v2  ;;  %v15627_v10 = vpack.c.bf16 %v15451_v29, %v15414_v16  ;;  %v1924_v14 = vld [vmem:[%s19414_s8 + $0x50] sm:$0xff]  ;;  %v1929_v25 = vld [vmem:[%s19414_s8 + $0x78] sm:$0xff] }
 0x248   : > { %3862 = vmatpush1.bf16.msra.mxu0 %v19794_v44  ;;  %v1868_v13 = vmul.f32 %v1804_v33, %v1740_v4  ;;  %v1748_v45 = vsel %vm1620_vm1, %v15503_v42, %v1684_v1  ;;  %v15631_v27 = vpack.c.bf16 %v1873_v24, %v1869_v56  ;;  %v1877_v61 = vmul.f32 %v1813_v53, %v1749_v51  ;;  %v1928_v42 = vld [vmem:[%s19414_s8 + $0x70] sm:$0xff]  ;;  %v13517_v28 = vld [vmem:[%s19414_s8 + $0x18] sm:$0xff] }
 0x249   : > { %4170 = vmatprep.subr.bf16.mxu0 %v19797_v34  ;;  %v1880_v55 = vmul.f32 %v1816_v5, %v1752_v36  ;;  %3595 = vmatmul.mubr.bf16.gmra.mrb[60].mxu1 %v15546_v31  ;;  %v1876_v16 = vmul.f32 %v1812_v62, %v1748_v45  ;;  %v10684_v8 = vcombine.low %v13515_v30, %v13516_v18  ;;  %v13518_v38 = vld [vmem:[%s19414_s8 + $0x38] sm:$0xff]  ;;  %v1932_v12 = vld [vmem:[%s19414_s8 + $0x90] sm:$0xff] }
 0x24a   : > { %3821 = vmatmul.mubr.bf16.gmra.mrb[92].mxu0 %v15546_v31  ;;  %3637 = vmatprep.mubr.bf16.mxu1 %v15537_v50  ;;  %v15637_v11 = vpack.c.bf16 %v1872_v40, %v1868_v13  ;;  %v15639_v29 = vpack.c.bf16 %v1881_v0, %v1877_v61  ;;  %v10686_v54 = vcombine.low %v13517_v28, %v13518_v38  ;;  %v1936_v48 = vld [vmem:[%s19414_s8 + $0xb0] sm:$0xff]  ;;  %v1937_v58 = vld [vmem:[%s19414_s8 + $0xb8] sm:$0xff] }
 0x24b   : > { %3863 = vmatprep.mubr.bf16.mxu0 %v15537_v50  ;;  %v15653_v63 = vpack.c.bf16 %v1880_v55, %v1876_v16  ;;  %v10693_v49 = vcombine.high %v1924_v14, %v1928_v42  ;;  %v10695_v37 = vcombine.high %v1925_v39, %v1929_v25  ;;  %v10692_v17 = vcombine.low %v1924_v14, %v1928_v42  ;;  %v1940_v26 = vld [vmem:[%s19414_s8 + $0xd0] sm:$0xff]  ;;  %v1941_v33 = vld [vmem:[%s19414_s8 + $0xd8] sm:$0xff] }
 0x24c   : > { %v10694_v24 = vcombine.low %v1925_v39, %v1929_v25  ;;  %v10701_v1 = vcombine.high %v1932_v12, %v1936_v48  ;;  %v10703_v59 = vcombine.high %v1933_v22, %v1937_v58  ;;  %v1944_v4 = vld [vmem:[%s19414_s8 + $0xf0] sm:$0xff]  ;;  %v1945_v56 = vld [vmem:[%s19414_s8 + $0xf8] sm:$0xff]  ;;  %v10700_v21 = vcombine.low %v1932_v12, %v1936_v48 }
 0x24d   : > { %v10702_v40 = vcombine.low %v1933_v22, %v1937_v58  ;;  %v10709_v51 = vcombine.high %v1940_v26, %v1944_v4  ;;  %v10711_v53 = vcombine.high %v1941_v33, %v1945_v56  ;;  %v1948_v36 = vld [vmem:[%s19414_s8 + $0x110] sm:$0xff]  ;;  %v1949_v44 = vld [vmem:[%s19414_s8 + $0x118] sm:$0xff]  ;;  %v10708_v6 = vcombine.low %v1940_v26, %v1944_v4 }
 0x24e   : > { %v1952_v5 = vld [vmem:[%s19414_s8 + $0x130] sm:$0xff]  ;;  %v1953_v0 = vld [vmem:[%s19414_s8 + $0x138] sm:$0xff]  ;;  %v10710_v2 = vcombine.low %v1941_v33, %v1945_v56 }
 0x24f   : > { %v10717_v34 = vcombine.high %v1948_v36, %v1952_v5  ;;  %v10719_v13 = vcombine.high %v1949_v44, %v1953_v0  ;;  %v1956_v45 = vld [vmem:[%s19414_s8 + $0x150] sm:$0xff]  ;;  %v1957_v61 = vld [vmem:[%s19414_s8 + $0x158] sm:$0xff]  ;;  %v10716_v16 = vcombine.low %v1948_v36, %v1952_v5  ;;  %v10718_v14 = vcombine.low %v1949_v44, %v1953_v0 }
 0x250   : > { %v1960_v62 = vld [vmem:[%s19414_s8 + $0x170] sm:$0xff]  ;;  %v1961_v55 = vld [vmem:[%s19414_s8 + $0x178] sm:$0xff] }
 0x251   : > { %3638 = vmatmul.mubr.bf16.vlgmr.msra.gmra.mrb[32].mxu1 %v19798_v41  ;;  %v10725_v42 = vcombine.high %v1956_v45, %v1960_v62  ;;  %v10727_v39 = vcombine.high %v1957_v61, %v1961_v55  ;;  %v1964_v25 = vld [vmem:[%s19414_s8 + $0x190] sm:$0xff]  ;;  %v1965_v18 = vld [vmem:[%s19414_s8 + $0x198] sm:$0xff]  ;;  %v10724_v28 = vcombine.low %v1956_v45, %v1960_v62  ;;  %v10726_v38 = vcombine.low %v1957_v61, %v1961_v55 }
 0x252   : > { %3864 = vmatmul.mubr.bf16.vlgmr.msra.gmra.mrb[64].mxu0 %v19798_v41  ;;  %3945 = vmatpush1.bf16.msra.mxu1 %v10684_v8  ;;  %v1968_v30 = vld [vmem:[%s19414_s8 + $0x1b0] sm:$0xff]  ;;  %v1969_v8 = vld [vmem:[%s19414_s8 + $0x1b8] sm:$0xff] }
 0x253   : > { %3647 = vmatprep.mubr.bf16.mxu1 %v15550_v43  ;;  %3873 = vmatprep.mubr.bf16.mxu0 %v15550_v43  ;;  %v1976_v12 = vld [vmem:[%s19414_s8 + $0x1f0] sm:$0xff]  ;;  %v1973_v48 = vld [vmem:[%s19414_s8 + $0x1d8] sm:$0xff]  ;;  %v10732_v58 = vcombine.low %v1964_v25, %v1968_v30 }
 0x254   : > { %4171 = vmatpush1.bf16.msra.mxu0 %v10686_v54  ;;  %3946 = vmatprep.subr.bf16.mxu1 %v10693_v49  ;;  %v10733_v54 = vcombine.high %v1964_v25, %v1968_v30  ;;  %v10735_v49 = vcombine.high %v1965_v18, %v1969_v8  ;;  %v1977_v22 = vld [vmem:[%s19414_s8 + $0x1f8] sm:$0xff]  ;;  %v1984_v26 = vld [vmem:[%s19414_s8 + $0x230] sm:$0xff] }
 0x255   : > { %4172 = vmatprep.subr.bf16.mxu0 %v10695_v37  ;;  %v1972_v37 = vld [vmem:[%s19414_s8 + $0x1d0] sm:$0xff]  ;;  %v1981_v4 = vld [vmem:[%s19414_s8 + $0x218] sm:$0xff] }
 0x256   : > { %3947 = vmatpush1.bf16.msra.mxu1 %v10692_v17  ;;  %v10734_v17 = vcombine.low %v1965_v18, %v1969_v8  ;;  %v1985_v33 = vld [vmem:[%s19414_s8 + $0x238] sm:$0xff]  ;;  %v10740_v56 = vcombine.low %v1972_v37, %v1976_v12  ;;  %v1992_v36 = vld [vmem:[%s19414_s8 + $0x270] sm:$0xff] }
 0x257   : > { %3948 = vmatprep.subr.bf16.mxu1 %v10701_v1  ;;  %v10743_v1 = vcombine.high %v1973_v48, %v1977_v22  ;;  %v1989_v5 = vld [vmem:[%s19414_s8 + $0x258] sm:$0xff]  ;;  %v2000_v45 = vld [vmem:[%s19414_s8 + $0x2b0] sm:$0xff] }
 0x258   : > { %4173 = vmatpush1.bf16.msra.mxu0 %v10694_v24  ;;  %v10741_v24 = vcombine.high %v1972_v37, %v1976_v12  ;;  %v1993_v44 = vld [vmem:[%s19414_s8 + $0x278] sm:$0xff]  ;;  %v2008_v25 = vld [vmem:[%s19414_s8 + $0x2f0] sm:$0xff] }
 0x259   : > { %4174 = vmatprep.subr.bf16.mxu0 %v10703_v59  ;;  %3648 = vmatmul.mubr.bf16.gmra.mrb[36].mxu1 %v15563_v57  ;;  %v1980_v59 = vld [vmem:[%s19414_s8 + $0x210] sm:$0xff]  ;;  %v1997_v62 = vld [vmem:[%s19414_s8 + $0x298] sm:$0xff] }
 0x25a   : > { %3874 = vmatmul.mubr.bf16.gmra.mrb[68].mxu0 %v15563_v57  ;;  %3949 = vmatpush1.bf16.msra.mxu1 %v10700_v21  ;;  %v10742_v21 = vcombine.low %v1973_v48, %v1977_v22  ;;  %v10748_v0 = vcombine.low %v1980_v59, %v1984_v26  ;;  %v2001_v61 = vld [vmem:[%s19414_s8 + $0x2b8] sm:$0xff]  ;;  %v2016_v37 = vld [vmem:[%s19414_s8 + $0x330] sm:$0xff] }
 0x25b   : > { %3657 = vmatprep.mubr.bf16.mxu1 %v15567_v9  ;;  %3883 = vmatprep.mubr.bf16.mxu0 %v15567_v9  ;;  %v2005_v30 = vld [vmem:[%s19414_s8 + $0x2d8] sm:$0xff] }
 0x25c   : > { %4175 = vmatpush1.bf16.msra.mxu0 %v10702_v40  ;;  %3950 = vmatprep.subr.bf16.mxu1 %v10709_v51  ;;  %v10749_v40 = vcombine.high %v1980_v59, %v1984_v26  ;;  %v10751_v51 = vcombine.high %v1981_v4, %v1985_v33  ;;  %v2009_v18 = vld [vmem:[%s19414_s8 + $0x2f8] sm:$0xff]  ;;  %v2024_v59 = vld [vmem:[%s19414_s8 + $0x370] sm:$0xff] }
 0x25d   : > { %4176 = vmatprep.subr.bf16.mxu0 %v10711_v53  ;;  %v1988_v53 = vld [vmem:[%s19414_s8 + $0x250] sm:$0xff]  ;;  %v2013_v12 = vld [vmem:[%s19414_s8 + $0x318] sm:$0xff] }
 0x25e   : > { %3951 = vmatpush1.bf16.msra.mxu1 %v10708_v6  ;;  %v10750_v6 = vcombine.low %v1981_v4, %v1985_v33  ;;  %v10756_v55 = vcombine.low %v1988_v53, %v1992_v36  ;;  %v2017_v48 = vld [vmem:[%s19414_s8 + $0x338] sm:$0xff] }
 0x25f   : > { %3952 = vmatprep.subr.bf16.mxu1 %v10717_v34  ;;  %v10759_v34 = vcombine.high %v1989_v5, %v1993_v44  ;;  %v2021_v26 = vld [vmem:[%s19414_s8 + $0x358] sm:$0xff] }
 0x260   : > { %4177 = vmatpush1.bf16.msra.mxu0 %v10710_v2  ;;  %v10757_v2 = vcombine.high %v1988_v53, %v1992_v36  ;;  %v2025_v4 = vld [vmem:[%s19414_s8 + $0x378] sm:$0xff]  ;;  %v2032_v53 = vld [vmem:[%s19414_s8 + $0x3b0] sm:$0xff] }
 0x261   : > { %4178 = vmatprep.subr.bf16.mxu0 %v10719_v13  ;;  %3658 = vmatmul.mubr.bf16.gmra.mrb[40].mxu1 %v15578_v35  ;;  %v1996_v13 = vld [vmem:[%s19414_s8 + $0x290] sm:$0xff]  ;;  %v2029_v36 = vld [vmem:[%s19414_s8 + $0x398] sm:$0xff] }
 0x262   : > { %3884 = vmatmul.mubr.bf16.gmra.mrb[72].mxu0 %v15578_v35  ;;  %3953 = vmatpush1.bf16.msra.mxu1 %v10716_v16  ;;  %v10758_v16 = vcombine.low %v1989_v5, %v1993_v44  ;;  %v10764_v8 = vcombine.low %v1996_v13, %v2000_v45  ;;  %v2033_v5 = vld [vmem:[%s19414_s8 + $0x3b8] sm:$0xff] }
 0x263   : > { %3667 = vmatprep.mubr.bf16.mxu1 %v15582_v52  ;;  %3893 = vmatprep.mubr.bf16.mxu0 %v15582_v52 }
 0x264   : > { %4179 = vmatpush1.bf16.msra.mxu0 %v10718_v14  ;;  %3954 = vmatprep.subr.bf16.mxu1 %v10725_v42  ;;  %v10765_v14 = vcombine.high %v1996_v13, %v2000_v45  ;;  %v10767_v42 = vcombine.high %v1997_v62, %v2001_v61  ;;  %v2040_v13 = vld [vmem:[%s19414_s8 + $0x3f0] sm:$0xff]  ;;  %v2037_v45 = vld [vmem:[%s19414_s8 + $0x3d8] sm:$0xff] }
 0x265   : > { %4180 = vmatprep.subr.bf16.mxu0 %v10727_v39  ;;  %v2004_v39 = vld [vmem:[%s19414_s8 + $0x2d0] sm:$0xff] }
 0x266   : > { %3955 = vmatpush1.bf16.msra.mxu1 %v10724_v28  ;;  %v10766_v28 = vcombine.low %v1997_v62, %v2001_v61  ;;  %v10772_v22 = vcombine.low %v2004_v39, %v2008_v25  ;;  %v2041_v62 = vld [vmem:[%s19414_s8 + $0x3f8] sm:$0xff] }
 0x267   : > { %3956 = vmatprep.subr.bf16.mxu1 %v10733_v54  ;;  %v10775_v54 = vcombine.high %v2005_v30, %v2009_v18 }
 0x268   : > { %4181 = vmatpush1.bf16.msra.mxu0 %v10726_v38  ;;  %v10773_v38 = vcombine.high %v2004_v39, %v2008_v25  ;;  %v2048_v39 = vld [vmem:[%s19414_s8 + $0x430] sm:$0xff]  ;;  %v2045_v25 = vld [vmem:[%s19414_s8 + $0x418] sm:$0xff] }
 0x269   : > { %4182 = vmatprep.subr.bf16.mxu0 %v10735_v49  ;;  %3668 = vmatmul.mubr.bf16.gmra.mrb[44].mxu1 %v15586_v47  ;;  %v2012_v49 = vld [vmem:[%s19414_s8 + $0x310] sm:$0xff] }
 0x26a   : > { %3894 = vmatmul.mubr.bf16.gmra.mrb[76].mxu0 %v15586_v47  ;;  %3957 = vmatpush1.bf16.msra.mxu1 %v10732_v58  ;;  %v10774_v58 = vcombine.low %v2005_v30, %v2009_v18  ;;  %v10780_v33 = vcombine.low %v2012_v49, %v2016_v37  ;;  %v2049_v30 = vld [vmem:[%s19414_s8 + $0x438] sm:$0xff]  ;;  %v19799_v18 = vld [vmem:[#allocation54_spill] sm:$0xff] }
 0x26b   : > { %3677 = vmatprep.mubr.bf16.mxu1 %v15595_v15  ;;  %3903 = vmatprep.mubr.bf16.mxu0 %v15595_v15 }
 0x26c   : > { %4183 = vmatpush1.bf16.msra.mxu0 %v10734_v17  ;;  %3958 = vmatprep.subr.bf16.mxu1 %v10741_v24  ;;  %v10781_v17 = vcombine.high %v2012_v49, %v2016_v37  ;;  %v10783_v24 = vcombine.high %v2013_v12, %v2017_v48  ;;  %v2052_v49 = vld [vmem:[%s19414_s8 + $0x450] sm:$0xff] }
 0x26d   : > { %4184 = vmatprep.subr.bf16.mxu0 %v10743_v1  ;;  %v2020_v1 = vld [vmem:[%s19414_s8 + $0x350] sm:$0xff] }
 0x26e   : > { %3959 = vmatpush1.bf16.msra.mxu1 %v10740_v56  ;;  %v10782_v56 = vcombine.low %v2013_v12, %v2017_v48  ;;  %v10788_v44 = vcombine.low %v2020_v1, %v2024_v59  ;;  %v2056_v37 = vld [vmem:[%s19414_s8 + $0x470] sm:$0xff]  ;;  %v2053_v48 = vld [vmem:[%s19414_s8 + $0x458] sm:$0xff] }
 0x26f   : > { %3960 = vmatprep.subr.bf16.mxu1 %v10749_v40  ;;  %v10791_v40 = vcombine.high %v2021_v26, %v2025_v4 }
 0x270   : > { %4185 = vmatpush1.bf16.msra.mxu0 %v10742_v21  ;;  %v10789_v21 = vcombine.high %v2020_v1, %v2024_v59  ;;  %v2064_v1 = vld [vmem:[%s19414_s8 + $0x4b0] sm:$0xff] }
 0x271   : > { %4186 = vmatprep.subr.bf16.mxu0 %v10751_v51  ;;  %3678 = vmatmul.mubr.bf16.gmra.mrb[48].mxu1 %v15606_v3  ;;  %v2028_v51 = vld [vmem:[%s19414_s8 + $0x390] sm:$0xff] }
 0x272   : > { %3904 = vmatmul.mubr.bf16.gmra.mrb[80].mxu0 %v15606_v3  ;;  %3961 = vmatpush1.bf16.msra.mxu1 %v10748_v0  ;;  %v10790_v0 = vcombine.low %v2021_v26, %v2025_v4  ;;  %v10796_v61 = vcombine.low %v2028_v51, %v2032_v53  ;;  %v19800_v59 = vld [vmem:[#allocation48_spill] sm:$0xff]  ;;  %v10820_v4 = vcombine.low %v2052_v49, %v2056_v37 }
 0x273   : > { %3687 = vmatprep.mubr.bf16.mxu1 %v15620_v20  ;;  %3913 = vmatprep.mubr.bf16.mxu0 %v15620_v20 }
 0x274   : > { %4187 = vmatpush1.bf16.msra.mxu0 %v10750_v6  ;;  %3962 = vmatprep.subr.bf16.mxu1 %v10757_v2  ;;  %v10797_v6 = vcombine.high %v2028_v51, %v2032_v53  ;;  %v10799_v2 = vcombine.high %v2029_v36, %v2033_v5 }
 0x275   : > { %4188 = vmatprep.subr.bf16.mxu0 %v10759_v34  ;;  %v2036_v34 = vld [vmem:[%s19414_s8 + $0x3d0] sm:$0xff] }
 0x276   : > { %3963 = vmatpush1.bf16.msra.mxu1 %v10756_v55  ;;  %v10798_v55 = vcombine.low %v2029_v36, %v2033_v5  ;;  %v2068_v36 = vld [vmem:[%s19414_s8 + $0x4d0] sm:$0xff] }
 0x277   : > { %3964 = vmatprep.subr.bf16.mxu1 %v10765_v14  ;;  %v10807_v14 = vcombine.high %v2037_v45, %v2041_v62  ;;  %v2072_v5 = vld [vmem:[%s19414_s8 + $0x4f0] sm:$0xff] }
 0x278   : > { %4189 = vmatpush1.bf16.msra.mxu0 %v10758_v16  ;;  %v10805_v16 = vcombine.high %v2036_v34, %v2040_v13 }
 0x279   : > { %4190 = vmatprep.subr.bf16.mxu0 %v10767_v42  ;;  %3688 = vmatmul.mubr.bf16.gmra.mrb[52].mxu1 %v15627_v10  ;;  %v2044_v42 = vld [vmem:[%s19414_s8 + $0x410] sm:$0xff] }
 0x27a   : > { %3914 = vmatmul.mubr.bf16.gmra.mrb[84].mxu0 %v15627_v10  ;;  %3965 = vmatpush1.bf16.msra.mxu1 %v10764_v8  ;;  %v10804_v8 = vcombine.low %v2036_v34, %v2040_v13  ;;  %v10812_v12 = vcombine.low %v2044_v42, %v2048_v39  ;;  %v10837_v34 = vcombine.high %v2068_v36, %v2072_v5  ;;  %v2076_v13 = vld [vmem:[%s19414_s8 + $0x510] sm:$0xff] }
 0x27b   : > { %3697 = vmatprep.mubr.bf16.mxu1 %v15631_v27  ;;  %3923 = vmatprep.mubr.bf16.mxu0 %v15631_v27 }
 0x27c   : > { %4191 = vmatpush1.bf16.msra.mxu0 %v10766_v28  ;;  %3966 = vmatprep.subr.bf16.mxu1 %v10773_v38  ;;  %v10806_v28 = vcombine.low %v2037_v45, %v2041_v62  ;;  %v10813_v38 = vcombine.high %v2044_v42, %v2048_v39  ;;  %v2080_v45 = vld [vmem:[%s19414_s8 + $0x530] sm:$0xff]  ;;  %v19803_v42 = vld [vmem:[#allocation57_spill] sm:$0xff] }
 0x27d   : > { %4192 = vmatprep.subr.bf16.mxu0 %v10775_v54  ;;  %v10815_v54 = vcombine.high %v2045_v25, %v2049_v30  ;;  %v19802_v62 = vld [vmem:[#allocation56_spill] sm:$0xff]  ;;  %v10845_v39 = vcombine.high %v2076_v13, %v2080_v45 }
 0x27e   : > { %3967 = vmatpush1.bf16.msra.mxu1 %v10772_v22  ;;  %v2057_v22 = vld [vmem:[%s19414_s8 + $0x478] sm:$0xff] }
 0x27f   : > { %3968 = vmatprep.subr.bf16.mxu1 %v10781_v17  ;;  %v10821_v17 = vcombine.high %v2052_v49, %v2056_v37  ;;  %v10823_v26 = vcombine.high %v2053_v48, %v2057_v22  ;;  %v10822_v51 = vcombine.low %v2053_v48, %v2057_v22  ;;  %v2096_v48 = vld [vmem:[%s19414_s8 + $0x5b0] sm:$0xff]  ;;  %v19804_v22 = vld [vmem:[#allocation58_spill] sm:$0xff] }
 0x280   : > { %4193 = vmatpush1.bf16.msra.mxu0 %v10774_v58  ;;  %v10814_v58 = vcombine.low %v2045_v25, %v2049_v30 }
 0x281   : > { %4194 = vmatprep.subr.bf16.mxu0 %v10783_v24  ;;  %3698 = vmatmul.mubr.bf16.gmra.mrb[56].mxu1 %v15637_v11  ;;  %v2060_v24 = vld [vmem:[%s19414_s8 + $0x490] sm:$0xff] }
 0x282   : > { %3924 = vmatmul.mubr.bf16.gmra.mrb[88].mxu0 %v15637_v11  ;;  %3969 = vmatpush1.bf16.msra.mxu1 %v10780_v33  ;;  %v2061_v33 = vld [vmem:[%s19414_s8 + $0x498] sm:$0xff] }
 0x283   : > { %3707 = vmatprep.mubr.bf16.mxu1 %v15639_v29  ;;  %3933 = vmatprep.mubr.bf16.mxu0 %v15639_v29 }
 0x284   : > { %4195 = vmatpush1.bf16.msra.mxu0 %v10782_v56  ;;  %3970 = vmatprep.subr.bf16.mxu1 %v10789_v21  ;;  %v2065_v56 = vld [vmem:[%s19414_s8 + $0x4b8] sm:$0xff]  ;;  %v19801_v21 = vld [vmem:[#allocation55_spill] sm:$0xff] }
 0x285   : > { %4196 = vmatprep.subr.bf16.mxu0 %v10791_v40  ;;  %v10829_v40 = vcombine.high %v2060_v24, %v2064_v1  ;;  %v10831_v53 = vcombine.high %v2061_v33, %v2065_v56 }
 0x286   : > { %3971 = vmatpush1.bf16.msra.mxu1 %v10788_v44  ;;  %v10828_v44 = vcombine.low %v2060_v24, %v2064_v1  ;;  %v2093_v24 = vld [vmem:[%s19414_s8 + $0x598] sm:$0xff] }
 0x287   : > { %3972 = vmatprep.subr.bf16.mxu1 %v10797_v6  ;;  %v2073_v6 = vld [vmem:[%s19414_s8 + $0x4f8] sm:$0xff] }
 0x288   : > { %4197 = vmatpush1.bf16.msra.mxu0 %v10790_v0  ;;  %v2069_v0 = vld [vmem:[%s19414_s8 + $0x4d8] sm:$0xff] }
 0x289   : > { %4198 = vmatprep.subr.bf16.mxu0 %v10799_v2  ;;  %3708 = vmatmul.mubr.bf16.gmra.mrb[60].mxu1 %v15653_v63  ;;  %v10830_v2 = vcombine.low %v2061_v33, %v2065_v56  ;;  %v10838_v25 = vcombine.low %v2069_v0, %v2073_v6  ;;  %v2097_v1 = vld [vmem:[%s19414_s8 + $0x5b8] sm:$0xff]  ;;  %v2100_v56 = vld [vmem:[%s19414_s8 + $0x5d0] sm:$0xff] }
 0x28a   : > { %3934 = vmatmul.mubr.bf16.gmra.mrb[92].mxu0 %v15653_v63  ;;  %3973 = vmatpush1.bf16.msra.mxu1 %v10796_v61  ;;  %v10839_v61 = vcombine.high %v2069_v0, %v2073_v6  ;;  %v10863_v33 = vcombine.high %v2093_v24, %v2097_v1  ;;  %v2112_v0 = vld [vmem:[%s19414_s8 + $0x630] sm:$0xff] }
 0x28b   : > { %3976 = vmatprep.mubr.bf16.mxu1 %v19799_v18  ;;  %4202 = vmatprep.mubr.bf16.mxu0 %v19799_v18  ;;  %v2084_v18 = vld [vmem:[%s19414_s8 + $0x550] sm:$0xff] }
 0x28c   : > { %4199 = vmatpush1.bf16.msra.mxu0 %v10798_v55  ;;  %3974 = vmatprep.subr.bf16.mxu1 %v10805_v16  ;;  %v10836_v55 = vcombine.low %v2068_v36, %v2072_v5  ;;  %v2077_v16 = vld [vmem:[%s19414_s8 + $0x518] sm:$0xff]  ;;  %v10862_v36 = vcombine.low %v2093_v24, %v2097_v1  ;;  %v19806_v6 = vld [vmem:[#allocation12_spill] sm:$0xff] }
 0x28d   : > { %4200 = vmatprep.subr.bf16.mxu0 %v10807_v14  ;;  %v2081_v14 = vld [vmem:[%s19414_s8 + $0x538] sm:$0xff] }
 0x28e   : > { %3975 = vmatpush1.bf16.msra.mxu1 %v10804_v8  ;;  %v10847_v30 = vcombine.high %v2077_v16, %v2081_v14  ;;  %v2088_v8 = vld [vmem:[%s19414_s8 + $0x570] sm:$0xff]  ;;  %v10846_v49 = vcombine.low %v2077_v16, %v2081_v14  ;;  %v2137_v1 = vld [vmem:[%s19414_s8 + $0x6f8] sm:$0xff] }
 0x28f   : > { %4057 = vmatprep.subr.bf16.mxu1 %v10813_v38  ;;  %v2085_v38 = vld [vmem:[%s19414_s8 + $0x558] sm:$0xff]  ;;  %v10853_v37 = vcombine.high %v2084_v18, %v2088_v8  ;;  %v2116_v16 = vld [vmem:[%s19414_s8 + $0x650] sm:$0xff] }
 0x290   : > { %4201 = vmatpush1.bf16.msra.mxu0 %v10806_v28  ;;  %v10844_v28 = vcombine.low %v2076_v13, %v2080_v45  ;;  %v2109_v13 = vld [vmem:[%s19414_s8 + $0x618] sm:$0xff]  ;;  %v2120_v14 = vld [vmem:[%s19414_s8 + $0x670] sm:$0xff] }
 0x291   : > { %4283 = vmatprep.subr.bf16.mxu0 %v10815_v54  ;;  %3977 = vmatmul.mubr.bf16.vlgmr.msra.gmra.mrb[64].mxu1 %v19800_v59  ;;  %v2089_v54 = vld [vmem:[%s19414_s8 + $0x578] sm:$0xff] }
 0x292   : > { %4058 = vmatpush1.bf16.msra.mxu1 %v10812_v12  ;;  %3986 = vmatprep.mubr.bf16.mxu1 %v19801_v21  ;;  %v2092_v12 = vld [vmem:[%s19414_s8 + $0x590] sm:$0xff]  ;;  %v2113_v45 = vld [vmem:[%s19414_s8 + $0x638] sm:$0xff] }
 0x293   : > { %4203 = vmatmul.mubr.bf16.vlgmr.msra.gmra.mrb[96].mxu0 %v19800_v59  ;;  %4059 = vmatprep.subr.bf16.mxu1 %v10821_v17  ;;  %v10852_v17 = vcombine.low %v2084_v18, %v2088_v8  ;;  %v19805_v59 = vld [vmem:[#allocation10_spill] sm:$0xff]  ;;  %v2124_v18 = vld [vmem:[%s19414_s8 + $0x690] sm:$0xff] }
 0x294   : > { %4212 = vmatprep.mubr.bf16.mxu0 %v19801_v21  ;;  %4284 = vmatpush1.bf16.msra.mxu0 %v10814_v58  ;;  %v10855_v58 = vcombine.high %v2085_v38, %v2089_v54  ;;  %v2104_v21 = vld [vmem:[%s19414_s8 + $0x5f0] sm:$0xff] }
 0x295   : > { %4285 = vmatprep.subr.bf16.mxu0 %v10823_v26  ;;  %v10861_v26 = vcombine.high %v2092_v12, %v2096_v48  ;;  %v10869_v5 = vcombine.high %v2100_v56, %v2104_v21  ;;  %v2128_v8 = vld [vmem:[%s19414_s8 + $0x6b0] sm:$0xff] }
 0x296   : > { %4060 = vmatpush1.bf16.msra.mxu1 %v10820_v4  ;;  %v10854_v4 = vcombine.low %v2085_v38, %v2089_v54  ;;  %v10884_v54 = vcombine.low %v2116_v16, %v2120_v14  ;;  %v10892_v24 = vcombine.low %v2124_v18, %v2128_v8 }
 0x297   : > { %4061 = vmatprep.subr.bf16.mxu1 %v10829_v40  ;;  %v10860_v40 = vcombine.low %v2092_v12, %v2096_v48  ;;  %v10893_v12 = vcombine.high %v2124_v18, %v2128_v8 }
 0x298   : > { %4286 = vmatpush1.bf16.msra.mxu0 %v10822_v51  ;;  %v2101_v51 = vld [vmem:[%s19414_s8 + $0x5d8] sm:$0xff] }
 0x299   : > { %3987 = vmatmul.mubr.bf16.gmra.mrb[68].mxu1 %v19802_v62  ;;  %4287 = vmatprep.subr.bf16.mxu0 %v10831_v53  ;;  %v2105_v53 = vld [vmem:[%s19414_s8 + $0x5f8] sm:$0xff] }
 0x29a   : > { %4062 = vmatpush1.bf16.msra.mxu1 %v10828_v44  ;;  %3996 = vmatprep.mubr.bf16.mxu1 %v19803_v42  ;;  %v2108_v44 = vld [vmem:[%s19414_s8 + $0x610] sm:$0xff] }
 0x29b   : > { %4213 = vmatmul.mubr.bf16.gmra.mrb[100].mxu0 %v19802_v62  ;;  %4063 = vmatprep.subr.bf16.mxu1 %v10837_v34  ;;  %v10868_v34 = vcombine.low %v2100_v56, %v2104_v21  ;;  %v10877_v62 = vcombine.high %v2108_v44, %v2112_v0 }
 0x29c   : > { %4222 = vmatprep.mubr.bf16.mxu0 %v19803_v42  ;;  %4288 = vmatpush1.bf16.msra.mxu0 %v10830_v2  ;;  %v10871_v2 = vcombine.high %v2101_v51, %v2105_v53  ;;  %v10876_v42 = vcombine.low %v2108_v44, %v2112_v0  ;;  %v2152_v44 = vld [vmem:[%s19414_s8 + $0x770] sm:$0xff] }
 0x29d   : > { %4289 = vmatprep.subr.bf16.mxu0 %v10839_v61  ;;  %v10870_v61 = vcombine.low %v2101_v51, %v2105_v53  ;;  %v2145_v51 = vld [vmem:[%s19414_s8 + $0x738] sm:$0xff] }
 0x29e   : > { %4064 = vmatpush1.bf16.msra.mxu1 %v10836_v55  ;;  %v10879_v55 = vcombine.high %v2109_v13, %v2113_v45 }
 0x29f   : > { %4065 = vmatprep.subr.bf16.mxu1 %v10845_v39  ;;  %v2121_v39 = vld [vmem:[%s19414_s8 + $0x678] sm:$0xff] }
 0x2a0   : > { %4290 = vmatpush1.bf16.msra.mxu0 %v10838_v25  ;;  %v10878_v25 = vcombine.low %v2109_v13, %v2113_v45  ;;  %v2156_v13 = vld [vmem:[%s19414_s8 + $0x790] sm:$0xff] }
 0x2a1   : > { %3997 = vmatmul.mubr.bf16.gmra.mrb[72].mxu1 %v19804_v22  ;;  %4291 = vmatprep.subr.bf16.mxu0 %v10847_v30  ;;  %v10885_v30 = vcombine.high %v2116_v16, %v2120_v14  ;;  %v2160_v45 = vld [vmem:[%s19414_s8 + $0x7b0] sm:$0xff]  ;;  %v2161_v16 = vld [vmem:[%s19414_s8 + $0x7b8] sm:$0xff] }
 0x2a2   : > { %4066 = vmatpush1.bf16.msra.mxu1 %v10844_v28  ;;  %4006 = vmatprep.mubr.bf16.mxu1 %v19805_v59  ;;  %v19807_v28 = vld [vmem:[#allocation14_spill] sm:$0xff]  ;;  %v10925_v14 = vcombine.high %v2156_v13, %v2160_v45 }
 0x2a3   : > { %4223 = vmatmul.mubr.bf16.gmra.mrb[104].mxu0 %v19804_v22  ;;  %4067 = vmatprep.subr.bf16.mxu1 %v10853_v37  ;;  %v2129_v37 = vld [vmem:[%s19414_s8 + $0x6b8] sm:$0xff] }
 0x2a4   : > { %4232 = vmatprep.mubr.bf16.mxu0 %v19805_v59  ;;  %4292 = vmatpush1.bf16.msra.mxu0 %v10846_v49  ;;  %v2125_v49 = vld [vmem:[%s19414_s8 + $0x698] sm:$0xff] }
 0x2a5   : > { %4293 = vmatprep.subr.bf16.mxu0 %v10855_v58  ;;  %v10895_v22 = vcombine.high %v2125_v49, %v2129_v37  ;;  %v2132_v58 = vld [vmem:[%s19414_s8 + $0x6d0] sm:$0xff]  ;;  %v10894_v59 = vcombine.low %v2125_v49, %v2129_v37  ;;  %v12432_v37 = vld [vmem:[%s19416_s10 + $0xc] ss:$28 sps:$4 sm:$0xff]  }
 0x2a6   : > { %4068 = vmatpush1.bf16.msra.mxu1 %v10852_v17  ;;  %v2136_v17 = vld [vmem:[%s19414_s8 + $0x6f0] sm:$0xff] }
 0x2a7   : > { %4069 = vmatprep.subr.bf16.mxu1 %v10861_v26  ;;  %v10901_v26 = vcombine.high %v2132_v58, %v2136_v17  ;;  %v10900_v21 = vcombine.low %v2132_v58, %v2136_v17  ;;  %v12441_v58 = vld [vmem:[%s19416_s10 + $0x74] ss:$28 sps:$4 sm:$0xff]   ;;  %v12436_v17 = vld [vmem:[%s19416_s10 + $0x40] ss:$28 sps:$4 sm:$0xff]  }
 0x2a8   : > { %4294 = vmatpush1.bf16.msra.mxu0 %v10854_v4  ;;  %v2140_v4 = vld [vmem:[%s19414_s8 + $0x710] sm:$0xff] }
 0x2a9   : > { %4007 = vmatmul.mubr.bf16.gmra.mrb[76].mxu1 %v19806_v6  ;;  %4295 = vmatprep.subr.bf16.mxu0 %v10863_v33  ;;  %v2144_v33 = vld [vmem:[%s19414_s8 + $0x730] sm:$0xff] }
 0x2aa   : > { %4070 = vmatpush1.bf16.msra.mxu1 %v10860_v40  ;;  %4016 = vmatprep.mubr.bf16.mxu1 %v15356_v32  ;;  %v2141_v40 = vld [vmem:[%s19414_s8 + $0x718] sm:$0xff]  ;;  %v10909_v53 = vcombine.high %v2140_v4, %v2144_v33  ;;  %v10908_v0 = vcombine.low %v2140_v4, %v2144_v33  ;;  %v12448_v4 = vld [vmem:[%s19416_s10 + $0xb0] ss:$28 sps:$4 sm:$0xff]  }
 0x2ab   : > { %4233 = vmatmul.mubr.bf16.gmra.mrb[108].mxu0 %v19806_v6  ;;  %4071 = vmatprep.subr.bf16.mxu1 %v10869_v5  ;;  %v10911_v5 = vcombine.high %v2141_v40, %v2145_v51  ;;  %v2153_v6 = vld [vmem:[%s19414_s8 + $0x778] sm:$0xff]  ;;  %v12456_v33 = vld [vmem:[%s19416_s10 + $0xec] ss:$28 sps:$4 sm:$0xff]  }
 0x2ac   : > { %4242 = vmatprep.mubr.bf16.mxu0 %v15356_v32  ;;  %4296 = vmatpush1.bf16.msra.mxu0 %v10862_v36  ;;  %v2117_v32 = vld [vmem:[%s19414_s8 + $0x658] sm:$0xff] }
 0x2ad   : > { %4297 = vmatprep.subr.bf16.mxu0 %v10871_v2  ;;  %v10887_v38 = vcombine.high %v2117_v32, %v2121_v39  ;;  %v10886_v48 = vcombine.low %v2117_v32, %v2121_v39  ;;  %v10910_v2 = vcombine.low %v2141_v40, %v2145_v51  ;;  %v2168_v39 = vld [vmem:[%s19414_s8 + $0x7f0] sm:$0xff] }
 0x2ae   : > { %4072 = vmatpush1.bf16.msra.mxu1 %v10868_v34  ;;  %v12457_v40 = vld [vmem:[%s19416_s10 + $0x118] ss:$28 sps:$4 sm:$0xff]  }
 0x2af   : > { %4073 = vmatprep.subr.bf16.mxu1 %v10877_v62  ;;  %v12465_v51 = vld [vmem:[%s19416_s10 + $0x154] ss:$28 sps:$4 sm:$0xff]  }
 0x2b0   : > { %4298 = vmatpush1.bf16.msra.mxu0 %v10870_v61 }
 0x2b1   : > { %4017 = vmatmul.mubr.bf16.gmra.mrb[80].mxu1 %v19807_v28  ;;  %4299 = vmatprep.subr.bf16.mxu0 %v10879_v55  ;;  %v2157_v55 = vld [vmem:[%s19414_s8 + $0x798] sm:$0xff] }
 0x2b2   : > { %4074 = vmatpush1.bf16.msra.mxu1 %v10876_v42  ;;  %4026 = vmatprep.mubr.bf16.mxu1 %v15442_v19  ;;  %v10927_v32 = vcombine.high %v2157_v55, %v2161_v16  ;;  %v10926_v18 = vcombine.low %v2157_v55, %v2161_v16  ;;  %v12490_v55 = vld [vmem:[%s19416_s10 + $0x238] ss:$28 sps:$4 sm:$0xff]  }
 0x2b3   : > { %4243 = vmatmul.mubr.bf16.gmra.mrb[112].mxu0 %v19807_v28  ;;  %4075 = vmatprep.subr.bf16.mxu1 %v10885_v30  ;;  %v2169_v30 = vld [vmem:[%s19414_s8 + $0x7f8] sm:$0xff]  ;;  %v12498_v16 = vld [vmem:[%s19416_s10 + $0x274] ss:$28 sps:$4 sm:$0xff]  }
 0x2b4   : > { %4252 = vmatprep.mubr.bf16.mxu0 %v15442_v19  ;;  %4300 = vmatpush1.bf16.msra.mxu0 %v10878_v25  ;;  %v2133_v19 = vld [vmem:[%s19414_s8 + $0x6d8] sm:$0xff]  ;;  %v10924_v25 = vcombine.low %v2156_v13, %v2160_v45  ;;  %v12489_v45 = vld [vmem:[%s19416_s10 + $0x234] ss:$28 sps:$4 sm:$0xff]  }
 0x2b5   : > { %4301 = vmatprep.subr.bf16.mxu0 %v10887_v38  ;;  %v10903_v56 = vcombine.high %v2133_v19, %v2137_v1  ;;  %v10902_v36 = vcombine.low %v2133_v19, %v2137_v1  ;;  %v12442_v19 = vld [vmem:[%s19416_s10 + $0x78] ss:$28 sps:$4 sm:$0xff]  }
 0x2b6   : > { %4076 = vmatpush1.bf16.msra.mxu1 %v10884_v54  ;;  %v12429_v54 = vld [vmem:[%s19416_s10 + $0x4] ss:$28 sps:$4 sm:$0xff]   ;;  %v12450_v1 = vld [vmem:[%s19416_s10 + $0xb4] ss:$28 sps:$4 sm:$0xff]  }
 0x2b7   : > { %4077 = vmatprep.subr.bf16.mxu1 %v10893_v12  ;;  %v12430_v12 = vld [vmem:[%s19416_s10 + $0x8] ss:$28 sps:$4 sm:$0xff]   ;;  %v12481_v13 = vld [vmem:[%s19416_s10 + $0x1f8] ss:$28 sps:$4 sm:$0xff]  }
 0x2b8   : > { %4302 = vmatpush1.bf16.msra.mxu0 %v10886_v48  ;;  %v12438_v48 = vld [vmem:[%s19416_s10 + $0x44] ss:$28 sps:$4 sm:$0xff]  }
 0x2b9   : > { %4027 = vmatmul.mubr.bf16.gmra.mrb[84].mxu1 %v15444_v60  ;;  %4303 = vmatprep.subr.bf16.mxu0 %v10895_v22  ;;  %v12433_v22 = vld [vmem:[%s19416_s10 + $0x38] ss:$28 sps:$4 sm:$0xff]  }
 0x2ba   : > { %4078 = vmatpush1.bf16.msra.mxu1 %v10892_v24  ;;  %4036 = vmatprep.mubr.bf16.mxu1 %v15528_v23  ;;  %v12444_v24 = vld [vmem:[%s19416_s10 + $0x7c] ss:$28 sps:$4 sm:$0xff]  }
 0x2bb   : > { %4253 = vmatmul.mubr.bf16.gmra.mrb[116].mxu0 %v15444_v60  ;;  %4079 = vmatprep.subr.bf16.mxu1 %v10901_v26  ;;  %v2148_v60 = vld [vmem:[%s19414_s8 + $0x750] sm:$0xff]  ;;  %v12453_v26 = vld [vmem:[%s19416_s10 + $0xe4] ss:$28 sps:$4 sm:$0xff]  }
 0x2bc   : > { %4262 = vmatprep.mubr.bf16.mxu0 %v15528_v23  ;;  %4304 = vmatpush1.bf16.msra.mxu0 %v10894_v59  ;;  %v2149_v23 = vld [vmem:[%s19414_s8 + $0x758] sm:$0xff]  ;;  %v10917_v34 = vcombine.high %v2148_v60, %v2152_v44  ;;  %v10916_v61 = vcombine.low %v2148_v60, %v2152_v44  ;;  %v12445_v59 = vld [vmem:[%s19416_s10 + $0xa8] ss:$28 sps:$4 sm:$0xff]   ;;  %v12474_v60 = vld [vmem:[%s19416_s10 + $0x194] ss:$28 sps:$4 sm:$0xff]  }
 0x2bd   : > { %4305 = vmatprep.subr.bf16.mxu0 %v10903_v56  ;;  %v10919_v62 = vcombine.high %v2149_v23, %v2153_v6  ;;  %v10918_v42 = vcombine.low %v2149_v23, %v2153_v6  ;;  %v12454_v56 = vld [vmem:[%s19416_s10 + $0xe8] ss:$28 sps:$4 sm:$0xff]   ;;  %v12472_v23 = vld [vmem:[%s19416_s10 + $0x190] ss:$28 sps:$4 sm:$0xff]  }
 0x2be   : > { %4080 = vmatpush1.bf16.msra.mxu1 %v10900_v21  ;;  %v12462_v21 = vld [vmem:[%s19416_s10 + $0x124] ss:$28 sps:$4 sm:$0xff]   ;;  %v12480_v6 = vld [vmem:[%s19416_s10 + $0x1cc] ss:$28 sps:$4 sm:$0xff]  }
 0x2bf   : > { %4081 = vmatprep.subr.bf16.mxu1 %v10909_v53  ;;  %v12460_v53 = vld [vmem:[%s19416_s10 + $0x120] ss:$28 sps:$4 sm:$0xff]   ;;  %v12469_v44 = vld [vmem:[%s19416_s10 + $0x188] ss:$28 sps:$4 sm:$0xff]  }
 0x2c0   : > { %4306 = vmatpush1.bf16.msra.mxu0 %v10902_v36  ;;  %v12468_v36 = vld [vmem:[%s19416_s10 + $0x15c] ss:$28 sps:$4 sm:$0xff]  }
 0x2c1   : > { %4037 = vmatmul.mubr.bf16.gmra.mrb[88].mxu1 %v15530_v46  ;;  %4307 = vmatprep.subr.bf16.mxu0 %v10911_v5  ;;  %v12466_v5 = vld [vmem:[%s19416_s10 + $0x158] ss:$28 sps:$4 sm:$0xff]  }
 0x2c2   : > { %4082 = vmatpush1.bf16.msra.mxu1 %v10908_v0  ;;  %4046 = vmatprep.mubr.bf16.mxu1 %v15553_v7  ;;  %v12477_v0 = vld [vmem:[%s19416_s10 + $0x1c4] ss:$28 sps:$4 sm:$0xff]  }
 0x2c3   : > { %4263 = vmatmul.mubr.bf16.gmra.mrb[120].mxu0 %v15530_v46  ;;  %4083 = vmatprep.subr.bf16.mxu1 %v10917_v34  ;;  %v2164_v46 = vld [vmem:[%s19414_s8 + $0x7d0] sm:$0xff]  ;;  %v12486_v34 = vld [vmem:[%s19416_s10 + $0x204] ss:$28 sps:$4 sm:$0xff]  }
 0x2c4   : > { %4272 = vmatprep.mubr.bf16.mxu0 %v15553_v7  ;;  %4308 = vmatpush1.bf16.msra.mxu0 %v10910_v2  ;;  %v2165_v7 = vld [vmem:[%s19414_s8 + $0x7d8] sm:$0xff]  ;;  %v10933_v8 = vcombine.high %v2164_v46, %v2168_v39  ;;  %v10932_v38 = vcombine.low %v2164_v46, %v2168_v39  ;;  %v12478_v2 = vld [vmem:[%s19416_s10 + $0x1c8] ss:$28 sps:$4 sm:$0xff]  }
 0x2c5   : > { %4309 = vmatprep.subr.bf16.mxu0 %v10919_v62  ;;  %v10935_v28 = vcombine.high %v2165_v7, %v2169_v30  ;;  %v10934_v49 = vcombine.low %v2165_v7, %v2169_v30  ;;  %v12484_v62 = vld [vmem:[%s19416_s10 + $0x200] ss:$28 sps:$4 sm:$0xff]   ;;  %v12504_v46 = vld [vmem:[%s19416_s10 + $0x2ac] ss:$28 sps:$4 sm:$0xff]   ;;  %v12505_v7 = vld [vmem:[%s19416_s10 + $0x2d8] ss:$28 sps:$4 sm:$0xff]  }
 0x2c6   : > { %4084 = vmatpush1.bf16.msra.mxu1 %v10916_v61  ;;  %v12492_v61 = vld [vmem:[%s19416_s10 + $0x23c] ss:$28 sps:$4 sm:$0xff]   ;;  %v12502_v39 = vld [vmem:[%s19416_s10 + $0x2a8] ss:$28 sps:$4 sm:$0xff]   ;;  %v12513_v30 = vld [vmem:[%s19416_s10 + $0x314] ss:$28 sps:$4 sm:$0xff]  }
 0x2c7   : > { %4085 = vmatprep.subr.bf16.mxu1 %v10925_v14  ;;  %v12493_v14 = vld [vmem:[%s19416_s10 + $0x268] ss:$28 sps:$4 sm:$0xff]  }
 0x2c8   : > { %4310 = vmatpush1.bf16.msra.mxu0 %v10918_v42  ;;  %v12501_v42 = vld [vmem:[%s19416_s10 + $0x2a4] ss:$28 sps:$4 sm:$0xff]  }
 0x2c9   : > { %4047 = vmatmul.mubr.bf16.gmra.mrb[92].mxu1 %v15546_v31  ;;  %4311 = vmatprep.subr.bf16.mxu0 %v10927_v32  ;;  %v12496_v32 = vld [vmem:[%s19416_s10 + $0x270] ss:$28 sps:$4 sm:$0xff]  }
 0x2ca   : > { %4086 = vmatpush1.bf16.msra.mxu1 %v10924_v25  ;;  %4089 = vmatprep.mubr.bf16.mxu1 %v15537_v50  ;;  %v12510_v25 = vld [vmem:[%s19416_s10 + $0x2e4] ss:$28 sps:$4 sm:$0xff]  }
 0x2cb   : > { %4273 = vmatmul.mubr.bf16.gmra.mrb[124].mxu0 %v15546_v31  ;;  %4087 = vmatprep.subr.bf16.mxu1 %v10933_v8  ;;  %v12427_v31 = vld [vmem:[%s19416_s10] ss:$28 sps:$4 sm:$0xff]  }
 0x2cc   : > { %4315 = vmatprep.mubr.bf16.mxu0 %v15537_v50  ;;  %4312 = vmatpush1.bf16.msra.mxu0 %v10926_v18  ;;  %v12435_v50 = vld [vmem:[%s19416_s10 + $0x3c] ss:$28 sps:$4 sm:$0xff]  }
 0x2cd   : > { %4313 = vmatprep.subr.bf16.mxu0 %v10935_v28  ;;  %v12508_v18 = vld [vmem:[%s19416_s10 + $0x2e0] ss:$28 sps:$4 sm:$0xff]   ;;  %v12514_v28 = vld [vmem:[%s19416_s10 + $0x318] ss:$28 sps:$4 sm:$0xff]  }
 0x2ce   : > { %4088 = vmatpush1.bf16.msra.mxu1 %v10932_v38  ;;  %v12516_v8 = vld [vmem:[%s19416_s10 + $0x31c] ss:$28 sps:$4 sm:$0xff]   ;;  %v12522_v38 = vld [vmem:[%s19416_s10 + $0x354] ss:$28 sps:$4 sm:$0xff]  }
 0x2cf   : > { %7953 = vmatprep.subr.bf16.mxu1 %v12429_v54  ;;  %v12517_v54 = vld [vmem:[%s19416_s10 + $0x348] ss:$28 sps:$4 sm:$0xff]  }
 0x2d0   : > { %4314 = vmatpush1.bf16.msra.mxu0 %v10934_v49  ;;  %v12525_v49 = vld [vmem:[%s19416_s10 + $0x384] ss:$28 sps:$4 sm:$0xff]  }
 0x2d1   : > { %4090 = vmatmul.mubr.bf16.vlgmr.msra.gmra.mrb[64].mxu1 %v19798_v41  ;;  %8405 = vmatprep.subr.bf16.mxu0 %v12432_v37  ;;  %v12520_v37 = vld [vmem:[%s19416_s10 + $0x350] ss:$28 sps:$4 sm:$0xff]  }
 0x2d2   : > { %4099 = vmatprep.mubr.bf16.mxu1 %v15550_v43  ;;  %7954 = vmatpush1.bf16.msra.mxu1 %v12427_v31  ;;  %v12528_v31 = vld [vmem:[%s19416_s10 + $0x38c] ss:$28 sps:$4 sm:$0xff]  }
 0x2d3   : > { %4316 = vmatmul.mubr.bf16.vlgmr.msra.gmra.mrb[96].mxu0 %v19798_v41  ;;  %7955 = vmatprep.subr.bf16.mxu1 %v12435_v50  ;;  %v12439_v41 = vld [vmem:[%s19416_s10 + $0x70] ss:$28 sps:$4 sm:$0xff]  }
 0x2d4   : > { %4325 = vmatprep.mubr.bf16.mxu0 %v15550_v43  ;;  %8406 = vmatpush1.bf16.msra.mxu0 %v12430_v12  ;;  %v12447_v43 = vld [vmem:[%s19416_s10 + $0xac] ss:$28 sps:$4 sm:$0xff]  }
 0x2d5   : > { %8407 = vmatprep.subr.bf16.mxu0 %v12438_v48  ;;  %v19808_v50 = vld [vmem:[#allocation3_spill] sm:$0xff]  ;;  %v19809_v48 = vld [vmem:[#allocation5_spill] sm:$0xff] }
 0x2d6   : > { %7956 = vmatpush1.bf16.msra.mxu1 %v12433_v22 }
 0x2d7   : > { %7957 = vmatprep.subr.bf16.mxu1 %v12441_v58  ;;  %v19810_v58 = vld [vmem:[#allocation4_spill] sm:$0xff] }
 0x2d8   : > { %8408 = vmatpush1.bf16.msra.mxu0 %v12436_v17 }
 0x2d9   : > { %4100 = vmatmul.mubr.bf16.gmra.mrb[68].mxu1 %v15563_v57  ;;  %8409 = vmatprep.subr.bf16.mxu0 %v12444_v24  ;;  %v19811_v24 = vld [vmem:[#allocation6_spill] sm:$0xff] }
 0x2da   : > { %4109 = vmatprep.mubr.bf16.mxu1 %v15567_v9  ;;  %7958 = vmatpush1.bf16.msra.mxu1 %v12439_v41 }
 0x2db   : > { %4326 = vmatmul.mubr.bf16.gmra.mrb[100].mxu0 %v15563_v57  ;;  %7959 = vmatprep.subr.bf16.mxu1 %v12447_v43  ;;  %v12451_v57 = vld [vmem:[%s19416_s10 + $0xe0] ss:$28 sps:$4 sm:$0xff]  }
 0x2dc   : > { %4335 = vmatprep.mubr.bf16.mxu0 %v15567_v9  ;;  %8410 = vmatpush1.bf16.msra.mxu0 %v12442_v19  ;;  %v12459_v9 = vld [vmem:[%s19416_s10 + $0x11c] ss:$28 sps:$4 sm:$0xff]  }
 0x2dd   : > { %8411 = vmatprep.subr.bf16.mxu0 %v12450_v1 }
 0x2de   : > { %7960 = vmatpush1.bf16.msra.mxu1 %v12445_v59 }
 0x2df   : > { %7961 = vmatprep.subr.bf16.mxu1 %v12453_v26 }
 0x2e0   : > { %8412 = vmatpush1.bf16.msra.mxu0 %v12448_v4 }
 0x2e1   : > { %4110 = vmatmul.mubr.bf16.gmra.mrb[72].mxu1 %v15578_v35  ;;  %8413 = vmatprep.subr.bf16.mxu0 %v12456_v33  ;;  %v4780_v33 = vld [vmem:[%s16338_s13] sm:$0xff] }
 0x2e2   : > { %4119 = vmatprep.mubr.bf16.mxu1 %v15582_v52  ;;  %7962 = vmatpush1.bf16.msra.mxu1 %v12451_v57  ;;  %v4782_v57 = vld [vmem:[%s16338_s13 + $0x10] sm:$0xff] }
 0x2e3   : > { %4336 = vmatmul.mubr.bf16.gmra.mrb[104].mxu0 %v15578_v35  ;;  %7963 = vmatprep.subr.bf16.mxu1 %v12459_v9  ;;  %v12463_v35 = vld [vmem:[%s19416_s10 + $0x150] ss:$28 sps:$4 sm:$0xff]  }
 0x2e4   : > { %4345 = vmatprep.mubr.bf16.mxu0 %v15582_v52  ;;  %8414 = vmatpush1.bf16.msra.mxu0 %v12454_v56  ;;  %v12471_v52 = vld [vmem:[%s19416_s10 + $0x18c] ss:$28 sps:$4 sm:$0xff]  }
 0x2e5   : > { %8415 = vmatprep.subr.bf16.mxu0 %v12462_v21  ;;  %v4781_v56 = vld [vmem:[%s16338_s13 + $0x8] sm:$0xff] }
 0x2e6   : > { %7964 = vmatpush1.bf16.msra.mxu1 %v12457_v40 }
 0x2e7   : > { %7965 = vmatprep.subr.bf16.mxu1 %v12465_v51 }
 0x2e8   : > { %8416 = vmatpush1.bf16.msra.mxu0 %v12460_v53 }
 0x2e9   : > { %4120 = vmatmul.mubr.bf16.gmra.mrb[76].mxu1 %v15586_v47  ;;  %8417 = vmatprep.subr.bf16.mxu0 %v12468_v36 }
 0x2ea   : > { %4129 = vmatprep.mubr.bf16.mxu1 %v15595_v15  ;;  %7966 = vmatpush1.bf16.msra.mxu1 %v12463_v35 }
 0x2eb   : > { %4346 = vmatmul.mubr.bf16.gmra.mrb[108].mxu0 %v15586_v47  ;;  %7967 = vmatprep.subr.bf16.mxu1 %v12471_v52  ;;  %v12475_v47 = vld [vmem:[%s19416_s10 + $0x1c0] ss:$28 sps:$4 sm:$0xff]  }
 0x2ec   : > { %4355 = vmatprep.mubr.bf16.mxu0 %v15595_v15  ;;  %8418 = vmatpush1.bf16.msra.mxu0 %v12466_v5  ;;  %v12483_v15 = vld [vmem:[%s19416_s10 + $0x1fc] ss:$28 sps:$4 sm:$0xff]  }
 0x2ed   : > { %8419 = vmatprep.subr.bf16.mxu0 %v12474_v60 }
 0x2ee   : > { %7968 = vmatpush1.bf16.msra.mxu1 %v12469_v44 }
 0x2ef   : > { %7969 = vmatprep.subr.bf16.mxu1 %v12477_v0 }
 0x2f0   : > { %8420 = vmatpush1.bf16.msra.mxu0 %v12472_v23 }
 0x2f1   : > { %4130 = vmatmul.mubr.bf16.gmra.mrb[80].mxu1 %v15606_v3  ;;  %8421 = vmatprep.subr.bf16.mxu0 %v12480_v6 }
 0x2f2   : > { %4139 = vmatprep.mubr.bf16.mxu1 %v15620_v20  ;;  %7970 = vmatpush1.bf16.msra.mxu1 %v12475_v47 }
 0x2f3   : > { %4356 = vmatmul.mubr.bf16.gmra.mrb[112].mxu0 %v15606_v3  ;;  %7971 = vmatprep.subr.bf16.mxu1 %v12483_v15  ;;  %v12487_v3 = vld [vmem:[%s19416_s10 + $0x230] ss:$28 sps:$4 sm:$0xff]  }
 0x2f4   : > { %4365 = vmatprep.mubr.bf16.mxu0 %v15620_v20  ;;  %8422 = vmatpush1.bf16.msra.mxu0 %v12478_v2  ;;  %v12495_v20 = vld [vmem:[%s19416_s10 + $0x26c] ss:$28 sps:$4 sm:$0xff]  }
 0x2f5   : > { %8423 = vmatprep.subr.bf16.mxu0 %v12486_v34  ;;  %v4783_v34 = vld [vmem:[%s16338_s13 + $0x18] sm:$0xff] }
 0x2f6   : > { %7972 = vmatpush1.bf16.msra.mxu1 %v12481_v13 }
 0x2f7   : > { %7973 = vmatprep.subr.bf16.mxu1 %v12489_v45 }
 0x2f8   : > { %8424 = vmatpush1.bf16.msra.mxu0 %v12484_v62 }
 0x2f9   : > { %4140 = vmatmul.mubr.bf16.gmra.mrb[84].mxu1 %v15627_v10  ;;  %8425 = vmatprep.subr.bf16.mxu0 %v12492_v61  ;;  %v4788_v61 = vld [vmem:[%s16338_s13 + $0x40] sm:$0xff] }
 0x2fa   : > { %4149 = vmatprep.mubr.bf16.mxu1 %v15631_v27  ;;  %7974 = vmatpush1.bf16.msra.mxu1 %v12487_v3 }
 0x2fb   : > { %4366 = vmatmul.mubr.bf16.gmra.mrb[116].mxu0 %v15627_v10  ;;  %7975 = vmatprep.subr.bf16.mxu1 %v12495_v20  ;;  %v12499_v10 = vld [vmem:[%s19416_s10 + $0x2a0] ss:$28 sps:$4 sm:$0xff]   ;;  %v4790_v20 = vld [vmem:[%s16338_s13 + $0x50] sm:$0xff] }
 0x2fc   : > { %4375 = vmatprep.mubr.bf16.mxu0 %v15631_v27  ;;  %8426 = vmatpush1.bf16.msra.mxu0 %v12490_v55  ;;  %v12507_v27 = vld [vmem:[%s19416_s10 + $0x2dc] ss:$28 sps:$4 sm:$0xff]  }
 0x2fd   : > { %8427 = vmatprep.subr.bf16.mxu0 %v12498_v16 }
 0x2fe   : > { %7976 = vmatpush1.bf16.msra.mxu1 %v12493_v14 }
 0x2ff   : > { %7977 = vmatprep.subr.bf16.mxu1 %v12501_v42 }
 0x300   : > { %8428 = vmatpush1.bf16.msra.mxu0 %v12496_v32 }
 0x301   : > { %4150 = vmatmul.mubr.bf16.gmra.mrb[88].mxu1 %v15637_v11  ;;  %8429 = vmatprep.subr.bf16.mxu0 %v12504_v46 }
 0x302   : > { %4159 = vmatprep.mubr.bf16.mxu1 %v15639_v29  ;;  %7978 = vmatpush1.bf16.msra.mxu1 %v12499_v10  ;;  %v4789_v10 = vld [vmem:[%s16338_s13 + $0x48] sm:$0xff] }
 0x303   : > { %4376 = vmatmul.mubr.bf16.gmra.mrb[120].mxu0 %v15637_v11  ;;  %7979 = vmatprep.subr.bf16.mxu1 %v12507_v27  ;;  %v12511_v11 = vld [vmem:[%s19416_s10 + $0x310] ss:$28 sps:$4 sm:$0xff]  }
 0x304   : > { %4385 = vmatprep.mubr.bf16.mxu0 %v15639_v29  ;;  %8430 = vmatpush1.bf16.msra.mxu0 %v12502_v39  ;;  %v12519_v29 = vld [vmem:[%s19416_s10 + $0x34c] ss:$28 sps:$4 sm:$0xff]  }
 0x305   : > { %8431 = vmatprep.subr.bf16.mxu0 %v12510_v25 }
 0x306   : > { %7980 = vmatpush1.bf16.msra.mxu1 %v12505_v7 }
 0x307   : > { %7981 = vmatprep.subr.bf16.mxu1 %v12513_v30 }
 0x308   : > { %8432 = vmatpush1.bf16.msra.mxu0 %v12508_v18 }
 0x309   : > { %4160 = vmatmul.mubr.bf16.gmra.mrb[92].mxu1 %v15653_v63  ;;  %8433 = vmatprep.subr.bf16.mxu0 %v12516_v8 }
 0x30a   : > { %7982 = vmatpush1.bf16.msra.mxu1 %v12511_v11  ;;  %v4791_v11 = vld [vmem:[%s16338_s13 + $0x58] sm:$0xff] }
 0x30b   : > { %4386 = vmatmul.mubr.bf16.gmra.mrb[124].mxu0 %v15653_v63  ;;  %7983 = vmatprep.subr.bf16.mxu1 %v12519_v29  ;;  %v2170_v63 = vld [vmem:[%s19415_s9] sm:$0xff] }
 0x30c   : > { %8434 = vmatpush1.bf16.msra.mxu0 %v12514_v28  ;;  %v16324_v12 = vrot.slane %v2170_v63, %v19808_v50  ;;  %v16327_v22 = vrot.slane %v2170_v63, %v19809_v48  ;;  %v16330_v17 = vrot.slane %v2170_v63, %v19810_v58  ;;  %v16333_v41 = vrot.slane %v2170_v63, %v19811_v24  ;;  %v4847_v58 = vld [vmem:[%s16338_s13 + $0x218] sm:$0xff] }
 0x30d   : > { %8435 = vmatprep.subr.bf16.mxu0 %v12522_v38 }
 0x30e   : > { %7984 = vmatpush1.bf16.msra.mxu1 %v12517_v54 }
 0x30f   : > { %8066 = vmatprep.subr.bf16.mxu1 %v12525_v49 }
 0x310   : > { %8436 = vmatpush1.bf16.msra.mxu0 %v12520_v37 }
 0x311   : > { %8518 = vmatprep.subr.bf16.mxu0 %v12528_v31 }
 0x324   : > { %v3639_v43 = vpop.f32.mrb[32].mxu1 }
 0x325   : > { %v3865_v19 = vpop.f32.mrb[64].mxu0  ;;  %v11661_v1 = vadd.f32 %v3639_v43, %v16324_v12  ;;  %v3641_v26 = vpop.f32.mrb[33].mxu1 }
 0x326   : > { %v11693_v59 = vadd.f32 %v3865_v19, %v16327_v22  ;;  %v3867_v4 = vpop.f32.mrb[65].mxu0  ;;  %v11662_v9 = vadd.f32 %v3641_v26, %v16330_v17  ;;  %v3643_v40 = vpop.f32.mrb[34].mxu1  ;;  %v4796_v19 = vld [vmem:[%s16338_s13 + $0x80] sm:$0xff] }
 0x327   : > { %v11694_v21 = vadd.f32 %v3867_v4, %v16333_v41  ;;  %v3869_v51 = vpop.f32.mrb[66].mxu0  ;;  %vm4396_vm2 = vcmp.ge.f32.partialorder %v11661_v1, 0.0  ;;  %v4524_v53 = vmul.f32 0.2, %v11661_v1  ;;  %v11663_v44 = vadd.f32 %v3643_v40, %v16324_v12  ;;  %v3645_v23 = vpop.f32.mrb[35].mxu1 }
 0x328   : > { %vm4398_vm3 = vcmp.ge.f32.partialorder %v11693_v59, 0.0  ;;  %v4526_v36 = vmul.f32 0.2, %v11693_v59  ;;  %vm4397_vm4 = vcmp.ge.f32.partialorder %v11662_v9, 0.0  ;;  %v4525_v35 = vmul.f32 0.2, %v11662_v9 }
 0x329   : > { %vm4399_vm5 = vcmp.ge.f32.partialorder %v11694_v21, 0.0  ;;  %v4527_v52 = vmul.f32 0.2, %v11694_v21  ;;  %v4652_v5 = vsel %vm4396_vm2, %v11661_v1, %v4524_v53  ;;  %v11695_v0 = vadd.f32 %v3869_v51, %v16327_v22  ;;  %v3871_v6 = vpop.f32.mrb[67].mxu0  ;;  %v4797_v53 = vld [vmem:[%s16338_s13 + $0x88] sm:$0xff] }
 0x32a   : > { %v4654_v60 = vsel %vm4398_vm3, %v11693_v59, %v4526_v36  ;;  %v4908_v47 = vmul.f32 %v4780_v33, %v4652_v5  ;;  %v4653_v15 = vsel %vm4397_vm4, %v11662_v9, %v4525_v35  ;;  %vm4404_vm6 = vcmp.ge.f32.partialorder %v11663_v44, 0.0  ;;  %v4798_v33 = vld [vmem:[%s16338_s13 + $0x90] sm:$0xff]  ;;  %v4799_v36 = vld [vmem:[%s16338_s13 + $0x98] sm:$0xff] }
 0x32b   : > { %v4655_v2 = vsel %vm4399_vm5, %v11694_v21, %v4527_v52  ;;  %v4910_v13 = vmul.f32 %v4782_v57, %v4654_v60  ;;  %v16350_v45 = vmul.f32 %v4781_v56, %v4653_v15  ;;  %v4532_v62 = vmul.f32 0.2, %v11663_v44  ;;  %v4804_v52 = vld [vmem:[%s16338_s13 + $0xc0] sm:$0xff] }
 0x32c   : > { %vm4406_vm7 = vcmp.ge.f32.partialorder %v11695_v0, 0.0  ;;  %v4534_v3 = vmul.f32 0.2, %v11695_v0  ;;  %v11664_v55 = vadd.f32 %v3645_v23, %v16330_v17  ;;  %v11696_v16 = vadd.f32 %v3871_v6, %v16333_v41  ;;  %v3649_v14 = vpop.f32.mrb[36].mxu1 }
 0x32d   : > { %v3875_v42 = vpop.f32.mrb[68].mxu0  ;;  %v16356_v32 = vmul.f32 %v4783_v34, %v4655_v2  ;;  %v4660_v46 = vsel %vm4404_vm6, %v11663_v44, %v4532_v62  ;;  %v11665_v27 = vadd.f32 %v3649_v14, %v16324_v12  ;;  %v3651_v25 = vpop.f32.mrb[37].mxu1 }
 0x32e   : > { %v11697_v39 = vadd.f32 %v3875_v42, %v16327_v22  ;;  %v3877_v7 = vpop.f32.mrb[69].mxu0  ;;  %v4916_v30 = vmul.f32 %v4788_v61, %v4660_v46  ;;  %v4662_v18 = vsel %vm4406_vm7, %v11695_v0, %v4534_v3  ;;  %vm4405_vm8 = vcmp.ge.f32.partialorder %v11664_v55, 0.0  ;;  %v3653_v29 = vpop.f32.mrb[38].mxu1  ;;  %v4806_v0 = vld [vmem:[%s16338_s13 + $0xd0] sm:$0xff]  ;;  %v12523_v61 = vld [vmem:[%s19416_s10 + $0x380] ss:$28 sps:$4 sm:$0xff]  }
 0x32f   : > { %v4533_v8 = vmul.f32 0.2, %v11664_v55  ;;  %v3879_v28 = vpop.f32.mrb[70].mxu0  ;;  %v4918_v38 = vmul.f32 %v4790_v20, %v4662_v18  ;;  %vm4407_vm9 = vcmp.ge.f32.partialorder %v11696_v16, 0.0  ;;  %v4535_v54 = vmul.f32 0.2, %v11696_v16 }
 0x330   : > { %vm4412_vm10 = vcmp.ge.f32.partialorder %v11665_v27, 0.0  ;;  %v3655_v49 = vpop.f32.mrb[39].mxu1  ;;  %v3881_v37 = vpop.f32.mrb[71].mxu0  ;;  %v16362_v31 = vpack.c.bf16 %v4916_v30, %v4908_v47  ;;  %v4540_v43 = vmul.f32 0.2, %v11665_v27  ;;  %vm4414_vm11 = vcmp.ge.f32.partialorder %v11697_v39, 0.0 }
 0x331   : > { %v4661_v63 = vsel %vm4405_vm8, %v11664_v55, %v4533_v8  ;;  %v16365_v1 = vpack.c.bf16 %v4918_v38, %v4910_v13  ;;  %v4663_v26 = vsel %vm4407_vm9, %v11696_v16, %v4535_v54  ;;  %v4542_v4 = vmul.f32 0.2, %v11697_v39  ;;  %v12526_v46 = vld [vmem:[%s19416_s10 + $0x388] ss:$28 sps:$4 sm:$0xff]   ;;  %v4807_v54 = vld [vmem:[%s16338_s13 + $0xd8] sm:$0xff] }
 0x332   : > { %19812 = vst [vmem:[#allocation15_spill] sm:$0xff] %v16362_v31  ;;  %v4917_v59 = vmul.f32 %v4789_v10, %v4661_v63  ;;  %v16368_v57 = vmul.f32 %v4791_v11, %v4663_v26  ;;  %v4668_v9 = vsel %vm4412_vm10, %v11665_v27, %v4540_v43  ;;  %v11666_v56 = vadd.f32 %v3651_v25, %v16330_v17  ;;  %v12531_v10 = vld [vmem:[%s19416_s10 + $0x3bc] ss:$28 sps:$4 sm:$0xff]   ;;  %v12534_v18 = vld [vmem:[%s19416_s10 + $0x3c4] ss:$28 sps:$4 sm:$0xff]  }
 0x333   : > { %19813 = vst [vmem:[#allocation16_spill] sm:$0xff] %v16365_v1  ;;  %v11698_v21 = vadd.f32 %v3877_v7, %v16333_v41  ;;  %v16372_v40 = vmul.f32 %v4796_v19, %v4668_v9  ;;  %v4670_v51 = vsel %vm4414_vm11, %v11697_v39, %v4542_v4  ;;  %v11667_v35 = vadd.f32 %v3653_v29, %v16324_v12  ;;  %v12529_v19 = vld [vmem:[%s19416_s10 + $0x3b8] ss:$28 sps:$4 sm:$0xff]   ;;  %v12532_v9 = vld [vmem:[%s19416_s10 + $0x3c0] ss:$28 sps:$4 sm:$0xff]  }
 0x334   : > { %v11699_v5 = vadd.f32 %v3879_v28, %v16327_v22  ;;  %v16379_v60 = vmul.f32 %v4798_v33, %v4670_v51  ;;  %vm4413_vm12 = vcmp.ge.f32.partialorder %v11666_v56, 0.0  ;;  %v4541_v44 = vmul.f32 0.2, %v11666_v56  ;;  %v3659_v23 = vpop.f32.mrb[40].mxu1  ;;  %v4814_v4 = vld [vmem:[%s16338_s13 + $0x110] sm:$0xff]  ;;  %v4855_v1 = vld [vmem:[%s16338_s13 + $0x258] sm:$0xff] }
 0x335   : > { %vm4415_vm13 = vcmp.ge.f32.partialorder %v11698_v21, 0.0  ;;  %v3885_v6 = vpop.f32.mrb[72].mxu0  ;;  %v4543_v47 = vmul.f32 0.2, %v11698_v21  ;;  %vm4420_vm14 = vcmp.ge.f32.partialorder %v11667_v35, 0.0  ;;  %v11668_v13 = vadd.f32 %v3655_v49, %v16330_v17  ;;  %v3661_v3 = vpop.f32.mrb[41].mxu1 }
 0x336   : > { %v4548_v15 = vmul.f32 0.2, %v11667_v35  ;;  %vm4422_vm15 = vcmp.ge.f32.partialorder %v11699_v5, 0.0  ;;  %v4669_v2 = vsel %vm4413_vm12, %v11666_v56, %v4541_v44  ;;  %v4550_v34 = vmul.f32 0.2, %v11699_v5  ;;  %v3887_v20 = vpop.f32.mrb[73].mxu0 }
 0x337   : > { %v11700_v62 = vadd.f32 %v3881_v37, %v16333_v41  ;;  %v16387_v55 = vmul.f32 %v4797_v53, %v4669_v2  ;;  %v4671_v16 = vsel %vm4415_vm13, %v11698_v21, %v4543_v47  ;;  %v16391_v42 = vpack.c.bf16 %v4917_v59, %v16350_v45  ;;  %v3663_v27 = vpop.f32.mrb[42].mxu1  ;;  %v3889_v39 = vpop.f32.mrb[74].mxu0  ;;  %v4805_v45 = vld [vmem:[%s16338_s13 + $0xc8] sm:$0xff]  ;;  %v4812_v37 = vld [vmem:[%s16338_s13 + $0x100] sm:$0xff]  ;;  %v12537_v56 = vld [vmem:[%s19416_s10 + $0x3f4] ss:$28 sps:$4 sm:$0xff]  }
 0x338   : > { %v4676_v14 = vsel %vm4420_vm14, %v11667_v35, %v4548_v15  ;;  %v16399_v25 = vmul.f32 %v4799_v36, %v4671_v16  ;;  %v4678_v30 = vsel %vm4422_vm15, %v11699_v5, %v4550_v34  ;;  %vm4421_vm0 = vcmp.ge.f32.partialorder %v11668_v13, 0.0  ;;  %v16408_v8 = vpop.f32.mrb[43].mxu1  ;;  %v16410_v11 = vpop.f32.mrb[75].mxu0  ;;  %v12540_v21 = vld [vmem:[%s19416_s10 + $0x3fc] ss:$28 sps:$4 sm:$0xff]   ;;  %v4813_v35 = vld [vmem:[%s16338_s13 + $0x108] sm:$0xff] }
 0x339   : > { %19814 = vst [vmem:[#allocation17_spill] sm:$0xff] %v16391_v42  ;;  %v16401_v7 = vmul.f32 %v4804_v52, %v4676_v14  ;;  %v16412_v29 = vmul.f32 %v4806_v0, %v4678_v30  ;;  %v4549_v28 = vmul.f32 0.2, %v11668_v13  ;;  %vm4423_vm1 = vcmp.ge.f32.partialorder %v11700_v62, 0.0  ;;  %7985 = vmatprep.mubr.bf16.mxu1 %v16391_v42  ;;  %8437 = vmatprep.mubr.bf16.mxu0 %v16391_v42  ;;  %v4815_v47 = vld [vmem:[%s16338_s13 + $0x118] sm:$0xff]  ;;  %v4820_v30 = vld [vmem:[%s16338_s13 + $0x140] sm:$0xff] }
 0x33a   : > { %v4551_v38 = vmul.f32 0.2, %v11700_v62  ;;  %7986 = vmatmul.mubr.bf16.vlgmr.msra.gmra.mrb[96].mxu1 %v16362_v31  ;;  %8438 = vmatmul.mubr.bf16.vlgmr.msra.gmra.mrb[128].mxu0 %v16362_v31  ;;  %v11669_v49 = vadd.f32 %v3659_v23, %v16324_v12  ;;  %v11701_v63 = vadd.f32 %v3885_v6, %v16327_v22  ;;  %v11670_v43 = vadd.f32 %v3661_v3, %v16330_v17 }
 0x33b   : > { %v4677_v59 = vsel %vm4421_vm0, %v11668_v13, %v4549_v28  ;;  %8067 = vmatpush1.bf16.msra.mxu1 %v12523_v61  ;;  %8519 = vmatpush1.bf16.msra.mxu0 %v12526_v46  ;;  %v11702_v33 = vadd.f32 %v3887_v20, %v16333_v41  ;;  %v11671_v15 = vadd.f32 %v3663_v27, %v16324_v12  ;;  %v12535_v20 = vld [vmem:[%s19416_s10 + $0x3f0] ss:$28 sps:$4 sm:$0xff]  }
 0x33c   : > { %v4679_v26 = vsel %vm4423_vm1, %v11700_v62, %v4551_v38  ;;  %v4933_v51 = vmul.f32 %v4805_v45, %v4677_v59  ;;  %vm4428_vm2 = vcmp.ge.f32.partialorder %v11669_v49, 0.0  ;;  %v4556_v36 = vmul.f32 0.2, %v11669_v49  ;;  %8068 = vmatprep.subr.bf16.mxu1 %v12531_v10  ;;  %8520 = vmatprep.subr.bf16.mxu0 %v12534_v18  ;;  %v3669_v52 = vpop.f32.mrb[44].mxu1  ;;  %v12538_v59 = vld [vmem:[%s19416_s10 + $0x3f8] ss:$28 sps:$4 sm:$0xff]  }
 0x33d   : > { %v16438_v53 = vmul.f32 %v4807_v54, %v4679_v26  ;;  %v3895_v5 = vpop.f32.mrb[76].mxu0  ;;  %vm4430_vm3 = vcmp.ge.f32.partialorder %v11701_v63, 0.0  ;;  %v4558_v44 = vmul.f32 0.2, %v11701_v63  ;;  %vm4429_vm4 = vcmp.ge.f32.partialorder %v11670_v43, 0.0  ;;  %v3671_v2 = vpop.f32.mrb[45].mxu1 }
 0x33e   : > { %v4557_v0 = vmul.f32 0.2, %v11670_v43  ;;  %v4684_v23 = vsel %vm4428_vm2, %v11669_v49, %v4556_v36  ;;  %vm4431_vm5 = vcmp.ge.f32.partialorder %v11702_v33, 0.0  ;;  %v4559_v6 = vmul.f32 0.2, %v11702_v33  ;;  %v16443_v34 = vpop.f32.mrb[77].mxu0 }
 0x33f   : > { %v16445_v13 = vmul.f32 %v4812_v37, %v4684_v23  ;;  %v4686_v62 = vsel %vm4430_vm3, %v11701_v63, %v4558_v44  ;;  %v11703_v3 = vadd.f32 %v3889_v39, %v16327_v22  ;;  %8069 = vmatpush1.bf16.msra.mxu1 %v12529_v19  ;;  %v16451_v16 = vpop.f32.mrb[46].mxu1  ;;  %v16453_v14 = vpop.f32.mrb[78].mxu0  ;;  %vm4436_vm6 = vcmp.ge.f32.partialorder %v11671_v15, 0.0  ;;  %8521 = vmatpush1.bf16.msra.mxu0 %v12532_v9  ;;  %v4822_v54 = vld [vmem:[%s16338_s13 + $0x150] sm:$0xff]  ;;  %v4821_v37 = vld [vmem:[%s16338_s13 + $0x148] sm:$0xff]  ;;  %v4828_v36 = vld [vmem:[%s16338_s13 + $0x180] sm:$0xff] }
 0x340   : > { %v4685_v61 = vsel %vm4429_vm4, %v11670_v43, %v4557_v0  ;;  %v16455_v46 = vmul.f32 %v4814_v4, %v4686_v62  ;;  %v4687_v27 = vsel %vm4431_vm5, %v11702_v33, %v4559_v6  ;;  %8070 = vmatprep.subr.bf16.mxu1 %v12537_v56  ;;  %v16461_v39 = vpop.f32.mrb[47].mxu1  ;;  %v16463_v45 = vpop.f32.mrb[79].mxu0  ;;  %v4564_v28 = vmul.f32 0.2, %v11671_v15  ;;  %8522 = vmatprep.subr.bf16.mxu0 %v12540_v21  ;;  %v12543_v26 = vld [vmem:[%s19416_s10 + $0x42c] ss:$28 sps:$4 sm:$0xff]  }
 0x341   : > { %v16457_v10 = vmul.f32 %v4813_v35, %v4685_v61  ;;  %v16465_v18 = vmul.f32 %v4815_v47, %v4687_v27  ;;  %vm4438_vm7 = vcmp.ge.f32.partialorder %v11703_v3, 0.0  ;;  %v4566_v38 = vmul.f32 0.2, %v11703_v3  ;;  %v12549_v9 = vld [vmem:[%s19416_s10 + $0x464] ss:$28 sps:$4 sm:$0xff]   ;;  %v4830_v47 = vld [vmem:[%s16338_s13 + $0x190] sm:$0xff] }
 0x342   : > { %v11672_v49 = vadd.f32 %v16408_v8, %v16330_v17  ;;  %v11704_v63 = vadd.f32 %v16410_v11, %v16333_v41  ;;  %v16474_v43 = vpack.c.bf16 %v4933_v51, %v16387_v55  ;;  %v16478_v19 = vpack.c.bf16 %v16401_v7, %v16372_v40  ;;  %v4823_v11 = vld [vmem:[%s16338_s13 + $0x158] sm:$0xff]  ;;  %v12541_v40 = vld [vmem:[%s19416_s10 + $0x428] ss:$28 sps:$4 sm:$0xff]   ;;  %v12546_v7 = vld [vmem:[%s19416_s10 + $0x434] ss:$28 sps:$4 sm:$0xff]  }
 0x343   : > { %v4692_v8 = vsel %vm4436_vm6, %v11671_v15, %v4564_v28  ;;  %v4694_v4 = vsel %vm4438_vm7, %v11703_v3, %v4566_v38  ;;  %8071 = vmatpush1.bf16.msra.mxu1 %v12535_v20  ;;  %v11673_v55 = vadd.f32 %v3669_v52, %v16324_v12  ;;  %v11705_v33 = vadd.f32 %v3895_v5, %v16327_v22  ;;  %v12544_v35 = vld [vmem:[%s19416_s10 + $0x430] ss:$28 sps:$4 sm:$0xff]   ;;  %v12547_v28 = vld [vmem:[%s19416_s10 + $0x460] ss:$28 sps:$4 sm:$0xff]  }
 0x344   : > { %19815 = vst [vmem:[#allocation18_spill] sm:$0xff] %v16474_v43  ;;  %19816 = vst [vmem:[#allocation19_spill] sm:$0xff] %v16478_v19  ;;  %v4948_v56 = vmul.f32 %v4820_v30, %v4692_v8  ;;  %v16499_v21 = vmul.f32 %v4822_v54, %v4694_v4  ;;  %vm4437_vm8 = vcmp.ge.f32.partialorder %v11672_v49, 0.0  ;;  %v4565_v51 = vmul.f32 0.2, %v11672_v49  ;;  %7995 = vmatprep.mubr.bf16.mxu1 %v16474_v43  ;;  %v16507_v52 = vpop.f32.mrb[48].mxu1 }
 0x345   : > { %8447 = vmatprep.mubr.bf16.mxu0 %v16474_v43  ;;  %v16509_v5 = vpop.f32.mrb[80].mxu0  ;;  %vm4439_vm9 = vcmp.ge.f32.partialorder %v11704_v63, 0.0  ;;  %v4567_v44 = vmul.f32 0.2, %v11704_v63  ;;  %7996 = vmatmul.mubr.bf16.gmra.mrb[100].mxu1 %v16478_v19  ;;  %vm4444_vm10 = vcmp.ge.f32.partialorder %v11673_v55, 0.0  ;;  %vm4446_vm11 = vcmp.ge.f32.partialorder %v11705_v33, 0.0 }
 0x346   : > { %8448 = vmatmul.mubr.bf16.gmra.mrb[132].mxu0 %v16478_v19  ;;  %v4572_v0 = vmul.f32 0.2, %v11673_v55  ;;  %v4693_v23 = vsel %vm4437_vm8, %v11672_v49, %v4565_v51  ;;  %v4574_v6 = vmul.f32 0.2, %v11705_v33  ;;  %v11674_v15 = vadd.f32 %v3671_v2, %v16330_v17  ;;  %8072 = vmatprep.subr.bf16.mxu1 %v12543_v26  ;;  %v16515_v62 = vpop.f32.mrb[49].mxu1  ;;  %v16517_v61 = vpop.f32.mrb[81].mxu0 }
 0x347   : > { %8523 = vmatpush1.bf16.msra.mxu0 %v12538_v59  ;;  %v4949_v3 = vmul.f32 %v4821_v37, %v4693_v23  ;;  %v4695_v20 = vsel %vm4439_vm9, %v11704_v63, %v4567_v44  ;;  %v11706_v30 = vadd.f32 %v16443_v34, %v16333_v41  ;;  %8073 = vmatpush1.bf16.msra.mxu1 %v12541_v40  ;;  %v12552_v2 = vld [vmem:[%s19416_s10 + $0x46c] ss:$28 sps:$4 sm:$0xff]   ;;  %v16528_v38 = vpop.f32.mrb[50].mxu1  ;;  %v16530_v54 = vpop.f32.mrb[82].mxu0  ;;  %v12555_v59 = vld [vmem:[%s19416_s10 + $0x49c] ss:$28 sps:$4 sm:$0xff]  }
 0x348   : > { %v4700_v27 = vsel %vm4444_vm10, %v11673_v55, %v4572_v0  ;;  %v16532_v49 = vmul.f32 %v4823_v11, %v4695_v20  ;;  %v4702_v34 = vsel %vm4446_vm11, %v11705_v33, %v4574_v6  ;;  %vm4445_vm12 = vcmp.ge.f32.partialorder %v11674_v15, 0.0  ;;  %v4829_v63 = vld [vmem:[%s16338_s13 + $0x188] sm:$0xff]  ;;  %8524 = vmatprep.subr.bf16.mxu0 %v12546_v7  ;;  %8074 = vmatprep.subr.bf16.mxu1 %v12549_v9  ;;  %v16541_v26 = vpop.f32.mrb[51].mxu1  ;;  %v16543_v8 = vpop.f32.mrb[83].mxu0  ;;  %v4831_v40 = vld [vmem:[%s16338_s13 + $0x198] sm:$0xff]  ;;  %v4836_v7 = vld [vmem:[%s16338_s13 + $0x1c0] sm:$0xff] }
 0x349   : > { %v16534_v37 = vmul.f32 %v4828_v36, %v4700_v27  ;;  %v16545_v4 = vmul.f32 %v4830_v47, %v4702_v34  ;;  %v4573_v11 = vmul.f32 0.2, %v11674_v15  ;;  %vm4447_vm13 = vcmp.ge.f32.partialorder %v11706_v30, 0.0  ;;  %v12550_v44 = vld [vmem:[%s19416_s10 + $0x468] ss:$28 sps:$4 sm:$0xff]   ;;  %v4839_v34 = vld [vmem:[%s16338_s13 + $0x1d8] sm:$0xff] }
 0x34a   : > { %v4575_v55 = vmul.f32 0.2, %v11706_v30  ;;  %v11675_v33 = vadd.f32 %v16451_v16, %v16324_v12  ;;  %v11707_v9 = vadd.f32 %v16453_v14, %v16327_v22  ;;  %v11676_v51 = vadd.f32 %v16461_v39, %v16330_v17  ;;  %v4838_v16 = vld [vmem:[%s16338_s13 + $0x1d0] sm:$0xff]  ;;  %v4853_v43 = vld [vmem:[%s16338_s13 + $0x248] sm:$0xff] }
 0x34b   : > { %v11708_v36 = vadd.f32 %v16463_v45, %v16333_v41  ;;  %8525 = vmatpush1.bf16.msra.mxu0 %v12544_v35  ;;  %v4701_v0 = vsel %vm4445_vm12, %v11674_v15, %v4573_v11  ;;  %v16563_v6 = vpack.c.bf16 %v4949_v3, %v16457_v10  ;;  %v16566_v14 = vpack.c.bf16 %v4948_v56, %v16445_v13  ;;  %v12553_v39 = vld [vmem:[%s19416_s10 + $0x498] ss:$28 sps:$4 sm:$0xff]   ;;  %v12558_v45 = vld [vmem:[%s19416_s10 + $0x4a4] ss:$28 sps:$4 sm:$0xff]   ;;  %v4837_v56 = vld [vmem:[%s16338_s13 + $0x1c8] sm:$0xff] }
 0x34c   : > { %v4703_v23 = vsel %vm4447_vm13, %v11706_v30, %v4575_v55  ;;  %8075 = vmatpush1.bf16.msra.mxu1 %v12547_v28  ;;  %v12561_v35 = vld [vmem:[%s19416_s10 + $0x4d4] ss:$28 sps:$4 sm:$0xff]   ;;  %v16577_v47 = vmul.f32 %v4829_v63, %v4701_v0  ;;  %vm4452_vm14 = vcmp.ge.f32.partialorder %v11675_v33, 0.0  ;;  %v4580_v13 = vmul.f32 0.2, %v11675_v33  ;;  %8526 = vmatprep.subr.bf16.mxu0 %v12552_v2  ;;  %v16582_v15 = vpop.f32.mrb[52].mxu1 }
 0x34d   : > { %19817 = vst [vmem:[#allocation20_spill] sm:$0xff] %v16563_v6  ;;  %19818 = vst [vmem:[#allocation21_spill] sm:$0xff] %v16566_v14  ;;  %v16579_v10 = vmul.f32 %v4831_v40, %v4703_v23  ;;  %8076 = vmatprep.subr.bf16.mxu1 %v12555_v59  ;;  %v16584_v3 = vpop.f32.mrb[84].mxu0  ;;  %vm4454_vm15 = vcmp.ge.f32.partialorder %v11707_v9, 0.0  ;;  %v4582_v20 = vmul.f32 0.2, %v11707_v9  ;;  %8005 = vmatprep.mubr.bf16.mxu1 %v16563_v6 }
 0x34e   : > { %vm4453_vm0 = vcmp.ge.f32.partialorder %v11676_v51, 0.0  ;;  %v4581_v27 = vmul.f32 0.2, %v11676_v51  ;;  %8457 = vmatprep.mubr.bf16.mxu0 %v16563_v6  ;;  %v12556_v30 = vld [vmem:[%s19416_s10 + $0x4a0] ss:$28 sps:$4 sm:$0xff]   ;;  %v4708_v28 = vsel %vm4452_vm14, %v11675_v33, %v4580_v13  ;;  %vm4455_vm1 = vcmp.ge.f32.partialorder %v11708_v36, 0.0  ;;  %8006 = vmatmul.mubr.bf16.gmra.mrb[104].mxu1 %v16566_v14 }
 0x34f   : > { %v4583_v2 = vmul.f32 0.2, %v11708_v36  ;;  %8458 = vmatmul.mubr.bf16.gmra.mrb[136].mxu0 %v16566_v14  ;;  %v11677_v63 = vadd.f32 %v16507_v52, %v16324_v12  ;;  %v16596_v59 = vpop.f32.mrb[53].mxu1  ;;  %v16598_v11 = vpop.f32.mrb[85].mxu0  ;;  %v16600_v55 = vmul.f32 %v4836_v7, %v4708_v28  ;;  %v4710_v40 = vsel %vm4454_vm15, %v11707_v9, %v4582_v20  ;;  %v12559_v23 = vld [vmem:[%s19416_s10 + $0x4d0] ss:$28 sps:$4 sm:$0xff]  }
 0x350   : > { %v4709_v33 = vsel %vm4453_vm0, %v11676_v51, %v4581_v27  ;;  %8527 = vmatpush1.bf16.msra.mxu0 %v12550_v44  ;;  %v11709_v0 = vadd.f32 %v16509_v5, %v16327_v22  ;;  %v12564_v52 = vld [vmem:[%s19416_s10 + $0x4dc] ss:$28 sps:$4 sm:$0xff]   ;;  %v16612_v13 = vpop.f32.mrb[54].mxu1  ;;  %v16614_v7 = vpop.f32.mrb[86].mxu0  ;;  %v16616_v9 = vmul.f32 %v4838_v16, %v4710_v40  ;;  %v4844_v44 = vld [vmem:[%s16338_s13 + $0x200] sm:$0xff]  ;;  %8077 = vmatpush1.bf16.msra.mxu1 %v12553_v39 }
 0x351   : > { %v16618_v51 = vmul.f32 %v4837_v56, %v4709_v33  ;;  %v4711_v5 = vsel %vm4455_vm1, %v11708_v36, %v4583_v2  ;;  %vm4460_vm2 = vcmp.ge.f32.partialorder %v11677_v63, 0.0  ;;  %8528 = vmatprep.subr.bf16.mxu0 %v12558_v45  ;;  %v12567_v20 = vld [vmem:[%s19416_s10 + $0x50c] ss:$28 sps:$4 sm:$0xff]   ;;  %v16625_v27 = vpop.f32.mrb[55].mxu1  ;;  %v16627_v28 = vpop.f32.mrb[87].mxu0  ;;  %v4846_v36 = vld [vmem:[%s16338_s13 + $0x210] sm:$0xff]  ;;  %8078 = vmatprep.subr.bf16.mxu1 %v12561_v35  ;;  %v11678_v39 = vadd.f32 %v16515_v62, %v16330_v17 }
 0x352   : > { %v16629_v16 = vmul.f32 %v4839_v34, %v4711_v5  ;;  %v4588_v56 = vmul.f32 0.2, %v11677_v63  ;;  %vm4462_vm3 = vcmp.ge.f32.partialorder %v11709_v0, 0.0  ;;  %v4590_v40 = vmul.f32 0.2, %v11709_v0  ;;  %v4845_v45 = vld [vmem:[%s16338_s13 + $0x208] sm:$0xff] }
 0x353   : > { %v11710_v2 = vadd.f32 %v16517_v61, %v16333_v41  ;;  %v11679_v33 = vadd.f32 %v16528_v38, %v16324_v12  ;;  %v11711_v24 = vadd.f32 %v16530_v54, %v16327_v22  ;;  %v12562_v34 = vld [vmem:[%s19416_s10 + $0x4d8] ss:$28 sps:$4 sm:$0xff]   ;;  %v4852_v62 = vld [vmem:[%s16338_s13 + $0x240] sm:$0xff]  ;;  %v11680_v48 = vadd.f32 %v16541_v26, %v16330_v17 }
 0x354   : > { %v4716_v35 = vsel %vm4460_vm2, %v11677_v63, %v4588_v56  ;;  %v4718_v5 = vsel %vm4462_vm3, %v11709_v0, %v4590_v40  ;;  %v11712_v61 = vadd.f32 %v16543_v8, %v16333_v41  ;;  %8529 = vmatpush1.bf16.msra.mxu0 %v12556_v30  ;;  %v12565_v38 = vld [vmem:[%s19416_s10 + $0x508] ss:$28 sps:$4 sm:$0xff]   ;;  %v12570_v54 = vld [vmem:[%s19416_s10 + $0x514] ss:$28 sps:$4 sm:$0xff]   ;;  %vm4461_vm4 = vcmp.ge.f32.partialorder %v11678_v39, 0.0  ;;  %8079 = vmatpush1.bf16.msra.mxu1 %v12559_v23  ;;  %v16665_v30 = vpop.f32.mrb[56].mxu1 }
 0x355   : > { %v12573_v63 = vld [vmem:[%s19416_s10 + $0x544] ss:$28 sps:$4 sm:$0xff]   ;;  %v16660_v0 = vmul.f32 %v4844_v44, %v4716_v35  ;;  %v16662_v56 = vmul.f32 %v4846_v36, %v4718_v5  ;;  %v4589_v26 = vmul.f32 0.2, %v11678_v39  ;;  %v4854_v8 = vld [vmem:[%s16338_s13 + $0x250] sm:$0xff]  ;;  %8530 = vmatprep.subr.bf16.mxu0 %v12564_v52  ;;  %v16667_v40 = vpop.f32.mrb[88].mxu0  ;;  %8080 = vmatprep.subr.bf16.mxu1 %v12567_v20 }
 0x356   : > { %vm4463_vm5 = vcmp.ge.f32.partialorder %v11710_v2, 0.0  ;;  %v4591_v50 = vmul.f32 0.2, %v11710_v2  ;;  %vm4468_vm6 = vcmp.ge.f32.partialorder %v11679_v33, 0.0  ;;  %v4596_v14 = vmul.f32 0.2, %v11679_v33 }
 0x357   : > { %19819 = vst [vmem:[#allocation22_spill] sm:$0xff] %v16662_v56  ;;  %v4717_v6 = vsel %vm4461_vm4, %v11678_v39, %v4589_v26  ;;  %vm4470_vm7 = vcmp.ge.f32.partialorder %v11711_v24, 0.0  ;;  %v4598_v44 = vmul.f32 0.2, %v11711_v24  ;;  %vm4469_vm8 = vcmp.ge.f32.partialorder %v11680_v48, 0.0  ;;  %v16669_v36 = vpop.f32.mrb[57].mxu1 }
 0x358   : > { %v16671_v35 = vpop.f32.mrb[89].mxu0  ;;  %v16673_v23 = vmul.f32 %v4845_v45, %v4717_v6  ;;  %v4719_v52 = vsel %vm4463_vm5, %v11710_v2, %v4591_v50  ;;  %v4724_v5 = vsel %vm4468_vm6, %v11679_v33, %v4596_v14  ;;  %v4597_v19 = vmul.f32 0.2, %v11680_v48  ;;  %8531 = vmatpush1.bf16.msra.mxu0 %v12562_v34  ;;  %v16676_v31 = vpop.f32.mrb[58].mxu1  ;;  %8081 = vmatpush1.bf16.msra.mxu1 %v12565_v38  ;;  %v12571_v33 = vld [vmem:[%s19416_s10 + $0x540] ss:$28 sps:$4 sm:$0xff]  }
 0x359   : > { %v16678_v42 = vpop.f32.mrb[90].mxu0  ;;  %v16680_v20 = vmul.f32 %v4847_v58, %v4719_v52  ;;  %v16682_v39 = vmul.f32 %v4852_v62, %v4724_v5  ;;  %v4726_v26 = vsel %vm4470_vm7, %v11711_v24, %v4598_v44  ;;  %vm4471_vm9 = vcmp.ge.f32.partialorder %v11712_v61, 0.0  ;;  %8532 = vmatprep.subr.bf16.mxu0 %v12570_v54  ;;  %v16685_v6 = vpop.f32.mrb[59].mxu1  ;;  %v12568_v24 = vld [vmem:[%s19416_s10 + $0x510] ss:$28 sps:$4 sm:$0xff]   ;;  %8082 = vmatprep.subr.bf16.mxu1 %v12573_v63 }
 0x35a   : > { %v16687_v50 = vpop.f32.mrb[91].mxu0  ;;  %v16689_v14 = vmul.f32 %v4854_v8, %v4726_v26  ;;  %v4725_v45 = vsel %vm4469_vm8, %v11680_v48, %v4597_v19  ;;  %v4599_v2 = vmul.f32 0.2, %v11712_v61  ;;  %v16694_v58 = vpack.c.bf16 %v16618_v51, %v16577_v47  ;;  %v4860_v47 = vld [vmem:[%s16338_s13 + $0x280] sm:$0xff]  ;;  %v12576_v62 = vld [vmem:[%s19416_s10 + $0x54c] ss:$28 sps:$4 sm:$0xff]  }
 0x35b   : > { %v16702_v34 = vmul.f32 %v4853_v43, %v4725_v45  ;;  %v16706_v48 = vpack.c.bf16 %v16600_v55, %v16534_v37  ;;  %v11681_v19 = vadd.f32 %v16582_v15, %v16324_v12  ;;  %v11713_v51 = vadd.f32 %v16584_v3, %v16327_v22  ;;  %v12579_v43 = vld [vmem:[%s19416_s10 + $0x57c] ss:$28 sps:$4 sm:$0xff]   ;;  %v4862_v37 = vld [vmem:[%s16338_s13 + $0x290] sm:$0xff]  ;;  %v4861_v3 = vld [vmem:[%s16338_s13 + $0x288] sm:$0xff] }
 0x35c   : > { %19820 = vst [vmem:[#allocation23_spill] sm:$0xff] %v16689_v14  ;;  %19821 = vst [vmem:[#allocation24_spill] sm:$0xff] %v16694_v58  ;;  %v4727_v38 = vsel %vm4471_vm9, %v11712_v61, %v4599_v2  ;;  %8015 = vmatprep.mubr.bf16.mxu1 %v16694_v58  ;;  %8467 = vmatprep.mubr.bf16.mxu0 %v16694_v58  ;;  %v11682_v15 = vadd.f32 %v16596_v59, %v16330_v17  ;;  %v12574_v54 = vld [vmem:[%s19416_s10 + $0x548] ss:$28 sps:$4 sm:$0xff]   ;;  %v12577_v61 = vld [vmem:[%s19416_s10 + $0x578] ss:$28 sps:$4 sm:$0xff]  }
 0x35d   : > { %19822 = vst [vmem:[#allocation25_spill] sm:$0xff] %v16706_v48  ;;  %v11714_v55 = vadd.f32 %v16598_v11, %v16333_v41  ;;  %v16734_v63 = vmul.f32 %v4855_v1, %v4727_v38  ;;  %8016 = vmatmul.mubr.bf16.gmra.mrb[108].mxu1 %v16706_v48  ;;  %8468 = vmatmul.mubr.bf16.gmra.mrb[140].mxu0 %v16706_v48  ;;  %vm4476_vm10 = vcmp.ge.f32.partialorder %v11681_v19, 0.0  ;;  %v4604_v59 = vmul.f32 0.2, %v11681_v19  ;;  %v4863_v8 = vld [vmem:[%s16338_s13 + $0x298] sm:$0xff]  ;;  %v16742_v44 = vpop.f32.mrb[60].mxu1 }
 0x35e   : > { %vm4478_vm11 = vcmp.ge.f32.partialorder %v11713_v51, 0.0  ;;  %v12582_v11 = vld [vmem:[%s19416_s10 + $0x584] ss:$28 sps:$4 sm:$0xff]   ;;  %v16744_v52 = vpop.f32.mrb[92].mxu0  ;;  %v4606_v5 = vmul.f32 0.2, %v11713_v51  ;;  %8533 = vmatpush1.bf16.msra.mxu0 %v12568_v24  ;;  %8083 = vmatpush1.bf16.msra.mxu1 %v12571_v33  ;;  %v11683_v2 = vadd.f32 %v16612_v13, %v16324_v12  ;;  %v11715_v38 = vadd.f32 %v16614_v7, %v16327_v22 }
 0x35f   : > { %vm4477_vm12 = vcmp.ge.f32.partialorder %v11682_v15, 0.0  ;;  %v4605_v1 = vmul.f32 0.2, %v11682_v15  ;;  %vm4479_vm13 = vcmp.ge.f32.partialorder %v11714_v55, 0.0  ;;  %v4732_v26 = vsel %vm4476_vm10, %v11681_v19, %v4604_v59  ;;  %8534 = vmatprep.subr.bf16.mxu0 %v12576_v62  ;;  %8084 = vmatprep.subr.bf16.mxu1 %v12579_v43  ;;  %v12585_v48 = vld [vmem:[%s19416_s10 + $0x5b4] ss:$28 sps:$4 sm:$0xff]  }
 0x360   : > { %v4607_v45 = vmul.f32 0.2, %v11714_v55  ;;  %v16753_v58 = vpop.f32.mrb[61].mxu1  ;;  %v16755_v14 = vpop.f32.mrb[93].mxu0  ;;  %v16757_v24 = vmul.f32 %v4860_v47, %v4732_v26  ;;  %v4734_v33 = vsel %vm4478_vm11, %v11713_v51, %v4606_v5  ;;  %v11684_v7 = vadd.f32 %v16625_v27, %v16330_v17  ;;  %v4868_v26 = vld [vmem:[%s16338_s13 + $0x2c0] sm:$0xff]  ;;  %v4870_v56 = vld [vmem:[%s16338_s13 + $0x2d0] sm:$0xff] }
 0x361   : > { %v4733_v13 = vsel %vm4477_vm12, %v11682_v15, %v4605_v1  ;;  %v16763_v19 = vpop.f32.mrb[62].mxu1  ;;  %v16765_v62 = vpop.f32.mrb[94].mxu0  ;;  %v16767_v43 = vmul.f32 %v4862_v37, %v4734_v33  ;;  %vm4484_vm14 = vcmp.ge.f32.partialorder %v11683_v2, 0.0  ;;  %v4612_v27 = vmul.f32 0.2, %v11683_v2 }
 0x362   : > { %v16769_v59 = vmul.f32 %v4861_v3, %v4733_v13  ;;  %v4735_v47 = vsel %vm4479_vm13, %v11714_v55, %v4607_v45  ;;  %v16773_v51 = vpop.f32.mrb[63].mxu1  ;;  %v16775_v5 = vpop.f32.mrb[95].mxu0  ;;  %vm4486_vm15 = vcmp.ge.f32.partialorder %v11715_v38, 0.0  ;;  %v4614_v1 = vmul.f32 0.2, %v11715_v38  ;;  %8535 = vmatpush1.bf16.msra.mxu0 %v12574_v54  ;;  %8085 = vmatpush1.bf16.msra.mxu1 %v12577_v61  ;;  %v4869_v3 = vld [vmem:[%s16338_s13 + $0x2c8] sm:$0xff] }
 0x363   : > { %v16777_v15 = vmul.f32 %v4863_v8, %v4735_v47  ;;  %vm4485_vm0 = vcmp.ge.f32.partialorder %v11684_v7, 0.0  ;;  %v4613_v37 = vmul.f32 0.2, %v11684_v7  ;;  %v11716_v55 = vadd.f32 %v16627_v28, %v16333_v41  ;;  %v12580_v8 = vld [vmem:[%s19416_s10 + $0x580] ss:$28 sps:$4 sm:$0xff]   ;;  %8536 = vmatprep.subr.bf16.mxu0 %v12582_v11  ;;  %8086 = vmatprep.subr.bf16.mxu1 %v12585_v48  ;;  %v4878_v47 = vld [vmem:[%s16338_s13 + $0x310] sm:$0xff] }
 0x364   : > { %v16785_v45 = vpack.c.bf16 %v16702_v34, %v16673_v23  ;;  %v4740_v54 = vsel %vm4484_vm14, %v11683_v2, %v4612_v27  ;;  %v4742_v61 = vsel %vm4486_vm15, %v11715_v38, %v4614_v1  ;;  %v16793_v33 = vpack.c.bf16 %v16682_v39, %v16660_v0  ;;  %v12583_v23 = vld [vmem:[%s19416_s10 + $0x5b0] ss:$28 sps:$4 sm:$0xff]   ;;  %v4871_v11 = vld [vmem:[%s16338_s13 + $0x2d8] sm:$0xff]  ;;  %v4876_v38 = vld [vmem:[%s16338_s13 + $0x300] sm:$0xff] }
 0x365   : > { %v11685_v28 = vadd.f32 %v16665_v30, %v16324_v12  ;;  %v16800_v34 = vmul.f32 %v4868_v26, %v4740_v54  ;;  %v16802_v13 = vmul.f32 %v4870_v56, %v4742_v61  ;;  %v4741_v48 = vsel %vm4485_vm0, %v11684_v7, %v4613_v37  ;;  %v12588_v0 = vld [vmem:[%s19416_s10 + $0x5bc] ss:$28 sps:$4 sm:$0xff]   ;;  %v12591_v30 = vld [vmem:[%s19416_s10 + $0x5ec] ss:$28 sps:$4 sm:$0xff]  }
 0x366   : > { %19823 = vst [vmem:[#allocation26_spill] sm:$0xff] %v16785_v45  ;;  %19824 = vst [vmem:[#allocation27_spill] sm:$0xff] %v16793_v33  ;;  %vm4487_vm1 = vcmp.ge.f32.partialorder %v11716_v55, 0.0  ;;  %8025 = vmatprep.mubr.bf16.mxu1 %v16785_v45  ;;  %8477 = vmatprep.mubr.bf16.mxu0 %v16785_v45  ;;  %v4997_v39 = vmul.f32 %v4869_v3, %v4741_v48  ;;  %v4615_v56 = vmul.f32 0.2, %v11716_v55  ;;  %v4879_v61 = vld [vmem:[%s16338_s13 + $0x318] sm:$0xff] }
 0x367   : > { %8026 = vmatmul.mubr.bf16.gmra.mrb[112].mxu1 %v16793_v33  ;;  %8478 = vmatmul.mubr.bf16.gmra.mrb[144].mxu0 %v16793_v33  ;;  %vm4492_vm2 = vcmp.ge.f32.partialorder %v11685_v28, 0.0  ;;  %v4620_v2 = vmul.f32 0.2, %v11685_v28  ;;  %v11717_v7 = vadd.f32 %v16667_v40, %v16327_v22  ;;  %v11686_v26 = vadd.f32 %v16669_v36, %v16330_v17  ;;  %v12586_v37 = vld [vmem:[%s19416_s10 + $0x5b8] ss:$28 sps:$4 sm:$0xff]   ;;  %v4877_v40 = vld [vmem:[%s16338_s13 + $0x308] sm:$0xff] }
 0x368   : > { %v11718_v27 = vadd.f32 %v16671_v35, %v16333_v41  ;;  %v11687_v1 = vadd.f32 %v16676_v31, %v16324_v12  ;;  %8537 = vmatpush1.bf16.msra.mxu0 %v12580_v8  ;;  %v4743_v3 = vsel %vm4487_vm1, %v11716_v55, %v4615_v56  ;;  %v11719_v36 = vadd.f32 %v16678_v42, %v16327_v22  ;;  %v12589_v31 = vld [vmem:[%s19416_s10 + $0x5e8] ss:$28 sps:$4 sm:$0xff]   ;;  %v12594_v8 = vld [vmem:[%s19416_s10 + $0x5f4] ss:$28 sps:$4 sm:$0xff]  }
 0x369   : > { %v4748_v54 = vsel %vm4492_vm2, %v11685_v28, %v4620_v2  ;;  %v11688_v35 = vadd.f32 %v16685_v6, %v16330_v17  ;;  %8087 = vmatpush1.bf16.msra.mxu1 %v12583_v23  ;;  %v16841_v55 = vmul.f32 %v4871_v11, %v4743_v3  ;;  %vm4494_vm3 = vcmp.ge.f32.partialorder %v11717_v7, 0.0  ;;  %v4884_v42 = vld [vmem:[%s16338_s13 + $0x340] sm:$0xff]  ;;  %8538 = vmatprep.subr.bf16.mxu0 %v12588_v0  ;;  %v4886_v2 = vld [vmem:[%s16338_s13 + $0x350] sm:$0xff] }
 0x36a   : > { %v16843_v28 = vmul.f32 %v4876_v38, %v4748_v54  ;;  %v4622_v48 = vmul.f32 0.2, %v11717_v7  ;;  %8088 = vmatprep.subr.bf16.mxu1 %v12591_v30  ;;  %v12597_v6 = vld [vmem:[%s19416_s10 + $0x624] ss:$28 sps:$4 sm:$0xff]   ;;  %vm4493_vm4 = vcmp.ge.f32.partialorder %v11686_v26, 0.0  ;;  %vm4495_vm5 = vcmp.ge.f32.partialorder %v11718_v27, 0.0 }
 0x36b   : > { %v4621_v23 = vmul.f32 0.2, %v11686_v26  ;;  %v4623_v56 = vmul.f32 0.2, %v11718_v27  ;;  %vm4500_vm6 = vcmp.ge.f32.partialorder %v11687_v1, 0.0  ;;  %vm4502_vm7 = vcmp.ge.f32.partialorder %v11719_v36, 0.0 }
 0x36c   : > { %v4750_v33 = vsel %vm4494_vm3, %v11717_v7, %v4622_v48  ;;  %v4628_v11 = vmul.f32 0.2, %v11687_v1  ;;  %8539 = vmatpush1.bf16.msra.mxu0 %v12586_v37  ;;  %v12592_v38 = vld [vmem:[%s19416_s10 + $0x5f0] ss:$28 sps:$4 sm:$0xff]   ;;  %v4630_v54 = vmul.f32 0.2, %v11719_v36 }
 0x36d   : > { %v16853_v0 = vmul.f32 %v4878_v47, %v4750_v33  ;;  %v4749_v30 = vsel %vm4493_vm4, %v11686_v26, %v4621_v23  ;;  %v4751_v3 = vsel %vm4495_vm5, %v11718_v27, %v4623_v56  ;;  %8089 = vmatpush1.bf16.msra.mxu1 %v12589_v31  ;;  %8540 = vmatprep.subr.bf16.mxu0 %v12594_v8  ;;  %v12595_v7 = vld [vmem:[%s19416_s10 + $0x620] ss:$28 sps:$4 sm:$0xff]   ;;  %v12600_v37 = vld [vmem:[%s19416_s10 + $0x62c] ss:$28 sps:$4 sm:$0xff]   ;;  %vm4501_vm8 = vcmp.ge.f32.partialorder %v11688_v35, 0.0 }
 0x36e   : > { %v16861_v48 = vmul.f32 %v4877_v40, %v4749_v30  ;;  %v16863_v45 = vmul.f32 %v4879_v61, %v4751_v3  ;;  %v4756_v33 = vsel %vm4500_vm6, %v11687_v1, %v4628_v11  ;;  %8090 = vmatprep.subr.bf16.mxu1 %v12597_v6  ;;  %v4758_v26 = vsel %vm4502_vm7, %v11719_v36, %v4630_v54  ;;  %v4885_v31 = vld [vmem:[%s16338_s13 + $0x348] sm:$0xff]  ;;  %v4892_v56 = vld [vmem:[%s16338_s13 + $0x380] sm:$0xff]  ;;  %v4894_v30 = vld [vmem:[%s16338_s13 + $0x390] sm:$0xff] }
 0x36f   : > { %v16865_v47 = vmul.f32 %v4884_v42, %v4756_v33  ;;  %v4629_v27 = vmul.f32 0.2, %v11688_v35  ;;  %v11720_v8 = vadd.f32 %v16687_v50, %v16333_v41  ;;  %v16871_v23 = vmul.f32 %v4886_v2, %v4758_v26  ;;  %v12598_v36 = vld [vmem:[%s19416_s10 + $0x628] ss:$28 sps:$4 sm:$0xff]   ;;  %v12601_v50 = vld [vmem:[%s19416_s10 + $0x658] ss:$28 sps:$4 sm:$0xff]  }
 0x370   : > { %v16874_v40 = vpack.c.bf16 %v4997_v39, %v16769_v59  ;;  %v16878_v1 = vpack.c.bf16 %v16800_v34, %v16757_v24  ;;  %v11689_v61 = vadd.f32 %v16742_v44, %v16324_v12  ;;  %8541 = vmatpush1.bf16.msra.mxu0 %v12592_v38  ;;  %v12603_v59 = vld [vmem:[%s19416_s10 + $0x65c] ss:$28 sps:$4 sm:$0xff]   ;;  %v11721_v44 = vadd.f32 %v16744_v52, %v16327_v22  ;;  %v12606_v42 = vld [vmem:[%s19416_s10 + $0x664] ss:$28 sps:$4 sm:$0xff]   ;;  %v12609_v52 = vld [vmem:[%s19416_s10 + $0x694] ss:$28 sps:$4 sm:$0xff]  }
 0x371   : > { %v4757_v39 = vsel %vm4501_vm8, %v11688_v35, %v4629_v27  ;;  %vm4503_vm9 = vcmp.ge.f32.partialorder %v11720_v8, 0.0  ;;  %v4631_v24 = vmul.f32 0.2, %v11720_v8  ;;  %v4887_v34 = vld [vmem:[%s16338_s13 + $0x358] sm:$0xff]  ;;  %8091 = vmatpush1.bf16.msra.mxu1 %v12595_v7  ;;  %8542 = vmatprep.subr.bf16.mxu0 %v12600_v37  ;;  %v11690_v2 = vadd.f32 %v16753_v58, %v16330_v17  ;;  %v4893_v33 = vld [vmem:[%s16338_s13 + $0x388] sm:$0xff] }
 0x372   : > { %19825 = vst [vmem:[#allocation28_spill] sm:$0xff] %v16874_v40  ;;  %19826 = vst [vmem:[#allocation29_spill] sm:$0xff] %v16878_v1  ;;  %v5013_v6 = vmul.f32 %v4885_v31, %v4757_v39  ;;  %8035 = vmatprep.mubr.bf16.mxu1 %v16874_v40  ;;  %8487 = vmatprep.mubr.bf16.mxu0 %v16874_v40  ;;  %vm4508_vm10 = vcmp.ge.f32.partialorder %v11689_v61, 0.0  ;;  %v4636_v35 = vmul.f32 0.2, %v11689_v61  ;;  %vm4510_vm11 = vcmp.ge.f32.partialorder %v11721_v44, 0.0 }
 0x373   : > { %v4759_v11 = vsel %vm4503_vm9, %v11720_v8, %v4631_v24  ;;  %8036 = vmatmul.mubr.bf16.gmra.mrb[116].mxu1 %v16878_v1  ;;  %8488 = vmatmul.mubr.bf16.gmra.mrb[148].mxu0 %v16878_v1  ;;  %v4638_v38 = vmul.f32 0.2, %v11721_v44  ;;  %v11722_v3 = vadd.f32 %v16755_v14, %v16333_v41  ;;  %v12604_v58 = vld [vmem:[%s19416_s10 + $0x660] ss:$28 sps:$4 sm:$0xff]   ;;  %vm4509_vm12 = vcmp.ge.f32.partialorder %v11690_v2, 0.0 }
 0x374   : > { %v16913_v54 = vmul.f32 %v4887_v34, %v4759_v11  ;;  %v4764_v7 = vsel %vm4508_vm10, %v11689_v61, %v4636_v35  ;;  %v4637_v37 = vmul.f32 0.2, %v11690_v2  ;;  %8543 = vmatpush1.bf16.msra.mxu0 %v12598_v36  ;;  %8092 = vmatprep.subr.bf16.mxu1 %v12603_v59  ;;  %v12607_v26 = vld [vmem:[%s19416_s10 + $0x690] ss:$28 sps:$4 sm:$0xff]   ;;  %v4895_v8 = vld [vmem:[%s16338_s13 + $0x398] sm:$0xff]  ;;  %v11691_v59 = vadd.f32 %v16763_v19, %v16324_v12 }
 0x375   : > { %v5020_v27 = vmul.f32 %v4892_v56, %v4764_v7  ;;  %v4766_v31 = vsel %vm4510_vm11, %v11721_v44, %v4638_v38  ;;  %vm4511_vm13 = vcmp.ge.f32.partialorder %v11722_v3, 0.0  ;;  %v4639_v14 = vmul.f32 0.2, %v11722_v3  ;;  %8093 = vmatpush1.bf16.msra.mxu1 %v12601_v50  ;;  %8544 = vmatprep.subr.bf16.mxu0 %v12606_v42  ;;  %v12612_v61 = vld [vmem:[%s19416_s10 + $0x69c] ss:$28 sps:$4 sm:$0xff]   ;;  %v4900_v42 = vld [vmem:[%s16338_s13 + $0x3c0] sm:$0xff] }
 0x376   : > { %v16923_v39 = vmul.f32 %v4894_v30, %v4766_v31  ;;  %v4765_v36 = vsel %vm4509_vm12, %v11690_v2, %v4637_v37  ;;  %v11723_v24 = vadd.f32 %v16765_v62, %v16327_v22  ;;  %8094 = vmatprep.subr.bf16.mxu1 %v12609_v52  ;;  %v12615_v50 = vld [vmem:[%s19416_s10 + $0x6cc] ss:$28 sps:$4 sm:$0xff]   ;;  %v4902_v35 = vld [vmem:[%s16338_s13 + $0x3d0] sm:$0xff]  ;;  %v11692_v56 = vadd.f32 %v16773_v51, %v16330_v17  ;;  %v4903_v19 = vld [vmem:[%s16338_s13 + $0x3d8] sm:$0xff] }
 0x377   : > { %v5021_v34 = vmul.f32 %v4893_v33, %v4765_v36  ;;  %v4767_v44 = vsel %vm4511_vm13, %v11722_v3, %v4639_v14  ;;  %v11724_v2 = vadd.f32 %v16775_v5, %v16333_v41  ;;  %vm4516_vm14 = vcmp.ge.f32.partialorder %v11691_v59, 0.0  ;;  %v4901_v22 = vld [vmem:[%s16338_s13 + $0x3c8] sm:$0xff]  ;;  %v12610_v51 = vld [vmem:[%s19416_s10 + $0x698] ss:$28 sps:$4 sm:$0xff]  }
 0x378   : > { %v5023_v11 = vmul.f32 %v4895_v8, %v4767_v44  ;;  %v4644_v12 = vmul.f32 0.2, %v11691_v59  ;;  %vm4518_vm15 = vcmp.ge.f32.partialorder %v11723_v24, 0.0  ;;  %8545 = vmatpush1.bf16.msra.mxu0 %v12604_v58  ;;  %v4646_v62 = vmul.f32 0.2, %v11723_v24 }
 0x379   : > { %vm4517_vm0 = vcmp.ge.f32.partialorder %v11692_v56, 0.0  ;;  %v4645_v52 = vmul.f32 0.2, %v11692_v56  ;;  %vm4519_vm1 = vcmp.ge.f32.partialorder %v11724_v2, 0.0  ;;  %8095 = vmatpush1.bf16.msra.mxu1 %v12607_v26  ;;  %8546 = vmatprep.subr.bf16.mxu0 %v12612_v61  ;;  %v4647_v30 = vmul.f32 0.2, %v11724_v2 }
 0x37a   : > { %v4772_v38 = vsel %vm4516_vm14, %v11691_v59, %v4644_v12  ;;  %v16941_v17 = vpack.c.bf16 %v5013_v6, %v16861_v48  ;;  %v16945_v41 = vpack.c.bf16 %v16865_v47, %v16843_v28  ;;  %v12613_v5 = vld [vmem:[%s19416_s10 + $0x6c8] ss:$28 sps:$4 sm:$0xff]   ;;  %8096 = vmatprep.subr.bf16.mxu1 %v12615_v50  ;;  %v4774_v58 = vsel %vm4518_vm15, %v11723_v24, %v4646_v62  ;;  %v12618_v28 = vld [vmem:[%s19416_s10 + $0x6d4] ss:$28 sps:$4 sm:$0xff]  }
 0x37b   : > { %v5028_v3 = vmul.f32 %v4900_v42, %v4772_v38  ;;  %v4773_v7 = vsel %vm4517_vm0, %v11692_v56, %v4645_v52  ;;  %v16956_v48 = vpack.c.bf16 %v16368_v57, %v16356_v32  ;;  %v12621_v47 = vld [vmem:[%s19416_s10 + $0x704] ss:$28 sps:$4 sm:$0xff]   ;;  %v5030_v6 = vmul.f32 %v4902_v35, %v4774_v58  ;;  %v12616_v14 = vld [vmem:[%s19416_s10 + $0x6d0] ss:$28 sps:$4 sm:$0xff]   ;;  %v12634_v36 = vld [vmem:[%s19416_s10 + $0x778] ss:$28 sps:$4 sm:$0xff]  }
 0x37c   : > { %19827 = vst [vmem:[#allocation30_spill] sm:$0xff] %v16941_v17  ;;  %19828 = vst [vmem:[#allocation31_spill] sm:$0xff] %v16945_v41  ;;  %v5029_v37 = vmul.f32 %v4901_v22, %v4773_v7  ;;  %v4775_v33 = vsel %vm4519_vm1, %v11724_v2, %v4647_v30  ;;  %8045 = vmatprep.mubr.bf16.mxu1 %v16941_v17  ;;  %8497 = vmatprep.mubr.bf16.mxu0 %v16941_v17  ;;  %v12639_v59 = vld [vmem:[%s19416_s10 + $0x7ac] ss:$28 sps:$4 sm:$0xff]   ;;  %v12642_v24 = vld [vmem:[%s19416_s10 + $0x7b4] ss:$28 sps:$4 sm:$0xff]  }
 0x37d   : > { %19829 = vst [vmem:[#allocation32_spill] sm:$0xff] %v16956_v48  ;;  %v5031_v26 = vmul.f32 %v4903_v19, %v4775_v33  ;;  %8046 = vmatmul.mubr.bf16.gmra.mrb[120].mxu1 %v16945_v41  ;;  %8498 = vmatmul.mubr.bf16.gmra.mrb[152].mxu0 %v16945_v41  ;;  %v16969_v32 = vpack.c.bf16 %v5028_v3, %v5020_v27  ;;  %v12637_v50 = vld [vmem:[%s19416_s10 + $0x7a8] ss:$28 sps:$4 sm:$0xff]   ;;  %v12643_v35 = vld [vmem:[%s19416_s10 + $0x7e0] ss:$28 sps:$4 sm:$0xff]  }
 0x37e   : > { %v16973_v57 = vpack.c.bf16 %v16438_v53, %v16399_v25  ;;  %v16975_v31 = vpack.c.bf16 %v5029_v37, %v5021_v34  ;;  %8547 = vmatpush1.bf16.msra.mxu0 %v12610_v51  ;;  %8097 = vmatpush1.bf16.msra.mxu1 %v12613_v5  ;;  %v16982_v8 = vpack.c.bf16 %v16412_v29, %v16379_v60  ;;  %v12624_v25 = vld [vmem:[%s19416_s10 + $0x70c] ss:$28 sps:$4 sm:$0xff]   ;;  %v12645_v44 = vld [vmem:[%s19416_s10 + $0x7e4] ss:$28 sps:$4 sm:$0xff]   ;;  %v12651_v2 = vld [vmem:[%s19416_s10 + $0x81c] ss:$28 sps:$4 sm:$0xff]  }
 0x37f   : > { %19830 = vst [vmem:[#allocation33_spill] sm:$0xff] %v16969_v32  ;;  %v16986_v27 = vpack.c.bf16 %v16532_v49, %v16465_v18  ;;  %8548 = vmatprep.subr.bf16.mxu0 %v12618_v28  ;;  %8179 = vmatprep.subr.bf16.mxu1 %v12621_v47  ;;  %v16993_v53 = vpack.c.bf16 %v16499_v21, %v16455_v46  ;;  %v19839_v18 = vld [vmem:[#allocation22_spill] sm:$0xff]  ;;  %v19840_v49 = vld [vmem:[#allocation23_spill] sm:$0xff]  ;;  %v12649_v12 = vld [vmem:[%s19416_s10 + $0x818] ss:$28 sps:$4 sm:$0xff]  }
 0x380   : > { %19831 = vst [vmem:[#allocation34_spill] sm:$0xff] %v16973_v57  ;;  %19832 = vst [vmem:[#allocation35_spill] sm:$0xff] %v16975_v31  ;;  %v16997_v61 = vpack.c.bf16 %v16629_v16, %v16579_v10  ;;  %v17001_v60 = vpack.c.bf16 %v16616_v9, %v16545_v4  ;;  %8055 = vmatprep.mubr.bf16.mxu1 %v16975_v31  ;;  %8507 = vmatprep.mubr.bf16.mxu0 %v16975_v31  ;;  %v12640_v34 = vld [vmem:[%s19416_s10 + $0x7b0] ss:$28 sps:$4 sm:$0xff]   ;;  %v12646_v56 = vld [vmem:[%s19416_s10 + $0x7e8] ss:$28 sps:$4 sm:$0xff]  }
 0x381   : > { %19833 = vst [vmem:[#allocation36_spill] sm:$0xff] %v16982_v8  ;;  %19834 = vst [vmem:[#allocation37_spill] sm:$0xff] %v16986_v27  ;;  %v17007_v29 = vpack.c.bf16 %v16734_v63, %v16680_v20  ;;  %v17011_v46 = vpack.c.bf16 %v19840_v49, %v19839_v18  ;;  %v17015_v21 = vpack.c.bf16 %v16841_v55, %v16777_v15  ;;  %v12619_v63 = vld [vmem:[%s19416_s10 + $0x700] ss:$28 sps:$4 sm:$0xff]   ;;  %v12625_v55 = vld [vmem:[%s19416_s10 + $0x738] ss:$28 sps:$4 sm:$0xff]  }
 0x382   : > { %19835 = vst [vmem:[#allocation38_spill] sm:$0xff] %v16993_v53  ;;  %19836 = vst [vmem:[#allocation39_spill] sm:$0xff] %v16997_v61  ;;  %v17019_v4 = vpack.c.bf16 %v16802_v13, %v16767_v43  ;;  %v17023_v10 = vpack.c.bf16 %v16913_v54, %v16863_v45  ;;  %v17027_v9 = vpack.c.bf16 %v16871_v23, %v16853_v0  ;;  %8549 = vmatpush1.bf16.msra.mxu0 %v12616_v14  ;;  %v12622_v43 = vld [vmem:[%s19416_s10 + $0x708] ss:$28 sps:$4 sm:$0xff]   ;;  %v12627_v15 = vld [vmem:[%s19416_s10 + $0x73c] ss:$28 sps:$4 sm:$0xff]  }
 0x383   : > { %19837 = vst [vmem:[#allocation40_spill] sm:$0xff] %v17001_v60  ;;  %19838 = vst [vmem:[#allocation41_spill] sm:$0xff] %v17007_v29  ;;  %v17029_v16 = vpack.c.bf16 %v5031_v26, %v5023_v11  ;;  %8631 = vmatprep.subr.bf16.mxu0 %v12624_v25  ;;  %v17032_v20 = vpack.c.bf16 %v5030_v6, %v16923_v39  ;;  %v12630_v45 = vld [vmem:[%s19416_s10 + $0x744] ss:$28 sps:$4 sm:$0xff]   ;;  %v19848_v13 = vld [vmem:[#allocation16_spill] sm:$0xff] }
 0x384   : > { %19841 = vst [vmem:[#allocation42_spill] sm:$0xff] %v17011_v46  ;;  %19842 = vst [vmem:[#allocation43_spill] sm:$0xff] %v17015_v21  ;;  %v12628_v0 = vld [vmem:[%s19416_s10 + $0x740] ss:$28 sps:$4 sm:$0xff]   ;;  %v12633_v23 = vld [vmem:[%s19416_s10 + $0x774] ss:$28 sps:$4 sm:$0xff]  }
 0x385   : > { %19843 = vst [vmem:[#allocation44_spill] sm:$0xff] %v17019_v4  ;;  %19844 = vst [vmem:[#allocation45_spill] sm:$0xff] %v17023_v10  ;;  %8056 = vmatmul.mubr.bf16.gmra.mrb[124].mxu1 %v16969_v32  ;;  %8508 = vmatmul.mubr.bf16.gmra.mrb[156].mxu0 %v16969_v32  ;;  %v12636_v54 = vld [vmem:[%s19416_s10 + $0x77c] ss:$28 sps:$4 sm:$0xff]   ;;  %v12631_v39 = vld [vmem:[%s19416_s10 + $0x770] ss:$28 sps:$4 sm:$0xff]  }
 0x386   : > { %19845 = vst [vmem:[#allocation46_spill] sm:$0xff] %v17027_v9  ;;  %19846 = vst [vmem:[#allocation47_spill] sm:$0xff] %v17029_v16  ;;  %8098 = vmatprep.mubr.bf16.mxu1 %v16956_v48  ;;  %8550 = vmatprep.mubr.bf16.mxu0 %v16956_v48  ;;  %v12648_v42 = vld [vmem:[%s19416_s10 + $0x7ec] ss:$28 sps:$4 sm:$0xff]   ;;  %v12654_v11 = vld [vmem:[%s19416_s10 + $0x824] ss:$28 sps:$4 sm:$0xff]  }
 0x387   : > { %19847 = vst [vmem:[#allocation49_spill] sm:$0xff] %v17032_v20  ;;  %v12652_v22 = vld [vmem:[%s19416_s10 + $0x820] ss:$28 sps:$4 sm:$0xff]   ;;  %v12657_v19 = vld [vmem:[%s19416_s10 + $0x854] ss:$28 sps:$4 sm:$0xff]  }
 0x388   : > { %v19849_v62 = vld [vmem:[#allocation2_spill] sm:$0xff]  ;;  %v12660_v38 = vld [vmem:[%s19416_s10 + $0x85c] ss:$28 sps:$4 sm:$0xff]   ;;  %v12655_v5 = vld [vmem:[%s19416_s10 + $0x850] ss:$28 sps:$4 sm:$0xff]  }
 0x389   : > { %v19556_v52 = vsub.s32 4, %v19849_v62  ;;  %v19555_v30 = vsub.s32 5, %v19849_v62  ;;  %v19557_v51 = vsub.s32 6, %v19849_v62  ;;  %v2202_v3 = vsub.s32 7, %v19849_v62  ;;  %v12658_v58 = vld [vmem:[%s19416_s10 + $0x858] ss:$28 sps:$4 sm:$0xff]  }
 0x38a   : > { %v13519_v7 = vld [vmem:[%s19415_s9] sm:$0xff]  ;;  %v12663_v47 = vld [vmem:[%s19416_s10 + $0x88c] ss:$28 sps:$4 sm:$0xff]   ;;  %v12666_v6 = vld [vmem:[%s19416_s10 + $0x894] ss:$28 sps:$4 sm:$0xff]  }
 0x38b   : > { %v17137_v28 = vrot.slane %v13519_v7, %v19556_v52  ;;  %v17147_v37 = vrot.slane %v13519_v7, %v19555_v30  ;;  %v17153_v33 = vrot.slane %v13519_v7, %v19557_v51  ;;  %v12661_v26 = vld [vmem:[%s19416_s10 + $0x888] ss:$28 sps:$4 sm:$0xff]   ;;  %v17159_v25 = vrot.slane %v13519_v7, %v2202_v3  ;;  %v12664_v18 = vld [vmem:[%s19416_s10 + $0x890] ss:$28 sps:$4 sm:$0xff]   ;;  %v4811_v62 = vld [vmem:[%s16338_s13 + $0xf8] sm:$0xff] }
 0x38c   : > { %v12669_v49 = vld [vmem:[%s19416_s10 + $0x8c4] ss:$28 sps:$4 sm:$0xff]   ;;  %v4843_v48 = vld [vmem:[%s16338_s13 + $0x1f8] sm:$0xff] }
 0x38d   : > { %8099 = vmatmul.mubr.bf16.vlgmr.msra.gmra.mrb[96].mxu1 %v19848_v13  ;;  %8551 = vmatmul.mubr.bf16.vlgmr.msra.gmra.mrb[128].mxu0 %v19848_v13  ;;  %v12678_v3 = vld [vmem:[%s19416_s10 + $0x904] ss:$28 sps:$4 sm:$0xff]  }
 0x38e   : > { %8180 = vmatpush1.bf16.msra.mxu1 %v12619_v63  ;;  %8108 = vmatprep.mubr.bf16.mxu1 %v16973_v57  ;;  %v4856_v17 = vld [vmem:[%s16338_s13 + $0x260] sm:$0xff] }
 0x38f   : > { %8560 = vmatprep.mubr.bf16.mxu0 %v16973_v57  ;;  %8632 = vmatpush1.bf16.msra.mxu0 %v12622_v43  ;;  %v4835_v57 = vld [vmem:[%s16338_s13 + $0x1b8] sm:$0xff] }
 0x390   : > { %8181 = vmatprep.subr.bf16.mxu1 %v12627_v15  ;;  %8633 = vmatprep.subr.bf16.mxu0 %v12630_v45  ;;  %v12667_v15 = vld [vmem:[%s19416_s10 + $0x8c0] ss:$28 sps:$4 sm:$0xff]   ;;  %v12672_v45 = vld [vmem:[%s19416_s10 + $0x8cc] ss:$28 sps:$4 sm:$0xff]  }
 0x392   : > { %8182 = vmatpush1.bf16.msra.mxu1 %v12625_v55 }
 0x393   : > { %8634 = vmatpush1.bf16.msra.mxu0 %v12628_v0  ;;  %8183 = vmatprep.subr.bf16.mxu1 %v12633_v23 }
 0x394   : > { %8635 = vmatprep.subr.bf16.mxu0 %v12636_v54  ;;  %v12670_v54 = vld [vmem:[%s19416_s10 + $0x8c8] ss:$28 sps:$4 sm:$0xff]  }
 0x395   : > { %8109 = vmatmul.mubr.bf16.gmra.mrb[100].mxu1 %v16982_v8  ;;  %8561 = vmatmul.mubr.bf16.gmra.mrb[132].mxu0 %v16982_v8 }
 0x396   : > { %8184 = vmatpush1.bf16.msra.mxu1 %v12631_v39  ;;  %8118 = vmatprep.mubr.bf16.mxu1 %v16986_v27 }
 0x397   : > { %8570 = vmatprep.mubr.bf16.mxu0 %v16986_v27  ;;  %8636 = vmatpush1.bf16.msra.mxu0 %v12634_v36  ;;  %v4784_v36 = vld [vmem:[%s16338_s13 + $0x20] sm:$0xff]  ;;  %v4826_v27 = vld [vmem:[%s16338_s13 + $0x170] sm:$0xff] }
 0x398   : > { %8185 = vmatprep.subr.bf16.mxu1 %v12639_v59  ;;  %8637 = vmatprep.subr.bf16.mxu0 %v12642_v24 }
 0x39a   : > { %8186 = vmatpush1.bf16.msra.mxu1 %v12637_v50 }
 0x39b   : > { %8638 = vmatpush1.bf16.msra.mxu0 %v12640_v34  ;;  %8187 = vmatprep.subr.bf16.mxu1 %v12645_v44  ;;  %v12675_v44 = vld [vmem:[%s19416_s10 + $0x8fc] ss:$28 sps:$4 sm:$0xff]  }
 0x39c   : > { %8639 = vmatprep.subr.bf16.mxu0 %v12648_v42 }
 0x39d   : > { %8119 = vmatmul.mubr.bf16.gmra.mrb[104].mxu1 %v16993_v53  ;;  %8571 = vmatmul.mubr.bf16.gmra.mrb[136].mxu0 %v16993_v53 }
 0x39e   : > { %8188 = vmatpush1.bf16.msra.mxu1 %v12643_v35  ;;  %8128 = vmatprep.mubr.bf16.mxu1 %v16997_v61  ;;  %v4785_v35 = vld [vmem:[%s16338_s13 + $0x28] sm:$0xff] }
 0x39f   : > { %8580 = vmatprep.mubr.bf16.mxu0 %v16997_v61  ;;  %8640 = vmatpush1.bf16.msra.mxu0 %v12646_v56 }
 0x3a0   : > { %8189 = vmatprep.subr.bf16.mxu1 %v12651_v2  ;;  %8641 = vmatprep.subr.bf16.mxu0 %v12654_v11 }
 0x3a2   : > { %8190 = vmatpush1.bf16.msra.mxu1 %v12649_v12 }
 0x3a3   : > { %8642 = vmatpush1.bf16.msra.mxu0 %v12652_v22  ;;  %8191 = vmatprep.subr.bf16.mxu1 %v12657_v19  ;;  %v4786_v19 = vld [vmem:[%s16338_s13 + $0x30] sm:$0xff] }
 0x3a4   : > { %8643 = vmatprep.subr.bf16.mxu0 %v12660_v38  ;;  %v4091_v14 = vpop.f32.mrb[64].mxu1 }
 0x3a5   : > { %8129 = vmatmul.mubr.bf16.gmra.mrb[108].mxu1 %v17001_v60  ;;  %8581 = vmatmul.mubr.bf16.gmra.mrb[140].mxu0 %v17001_v60  ;;  %v11725_v63 = vadd.f32 %v4091_v14, %v17137_v28  ;;  %v4093_v43 = vpop.f32.mrb[65].mxu1  ;;  %v12681_v14 = vld [vmem:[%s19416_s10 + $0x934] ss:$28 sps:$4 sm:$0xff]  }
 0x3a6   : > { %8192 = vmatpush1.bf16.msra.mxu1 %v12655_v5  ;;  %8138 = vmatprep.mubr.bf16.mxu1 %v17007_v29  ;;  %v4317_v55 = vpop.f32.mrb[96].mxu0  ;;  %v11726_v0 = vadd.f32 %v4093_v43, %v17147_v37  ;;  %v4095_v23 = vpop.f32.mrb[66].mxu1  ;;  %v12673_v5 = vld [vmem:[%s19416_s10 + $0x8f8] ss:$28 sps:$4 sm:$0xff]   ;;  %v4792_v43 = vld [vmem:[%s16338_s13 + $0x60] sm:$0xff] }
 0x3a7   : > { %8590 = vmatprep.mubr.bf16.mxu0 %v17007_v29  ;;  %8644 = vmatpush1.bf16.msra.mxu0 %v12658_v58  ;;  %vm4400_vm2 = vcmp.ge.f32.partialorder %v11725_v63, 0.0  ;;  %v4528_v39 = vmul.f32 0.2, %v11725_v63  ;;  %v11757_v59 = vadd.f32 %v4317_v55, %v17153_v33  ;;  %v4319_v24 = vpop.f32.mrb[97].mxu0  ;;  %v11727_v50 = vadd.f32 %v4095_v23, %v17137_v28  ;;  %v4097_v34 = vpop.f32.mrb[67].mxu1 }
 0x3a8   : > { %8193 = vmatprep.subr.bf16.mxu1 %v12663_v47  ;;  %8645 = vmatprep.subr.bf16.mxu0 %v12666_v6  ;;  %vm4401_vm3 = vcmp.ge.f32.partialorder %v11726_v0, 0.0  ;;  %v4529_v42 = vmul.f32 0.2, %v11726_v0  ;;  %v11758_v56 = vadd.f32 %v4319_v24, %v17159_v25  ;;  %v4321_v2 = vpop.f32.mrb[98].mxu0  ;;  %v11728_v11 = vadd.f32 %v4097_v34, %v17147_v37  ;;  %v4787_v6 = vld [vmem:[%s16338_s13 + $0x38] sm:$0xff] }
 0x3a9   : > { %v4656_v12 = vsel %vm4400_vm2, %v11725_v63, %v4528_v39  ;;  %vm4402_vm4 = vcmp.ge.f32.partialorder %v11757_v59, 0.0  ;;  %v4530_v22 = vmul.f32 0.2, %v11757_v59  ;;  %vm4408_vm5 = vcmp.ge.f32.partialorder %v11727_v50, 0.0  ;;  %v4323_v38 = vpop.f32.mrb[99].mxu0  ;;  %v4793_v39 = vld [vmem:[%s16338_s13 + $0x68] sm:$0xff] }
 0x3aa   : > { %8194 = vmatpush1.bf16.msra.mxu1 %v12661_v26  ;;  %v4912_v58 = vmul.f32 %v4784_v36, %v4656_v12  ;;  %v4657_v7 = vsel %vm4401_vm3, %v11726_v0, %v4529_v42  ;;  %vm4403_vm6 = vcmp.ge.f32.partialorder %v11758_v56, 0.0  ;;  %v4531_v47 = vmul.f32 0.2, %v11758_v56  ;;  %v12676_v26 = vld [vmem:[%s19416_s10 + $0x900] ss:$28 sps:$4 sm:$0xff]   ;;  %v4794_v42 = vld [vmem:[%s16338_s13 + $0x70] sm:$0xff] }
 0x3ab   : > { %8646 = vmatpush1.bf16.msra.mxu0 %v12664_v18  ;;  %8195 = vmatprep.subr.bf16.mxu1 %v12669_v49  ;;  %v4658_v18 = vsel %vm4402_vm4, %v11757_v59, %v4530_v22  ;;  %v17207_v49 = vmul.f32 %v4785_v35, %v4657_v7  ;;  %v4536_v63 = vmul.f32 0.2, %v11727_v50  ;;  %vm4409_vm7 = vcmp.ge.f32.partialorder %v11728_v11, 0.0  ;;  %v12679_v35 = vld [vmem:[%s19416_s10 + $0x930] ss:$28 sps:$4 sm:$0xff]   ;;  %v4795_v7 = vld [vmem:[%s16338_s13 + $0x78] sm:$0xff] }
 0x3ac   : > { %8647 = vmatprep.subr.bf16.mxu0 %v12672_v45  ;;  %v11759_v45 = vadd.f32 %v4321_v2, %v17153_v33  ;;  %v4914_v55 = vmul.f32 %v4786_v19, %v4658_v18  ;;  %v4659_v0 = vsel %vm4403_vm6, %v11758_v56, %v4531_v47  ;;  %v4537_v23 = vmul.f32 0.2, %v11728_v11  ;;  %v4101_v36 = vpop.f32.mrb[68].mxu1  ;;  %v12684_v56 = vld [vmem:[%s19416_s10 + $0x93c] ss:$28 sps:$4 sm:$0xff]  }
 0x3ad   : > { %8139 = vmatmul.mubr.bf16.gmra.mrb[112].mxu1 %v17011_v46  ;;  %8591 = vmatmul.mubr.bf16.gmra.mrb[144].mxu0 %v17011_v46  ;;  %v17214_v59 = vmul.f32 %v4787_v6, %v4659_v0  ;;  %v4664_v24 = vsel %vm4408_vm5, %v11727_v50, %v4536_v63  ;;  %v11760_v50 = vadd.f32 %v4323_v38, %v17159_v25  ;;  %v4800_v0 = vld [vmem:[%s16338_s13 + $0xa0] sm:$0xff]  ;;  %v12714_v60 = vld [vmem:[%s19416_s10 + $0xa54] ss:$28 sps:$4 sm:$0xff]  }
 0x3ae   : > { %8196 = vmatpush1.bf16.msra.mxu1 %v12667_v15  ;;  %8148 = vmatprep.mubr.bf16.mxu1 %v17015_v21  ;;  %vm4410_vm8 = vcmp.ge.f32.partialorder %v11759_v45, 0.0  ;;  %v4538_v34 = vmul.f32 0.2, %v11759_v45  ;;  %v4103_v15 = vpop.f32.mrb[69].mxu1  ;;  %v4665_v2 = vsel %vm4409_vm7, %v11728_v11, %v4537_v23  ;;  %v4327_v12 = vpop.f32.mrb[100].mxu0  ;;  %v11729_v47 = vadd.f32 %v4101_v36, %v17137_v28  ;;  %v4802_v23 = vld [vmem:[%s16338_s13 + $0xb0] sm:$0xff] }
 0x3af   : > { %8600 = vmatprep.mubr.bf16.mxu0 %v17015_v21  ;;  %8648 = vmatpush1.bf16.msra.mxu0 %v12670_v54  ;;  %v4920_v54 = vmul.f32 %v4792_v43, %v4664_v24  ;;  %v4105_v22 = vpop.f32.mrb[70].mxu1  ;;  %v11761_v6 = vadd.f32 %v4327_v12, %v17153_v33  ;;  %v4329_v18 = vpop.f32.mrb[101].mxu0  ;;  %vm4411_vm9 = vcmp.ge.f32.partialorder %v11760_v50, 0.0  ;;  %v4539_v43 = vmul.f32 0.2, %v11760_v50 }
 0x3b0   : > { %8197 = vmatprep.subr.bf16.mxu1 %v12675_v44  ;;  %8649 = vmatprep.subr.bf16.mxu0 %v12678_v3  ;;  %v12682_v44 = vld [vmem:[%s19416_s10 + $0x938] ss:$28 sps:$4 sm:$0xff]   ;;  %v4666_v19 = vsel %vm4410_vm8, %v11759_v45, %v4538_v34  ;;  %v17229_v3 = vmul.f32 %v4793_v39, %v4665_v2  ;;  %v4107_v11 = vpop.f32.mrb[71].mxu1  ;;  %v4331_v24 = vpop.f32.mrb[102].mxu0  ;;  %vm4416_vm10 = vcmp.ge.f32.partialorder %v11729_v47, 0.0 }
 0x3b1   : > { %v17234_v38 = vpack.c.bf16 %v4920_v54, %v4912_v58  ;;  %v4922_v63 = vmul.f32 %v4794_v42, %v4666_v19  ;;  %v4544_v45 = vmul.f32 0.2, %v11729_v47  ;;  %vm4418_vm11 = vcmp.ge.f32.partialorder %v11761_v6, 0.0  ;;  %v12687_v36 = vld [vmem:[%s19416_s10 + $0x96c] ss:$28 sps:$4 sm:$0xff]  }
 0x3b2   : > { %8198 = vmatpush1.bf16.msra.mxu1 %v12673_v5  ;;  %v4546_v39 = vmul.f32 0.2, %v11761_v6  ;;  %v12690_v5 = vld [vmem:[%s19416_s10 + $0x974] ss:$28 sps:$4 sm:$0xff]   ;;  %v4667_v34 = vsel %vm4411_vm9, %v11760_v50, %v4539_v43  ;;  %v11730_v42 = vadd.f32 %v4103_v15, %v17147_v37  ;;  %v12693_v15 = vld [vmem:[%s19416_s10 + $0x9a4] ss:$28 sps:$4 sm:$0xff]  }
 0x3b3   : > { %19850 = vst [vmem:[#allocation50_spill] sm:$0xff] %v17234_v38  ;;  %8650 = vmatpush1.bf16.msra.mxu0 %v12676_v26  ;;  %8199 = vmatprep.subr.bf16.mxu1 %v12681_v14  ;;  %v17244_v58 = vpack.c.bf16 %v4922_v63, %v4914_v55  ;;  %v11762_v26 = vadd.f32 %v4329_v18, %v17159_v25  ;;  %v4333_v14 = vpop.f32.mrb[103].mxu0  ;;  %v12688_v55 = vld [vmem:[%s19416_s10 + $0x970] ss:$28 sps:$4 sm:$0xff]  }
 0x3b4   : > { %8651 = vmatprep.subr.bf16.mxu0 %v12684_v56  ;;  %v12685_v56 = vld [vmem:[%s19416_s10 + $0x968] ss:$28 sps:$4 sm:$0xff]   ;;  %v17259_v54 = vmul.f32 %v4795_v7, %v4667_v34  ;;  %v4672_v2 = vsel %vm4416_vm10, %v11729_v47, %v4544_v45  ;;  %v4674_v50 = vsel %vm4418_vm11, %v11761_v6, %v4546_v39  ;;  %vm4417_vm12 = vcmp.ge.f32.partialorder %v11730_v42, 0.0  ;;  %v4111_v43 = vpop.f32.mrb[72].mxu1  ;;  %v4803_v47 = vld [vmem:[%s16338_s13 + $0xb8] sm:$0xff]  ;;  %v4810_v34 = vld [vmem:[%s16338_s13 + $0xf0] sm:$0xff] }
 0x3b5   : > { %19851 = vst [vmem:[#allocation8_spill] sm:$0xff] %v17244_v58  ;;  %8149 = vmatmul.mubr.bf16.gmra.mrb[116].mxu1 %v17019_v4  ;;  %8601 = vmatmul.mubr.bf16.gmra.mrb[148].mxu0 %v17019_v4  ;;  %v17264_v12 = vmul.f32 %v4800_v0, %v4672_v2  ;;  %v17266_v19 = vmul.f32 %v4802_v23, %v4674_v50  ;;  %v4545_v18 = vmul.f32 0.2, %v11730_v42  ;;  %v4801_v63 = vld [vmem:[%s16338_s13 + $0xa8] sm:$0xff]  ;;  %vm4419_vm13 = vcmp.ge.f32.partialorder %v11762_v26, 0.0  ;;  %v4113_v0 = vpop.f32.mrb[73].mxu1 }
 0x3b6   : > { %8200 = vmatpush1.bf16.msra.mxu1 %v12679_v35  ;;  %8158 = vmatprep.mubr.bf16.mxu1 %v17023_v10  ;;  %v4547_v7 = vmul.f32 0.2, %v11762_v26  ;;  %v11731_v35 = vadd.f32 %v4105_v22, %v17137_v28  ;;  %v11763_v6 = vadd.f32 %v4331_v24, %v17153_v33  ;;  %v12691_v23 = vld [vmem:[%s19416_s10 + $0x9a0] ss:$28 sps:$4 sm:$0xff]   ;;  %v12696_v45 = vld [vmem:[%s19416_s10 + $0x9ac] ss:$28 sps:$4 sm:$0xff]   ;;  %v11732_v22 = vadd.f32 %v4107_v11, %v17147_v37 }
 0x3b7   : > { %8610 = vmatprep.mubr.bf16.mxu0 %v17023_v10  ;;  %8652 = vmatpush1.bf16.msra.mxu0 %v12682_v44  ;;  %v4673_v44 = vsel %vm4417_vm12, %v11730_v42, %v4545_v18  ;;  %v4808_v39 = vld [vmem:[%s16338_s13 + $0xe0] sm:$0xff]  ;;  %v11764_v24 = vadd.f32 %v4333_v14, %v17159_v25  ;;  %v4115_v2 = vpop.f32.mrb[74].mxu1  ;;  %v4809_v42 = vld [vmem:[%s16338_s13 + $0xe8] sm:$0xff] }
 0x3b8   : > { %8201 = vmatprep.subr.bf16.mxu1 %v12687_v36  ;;  %8653 = vmatprep.subr.bf16.mxu0 %v12690_v5  ;;  %v4337_v36 = vpop.f32.mrb[104].mxu0  ;;  %v12694_v5 = vld [vmem:[%s19416_s10 + $0x9a8] ss:$28 sps:$4 sm:$0xff]   ;;  %v17287_v50 = vmul.f32 %v4801_v63, %v4673_v44  ;;  %v4675_v30 = vsel %vm4419_vm13, %v11762_v26, %v4547_v7  ;;  %vm4424_vm14 = vcmp.ge.f32.partialorder %v11731_v35, 0.0  ;;  %v4552_v52 = vmul.f32 0.2, %v11731_v35 }
 0x3b9   : > { %v4339_v18 = vpop.f32.mrb[105].mxu0  ;;  %v17291_v51 = vpop.f32.mrb[75].mxu1  ;;  %v17293_v11 = vmul.f32 %v4803_v47, %v4675_v30  ;;  %vm4426_vm15 = vcmp.ge.f32.partialorder %v11763_v6, 0.0  ;;  %v4554_v14 = vmul.f32 0.2, %v11763_v6  ;;  %vm4425_vm0 = vcmp.ge.f32.partialorder %v11732_v22, 0.0 }
 0x3ba   : > { %8202 = vmatpush1.bf16.msra.mxu1 %v12685_v56  ;;  %v4341_v10 = vpop.f32.mrb[106].mxu0  ;;  %v4680_v63 = vsel %vm4424_vm14, %v11731_v35, %v4552_v52  ;;  %v4553_v44 = vmul.f32 0.2, %v11732_v22  ;;  %vm4427_vm1 = vcmp.ge.f32.partialorder %v11764_v24, 0.0  ;;  %v4555_v26 = vmul.f32 0.2, %v11764_v24 }
 0x3bb   : > { %8654 = vmatpush1.bf16.msra.mxu0 %v12688_v55  ;;  %8203 = vmatprep.subr.bf16.mxu1 %v12693_v15  ;;  %v17296_v7 = vpop.f32.mrb[107].mxu0  ;;  %v12699_v56 = vld [vmem:[%s19416_s10 + $0x9dc] ss:$28 sps:$4 sm:$0xff]   ;;  %v12702_v30 = vld [vmem:[%s19416_s10 + $0x9e4] ss:$28 sps:$4 sm:$0xff]   ;;  %v17304_v47 = vmul.f32 %v4808_v39, %v4680_v63  ;;  %v4682_v55 = vsel %vm4426_vm15, %v11763_v6, %v4554_v14  ;;  %v17309_v52 = vpack.c.bf16 %v17229_v3, %v17207_v49  ;;  %v4865_v58 = vld [vmem:[%s16338_s13 + $0x2a8] sm:$0xff] }
 0x3bc   : > { %8655 = vmatprep.subr.bf16.mxu0 %v12696_v45  ;;  %v11733_v15 = vadd.f32 %v4111_v43, %v17137_v28  ;;  %v12697_v35 = vld [vmem:[%s19416_s10 + $0x9d8] ss:$28 sps:$4 sm:$0xff]   ;;  %v12700_v45 = vld [vmem:[%s19416_s10 + $0x9e0] ss:$28 sps:$4 sm:$0xff]   ;;  %v17320_v6 = vmul.f32 %v4810_v34, %v4682_v55  ;;  %v4681_v39 = vsel %vm4425_vm0, %v11732_v22, %v4553_v44  ;;  %v4683_v49 = vsel %vm4427_vm1, %v11764_v24, %v4555_v26  ;;  %v4817_v55 = vld [vmem:[%s16338_s13 + $0x128] sm:$0xff] }
 0x3bd   : > { %19852 = vst [vmem:[#allocation11_spill] sm:$0xff] %v17309_v52  ;;  %8159 = vmatmul.mubr.bf16.gmra.mrb[120].mxu1 %v17027_v9  ;;  %8611 = vmatmul.mubr.bf16.gmra.mrb[152].mxu0 %v17027_v9  ;;  %v17325_v3 = vmul.f32 %v4809_v42, %v4681_v39  ;;  %v17327_v43 = vmul.f32 %v4811_v62, %v4683_v49  ;;  %v4816_v63 = vld [vmem:[%s16338_s13 + $0x120] sm:$0xff]  ;;  %v17330_v9 = vpop.f32.mrb[76].mxu1  ;;  %v12708_v62 = vld [vmem:[%s19416_s10 + $0xa1c] ss:$28 sps:$4 sm:$0xff]   ;;  %v4818_v26 = vld [vmem:[%s16338_s13 + $0x130] sm:$0xff] }
 0x3be   : > { %8204 = vmatpush1.bf16.msra.mxu1 %v12691_v23  ;;  %8168 = vmatprep.mubr.bf16.mxu1 %v17029_v16  ;;  %vm4432_vm2 = vcmp.ge.f32.partialorder %v11733_v15, 0.0  ;;  %v4560_v14 = vmul.f32 0.2, %v11733_v15  ;;  %v12705_v23 = vld [vmem:[%s19416_s10 + $0xa14] ss:$28 sps:$4 sm:$0xff]   ;;  %v11765_v34 = vadd.f32 %v4337_v36, %v17153_v33  ;;  %v11734_v22 = vadd.f32 %v4113_v0, %v17147_v37  ;;  %v17342_v42 = vpop.f32.mrb[77].mxu1 }
 0x3bf   : > { %8620 = vmatprep.mubr.bf16.mxu0 %v17029_v16  ;;  %8656 = vmatpush1.bf16.msra.mxu0 %v12694_v5  ;;  %v11766_v24 = vadd.f32 %v4339_v18, %v17159_v25  ;;  %v12703_v5 = vld [vmem:[%s19416_s10 + $0xa10] ss:$28 sps:$4 sm:$0xff]   ;;  %v4819_v39 = vld [vmem:[%s16338_s13 + $0x138] sm:$0xff]  ;;  %v11735_v49 = vadd.f32 %v4115_v2, %v17137_v28  ;;  %v11767_v36 = vadd.f32 %v4341_v10, %v17153_v33  ;;  %v17352_v0 = vpop.f32.mrb[108].mxu0  ;;  %v17354_v18 = vpop.f32.mrb[78].mxu1  ;;  %v4824_v2 = vld [vmem:[%s16338_s13 + $0x160] sm:$0xff] }
 0x3c0   : > { %8205 = vmatprep.subr.bf16.mxu1 %v12699_v56  ;;  %8657 = vmatprep.subr.bf16.mxu0 %v12702_v30  ;;  %v4688_v44 = vsel %vm4432_vm2, %v11733_v15, %v4560_v14  ;;  %v12706_v56 = vld [vmem:[%s19416_s10 + $0xa18] ss:$28 sps:$4 sm:$0xff]   ;;  %v12711_v30 = vld [vmem:[%s19416_s10 + $0xa4c] ss:$28 sps:$4 sm:$0xff]   ;;  %vm4434_vm3 = vcmp.ge.f32.partialorder %v11765_v34, 0.0  ;;  %vm4433_vm4 = vcmp.ge.f32.partialorder %v11734_v22, 0.0 }
 0x3c1   : > { %v17362_v15 = vmul.f32 %v4816_v63, %v4688_v44  ;;  %v4562_v14 = vmul.f32 0.2, %v11765_v34  ;;  %v17365_v16 = vpop.f32.mrb[109].mxu0  ;;  %v17367_v10 = vpop.f32.mrb[79].mxu1  ;;  %v4561_v4 = vmul.f32 0.2, %v11734_v22 }
 0x3c2   : > { %8206 = vmatpush1.bf16.msra.mxu1 %v12697_v35  ;;  %vm4435_vm5 = vcmp.ge.f32.partialorder %v11766_v24, 0.0  ;;  %v4563_v21 = vmul.f32 0.2, %v11766_v24  ;;  %vm4440_vm6 = vcmp.ge.f32.partialorder %v11735_v49, 0.0  ;;  %v4568_v29 = vmul.f32 0.2, %v11735_v49 }
 0x3c3   : > { %8658 = vmatpush1.bf16.msra.mxu0 %v12700_v45  ;;  %8207 = vmatprep.subr.bf16.mxu1 %v12705_v23  ;;  %v4690_v46 = vsel %vm4434_vm3, %v11765_v34, %v4562_v14  ;;  %vm4442_vm7 = vcmp.ge.f32.partialorder %v11767_v36, 0.0  ;;  %v4570_v63 = vmul.f32 0.2, %v11767_v36  ;;  %v17369_v44 = vpop.f32.mrb[110].mxu0  ;;  %v4689_v35 = vsel %vm4433_vm4, %v11734_v22, %v4561_v4  ;;  %v12723_v14 = vld [vmem:[%s19416_s10 + $0xabc] ss:$28 sps:$4 sm:$0xff]  }
 0x3c4   : > { %8659 = vmatprep.subr.bf16.mxu0 %v12708_v62  ;;  %v17374_v61 = vmul.f32 %v4818_v26, %v4690_v46  ;;  %v4691_v53 = vsel %vm4435_vm5, %v11766_v24, %v4563_v21  ;;  %v11736_v45 = vadd.f32 %v17291_v51, %v17147_v37  ;;  %v17380_v23 = vpop.f32.mrb[111].mxu0  ;;  %v12709_v62 = vld [vmem:[%s19416_s10 + $0xa48] ss:$28 sps:$4 sm:$0xff]   ;;  %v17387_v46 = vmul.f32 %v4817_v55, %v4689_v35  ;;  %v17397_v26 = vpop.f32.mrb[80].mxu1 }
 0x3c5   : > { %8169 = vmatmul.mubr.bf16.gmra.mrb[124].mxu1 %v17032_v20  ;;  %8621 = vmatmul.mubr.bf16.gmra.mrb[156].mxu0 %v17032_v20  ;;  %v17389_v34 = vmul.f32 %v4819_v39, %v4691_v53  ;;  %v4696_v21 = vsel %vm4440_vm6, %v11735_v49, %v4568_v29  ;;  %v4698_v51 = vsel %vm4442_vm7, %v11767_v36, %v4570_v63  ;;  %v4825_v24 = vld [vmem:[%s16338_s13 + $0x168] sm:$0xff]  ;;  %v12717_v29 = vld [vmem:[%s19416_s10 + $0xa84] ss:$28 sps:$4 sm:$0xff]   ;;  %v17413_v49 = vpop.f32.mrb[81].mxu1 }
 0x3c6   : > { %8208 = vmatpush1.bf16.msra.mxu1 %v12703_v5  ;;  %8211 = vmatprep.mubr.bf16.mxu1 %v17309_v52  ;;  %v17393_v4 = vmul.f32 %v4824_v2, %v4696_v21  ;;  %vm4441_vm8 = vcmp.ge.f32.partialorder %v11736_v45, 0.0  ;;  %v4569_v22 = vmul.f32 0.2, %v11736_v45  ;;  %v12712_v53 = vld [vmem:[%s19416_s10 + $0xa50] ss:$28 sps:$4 sm:$0xff]   ;;  %v17405_v5 = vmul.f32 %v4826_v27, %v4698_v51  ;;  %v4832_v21 = vld [vmem:[%s16338_s13 + $0x1a0] sm:$0xff] }
 0x3c7   : > { %8660 = vmatpush1.bf16.msra.mxu0 %v12706_v56  ;;  %8209 = vmatprep.subr.bf16.mxu1 %v12711_v30  ;;  %v11768_v55 = vadd.f32 %v17296_v7, %v17159_v25  ;;  %v17411_v39 = vpack.c.bf16 %v17325_v3, %v17287_v50  ;;  %v12715_v36 = vld [vmem:[%s19416_s10 + $0xa80] ss:$28 sps:$4 sm:$0xff]   ;;  %v12720_v27 = vld [vmem:[%s19416_s10 + $0xa8c] ss:$28 sps:$4 sm:$0xff]   ;;  %v17425_v50 = vpack.c.bf16 %v17304_v47, %v17264_v12  ;;  %v17429_v3 = vpop.f32.mrb[112].mxu0  ;;  %v17431_v56 = vpop.f32.mrb[82].mxu1 }
 0x3c8   : > { %8661 = vmatprep.subr.bf16.mxu0 %v12714_v60  ;;  %8663 = vmatprep.mubr.bf16.mxu0 %v17309_v52  ;;  %v4697_v7 = vsel %vm4441_vm8, %v11736_v45, %v4569_v22  ;;  %v11737_v60 = vadd.f32 %v17330_v9, %v17137_v28  ;;  %v12718_v30 = vld [vmem:[%s19416_s10 + $0xa88] ss:$28 sps:$4 sm:$0xff]   ;;  %v4827_v47 = vld [vmem:[%s16338_s13 + $0x178] sm:$0xff]  ;;  %v11769_v9 = vadd.f32 %v17352_v0, %v17153_v33  ;;  %v17444_v63 = vpop.f32.mrb[113].mxu0  ;;  %v17446_v35 = vpop.f32.mrb[83].mxu1  ;;  %v4834_v52 = vld [vmem:[%s16338_s13 + $0x1b0] sm:$0xff] }
 0x3c9   : > { %19853 = vst [vmem:[#allocation7_spill] sm:$0xff] %v17411_v39  ;;  %19854 = vst [vmem:[#allocation9_spill] sm:$0xff] %v17425_v50  ;;  %v17439_v2 = vmul.f32 %v4825_v24, %v4697_v7  ;;  %vm4443_vm9 = vcmp.ge.f32.partialorder %v11768_v55, 0.0  ;;  %v4571_v12 = vmul.f32 0.2, %v11768_v55  ;;  %v11738_v51 = vadd.f32 %v17342_v42, %v17147_v37  ;;  %v17453_v24 = vpop.f32.mrb[114].mxu0 }
 0x3ca   : > { %8210 = vmatpush1.bf16.msra.mxu1 %v12709_v62  ;;  %vm4448_vm10 = vcmp.ge.f32.partialorder %v11737_v60, 0.0  ;;  %v4576_v45 = vmul.f32 0.2, %v11737_v60  ;;  %v11770_v22 = vadd.f32 %v17365_v16, %v17159_v25  ;;  %vm4450_vm11 = vcmp.ge.f32.partialorder %v11769_v9, 0.0  ;;  %v17458_v20 = vpop.f32.mrb[115].mxu0 }
 0x3cb   : > { %8662 = vmatpush1.bf16.msra.mxu0 %v12712_v53  ;;  %8292 = vmatprep.subr.bf16.mxu1 %v12717_v29  ;;  %v4699_v0 = vsel %vm4443_vm9, %v11768_v55, %v4571_v12  ;;  %v4578_v7 = vmul.f32 0.2, %v11769_v9  ;;  %v11739_v62 = vadd.f32 %v17354_v18, %v17137_v28  ;;  %v12726_v16 = vld [vmem:[%s19416_s10 + $0xac4] ss:$28 sps:$4 sm:$0xff]   ;;  %vm4449_vm12 = vcmp.ge.f32.partialorder %v11738_v51, 0.0  ;;  %v4833_v55 = vld [vmem:[%s16338_s13 + $0x1a8] sm:$0xff] }
 0x3cc   : > { %8744 = vmatprep.subr.bf16.mxu0 %v12720_v27  ;;  %v17463_v42 = vmul.f32 %v4827_v47, %v4699_v0  ;;  %v4704_v53 = vsel %vm4448_vm10, %v11737_v60, %v4576_v45  ;;  %v4577_v29 = vmul.f32 0.2, %v11738_v51  ;;  %v12721_v18 = vld [vmem:[%s19416_s10 + $0xab8] ss:$28 sps:$4 sm:$0xff]   ;;  %vm4451_vm13 = vcmp.ge.f32.partialorder %v11770_v22, 0.0  ;;  %v4840_v0 = vld [vmem:[%s16338_s13 + $0x1e0] sm:$0xff] }
 0x3cd   : > { %8212 = vmatmul.mubr.bf16.vlgmr.msra.gmra.mrb[96].mxu1 %v17234_v38  ;;  %v17471_v12 = vmul.f32 %v4832_v21, %v4704_v53  ;;  %v4706_v27 = vsel %vm4450_vm11, %v11769_v9, %v4578_v7  ;;  %v4579_v8 = vmul.f32 0.2, %v11770_v22  ;;  %vm4456_vm14 = vcmp.ge.f32.partialorder %v11739_v62, 0.0  ;;  %v17478_v13 = vpop.f32.mrb[84].mxu1  ;;  %v12724_v9 = vld [vmem:[%s19416_s10 + $0xac0] ss:$28 sps:$4 sm:$0xff]  }
 0x3ce   : > { %8293 = vmatpush1.bf16.msra.mxu1 %v12715_v36  ;;  %8664 = vmatmul.mubr.bf16.vlgmr.msra.gmra.mrb[128].mxu0 %v17234_v38  ;;  %v17475_v60 = vmul.f32 %v4834_v52, %v4706_v27  ;;  %v4705_v47 = vsel %vm4449_vm12, %v11738_v51, %v4577_v29  ;;  %v4584_v45 = vmul.f32 0.2, %v11739_v62  ;;  %v12729_v36 = vld [vmem:[%s19416_s10 + $0xaf4] ss:$28 sps:$4 sm:$0xff]   ;;  %v11771_v51 = vadd.f32 %v17369_v44, %v17153_v33  ;;  %v17491_v7 = vpop.f32.mrb[85].mxu1 }
 0x3cf   : > { %8745 = vmatpush1.bf16.msra.mxu0 %v12718_v30  ;;  %8294 = vmatprep.subr.bf16.mxu1 %v12723_v14  ;;  %v17486_v21 = vmul.f32 %v4833_v55, %v4705_v47  ;;  %v4707_v52 = vsel %vm4451_vm13, %v11770_v22, %v4579_v8  ;;  %v12727_v30 = vld [vmem:[%s19416_s10 + $0xaf0] ss:$28 sps:$4 sm:$0xff]   ;;  %v12732_v14 = vld [vmem:[%s19416_s10 + $0xafc] ss:$28 sps:$4 sm:$0xff]   ;;  %v11740_v44 = vadd.f32 %v17367_v10, %v17147_v37  ;;  %v17505_v22 = vpop.f32.mrb[116].mxu0 }
 0x3d0   : > { %8746 = vmatprep.subr.bf16.mxu0 %v12726_v16  ;;  %8221 = vmatprep.mubr.bf16.mxu1 %v17411_v39  ;;  %v17500_v53 = vmul.f32 %v4835_v57, %v4707_v52  ;;  %v4712_v8 = vsel %vm4456_vm14, %v11739_v62, %v4584_v45  ;;  %v17507_v16 = vpop.f32.mrb[86].mxu1  ;;  %v12730_v29 = vld [vmem:[%s19416_s10 + $0xaf8] ss:$28 sps:$4 sm:$0xff]   ;;  %v12735_v57 = vld [vmem:[%s19416_s10 + $0xb2c] ss:$28 sps:$4 sm:$0xff]   ;;  %vm4458_vm15 = vcmp.ge.f32.partialorder %v11771_v51, 0.0  ;;  %v11772_v27 = vadd.f32 %v17380_v23, %v17159_v25 }
 0x3d1   : > { %8673 = vmatprep.mubr.bf16.mxu0 %v17411_v39  ;;  %v17516_v55 = vmul.f32 %v4840_v0, %v4712_v8  ;;  %v4586_v62 = vmul.f32 0.2, %v11771_v51  ;;  %v4842_v10 = vld [vmem:[%s16338_s13 + $0x1f0] sm:$0xff]  ;;  %v17521_v47 = vpop.f32.mrb[117].mxu0  ;;  %v17523_v45 = vpop.f32.mrb[87].mxu1  ;;  %vm4457_vm0 = vcmp.ge.f32.partialorder %v11740_v44, 0.0  ;;  %v17528_v38 = vpack.c.bf16 %v17439_v2, %v17387_v46 }
 0x3d2   : > { %8295 = vmatpush1.bf16.msra.mxu1 %v12721_v18  ;;  %v4585_v52 = vmul.f32 0.2, %v11740_v44  ;;  %v4841_v39 = vld [vmem:[%s16338_s13 + $0x1e8] sm:$0xff]  ;;  %v17532_v0 = vpack.c.bf16 %v17393_v4, %v17362_v15  ;;  %v17534_v8 = vpop.f32.mrb[118].mxu0  ;;  %vm4459_vm1 = vcmp.ge.f32.partialorder %v11772_v27, 0.0  ;;  %v11741_v18 = vadd.f32 %v17397_v26, %v17137_v28 }
 0x3d3   : > { %19855 = vst [vmem:[#allocation13_spill] sm:$0xff] %v17528_v38  ;;  %8747 = vmatpush1.bf16.msra.mxu0 %v12724_v9  ;;  %8296 = vmatprep.subr.bf16.mxu1 %v12729_v36  ;;  %v4714_v23 = vsel %vm4458_vm15, %v11771_v51, %v4586_v62  ;;  %v4587_v32 = vmul.f32 0.2, %v11772_v27  ;;  %v17539_v31 = vpop.f32.mrb[119].mxu0  ;;  %v12733_v15 = vld [vmem:[%s19416_s10 + $0xb28] ss:$28 sps:$4 sm:$0xff]   ;;  %v11773_v9 = vadd.f32 %v17429_v3, %v17153_v33 }
 0x3d4   : > { %19856 = vst [vmem:[#allocation52_spill] sm:$0xff] %v17532_v0  ;;  %8748 = vmatprep.subr.bf16.mxu0 %v12732_v14  ;;  %v17544_v46 = vmul.f32 %v4842_v10, %v4714_v23  ;;  %v12738_v4 = vld [vmem:[%s19416_s10 + $0xb34] ss:$28 sps:$4 sm:$0xff]   ;;  %v4713_v2 = vsel %vm4457_vm0, %v11740_v44, %v4585_v52  ;;  %v11742_v26 = vadd.f32 %v17413_v49, %v17147_v37  ;;  %vm4464_vm2 = vcmp.ge.f32.partialorder %v11741_v18, 0.0  ;;  %v4848_v10 = vld [vmem:[%s16338_s13 + $0x220] sm:$0xff]  ;;  %v17563_v52 = vpop.f32.mrb[88].mxu1 }
 0x3d5   : > { %8222 = vmatmul.mubr.bf16.gmra.mrb[100].mxu1 %v17425_v50  ;;  %v12736_v36 = vld [vmem:[%s19416_s10 + $0xb30] ss:$28 sps:$4 sm:$0xff]   ;;  %v4969_v51 = vmul.f32 %v4841_v39, %v4713_v2  ;;  %v4715_v14 = vsel %vm4459_vm1, %v11772_v27, %v4587_v32  ;;  %v4592_v62 = vmul.f32 0.2, %v11741_v18  ;;  %vm4466_vm3 = vcmp.ge.f32.partialorder %v11773_v9, 0.0  ;;  %v17573_v2 = vpop.f32.mrb[89].mxu1 }
 0x3d6   : > { %8297 = vmatpush1.bf16.msra.mxu1 %v12727_v30  ;;  %8674 = vmatmul.mubr.bf16.gmra.mrb[132].mxu0 %v17425_v50  ;;  %v17560_v44 = vmul.f32 %v4843_v48, %v4715_v14  ;;  %v4594_v3 = vmul.f32 0.2, %v11773_v9  ;;  %v4850_v49 = vld [vmem:[%s16338_s13 + $0x230] sm:$0xff]  ;;  %vm4465_vm4 = vcmp.ge.f32.partialorder %v11742_v26, 0.0  ;;  %v12741_v32 = vld [vmem:[%s19416_s10 + $0xb64] ss:$28 sps:$4 sm:$0xff]   ;;  %v11774_v30 = vadd.f32 %v17444_v63, %v17159_v25 }
 0x3d7   : > { %8749 = vmatpush1.bf16.msra.mxu0 %v12730_v29  ;;  %8298 = vmatprep.subr.bf16.mxu1 %v12735_v57  ;;  %v4720_v39 = vsel %vm4464_vm2, %v11741_v18, %v4592_v62  ;;  %v4593_v27 = vmul.f32 0.2, %v11742_v26  ;;  %v4849_v23 = vld [vmem:[%s16338_s13 + $0x228] sm:$0xff]  ;;  %v11743_v48 = vadd.f32 %v17431_v56, %v17137_v28  ;;  %v12739_v29 = vld [vmem:[%s19416_s10 + $0xb60] ss:$28 sps:$4 sm:$0xff]   ;;  %v11775_v56 = vadd.f32 %v17453_v24, %v17153_v33  ;;  %v17587_v14 = vpop.f32.mrb[120].mxu0 }
 0x3d8   : > { %8750 = vmatprep.subr.bf16.mxu0 %v12738_v4  ;;  %8231 = vmatprep.mubr.bf16.mxu1 %v17528_v38  ;;  %v12744_v57 = vld [vmem:[%s19416_s10 + $0xb6c] ss:$28 sps:$4 sm:$0xff]   ;;  %v17582_v18 = vmul.f32 %v4848_v10, %v4720_v39  ;;  %v4722_v63 = vsel %vm4466_vm3, %v11773_v9, %v4594_v3  ;;  %v17589_v4 = vpop.f32.mrb[90].mxu1  ;;  %vm4467_vm5 = vcmp.ge.f32.partialorder %v11774_v30, 0.0  ;;  %v4595_v9 = vmul.f32 0.2, %v11774_v30 }
 0x3d9   : > { %8683 = vmatprep.mubr.bf16.mxu0 %v17528_v38  ;;  %v12742_v62 = vld [vmem:[%s19416_s10 + $0xb68] ss:$28 sps:$4 sm:$0xff]   ;;  %v17595_v50 = vmul.f32 %v4850_v49, %v4722_v63  ;;  %v4721_v10 = vsel %vm4465_vm4, %v11742_v26, %v4593_v27  ;;  %v4851_v3 = vld [vmem:[%s16338_s13 + $0x238] sm:$0xff]  ;;  %v17599_v24 = vpop.f32.mrb[121].mxu0  ;;  %v17601_v39 = vpop.f32.mrb[91].mxu1  ;;  %vm4472_vm6 = vcmp.ge.f32.partialorder %v11743_v48, 0.0 }
 0x3da   : > { %8299 = vmatpush1.bf16.msra.mxu1 %v12733_v15  ;;  %v17603_v41 = vmul.f32 %v4849_v23, %v4721_v10  ;;  %v4600_v38 = vmul.f32 0.2, %v11743_v48  ;;  %vm4474_vm7 = vcmp.ge.f32.partialorder %v11775_v56, 0.0  ;;  %v17606_v1 = vpop.f32.mrb[122].mxu0  ;;  %v4723_v26 = vsel %vm4467_vm5, %v11774_v30, %v4595_v9  ;;  %v12747_v49 = vld [vmem:[%s19416_s10 + $0xb9c] ss:$28 sps:$4 sm:$0xff]  }
 0x3db   : > { %19857 = vst [vmem:[#allocation53_spill] sm:$0xff] %v17595_v50  ;;  %8751 = vmatpush1.bf16.msra.mxu0 %v12736_v36  ;;  %8300 = vmatprep.subr.bf16.mxu1 %v12741_v32  ;;  %v4602_v27 = vmul.f32 0.2, %v11775_v56  ;;  %v4858_v63 = vld [vmem:[%s16338_s13 + $0x270] sm:$0xff]  ;;  %v11744_v15 = vadd.f32 %v17446_v35, %v17147_v37  ;;  %v11776_v23 = vadd.f32 %v17458_v20, %v17159_v25  ;;  %v17616_v10 = vpop.f32.mrb[123].mxu0  ;;  %v4872_v50 = vld [vmem:[%s16338_s13 + $0x2e0] sm:$0xff] }
 0x3dc   : > { %8752 = vmatprep.subr.bf16.mxu0 %v12744_v57  ;;  %v17618_v40 = vmul.f32 %v4851_v3, %v4723_v26  ;;  %v12745_v36 = vld [vmem:[%s19416_s10 + $0xb98] ss:$28 sps:$4 sm:$0xff]   ;;  %v4728_v32 = vsel %vm4472_vm6, %v11743_v48, %v4600_v38  ;;  %v12750_v35 = vld [vmem:[%s19416_s10 + $0xba4] ss:$28 sps:$4 sm:$0xff]   ;;  %v17628_v30 = vpack.c.bf16 %v4969_v51, %v17486_v21  ;;  %v17632_v20 = vpack.c.bf16 %v17516_v55, %v17471_v12  ;;  %v4857_v3 = vld [vmem:[%s16338_s13 + $0x268] sm:$0xff]  ;;  %v17648_v51 = vpop.f32.mrb[92].mxu1 }
 0x3dd   : > { %8232 = vmatmul.mubr.bf16.gmra.mrb[104].mxu1 %v17532_v0  ;;  %v17635_v57 = vmul.f32 %v4856_v17, %v4728_v32  ;;  %v4730_v9 = vsel %vm4474_vm7, %v11775_v56, %v4602_v27  ;;  %v12748_v38 = vld [vmem:[%s19416_s10 + $0xba0] ss:$28 sps:$4 sm:$0xff]   ;;  %vm4473_vm8 = vcmp.ge.f32.partialorder %v11744_v15, 0.0  ;;  %v4601_v48 = vmul.f32 0.2, %v11744_v15  ;;  %v17661_v32 = vpop.f32.mrb[93].mxu1 }
 0x3de   : > { %19858 = vst [vmem:[#allocation51_spill] sm:$0xff] %v17628_v30  ;;  %19859 = vst [vmem:[#allocation54_spill] sm:$0xff] %v17632_v20  ;;  %8301 = vmatpush1.bf16.msra.mxu1 %v12739_v29  ;;  %8684 = vmatmul.mubr.bf16.gmra.mrb[136].mxu0 %v17532_v0  ;;  %v17643_v21 = vmul.f32 %v4858_v63, %v4730_v9  ;;  %vm4475_vm9 = vcmp.ge.f32.partialorder %v11776_v23, 0.0  ;;  %v4603_v12 = vmul.f32 0.2, %v11776_v23  ;;  %v4859_v55 = vld [vmem:[%s16338_s13 + $0x278] sm:$0xff] }
 0x3df   : > { %v11745_v17 = vadd.f32 %v17478_v13, %v17137_v28  ;;  %8753 = vmatpush1.bf16.msra.mxu0 %v12742_v62  ;;  %8302 = vmatprep.subr.bf16.mxu1 %v12747_v49  ;;  %v4729_v56 = vsel %vm4473_vm8, %v11744_v15, %v4601_v48  ;;  %v12753_v29 = vld [vmem:[%s19416_s10 + $0xbd4] ss:$28 sps:$4 sm:$0xff]   ;;  %v12756_v26 = vld [vmem:[%s19416_s10 + $0xbdc] ss:$28 sps:$4 sm:$0xff]   ;;  %v4864_v27 = vld [vmem:[%s16338_s13 + $0x2a0] sm:$0xff]  ;;  %v11777_v63 = vadd.f32 %v17505_v22, %v17153_v33  ;;  %v17666_v48 = vpop.f32.mrb[124].mxu0 }
 0x3e0   : > { %19860 = vst [vmem:[#allocation48_spill] sm:$0xff] %v17643_v21  ;;  %v11746_v13 = vadd.f32 %v17491_v7, %v17147_v37  ;;  %8754 = vmatprep.subr.bf16.mxu0 %v12750_v35  ;;  %v4985_v62 = vmul.f32 %v4857_v3, %v4729_v56  ;;  %v4731_v49 = vsel %vm4475_vm9, %v11776_v23, %v4603_v12  ;;  %v4866_v9 = vld [vmem:[%s16338_s13 + $0x2b0] sm:$0xff]  ;;  %v17668_v0 = vpop.f32.mrb[94].mxu1  ;;  %v17673_v35 = vpop.f32.mrb[125].mxu0 }
 0x3e1   : > { %8241 = vmatprep.mubr.bf16.mxu1 %v17628_v30  ;;  %vm4480_vm10 = vcmp.ge.f32.partialorder %v11745_v17, 0.0  ;;  %v4608_v15 = vmul.f32 0.2, %v11745_v17  ;;  %v17670_v22 = vmul.f32 %v4859_v55, %v4731_v49  ;;  %8693 = vmatprep.mubr.bf16.mxu0 %v17628_v30  ;;  %vm4482_vm11 = vcmp.ge.f32.partialorder %v11777_v63, 0.0  ;;  %v17675_v23 = vpop.f32.mrb[95].mxu1  ;;  %v17685_v30 = vpop.f32.mrb[126].mxu0 }
 0x3e2   : > { %v4610_v7 = vmul.f32 0.2, %v11777_v63  ;;  %vm4481_vm12 = vcmp.ge.f32.partialorder %v11746_v13, 0.0  ;;  %8303 = vmatpush1.bf16.msra.mxu1 %v12745_v36  ;;  %v12751_v3 = vld [vmem:[%s19416_s10 + $0xbd0] ss:$28 sps:$4 sm:$0xff]   ;;  %v11778_v55 = vadd.f32 %v17521_v47, %v17159_v25  ;;  %v11747_v49 = vadd.f32 %v17507_v16, %v17137_v28 }
 0x3e3   : > { %v4736_v12 = vsel %vm4480_vm10, %v11745_v17, %v4608_v15  ;;  %v4609_v56 = vmul.f32 0.2, %v11746_v13  ;;  %8755 = vmatpush1.bf16.msra.mxu0 %v12748_v38  ;;  %8304 = vmatprep.subr.bf16.mxu1 %v12753_v29  ;;  %v12754_v36 = vld [vmem:[%s19416_s10 + $0xbd8] ss:$28 sps:$4 sm:$0xff]   ;;  %v12759_v47 = vld [vmem:[%s19416_s10 + $0xc0c] ss:$28 sps:$4 sm:$0xff]   ;;  %v11779_v16 = vadd.f32 %v17534_v8, %v17153_v33 }
 0x3e4   : > { %v17690_v21 = vmul.f32 %v4864_v27, %v4736_v12  ;;  %v4738_v17 = vsel %vm4482_vm11, %v11777_v63, %v4610_v7  ;;  %v17698_v15 = vpop.f32.mrb[127].mxu0  ;;  %8756 = vmatprep.subr.bf16.mxu0 %v12756_v26  ;;  %vm4483_vm13 = vcmp.ge.f32.partialorder %v11778_v55, 0.0  ;;  %v4611_v27 = vmul.f32 0.2, %v11778_v55  ;;  %v4867_v12 = vld [vmem:[%s16338_s13 + $0x2b8] sm:$0xff] }
 0x3e5   : > { %v17700_v38 = vmul.f32 %v4866_v9, %v4738_v17  ;;  %v4737_v29 = vsel %vm4481_vm12, %v11746_v13, %v4609_v56  ;;  %v12762_v63 = vld [vmem:[%s19416_s10 + $0xc14] ss:$28 sps:$4 sm:$0xff]   ;;  %8242 = vmatmul.mubr.bf16.gmra.mrb[108].mxu1 %v17632_v20  ;;  %vm4488_vm14 = vcmp.ge.f32.partialorder %v11747_v49, 0.0  ;;  %v4616_v8 = vmul.f32 0.2, %v11747_v49 }
 0x3e6   : > { %v17708_v7 = vmul.f32 %v4865_v58, %v4737_v29  ;;  %vm4490_vm15 = vcmp.ge.f32.partialorder %v11779_v16, 0.0  ;;  %8305 = vmatpush1.bf16.msra.mxu1 %v12751_v3  ;;  %8694 = vmatmul.mubr.bf16.gmra.mrb[140].mxu0 %v17632_v20  ;;  %v4739_v26 = vsel %vm4483_vm13, %v11778_v55, %v4611_v27  ;;  %v12757_v13 = vld [vmem:[%s19416_s10 + $0xc08] ss:$28 sps:$4 sm:$0xff]   ;;  %v4618_v9 = vmul.f32 0.2, %v11779_v16  ;;  %v4874_v56 = vld [vmem:[%s16338_s13 + $0x2f0] sm:$0xff] }
 0x3e7   : > { %v11748_v17 = vadd.f32 %v17523_v45, %v17147_v37  ;;  %v11780_v58 = vadd.f32 %v17539_v31, %v17159_v25  ;;  %8757 = vmatpush1.bf16.msra.mxu0 %v12754_v36  ;;  %v17720_v29 = vmul.f32 %v4867_v12, %v4739_v26  ;;  %8306 = vmatprep.subr.bf16.mxu1 %v12759_v47  ;;  %v12760_v55 = vld [vmem:[%s19416_s10 + $0xc10] ss:$28 sps:$4 sm:$0xff]   ;;  %v12765_v45 = vld [vmem:[%s19416_s10 + $0xc44] ss:$28 sps:$4 sm:$0xff]  }
 0x3e8   : > { %v4744_v3 = vsel %vm4488_vm14, %v11747_v49, %v4616_v8  ;;  %v17726_v27 = vpack.c.bf16 %v4985_v62, %v17603_v41  ;;  %v4746_v31 = vsel %vm4490_vm15, %v11779_v16, %v4618_v9  ;;  %8758 = vmatprep.subr.bf16.mxu0 %v12762_v63  ;;  %v4873_v49 = vld [vmem:[%s16338_s13 + $0x2e8] sm:$0xff]  ;;  %v4875_v62 = vld [vmem:[%s16338_s13 + $0x2f8] sm:$0xff]  ;;  %v11749_v8 = vadd.f32 %v17563_v52, %v17137_v28  ;;  %v4880_v26 = vld [vmem:[%s16338_s13 + $0x320] sm:$0xff] }
 0x3e9   : > { %v17731_v20 = vmul.f32 %v4872_v50, %v4744_v3  ;;  %vm4489_vm0 = vcmp.ge.f32.partialorder %v11748_v17, 0.0  ;;  %v4617_v36 = vmul.f32 0.2, %v11748_v17  ;;  %v12768_v47 = vld [vmem:[%s19416_s10 + $0xc4c] ss:$28 sps:$4 sm:$0xff]   ;;  %v17738_v12 = vmul.f32 %v4874_v56, %v4746_v31 }
 0x3ea   : > { %vm4491_vm1 = vcmp.ge.f32.partialorder %v11780_v58, 0.0  ;;  %v4619_v41 = vmul.f32 0.2, %v11780_v58  ;;  %8251 = vmatprep.mubr.bf16.mxu1 %v17726_v27  ;;  %8703 = vmatprep.mubr.bf16.mxu0 %v17726_v27  ;;  %v17745_v50 = vpack.c.bf16 %v17635_v57, %v17582_v18  ;;  %v12763_v63 = vld [vmem:[%s19416_s10 + $0xc40] ss:$28 sps:$4 sm:$0xff]   ;;  %v11781_v9 = vadd.f32 %v17587_v14, %v17153_v33  ;;  %v4882_v57 = vld [vmem:[%s16338_s13 + $0x330] sm:$0xff] }
 0x3eb   : > { %8307 = vmatpush1.bf16.msra.mxu1 %v12757_v13  ;;  %v4745_v16 = vsel %vm4489_vm0, %v11748_v17, %v4617_v36  ;;  %v11750_v56 = vadd.f32 %v17573_v2, %v17147_v37  ;;  %8759 = vmatpush1.bf16.msra.mxu0 %v12760_v55  ;;  %v12766_v18 = vld [vmem:[%s19416_s10 + $0xc48] ss:$28 sps:$4 sm:$0xff]   ;;  %v11782_v52 = vadd.f32 %v17599_v24, %v17159_v25  ;;  %v12771_v14 = vld [vmem:[%s19416_s10 + $0xc7c] ss:$28 sps:$4 sm:$0xff]   ;;  %vm4496_vm2 = vcmp.ge.f32.partialorder %v11749_v8, 0.0 }
 0x3ec   : > { %v5001_v3 = vmul.f32 %v4873_v49, %v4745_v16  ;;  %v4747_v31 = vsel %vm4491_vm1, %v11780_v58, %v4619_v41  ;;  %8308 = vmatprep.subr.bf16.mxu1 %v12765_v45  ;;  %v4881_v13 = vld [vmem:[%s16338_s13 + $0x328] sm:$0xff]  ;;  %8760 = vmatprep.subr.bf16.mxu0 %v12768_v47  ;;  %v4624_v2 = vmul.f32 0.2, %v11749_v8  ;;  %vm4498_vm3 = vcmp.ge.f32.partialorder %v11781_v9, 0.0  ;;  %v12774_v58 = vld [vmem:[%s19416_s10 + $0xc84] ss:$28 sps:$4 sm:$0xff]  }
 0x3ed   : > { %v17767_v17 = vmul.f32 %v4875_v62, %v4747_v31  ;;  %8252 = vmatmul.mubr.bf16.gmra.mrb[112].mxu1 %v17745_v50  ;;  %v4626_v55 = vmul.f32 0.2, %v11781_v9  ;;  %vm4497_vm4 = vcmp.ge.f32.partialorder %v11750_v56, 0.0  ;;  %v4625_v24 = vmul.f32 0.2, %v11750_v56  ;;  %v4883_v49 = vld [vmem:[%s16338_s13 + $0x338] sm:$0xff] }
 0x3ee   : > { %vm4499_vm5 = vcmp.ge.f32.partialorder %v11782_v52, 0.0  ;;  %8704 = vmatmul.mubr.bf16.gmra.mrb[144].mxu0 %v17745_v50  ;;  %v4752_v45 = vsel %vm4496_vm2, %v11749_v8, %v4624_v2  ;;  %v4627_v36 = vmul.f32 0.2, %v11782_v52  ;;  %v12769_v47 = vld [vmem:[%s19416_s10 + $0xc78] ss:$28 sps:$4 sm:$0xff]   ;;  %v11751_v41 = vadd.f32 %v17589_v4, %v17137_v28 }
 0x3ef   : > { %8309 = vmatpush1.bf16.msra.mxu1 %v12763_v63  ;;  %v11783_v62 = vadd.f32 %v17606_v1, %v17153_v33  ;;  %8761 = vmatpush1.bf16.msra.mxu0 %v12766_v18  ;;  %v17782_v16 = vmul.f32 %v4880_v26, %v4752_v45  ;;  %v4754_v63 = vsel %vm4498_vm3, %v11781_v9, %v4626_v55  ;;  %v12772_v31 = vld [vmem:[%s19416_s10 + $0xc80] ss:$28 sps:$4 sm:$0xff]   ;;  %v12777_v4 = vld [vmem:[%s19416_s10 + $0xcb4] ss:$28 sps:$4 sm:$0xff]  }
 0x3f0   : > { %v4753_v8 = vsel %vm4497_vm4, %v11750_v56, %v4625_v24  ;;  %8310 = vmatprep.subr.bf16.mxu1 %v12771_v14  ;;  %v17791_v2 = vmul.f32 %v4882_v57, %v4754_v63  ;;  %v4755_v26 = vsel %vm4499_vm5, %v11782_v52, %v4627_v36  ;;  %vm4504_vm6 = vcmp.ge.f32.partialorder %v11751_v41, 0.0  ;;  %v4888_v9 = vld [vmem:[%s16338_s13 + $0x360] sm:$0xff]  ;;  %8762 = vmatprep.subr.bf16.mxu0 %v12774_v58  ;;  %v12780_v56 = vld [vmem:[%s19416_s10 + $0xcbc] ss:$28 sps:$4 sm:$0xff]   ;;  %v4890_v24 = vld [vmem:[%s16338_s13 + $0x370] sm:$0xff] }
 0x3f1   : > { %v17793_v1 = vmul.f32 %v4881_v13, %v4753_v8  ;;  %v17800_v18 = vmul.f32 %v4883_v49, %v4755_v26  ;;  %v4632_v14 = vmul.f32 0.2, %v11751_v41  ;;  %vm4506_vm7 = vcmp.ge.f32.partialorder %v11783_v62, 0.0  ;;  %v4889_v13 = vld [vmem:[%s16338_s13 + $0x368] sm:$0xff]  ;;  %v4898_v26 = vld [vmem:[%s16338_s13 + $0x3b0] sm:$0xff] }
 0x3f2   : > { %v4634_v55 = vmul.f32 0.2, %v11783_v62  ;;  %v11752_v57 = vadd.f32 %v17601_v39, %v17147_v37  ;;  %v11784_v52 = vadd.f32 %v17616_v10, %v17159_v25  ;;  %v17809_v58 = vpack.c.bf16 %v5001_v3, %v17708_v7  ;;  %v12775_v45 = vld [vmem:[%s19416_s10 + $0xcb0] ss:$28 sps:$4 sm:$0xff]   ;;  %v4891_v39 = vld [vmem:[%s16338_s13 + $0x378] sm:$0xff] }
 0x3f3   : > { %8311 = vmatpush1.bf16.msra.mxu1 %v12769_v47  ;;  %v17816_v36 = vpack.c.bf16 %v17731_v20, %v17690_v21  ;;  %v4760_v49 = vsel %vm4504_vm6, %v11751_v41, %v4632_v14  ;;  %8763 = vmatpush1.bf16.msra.mxu0 %v12772_v31  ;;  %v12778_v10 = vld [vmem:[%s19416_s10 + $0xcb8] ss:$28 sps:$4 sm:$0xff]   ;;  %v11753_v7 = vadd.f32 %v17648_v51, %v17137_v28  ;;  %v12783_v3 = vld [vmem:[%s19416_s10 + $0xcec] ss:$28 sps:$4 sm:$0xff]   ;;  %v4896_v41 = vld [vmem:[%s16338_s13 + $0x3a0] sm:$0xff] }
 0x3f4   : > { %v4762_v47 = vsel %vm4506_vm7, %v11783_v62, %v4634_v55  ;;  %8312 = vmatprep.subr.bf16.mxu1 %v12777_v4  ;;  %v17828_v63 = vmul.f32 %v4888_v9, %v4760_v49  ;;  %vm4505_vm8 = vcmp.ge.f32.partialorder %v11752_v57, 0.0  ;;  %v4633_v21 = vmul.f32 0.2, %v11752_v57  ;;  %8261 = vmatprep.mubr.bf16.mxu1 %v17809_v58  ;;  %v12786_v51 = vld [vmem:[%s19416_s10 + $0xcf4] ss:$28 sps:$4 sm:$0xff]  }
 0x3f5   : > { %v17830_v20 = vmul.f32 %v4890_v24, %v4762_v47  ;;  %8713 = vmatprep.mubr.bf16.mxu0 %v17809_v58  ;;  %vm4507_vm9 = vcmp.ge.f32.partialorder %v11784_v52, 0.0  ;;  %v4635_v62 = vmul.f32 0.2, %v11784_v52  ;;  %8262 = vmatmul.mubr.bf16.gmra.mrb[116].mxu1 %v17816_v36  ;;  %vm4512_vm10 = vcmp.ge.f32.partialorder %v11753_v7, 0.0  ;;  %v12781_v14 = vld [vmem:[%s19416_s10 + $0xce8] ss:$28 sps:$4 sm:$0xff]  }
 0x3f6   : > { %8764 = vmatprep.subr.bf16.mxu0 %v12780_v56  ;;  %v4640_v8 = vmul.f32 0.2, %v11753_v7  ;;  %v4761_v31 = vsel %vm4505_vm8, %v11752_v57, %v4633_v21  ;;  %8714 = vmatmul.mubr.bf16.gmra.mrb[148].mxu0 %v17816_v36  ;;  %v11785_v4 = vadd.f32 %v17666_v48, %v17153_v33  ;;  %v11754_v9 = vadd.f32 %v17661_v32, %v17147_v37  ;;  %v4897_v57 = vld [vmem:[%s16338_s13 + $0x3a8] sm:$0xff]  ;;  %v12789_v32 = vld [vmem:[%s19416_s10 + $0xd24] ss:$28 sps:$4 sm:$0xff]  }
 0x3f7   : > { %8313 = vmatpush1.bf16.msra.mxu1 %v12775_v45  ;;  %v5017_v55 = vmul.f32 %v4889_v13, %v4761_v31  ;;  %v4763_v56 = vsel %vm4507_vm9, %v11784_v52, %v4635_v62  ;;  %8765 = vmatpush1.bf16.msra.mxu0 %v12778_v10  ;;  %v11786_v45 = vadd.f32 %v17673_v35, %v17159_v25  ;;  %v12784_v48 = vld [vmem:[%s19416_s10 + $0xcf0] ss:$28 sps:$4 sm:$0xff]   ;;  %v4899_v52 = vld [vmem:[%s16338_s13 + $0x3b8] sm:$0xff] }
 0x3f8   : > { %v4768_v24 = vsel %vm4512_vm10, %v11753_v7, %v4640_v8  ;;  %v17857_v49 = vmul.f32 %v4891_v39, %v4763_v56  ;;  %vm4514_vm11 = vcmp.ge.f32.partialorder %v11785_v4, 0.0  ;;  %v4642_v13 = vmul.f32 0.2, %v11785_v4  ;;  %8314 = vmatprep.subr.bf16.mxu1 %v12783_v3  ;;  %8766 = vmatprep.subr.bf16.mxu0 %v12786_v51  ;;  %v12792_v35 = vld [vmem:[%s19416_s10 + $0xd2c] ss:$28 sps:$4 sm:$0xff]   ;;  %v4906_v56 = vld [vmem:[%s16338_s13 + $0x3f0] sm:$0xff] }
 0x3f9   : > { %v5024_v47 = vmul.f32 %v4896_v41, %v4768_v24  ;;  %vm4513_vm12 = vcmp.ge.f32.partialorder %v11754_v9, 0.0  ;;  %v4641_v10 = vmul.f32 0.2, %v11754_v9  ;;  %vm4515_vm13 = vcmp.ge.f32.partialorder %v11786_v45, 0.0  ;;  %v12787_v51 = vld [vmem:[%s19416_s10 + $0xd20] ss:$28 sps:$4 sm:$0xff]  }
 0x3fa   : > { %v4643_v7 = vmul.f32 0.2, %v11786_v45  ;;  %v4770_v21 = vsel %vm4514_vm11, %v11785_v4, %v4642_v13  ;;  %v11755_v39 = vadd.f32 %v17668_v0, %v17137_v28  ;;  %v11787_v41 = vadd.f32 %v17685_v30, %v17153_v33  ;;  %v4904_v4 = vld [vmem:[%s16338_s13 + $0x3e0] sm:$0xff]  ;;  %v4907_v24 = vld [vmem:[%s16338_s13 + $0x3f8] sm:$0xff] }
 0x3fb   : > { %8315 = vmatpush1.bf16.msra.mxu1 %v12781_v14  ;;  %v11756_v3 = vadd.f32 %v17675_v23, %v17147_v37  ;;  %v17872_v62 = vmul.f32 %v4898_v26, %v4770_v21  ;;  %v4769_v8 = vsel %vm4513_vm12, %v11754_v9, %v4641_v10  ;;  %v11788_v28 = vadd.f32 %v17698_v15, %v17159_v25  ;;  %v12790_v33 = vld [vmem:[%s19416_s10 + $0xd28] ss:$28 sps:$4 sm:$0xff]   ;;  %v12795_v26 = vld [vmem:[%s19416_s10 + $0xd5c] ss:$28 sps:$4 sm:$0xff]  }
 0x3fc   : > { %v4771_v31 = vsel %vm4515_vm13, %v11786_v45, %v4643_v7  ;;  %8767 = vmatpush1.bf16.msra.mxu0 %v12784_v48  ;;  %v5025_v37 = vmul.f32 %v4897_v57, %v4769_v8  ;;  %vm4520_vm14 = vcmp.ge.f32.partialorder %v11755_v39, 0.0  ;;  %v4648_v30 = vmul.f32 0.2, %v11755_v39  ;;  %v4905_v23 = vld [vmem:[%s16338_s13 + $0x3e8] sm:$0xff]  ;;  %8316 = vmatprep.subr.bf16.mxu1 %v12789_v32  ;;  %v12798_v45 = vld [vmem:[%s19416_s10 + $0xd64] ss:$28 sps:$4 sm:$0xff]  }
 0x3fd   : > { %v5027_v0 = vmul.f32 %v4899_v52, %v4771_v31  ;;  %8768 = vmatprep.subr.bf16.mxu0 %v12792_v35  ;;  %vm4522_vm15 = vcmp.ge.f32.partialorder %v11787_v41, 0.0  ;;  %v4650_v9 = vmul.f32 0.2, %v11787_v41  ;;  %vm4521_vm0 = vcmp.ge.f32.partialorder %v11756_v3, 0.0  ;;  %v12793_v35 = vld [vmem:[%s19416_s10 + $0xd58] ss:$28 sps:$4 sm:$0xff]  }
 0x3fe   : > { %v4649_v25 = vmul.f32 0.2, %v11756_v3  ;;  %v4776_v15 = vsel %vm4520_vm14, %v11755_v39, %v4648_v30  ;;  %vm4523_vm1 = vcmp.ge.f32.partialorder %v11788_v28, 0.0  ;;  %v4651_v14 = vmul.f32 0.2, %v11788_v28 }
 0x3ff   : > { %v17887_v57 = vpack.c.bf16 %v5017_v55, %v17793_v1  ;;  %8317 = vmatpush1.bf16.msra.mxu1 %v12787_v51  ;;  %v5032_v48 = vmul.f32 %v4904_v4, %v4776_v15  ;;  %v4778_v32 = vsel %vm4522_vm15, %v11787_v41, %v4650_v9  ;;  %v17894_v52 = vpack.c.bf16 %v17828_v63, %v17782_v16  ;;  %v12796_v1 = vld [vmem:[%s19416_s10 + $0xd60] ss:$28 sps:$4 sm:$0xff]   ;;  %v12801_v16 = vld [vmem:[%s19416_s10 + $0xd94] ss:$28 sps:$4 sm:$0xff]   ;;  %v12814_v4 = vld [vmem:[%s19416_s10 + $0x48] ss:$28 sps:$4 sm:$0xff]  }
 0x400   : > { %v4777_v13 = vsel %vm4521_vm0, %v11756_v3, %v4649_v25  ;;  %8769 = vmatpush1.bf16.msra.mxu0 %v12790_v33  ;;  %v5034_v55 = vmul.f32 %v4906_v56, %v4778_v32  ;;  %v4779_v7 = vsel %vm4523_vm1, %v11788_v28, %v4651_v14  ;;  %v12804_v39 = vld [vmem:[%s19416_s10 + $0xd9c] ss:$28 sps:$4 sm:$0xff]   ;;  %v17916_v41 = vpack.c.bf16 %v17259_v54, %v17214_v59  ;;  %v12799_v8 = vld [vmem:[%s19416_s10 + $0xd90] ss:$28 sps:$4 sm:$0xff]   ;;  %v12819_v56 = vld [vmem:[%s19416_s10 + $0x84] ss:$28 sps:$4 sm:$0xff]  }
 0x401   : > { %v5033_v10 = vmul.f32 %v4905_v23, %v4777_v13  ;;  %8271 = vmatprep.mubr.bf16.mxu1 %v17887_v57  ;;  %8723 = vmatprep.mubr.bf16.mxu0 %v17887_v57  ;;  %v5035_v63 = vmul.f32 %v4907_v24, %v4779_v7  ;;  %v17909_v21 = vpack.c.bf16 %v5032_v48, %v5024_v47  ;;  %v12802_v59 = vld [vmem:[%s19416_s10 + $0xd98] ss:$28 sps:$4 sm:$0xff]   ;;  %v12838_v28 = vld [vmem:[%s19416_s10 + $0x50] ss:$28 sps:$4 sm:$0xff]   ;;  %v12817_v33 = vld [vmem:[%s19416_s10 + $0x80] ss:$28 sps:$4 sm:$0xff]  }
 0x402   : > { %8272 = vmatmul.mubr.bf16.gmra.mrb[120].mxu1 %v17894_v52  ;;  %8724 = vmatmul.mubr.bf16.gmra.mrb[152].mxu0 %v17894_v52  ;;  %v17922_v51 = vpack.c.bf16 %v17327_v43, %v17293_v11  ;;  %v17926_v47 = vpack.c.bf16 %v17320_v6, %v17266_v19  ;;  %v17936_v54 = vpack.c.bf16 %v17463_v42, %v17389_v34  ;;  %v12807_v6 = vld [vmem:[%s19416_s10 + $0xdcc] ss:$28 sps:$4 sm:$0xff]   ;;  %v12810_v43 = vld [vmem:[%s19416_s10 + $0xdd4] ss:$28 sps:$4 sm:$0xff]   ;;  %v12854_v14 = vld [vmem:[%s19416_s10 + $0xc0] ss:$28 sps:$4 sm:$0xff]  }
 0x403   : > { %8318 = vmatprep.subr.bf16.mxu1 %v12795_v26  ;;  %8770 = vmatprep.subr.bf16.mxu0 %v12798_v45  ;;  %v17918_v3 = vpack.c.bf16 %v5033_v10, %v5025_v37  ;;  %v17940_v11 = vpack.c.bf16 %v17405_v5, %v17374_v61  ;;  %v17944_v19 = vpack.c.bf16 %v17560_v44, %v17500_v53  ;;  %v19861_v5 = vld [vmem:[#allocation53_spill] sm:$0xff]  ;;  %v19862_v42 = vld [vmem:[#allocation48_spill] sm:$0xff]  ;;  %v12846_v30 = vld [vmem:[%s19416_s10 + $0x88] ss:$28 sps:$4 sm:$0xff]  }
 0x404   : > { %8319 = vmatpush1.bf16.msra.mxu1 %v12793_v35  ;;  %8771 = vmatpush1.bf16.msra.mxu0 %v12796_v1  ;;  %v17955_v34 = vpack.c.bf16 %v17544_v46, %v17475_v60  ;;  %v17959_v61 = vpack.c.bf16 %v17670_v22, %v17618_v40  ;;  %v17963_v53 = vpack.c.bf16 %v19862_v42, %v19861_v5  ;;  %v12822_v37 = vld [vmem:[%s19416_s10 + $0xbc] ss:$28 sps:$4 sm:$0xff]   ;;  %v12825_v9 = vld [vmem:[%s19416_s10 + $0xf4] ss:$28 sps:$4 sm:$0xff]   ;;  %v12828_v15 = vld [vmem:[%s19416_s10 + $0x12c] ss:$28 sps:$4 sm:$0xff]  }
 0x405   : > { %8281 = vmatprep.mubr.bf16.mxu1 %v17918_v3  ;;  %8320 = vmatprep.subr.bf16.mxu1 %v12801_v16  ;;  %v17968_v44 = vpack.c.bf16 %v17767_v17, %v17720_v29  ;;  %v17972_v31 = vpack.c.bf16 %v17738_v12, %v17700_v38  ;;  %v17976_v60 = vpack.c.bf16 %v17857_v49, %v17800_v18  ;;  %v12805_v38 = vld [vmem:[%s19416_s10 + $0xdc8] ss:$28 sps:$4 sm:$0xff]   ;;  %v12808_v29 = vld [vmem:[%s19416_s10 + $0xdd0] ss:$28 sps:$4 sm:$0xff]   ;;  %v12829_v17 = vld [vmem:[%s19416_s10 + $0x1d8] ss:$28 sps:$4 sm:$0xff]  }
 0x406   : > { %8733 = vmatprep.mubr.bf16.mxu0 %v17918_v3  ;;  %8772 = vmatprep.subr.bf16.mxu0 %v12804_v39  ;;  %v17980_v40 = vpack.c.bf16 %v17830_v20, %v17791_v2  ;;  %v17982_v46 = vpack.c.bf16 %v5035_v63, %v5027_v0  ;;  %v17985_v22 = vpack.c.bf16 %v5034_v55, %v17872_v62  ;;  %v12813_v12 = vld [vmem:[%s19416_s10 + $0x14] ss:$28 sps:$4 sm:$0xff]   ;;  %v12816_v18 = vld [vmem:[%s19416_s10 + $0x4c] ss:$28 sps:$4 sm:$0xff]   ;;  %v12853_v26 = vld [vmem:[%s19416_s10 + $0x280] ss:$28 sps:$4 sm:$0xff]  }
 0x407   : > { %v12811_v2 = vld [vmem:[%s19416_s10 + $0x10] ss:$28 sps:$4 sm:$0xff]   ;;  %v12830_v20 = vld [vmem:[%s19416_s10 + $0x18] ss:$28 sps:$4 sm:$0xff]   ;;  %v12845_v0 = vld [vmem:[%s19416_s10 + $0x248] ss:$28 sps:$4 sm:$0xff]  }
 0x408   : > { %8321 = vmatpush1.bf16.msra.mxu1 %v12799_v8  ;;  %8773 = vmatpush1.bf16.msra.mxu0 %v12802_v59  ;;  %v19863_v49 = vld [vmem:[#allocation8_spill] sm:$0xff]  ;;  %v12826_v45 = vld [vmem:[%s19416_s10 + $0x128] ss:$28 sps:$4 sm:$0xff]   ;;  %v12831_v13 = vld [vmem:[%s19416_s10 + $0x160] ss:$28 sps:$4 sm:$0xff]  }
 0x409   : > { %8322 = vmatprep.subr.bf16.mxu1 %v12807_v6  ;;  %8774 = vmatprep.subr.bf16.mxu0 %v12810_v43  ;;  %v12837_v62 = vld [vmem:[%s19416_s10 + $0x210] ss:$28 sps:$4 sm:$0xff]   ;;  %v12820_v23 = vld [vmem:[%s19416_s10 + $0xb8] ss:$28 sps:$4 sm:$0xff]   ;;  %v12833_v48 = vld [vmem:[%s19416_s10 + $0x164] ss:$28 sps:$4 sm:$0xff]  }
 0x40a   : > { %8282 = vmatmul.mubr.bf16.gmra.mrb[124].mxu1 %v17909_v21  ;;  %8734 = vmatmul.mubr.bf16.gmra.mrb[156].mxu0 %v17909_v21  ;;  %v12823_v25 = vld [vmem:[%s19416_s10 + $0xf0] ss:$28 sps:$4 sm:$0xff]   ;;  %v12858_v24 = vld [vmem:[%s19416_s10 + $0x2b8] ss:$28 sps:$4 sm:$0xff]   ;;  %v12868_v7 = vld [vmem:[%s19416_s10 + $0x328] ss:$28 sps:$4 sm:$0xff]  }
 0x40b   : > { %8324 = vmatprep.mubr.bf16.mxu1 %v17916_v41  ;;  %8776 = vmatprep.mubr.bf16.mxu0 %v17916_v41  ;;  %v12859_v32 = vld [vmem:[%s19416_s10 + $0xf8] ss:$28 sps:$4 sm:$0xff]   ;;  %v12863_v1 = vld [vmem:[%s19416_s10 + $0x2f0] ss:$28 sps:$4 sm:$0xff]   ;;  %v12869_v8 = vld [vmem:[%s19416_s10 + $0x168] ss:$28 sps:$4 sm:$0xff]  }
 0x40c   : > { %8323 = vmatpush1.bf16.msra.mxu1 %v12805_v38  ;;  %8775 = vmatpush1.bf16.msra.mxu0 %v12808_v29  ;;  %v12836_v35 = vld [vmem:[%s19416_s10 + $0x19c] ss:$28 sps:$4 sm:$0xff]   ;;  %v12864_v55 = vld [vmem:[%s19416_s10 + $0x130] ss:$28 sps:$4 sm:$0xff]   ;;  %v12842_v6 = vld [vmem:[%s19416_s10 + $0x208] ss:$28 sps:$4 sm:$0xff]  }
 0x40d   : > { %8857 = vmatprep.subr.bf16.mxu1 %v12813_v12  ;;  %11389 = vmatprep.subr.bf16.mxu0 %v12829_v17  ;;  %v12834_v10 = vld [vmem:[%s19416_s10 + $0x198] ss:$28 sps:$4 sm:$0xff]   ;;  %v12839_v63 = vld [vmem:[%s19416_s10 + $0x1d0] ss:$28 sps:$4 sm:$0xff]   ;;  %v12873_v59 = vld [vmem:[%s19416_s10 + $0x360] ss:$28 sps:$4 sm:$0xff]  }
 0x40e   : > { %v12841_v16 = vld [vmem:[%s19416_s10 + $0x1d4] ss:$28 sps:$4 sm:$0xff]   ;;  %v12844_v39 = vld [vmem:[%s19416_s10 + $0x20c] ss:$28 sps:$4 sm:$0xff]   ;;  %v12849_v43 = vld [vmem:[%s19416_s10 + $0x244] ss:$28 sps:$4 sm:$0xff]  }
 0x40f   : > { %v12874_v5 = vld [vmem:[%s19416_s10 + $0x1a0] ss:$28 sps:$4 sm:$0xff]   ;;  %v12893_v29 = vld [vmem:[%s19416_s10 + $0x558] ss:$28 sps:$4 sm:$0xff]  }
 0x410   : > { %v12847_v42 = vld [vmem:[%s19416_s10 + $0x240] ss:$28 sps:$4 sm:$0xff]   ;;  %v12850_v12 = vld [vmem:[%s19416_s10 + $0x278] ss:$28 sps:$4 sm:$0xff]  }
 0x411   : > { %v12852_v38 = vld [vmem:[%s19416_s10 + $0x27c] ss:$28 sps:$4 sm:$0xff]   ;;  %v12857_v17 = vld [vmem:[%s19416_s10 + $0x2b4] ss:$28 sps:$4 sm:$0xff]  }
 0x412   : > { %8325 = vmatmul.mubr.bf16.vlgmr.msra.gmra.mrb[96].mxu1 %v19863_v49  ;;  %8777 = vmatmul.mubr.bf16.vlgmr.msra.gmra.mrb[128].mxu0 %v19863_v49 }
 0x413   : > { %8858 = vmatpush1.bf16.msra.mxu1 %v12811_v2  ;;  %8334 = vmatprep.mubr.bf16.mxu1 %v17922_v51  ;;  %v12855_v2 = vld [vmem:[%s19416_s10 + $0x2b0] ss:$28 sps:$4 sm:$0xff]  }
 0x414   : > { %8786 = vmatprep.mubr.bf16.mxu0 %v17922_v51  ;;  %8859 = vmatprep.subr.bf16.mxu1 %v12816_v18  ;;  %v12862_v18 = vld [vmem:[%s19416_s10 + $0x2ec] ss:$28 sps:$4 sm:$0xff]  }
 0x415   : > { %11390 = vmatpush3.bf16.msra.mxu0 %v12830_v20  ;;  %v12860_v20 = vld [vmem:[%s19416_s10 + $0x2e8] ss:$28 sps:$4 sm:$0xff]  }
 0x416   : > { %11391 = vmatprep.subr.bf16.mxu0 %v12837_v62  ;;  %v12867_v62 = vld [vmem:[%s19416_s10 + $0x324] ss:$28 sps:$4 sm:$0xff]  }
 0x417   : > { %8860 = vmatpush1.bf16.msra.mxu1 %v12814_v4  ;;  %v12865_v4 = vld [vmem:[%s19416_s10 + $0x320] ss:$28 sps:$4 sm:$0xff]  }
 0x418   : > { %8861 = vmatprep.subr.bf16.mxu1 %v12819_v56  ;;  %v12872_v56 = vld [vmem:[%s19416_s10 + $0x35c] ss:$28 sps:$4 sm:$0xff]  }
 0x419   : > { %11392 = vmatpush3.bf16.msra.mxu0 %v12838_v28  ;;  %v19864_v28 = vld [vmem:[#allocation17_spill] sm:$0xff] }
 0x41a   : > { %8335 = vmatmul.mubr.bf16.gmra.mrb[100].mxu1 %v17926_v47  ;;  %8787 = vmatmul.mubr.bf16.gmra.mrb[132].mxu0 %v17926_v47 }
 0x41b   : > { %8862 = vmatpush1.bf16.msra.mxu1 %v12817_v33  ;;  %8344 = vmatprep.mubr.bf16.mxu1 %v17936_v54  ;;  %v12870_v33 = vld [vmem:[%s19416_s10 + $0x358] ss:$28 sps:$4 sm:$0xff]  }
 0x41c   : > { %8796 = vmatprep.mubr.bf16.mxu0 %v17936_v54  ;;  %8863 = vmatprep.subr.bf16.mxu1 %v12822_v37  ;;  %v12877_v37 = vld [vmem:[%s19416_s10 + $0x394] ss:$28 sps:$4 sm:$0xff]  }
 0x41d   : > { %11393 = vmatprep.subr.bf16.mxu0 %v12845_v0  ;;  %v12875_v0 = vld [vmem:[%s19416_s10 + $0x390] ss:$28 sps:$4 sm:$0xff]  }
 0x41e   : > { %11394 = vmatpush3.bf16.msra.mxu0 %v12846_v30  ;;  %v12880_v30 = vld [vmem:[%s19416_s10 + $0x3cc] ss:$28 sps:$4 sm:$0xff]  }
 0x41f   : > { %8864 = vmatpush1.bf16.msra.mxu1 %v12820_v23  ;;  %11395 = vmatprep.subr.bf16.mxu0 %v12853_v26  ;;  %v12894_v23 = vld [vmem:[%s19416_s10 + $0x398] ss:$28 sps:$4 sm:$0xff]   ;;  %v19865_v26 = vld [vmem:[#allocation15_spill] sm:$0xff] }
 0x420   : > { %8865 = vmatprep.subr.bf16.mxu1 %v12825_v9  ;;  %v12901_v9 = vld [vmem:[%s19416_s10 + $0x590] ss:$28 sps:$4 sm:$0xff]  }
 0x422   : > { %8345 = vmatmul.mubr.bf16.gmra.mrb[104].mxu1 %v17940_v11  ;;  %8797 = vmatmul.mubr.bf16.gmra.mrb[136].mxu0 %v17940_v11 }
 0x423   : > { %8866 = vmatpush1.bf16.msra.mxu1 %v12823_v25  ;;  %8354 = vmatprep.mubr.bf16.mxu1 %v17944_v19  ;;  %v19866_v25 = vld [vmem:[#allocation18_spill] sm:$0xff] }
 0x424   : > { %8806 = vmatprep.mubr.bf16.mxu0 %v17944_v19  ;;  %8867 = vmatprep.subr.bf16.mxu1 %v12828_v15  ;;  %v12878_v15 = vld [vmem:[%s19416_s10 + $0x3c8] ss:$28 sps:$4 sm:$0xff]  }
 0x425   : > { %11396 = vmatpush3.bf16.msra.mxu0 %v12854_v14  ;;  %v12883_v14 = vld [vmem:[%s19416_s10 + $0x404] ss:$28 sps:$4 sm:$0xff]  }
 0x426   : > { %11397 = vmatprep.subr.bf16.mxu0 %v12858_v24  ;;  %v12902_v24 = vld [vmem:[%s19416_s10 + $0x3d0] ss:$28 sps:$4 sm:$0xff]  }
 0x427   : > { %8868 = vmatpush1.bf16.msra.mxu1 %v12826_v45  ;;  %v12881_v45 = vld [vmem:[%s19416_s10 + $0x400] ss:$28 sps:$4 sm:$0xff]  }
 0x428   : > { %8869 = vmatprep.subr.bf16.mxu1 %v12833_v48  ;;  %v12886_v48 = vld [vmem:[%s19416_s10 + $0x43c] ss:$28 sps:$4 sm:$0xff]  }
 0x429   : > { %11398 = vmatpush3.bf16.msra.mxu0 %v12859_v32  ;;  %v12906_v32 = vld [vmem:[%s19416_s10 + $0x5c8] ss:$28 sps:$4 sm:$0xff]  }
 0x42a   : > { %8355 = vmatmul.mubr.bf16.gmra.mrb[108].mxu1 %v17955_v34  ;;  %8807 = vmatmul.mubr.bf16.gmra.mrb[140].mxu0 %v17955_v34 }
 0x42b   : > { %8870 = vmatpush1.bf16.msra.mxu1 %v12831_v13  ;;  %8364 = vmatprep.mubr.bf16.mxu1 %v17959_v61  ;;  %v19867_v13 = vld [vmem:[#allocation19_spill] sm:$0xff] }
 0x42c   : > { %8816 = vmatprep.mubr.bf16.mxu0 %v17959_v61  ;;  %8871 = vmatprep.subr.bf16.mxu1 %v12836_v35  ;;  %v12907_v35 = vld [vmem:[%s19416_s10 + $0x408] ss:$28 sps:$4 sm:$0xff]  }
 0x42d   : > { %11399 = vmatprep.subr.bf16.mxu0 %v12863_v1  ;;  %v19868_v1 = vld [vmem:[#allocation20_spill] sm:$0xff] }
 0x42e   : > { %11400 = vmatpush3.bf16.msra.mxu0 %v12864_v55  ;;  %v12884_v55 = vld [vmem:[%s19416_s10 + $0x438] ss:$28 sps:$4 sm:$0xff]  }
 0x42f   : > { %8872 = vmatpush1.bf16.msra.mxu1 %v12834_v10  ;;  %11401 = vmatprep.subr.bf16.mxu0 %v12868_v7  ;;  %v12911_v10 = vld [vmem:[%s19416_s10 + $0x600] ss:$28 sps:$4 sm:$0xff]   ;;  %v12889_v7 = vld [vmem:[%s19416_s10 + $0x474] ss:$28 sps:$4 sm:$0xff]  }
 0x430   : > { %8873 = vmatprep.subr.bf16.mxu1 %v12841_v16  ;;  %v12887_v16 = vld [vmem:[%s19416_s10 + $0x470] ss:$28 sps:$4 sm:$0xff]  }
 0x432   : > { %8365 = vmatmul.mubr.bf16.gmra.mrb[112].mxu1 %v17963_v53  ;;  %8817 = vmatmul.mubr.bf16.gmra.mrb[144].mxu0 %v17963_v53 }
 0x433   : > { %8874 = vmatpush1.bf16.msra.mxu1 %v12839_v63  ;;  %8374 = vmatprep.mubr.bf16.mxu1 %v17968_v44  ;;  %v12892_v63 = vld [vmem:[%s19416_s10 + $0x4ac] ss:$28 sps:$4 sm:$0xff]  }
 0x434   : > { %8826 = vmatprep.mubr.bf16.mxu0 %v17968_v44  ;;  %8875 = vmatprep.subr.bf16.mxu1 %v12844_v39  ;;  %v12912_v39 = vld [vmem:[%s19416_s10 + $0x440] ss:$28 sps:$4 sm:$0xff]  }
 0x435   : > { %11402 = vmatpush3.bf16.msra.mxu0 %v12869_v8  ;;  %v19869_v8 = vld [vmem:[#allocation21_spill] sm:$0xff] }
 0x436   : > { %11403 = vmatprep.subr.bf16.mxu0 %v12873_v59  ;;  %v12916_v59 = vld [vmem:[%s19416_s10 + $0x638] ss:$28 sps:$4 sm:$0xff]  }
 0x437   : > { %8876 = vmatpush1.bf16.msra.mxu1 %v12842_v6  ;;  %v19870_v6 = vld [vmem:[#allocation24_spill] sm:$0xff] }
 0x438   : > { %8877 = vmatprep.subr.bf16.mxu1 %v12849_v43  ;;  %v12890_v43 = vld [vmem:[%s19416_s10 + $0x4a8] ss:$28 sps:$4 sm:$0xff]  }
 0x439   : > { %11404 = vmatpush3.bf16.msra.mxu0 %v12874_v5  ;;  %v12897_v5 = vld [vmem:[%s19416_s10 + $0x4e4] ss:$28 sps:$4 sm:$0xff]  }
 0x43a   : > { %8375 = vmatmul.mubr.bf16.gmra.mrb[116].mxu1 %v17972_v31  ;;  %8827 = vmatmul.mubr.bf16.gmra.mrb[148].mxu0 %v17972_v31 }
 0x43b   : > { %8878 = vmatpush1.bf16.msra.mxu1 %v12847_v42  ;;  %8384 = vmatprep.mubr.bf16.mxu1 %v17976_v60  ;;  %v12917_v42 = vld [vmem:[%s19416_s10 + $0x478] ss:$28 sps:$4 sm:$0xff]  }
 0x43c   : > { %8836 = vmatprep.mubr.bf16.mxu0 %v17976_v60  ;;  %8879 = vmatprep.subr.bf16.mxu1 %v12852_v38  ;;  %v12895_v38 = vld [vmem:[%s19416_s10 + $0x4e0] ss:$28 sps:$4 sm:$0xff]  }
 0x43d   : > { %11453 = vmatprep.subr.bf16.mxu0 %v12893_v29  ;;  %v12900_v29 = vld [vmem:[%s19416_s10 + $0x51c] ss:$28 sps:$4 sm:$0xff]  }
 0x43f   : > { %8880 = vmatpush1.bf16.msra.mxu1 %v12850_v12  ;;  %v12921_v12 = vld [vmem:[%s19416_s10 + $0x670] ss:$28 sps:$4 sm:$0xff]  }
 0x440   : > { %8881 = vmatprep.subr.bf16.mxu1 %v12857_v17  ;;  %v19871_v17 = vld [vmem:[#allocation25_spill] sm:$0xff] }
 0x442   : > { %8385 = vmatmul.mubr.bf16.gmra.mrb[120].mxu1 %v17980_v40  ;;  %8837 = vmatmul.mubr.bf16.gmra.mrb[152].mxu0 %v17980_v40 }
 0x443   : > { %8882 = vmatpush1.bf16.msra.mxu1 %v12855_v2  ;;  %8394 = vmatprep.mubr.bf16.mxu1 %v17982_v46  ;;  %v12922_v2 = vld [vmem:[%s19416_s10 + $0x4b0] ss:$28 sps:$4 sm:$0xff]  }
 0x444   : > { %8846 = vmatprep.mubr.bf16.mxu0 %v17982_v46  ;;  %8883 = vmatprep.subr.bf16.mxu1 %v12862_v18  ;;  %v19872_v18 = vld [vmem:[#allocation26_spill] sm:$0xff] }
 0x447   : > { %8884 = vmatpush1.bf16.msra.mxu1 %v12860_v20  ;;  %v12898_v20 = vld [vmem:[%s19416_s10 + $0x518] ss:$28 sps:$4 sm:$0xff]  }
 0x448   : > { %8885 = vmatprep.subr.bf16.mxu1 %v12867_v62  ;;  %v12926_v62 = vld [vmem:[%s19416_s10 + $0x6a8] ss:$28 sps:$4 sm:$0xff]  }
 0x44a   : > { %8395 = vmatmul.mubr.bf16.gmra.mrb[124].mxu1 %v17985_v22  ;;  %8847 = vmatmul.mubr.bf16.gmra.mrb[156].mxu0 %v17985_v22 }
 0x44b   : > { %8886 = vmatpush1.bf16.msra.mxu1 %v12865_v4  ;;  %8889 = vmatprep.mubr.bf16.mxu1 %v19864_v28  ;;  %v12905_v4 = vld [vmem:[%s19416_s10 + $0x554] ss:$28 sps:$4 sm:$0xff]  }
 0x44c   : > { %9341 = vmatprep.mubr.bf16.mxu0 %v19864_v28  ;;  %8887 = vmatprep.subr.bf16.mxu1 %v12872_v56  ;;  %v12903_v56 = vld [vmem:[%s19416_s10 + $0x550] ss:$28 sps:$4 sm:$0xff]  }
 0x44d   : > { %v12910_v28 = vld [vmem:[%s19416_s10 + $0x58c] ss:$28 sps:$4 sm:$0xff]  }
 0x44f   : > { %8888 = vmatpush1.bf16.msra.mxu1 %v12870_v33  ;;  %v12927_v33 = vld [vmem:[%s19416_s10 + $0x4e8] ss:$28 sps:$4 sm:$0xff]  }
 0x450   : > { %8970 = vmatprep.subr.bf16.mxu1 %v12877_v37  ;;  %v19873_v37 = vld [vmem:[#allocation27_spill] sm:$0xff] }
 0x452   : > { %8890 = vmatmul.mubr.bf16.vlgmr.msra.gmra.mrb[128].mxu1 %v19865_v26  ;;  %9342 = vmatmul.mubr.bf16.vlgmr.msra.gmra.mrb[160].mxu0 %v19865_v26  ;;  %v12915_v26 = vld [vmem:[%s19416_s10 + $0x5c4] ss:$28 sps:$4 sm:$0xff]  }
 0x453   : > { %8971 = vmatpush1.bf16.msra.mxu1 %v12875_v0  ;;  %8899 = vmatprep.mubr.bf16.mxu1 %v19866_v25  ;;  %v12931_v0 = vld [vmem:[%s19416_s10 + $0x6e0] ss:$28 sps:$4 sm:$0xff]  }
 0x454   : > { %9349 = vmatprep.mubr.bf16.mxu0 %v19866_v25  ;;  %8972 = vmatprep.subr.bf16.mxu1 %v12880_v30  ;;  %v19874_v30 = vld [vmem:[#allocation28_spill] sm:$0xff]  ;;  %v12913_v25 = vld [vmem:[%s19416_s10 + $0x5c0] ss:$28 sps:$4 sm:$0xff]  }
 0x455   : > { %11454 = vmatpush3.bf16.msra.mxu0 %v12894_v23  ;;  %v12908_v23 = vld [vmem:[%s19416_s10 + $0x588] ss:$28 sps:$4 sm:$0xff]  }
 0x456   : > { %11455 = vmatprep.subr.bf16.mxu0 %v12901_v9  ;;  %v12932_v9 = vld [vmem:[%s19416_s10 + $0x520] ss:$28 sps:$4 sm:$0xff]  }
 0x457   : > { %8973 = vmatpush1.bf16.msra.mxu1 %v12878_v15  ;;  %v12920_v15 = vld [vmem:[%s19416_s10 + $0x5fc] ss:$28 sps:$4 sm:$0xff]  }
 0x458   : > { %8974 = vmatprep.subr.bf16.mxu1 %v12883_v14  ;;  %v12951_v14 = vld [vmem:[%s19416_s10 + $0x8d8] ss:$28 sps:$4 sm:$0xff]  }
 0x459   : > { %11456 = vmatpush3.bf16.msra.mxu0 %v12902_v24  ;;  %v19875_v24 = vld [vmem:[#allocation29_spill] sm:$0xff] }
 0x45a   : > { %8900 = vmatmul.mubr.bf16.gmra.mrb[132].mxu1 %v19867_v13  ;;  %9350 = vmatmul.mubr.bf16.gmra.mrb[164].mxu0 %v19867_v13  ;;  %v12923_v13 = vld [vmem:[%s19416_s10 + $0x630] ss:$28 sps:$4 sm:$0xff]  }
 0x45b   : > { %8975 = vmatpush1.bf16.msra.mxu1 %v12881_v45  ;;  %8909 = vmatprep.mubr.bf16.mxu1 %v19868_v1  ;;  %v19876_v45 = vld [vmem:[#allocation30_spill] sm:$0xff] }
 0x45c   : > { %9357 = vmatprep.mubr.bf16.mxu0 %v19868_v1  ;;  %8976 = vmatprep.subr.bf16.mxu1 %v12886_v48  ;;  %v12918_v48 = vld [vmem:[%s19416_s10 + $0x5f8] ss:$28 sps:$4 sm:$0xff]   ;;  %v19877_v1 = vld [vmem:[#allocation31_spill] sm:$0xff] }
 0x45d   : > { %11457 = vmatprep.subr.bf16.mxu0 %v12906_v32  ;;  %v12925_v32 = vld [vmem:[%s19416_s10 + $0x634] ss:$28 sps:$4 sm:$0xff]  }
 0x45e   : > { %11458 = vmatpush3.bf16.msra.mxu0 %v12907_v35  ;;  %v12930_v35 = vld [vmem:[%s19416_s10 + $0x66c] ss:$28 sps:$4 sm:$0xff]  }
 0x45f   : > { %8977 = vmatpush1.bf16.msra.mxu1 %v12884_v55  ;;  %11459 = vmatprep.subr.bf16.mxu0 %v12911_v10  ;;  %v19878_v55 = vld [vmem:[#allocation35_spill] sm:$0xff] }
 0x460   : > { %8978 = vmatprep.subr.bf16.mxu1 %v12889_v7  ;;  %v12928_v10 = vld [vmem:[%s19416_s10 + $0x668] ss:$28 sps:$4 sm:$0xff]   ;;  %v19879_v7 = vld [vmem:[#allocation32_spill] sm:$0xff] }
 0x462   : > { %8910 = vmatmul.mubr.bf16.gmra.mrb[136].mxu1 %v19869_v8  ;;  %9358 = vmatmul.mubr.bf16.gmra.mrb[168].mxu0 %v19869_v8  ;;  %v12952_v8 = vld [vmem:[%s19416_s10 + $0x718] ss:$28 sps:$4 sm:$0xff]  }
 0x463   : > { %8979 = vmatpush1.bf16.msra.mxu1 %v12887_v16  ;;  %8919 = vmatprep.mubr.bf16.mxu1 %v19870_v6  ;;  %v12935_v16 = vld [vmem:[%s19416_s10 + $0x6a4] ss:$28 sps:$4 sm:$0xff]  }
 0x464   : > { %9365 = vmatprep.mubr.bf16.mxu0 %v19870_v6  ;;  %8980 = vmatprep.subr.bf16.mxu1 %v12892_v63  ;;  %v12933_v63 = vld [vmem:[%s19416_s10 + $0x6a0] ss:$28 sps:$4 sm:$0xff]   ;;  %v19881_v6 = vld [vmem:[#allocation16_spill] sm:$0xff] }
 0x465   : > { %11460 = vmatpush3.bf16.msra.mxu0 %v12912_v39  ;;  %v12938_v39 = vld [vmem:[%s19416_s10 + $0x6dc] ss:$28 sps:$4 sm:$0xff]  }
 0x466   : > { %11461 = vmatprep.subr.bf16.mxu0 %v12916_v59  ;;  %v19880_v59 = vld [vmem:[#allocation33_spill] sm:$0xff] }
 0x467   : > { %8981 = vmatpush1.bf16.msra.mxu1 %v12890_v43  ;;  %v12959_v43 = vld [vmem:[%s19416_s10 + $0x910] ss:$28 sps:$4 sm:$0xff]  }
 0x468   : > { %8982 = vmatprep.subr.bf16.mxu1 %v12897_v5  ;;  %v12936_v5 = vld [vmem:[%s19416_s10 + $0x6d8] ss:$28 sps:$4 sm:$0xff]  }
 0x469   : > { %11462 = vmatpush3.bf16.msra.mxu0 %v12917_v42  ;;  %v19882_v42 = vld [vmem:[#allocation34_spill] sm:$0xff] }
 0x46a   : > { %8920 = vmatmul.mubr.bf16.gmra.mrb[140].mxu1 %v19871_v17  ;;  %9366 = vmatmul.mubr.bf16.gmra.mrb[172].mxu0 %v19871_v17  ;;  %v12944_v17 = vld [vmem:[%s19416_s10 + $0x74c] ss:$28 sps:$4 sm:$0xff]  }
 0x46b   : > { %8983 = vmatpush1.bf16.msra.mxu1 %v12895_v38  ;;  %8929 = vmatprep.mubr.bf16.mxu1 %v19872_v18  ;;  %v12941_v38 = vld [vmem:[%s19416_s10 + $0x714] ss:$28 sps:$4 sm:$0xff]  }
 0x46c   : > { %9373 = vmatprep.mubr.bf16.mxu0 %v19872_v18  ;;  %8984 = vmatprep.subr.bf16.mxu1 %v12900_v29  ;;  %v12960_v29 = vld [vmem:[%s19416_s10 + $0x750] ss:$28 sps:$4 sm:$0xff]  }
 0x46d   : > { %11463 = vmatprep.subr.bf16.mxu0 %v12921_v12  ;;  %v12939_v12 = vld [vmem:[%s19416_s10 + $0x710] ss:$28 sps:$4 sm:$0xff]  }
 0x46e   : > { %11464 = vmatpush3.bf16.msra.mxu0 %v12922_v2  ;;  %v12967_v2 = vld [vmem:[%s19416_s10 + $0x948] ss:$28 sps:$4 sm:$0xff]   ;;  %v19883_v18 = vld [vmem:[#allocation36_spill] sm:$0xff] }
 0x46f   : > { %8985 = vmatpush1.bf16.msra.mxu1 %v12898_v20  ;;  %11465 = vmatprep.subr.bf16.mxu0 %v12926_v62  ;;  %v12968_v20 = vld [vmem:[%s19416_s10 + $0x788] ss:$28 sps:$4 sm:$0xff]  }
 0x470   : > { %8986 = vmatprep.subr.bf16.mxu1 %v12905_v4  ;;  %v12942_v62 = vld [vmem:[%s19416_s10 + $0x748] ss:$28 sps:$4 sm:$0xff]   ;;  %v12975_v4 = vld [vmem:[%s19416_s10 + $0x980] ss:$28 sps:$4 sm:$0xff]  }
 0x472   : > { %8930 = vmatmul.mubr.bf16.gmra.mrb[144].mxu1 %v19873_v37  ;;  %9374 = vmatmul.mubr.bf16.gmra.mrb[176].mxu0 %v19873_v37  ;;  %v12950_v37 = vld [vmem:[%s19416_s10 + $0x7bc] ss:$28 sps:$4 sm:$0xff]  }
 0x473   : > { %8987 = vmatpush1.bf16.msra.mxu1 %v12903_v56  ;;  %8939 = vmatprep.mubr.bf16.mxu1 %v19874_v30  ;;  %v19884_v56 = vld [vmem:[#allocation37_spill] sm:$0xff] }
 0x474   : > { %9381 = vmatprep.mubr.bf16.mxu0 %v19874_v30  ;;  %8988 = vmatprep.subr.bf16.mxu1 %v12910_v28  ;;  %v12947_v28 = vld [vmem:[%s19416_s10 + $0x784] ss:$28 sps:$4 sm:$0xff]  }
 0x475   : > { %11466 = vmatpush3.bf16.msra.mxu0 %v12927_v33  ;;  %v12945_v33 = vld [vmem:[%s19416_s10 + $0x780] ss:$28 sps:$4 sm:$0xff]  }
 0x476   : > { %11467 = vmatprep.subr.bf16.mxu0 %v12931_v0  ;;  %v12976_v0 = vld [vmem:[%s19416_s10 + $0x7c0] ss:$28 sps:$4 sm:$0xff]  }
 0x477   : > { %8989 = vmatpush1.bf16.msra.mxu1 %v12908_v23  ;;  %v19885_v30 = vld [vmem:[#allocation38_spill] sm:$0xff]  ;;  %v12980_v23 = vld [vmem:[%s19416_s10 + $0x9b8] ss:$28 sps:$4 sm:$0xff]  }
 0x478   : > { %8990 = vmatprep.subr.bf16.mxu1 %v12915_v26  ;;  %v12948_v26 = vld [vmem:[%s19416_s10 + $0x7b8] ss:$28 sps:$4 sm:$0xff]  }
 0x479   : > { %11468 = vmatpush3.bf16.msra.mxu0 %v12932_v9  ;;  %v19886_v9 = vld [vmem:[#allocation39_spill] sm:$0xff] }
 0x47a   : > { %8940 = vmatmul.mubr.bf16.gmra.mrb[148].mxu1 %v19875_v24  ;;  %9382 = vmatmul.mubr.bf16.gmra.mrb[180].mxu0 %v19875_v24  ;;  %v12958_v24 = vld [vmem:[%s19416_s10 + $0x82c] ss:$28 sps:$4 sm:$0xff]  }
 0x47b   : > { %8991 = vmatpush1.bf16.msra.mxu1 %v12913_v25  ;;  %8949 = vmatprep.mubr.bf16.mxu1 %v19876_v45  ;;  %v12955_v25 = vld [vmem:[%s19416_s10 + $0x7f4] ss:$28 sps:$4 sm:$0xff]  }
 0x47c   : > { %9389 = vmatprep.mubr.bf16.mxu0 %v19876_v45  ;;  %8992 = vmatprep.subr.bf16.mxu1 %v12920_v15  ;;  %v12981_v15 = vld [vmem:[%s19416_s10 + $0x7f8] ss:$28 sps:$4 sm:$0xff]   ;;  %v12985_v45 = vld [vmem:[%s19416_s10 + $0x9f0] ss:$28 sps:$4 sm:$0xff]  }
 0x47d   : > { %11517 = vmatprep.subr.bf16.mxu0 %v12951_v14  ;;  %v12953_v14 = vld [vmem:[%s19416_s10 + $0x7f0] ss:$28 sps:$4 sm:$0xff]  }
 0x47f   : > { %8993 = vmatpush1.bf16.msra.mxu1 %v12918_v48  ;;  %v19887_v48 = vld [vmem:[#allocation40_spill] sm:$0xff] }
 0x480   : > { %8994 = vmatprep.subr.bf16.mxu1 %v12925_v32  ;;  %v12986_v32 = vld [vmem:[%s19416_s10 + $0x830] ss:$28 sps:$4 sm:$0xff]  }
 0x482   : > { %8950 = vmatmul.mubr.bf16.gmra.mrb[152].mxu1 %v19877_v1  ;;  %9390 = vmatmul.mubr.bf16.gmra.mrb[184].mxu0 %v19877_v1  ;;  %v19888_v1 = vld [vmem:[#allocation41_spill] sm:$0xff] }
 0x483   : > { %8995 = vmatpush1.bf16.msra.mxu1 %v12923_v13  ;;  %8959 = vmatprep.mubr.bf16.mxu1 %v19878_v55  ;;  %v12956_v13 = vld [vmem:[%s19416_s10 + $0x828] ss:$28 sps:$4 sm:$0xff]  }
 0x484   : > { %9438 = vmatprep.mubr.bf16.mxu0 %v19879_v7  ;;  %8996 = vmatprep.subr.bf16.mxu1 %v12930_v35  ;;  %v12990_v35 = vld [vmem:[%s19416_s10 + $0xa28] ss:$28 sps:$4 sm:$0xff]  }
 0x487   : > { %8997 = vmatpush1.bf16.msra.mxu1 %v12928_v10  ;;  %v12963_v10 = vld [vmem:[%s19416_s10 + $0x864] ss:$28 sps:$4 sm:$0xff]  }
 0x488   : > { %8998 = vmatprep.subr.bf16.mxu1 %v12935_v16  ;;  %v12966_v16 = vld [vmem:[%s19416_s10 + $0x89c] ss:$28 sps:$4 sm:$0xff]  }
 0x48a   : > { %8960 = vmatmul.mubr.bf16.gmra.mrb[156].mxu1 %v19880_v59  ;;  %9439 = vmatmul.mubr.bf16.vlgmr.msra.gmra.mrb[188].mxu0 %v19881_v6 }
 0x48b   : > { %8999 = vmatpush1.bf16.msra.mxu1 %v12933_v63  ;;  %9002 = vmatprep.mubr.bf16.mxu1 %v19879_v7  ;;  %v12961_v7 = vld [vmem:[%s19416_s10 + $0x860] ss:$28 sps:$4 sm:$0xff]   ;;  %v12991_v63 = vld [vmem:[%s19416_s10 + $0x868] ss:$28 sps:$4 sm:$0xff]  }
 0x48c   : > { %9446 = vmatprep.mubr.bf16.mxu0 %v19882_v42  ;;  %9000 = vmatprep.subr.bf16.mxu1 %v12938_v39  ;;  %v19889_v39 = vld [vmem:[#allocation42_spill] sm:$0xff] }
 0x48d   : > { %11518 = vmatpush3.bf16.msra.mxu0 %v12952_v8  ;;  %v12995_v8 = vld [vmem:[%s19416_s10 + $0xa60] ss:$28 sps:$4 sm:$0xff]  }
 0x48e   : > { %11519 = vmatprep.subr.bf16.mxu0 %v12959_v43  ;;  %v19890_v43 = vld [vmem:[#allocation43_spill] sm:$0xff] }
 0x48f   : > { %9001 = vmatpush1.bf16.msra.mxu1 %v12936_v5  ;;  %v12971_v5 = vld [vmem:[%s19416_s10 + $0x8d4] ss:$28 sps:$4 sm:$0xff]  }
 0x490   : > { %9083 = vmatprep.subr.bf16.mxu1 %v12941_v38  ;;  %v12969_v38 = vld [vmem:[%s19416_s10 + $0x8d0] ss:$28 sps:$4 sm:$0xff]  }
 0x491   : > { %11520 = vmatpush3.bf16.msra.mxu0 %v12960_v29  ;;  %v12974_v29 = vld [vmem:[%s19416_s10 + $0x90c] ss:$28 sps:$4 sm:$0xff]  }
 0x492   : > { %9003 = vmatmul.mubr.bf16.vlgmr.msra.gmra.mrb[128].mxu1 %v19881_v6  ;;  %9447 = vmatmul.mubr.bf16.gmra.mrb[192].mxu0 %v19883_v18  ;;  %v12964_v6 = vld [vmem:[%s19416_s10 + $0x898] ss:$28 sps:$4 sm:$0xff]  }
 0x493   : > { %9084 = vmatpush1.bf16.msra.mxu1 %v12939_v12  ;;  %9012 = vmatprep.mubr.bf16.mxu1 %v19882_v42  ;;  %v12996_v42 = vld [vmem:[%s19416_s10 + $0x8a0] ss:$28 sps:$4 sm:$0xff]   ;;  %v13015_v12 = vld [vmem:[%s19416_s10 + $0xc58] ss:$28 sps:$4 sm:$0xff]  }
 0x494   : > { %9454 = vmatprep.mubr.bf16.mxu0 %v19884_v56  ;;  %9085 = vmatprep.subr.bf16.mxu1 %v12944_v17  ;;  %v19891_v17 = vld [vmem:[#allocation44_spill] sm:$0xff] }
 0x495   : > { %11521 = vmatprep.subr.bf16.mxu0 %v12967_v2  ;;  %v12972_v2 = vld [vmem:[%s19416_s10 + $0x908] ss:$28 sps:$4 sm:$0xff]  }
 0x496   : > { %11522 = vmatpush3.bf16.msra.mxu0 %v12968_v20  ;;  %v12979_v20 = vld [vmem:[%s19416_s10 + $0x944] ss:$28 sps:$4 sm:$0xff]  }
 0x497   : > { %9086 = vmatpush1.bf16.msra.mxu1 %v12942_v62  ;;  %11523 = vmatprep.subr.bf16.mxu0 %v12975_v4  ;;  %v12977_v62 = vld [vmem:[%s19416_s10 + $0x940] ss:$28 sps:$4 sm:$0xff]  }
 0x498   : > { %9087 = vmatprep.subr.bf16.mxu1 %v12947_v28  ;;  %v12984_v4 = vld [vmem:[%s19416_s10 + $0x97c] ss:$28 sps:$4 sm:$0xff]  }
 0x499   : > { %v12982_v28 = vld [vmem:[%s19416_s10 + $0x978] ss:$28 sps:$4 sm:$0xff]  }
 0x49a   : > { %9013 = vmatmul.mubr.bf16.gmra.mrb[132].mxu1 %v19883_v18  ;;  %9455 = vmatmul.mubr.bf16.gmra.mrb[196].mxu0 %v19885_v30  ;;  %v19892_v18 = vld [vmem:[#allocation45_spill] sm:$0xff] }
 0x49b   : > { %9088 = vmatpush1.bf16.msra.mxu1 %v12945_v33  ;;  %9022 = vmatprep.mubr.bf16.mxu1 %v19884_v56  ;;  %v19893_v56 = vld [vmem:[#allocation46_spill] sm:$0xff]  ;;  %v19894_v33 = vld [vmem:[#allocation47_spill] sm:$0xff] }
 0x49c   : > { %9462 = vmatprep.mubr.bf16.mxu0 %v19886_v9  ;;  %9089 = vmatprep.subr.bf16.mxu1 %v12950_v37  ;;  %v12989_v37 = vld [vmem:[%s19416_s10 + $0x9b4] ss:$28 sps:$4 sm:$0xff]  }
 0x49d   : > { %11524 = vmatpush3.bf16.msra.mxu0 %v12976_v0  ;;  %v12987_v0 = vld [vmem:[%s19416_s10 + $0x9b0] ss:$28 sps:$4 sm:$0xff]  }
 0x49e   : > { %11525 = vmatprep.subr.bf16.mxu0 %v12980_v23  ;;  %v19895_v23 = vld [vmem:[#allocation49_spill] sm:$0xff] }
 0x49f   : > { %9090 = vmatpush1.bf16.msra.mxu1 %v12948_v26  ;;  %v12992_v26 = vld [vmem:[%s19416_s10 + $0x9e8] ss:$28 sps:$4 sm:$0xff]  }
 0x4a0   : > { %9091 = vmatprep.subr.bf16.mxu1 %v12955_v25  ;;  %v12999_v25 = vld [vmem:[%s19416_s10 + $0xa24] ss:$28 sps:$4 sm:$0xff]  }
 0x4a1   : > { %11526 = vmatpush3.bf16.msra.mxu0 %v12981_v15  ;;  %v12997_v15 = vld [vmem:[%s19416_s10 + $0xa20] ss:$28 sps:$4 sm:$0xff]  }
 0x4a2   : > { %9023 = vmatmul.mubr.bf16.gmra.mrb[136].mxu1 %v19885_v30  ;;  %9463 = vmatmul.mubr.bf16.gmra.mrb[200].mxu0 %v19887_v48  ;;  %v12994_v30 = vld [vmem:[%s19416_s10 + $0x9ec] ss:$28 sps:$4 sm:$0xff]  }
 0x4a3   : > { %9092 = vmatpush1.bf16.msra.mxu1 %v12953_v14  ;;  %9032 = vmatprep.mubr.bf16.mxu1 %v19886_v9  ;;  %v19896_v9 = vld [vmem:[#allocation11_spill] sm:$0xff]  ;;  %v13002_v14 = vld [vmem:[%s19416_s10 + $0xa5c] ss:$28 sps:$4 sm:$0xff]  }
 0x4a4   : > { %9470 = vmatprep.mubr.bf16.mxu0 %v19888_v1  ;;  %9093 = vmatprep.subr.bf16.mxu1 %v12958_v24  ;;  %v13016_v24 = vld [vmem:[%s19416_s10 + $0xa98] ss:$28 sps:$4 sm:$0xff]  }
 0x4a5   : > { %11527 = vmatprep.subr.bf16.mxu0 %v12985_v45  ;;  %v19897_v45 = vld [vmem:[#allocation50_spill] sm:$0xff] }
 0x4a6   : > { %11528 = vmatpush3.bf16.msra.mxu0 %v12986_v32  ;;  %v13000_v32 = vld [vmem:[%s19416_s10 + $0xa58] ss:$28 sps:$4 sm:$0xff]  }
 0x4a7   : > { %9094 = vmatpush1.bf16.msra.mxu1 %v12956_v13  ;;  %11529 = vmatprep.subr.bf16.mxu0 %v12990_v35  ;;  %v19898_v13 = vld [vmem:[#allocation7_spill] sm:$0xff]  ;;  %v13005_v35 = vld [vmem:[%s19416_s10 + $0xa94] ss:$28 sps:$4 sm:$0xff]  }
 0x4a8   : > { %9095 = vmatprep.subr.bf16.mxu1 %v12963_v10  ;;  %v13003_v10 = vld [vmem:[%s19416_s10 + $0xa90] ss:$28 sps:$4 sm:$0xff]  }
 0x4aa   : > { %9033 = vmatmul.mubr.bf16.gmra.mrb[140].mxu1 %v19887_v48  ;;  %9471 = vmatmul.mubr.bf16.gmra.mrb[204].mxu0 %v19889_v39  ;;  %v13023_v48 = vld [vmem:[%s19416_s10 + $0xc90] ss:$28 sps:$4 sm:$0xff]  }
 0x4ab   : > { %9096 = vmatpush1.bf16.msra.mxu1 %v12961_v7  ;;  %9042 = vmatprep.mubr.bf16.mxu1 %v19888_v1  ;;  %v13024_v1 = vld [vmem:[%s19416_s10 + $0xad0] ss:$28 sps:$4 sm:$0xff]  }
 0x4ac   : > { %9478 = vmatprep.mubr.bf16.mxu0 %v19890_v43  ;;  %9097 = vmatprep.subr.bf16.mxu1 %v12966_v16  ;;  %v13008_v7 = vld [vmem:[%s19416_s10 + $0xacc] ss:$28 sps:$4 sm:$0xff]  }
 0x4ad   : > { %11530 = vmatpush3.bf16.msra.mxu0 %v12991_v63  ;;  %v13031_v16 = vld [vmem:[%s19416_s10 + $0xcc8] ss:$28 sps:$4 sm:$0xff]   ;;  %v19899_v63 = vld [vmem:[#allocation9_spill] sm:$0xff] }
 0x4ae   : > { %11531 = vmatprep.subr.bf16.mxu0 %v12995_v8  ;;  %v13006_v8 = vld [vmem:[%s19416_s10 + $0xac8] ss:$28 sps:$4 sm:$0xff]  }
 0x4af   : > { %9098 = vmatpush1.bf16.msra.mxu1 %v12964_v6  ;;  %v13039_v6 = vld [vmem:[%s19416_s10 + $0xd00] ss:$28 sps:$4 sm:$0xff]  }
 0x4b0   : > { %9099 = vmatprep.subr.bf16.mxu1 %v12971_v5  ;;  %v13011_v5 = vld [vmem:[%s19416_s10 + $0xb04] ss:$28 sps:$4 sm:$0xff]  }
 0x4b1   : > { %11532 = vmatpush3.bf16.msra.mxu0 %v12996_v42  ;;  %v13009_v42 = vld [vmem:[%s19416_s10 + $0xb00] ss:$28 sps:$4 sm:$0xff]  }
 0x4b2   : > { %9043 = vmatmul.mubr.bf16.gmra.mrb[144].mxu1 %v19889_v39  ;;  %9479 = vmatmul.mubr.bf16.gmra.mrb[208].mxu0 %v19891_v17  ;;  %v13032_v39 = vld [vmem:[%s19416_s10 + $0xb08] ss:$28 sps:$4 sm:$0xff]  }
 0x4b3   : > { %9100 = vmatpush1.bf16.msra.mxu1 %v12969_v38  ;;  %9052 = vmatprep.mubr.bf16.mxu1 %v19890_v43  ;;  %v19900_v43 = vld [vmem:[#allocation13_spill] sm:$0xff] }
 0x4b4   : > { %9486 = vmatprep.mubr.bf16.mxu0 %v19892_v18  ;;  %9101 = vmatprep.subr.bf16.mxu1 %v12974_v29  ;;  %v13014_v38 = vld [vmem:[%s19416_s10 + $0xb3c] ss:$28 sps:$4 sm:$0xff]  }
 0x4b5   : > { %11581 = vmatprep.subr.bf16.mxu0 %v13015_v12  ;;  %v13040_v29 = vld [vmem:[%s19416_s10 + $0xb40] ss:$28 sps:$4 sm:$0xff]   ;;  %v19901_v12 = vld [vmem:[#allocation52_spill] sm:$0xff] }
 0x4b7   : > { %9102 = vmatpush1.bf16.msra.mxu1 %v12972_v2  ;;  %v13012_v2 = vld [vmem:[%s19416_s10 + $0xb38] ss:$28 sps:$4 sm:$0xff]  }
 0x4b8   : > { %9103 = vmatprep.subr.bf16.mxu1 %v12979_v20  ;;  %v13019_v20 = vld [vmem:[%s19416_s10 + $0xb74] ss:$28 sps:$4 sm:$0xff]  }
 0x4ba   : > { %9053 = vmatmul.mubr.bf16.gmra.mrb[148].mxu1 %v19891_v17  ;;  %9487 = vmatmul.mubr.bf16.gmra.mrb[212].mxu0 %v19893_v56  ;;  %v13044_v17 = vld [vmem:[%s19416_s10 + $0xd38] ss:$28 sps:$4 sm:$0xff]  }
 0x4bb   : > { %9104 = vmatpush1.bf16.msra.mxu1 %v12977_v62  ;;  %9062 = vmatprep.mubr.bf16.mxu1 %v19892_v18  ;;  %v19902_v18 = vld [vmem:[#allocation51_spill] sm:$0xff]  ;;  %v13045_v62 = vld [vmem:[%s19416_s10 + $0xb78] ss:$28 sps:$4 sm:$0xff]  }
 0x4bc   : > { %9494 = vmatprep.mubr.bf16.mxu0 %v19894_v33  ;;  %9105 = vmatprep.subr.bf16.mxu1 %v12984_v4  ;;  %v13017_v4 = vld [vmem:[%s19416_s10 + $0xb70] ss:$28 sps:$4 sm:$0xff]  }
 0x4bf   : > { %9106 = vmatpush1.bf16.msra.mxu1 %v12982_v28  ;;  %v13022_v28 = vld [vmem:[%s19416_s10 + $0xbac] ss:$28 sps:$4 sm:$0xff]  }
 0x4c0   : > { %9107 = vmatprep.subr.bf16.mxu1 %v12989_v37  ;;  %v19903_v37 = vld [vmem:[#allocation54_spill] sm:$0xff] }
 0x4c2   : > { %9063 = vmatmul.mubr.bf16.gmra.mrb[152].mxu1 %v19893_v56  ;;  %9495 = vmatmul.mubr.bf16.gmra.mrb[216].mxu0 %v19895_v23  ;;  %v5612_v56 = vld [vmem:[%s19417_s11] sm:$0xff] }
 0x4c3   : > { %9108 = vmatpush1.bf16.msra.mxu1 %v12987_v0  ;;  %9072 = vmatprep.mubr.bf16.mxu1 %v19894_v33  ;;  %v13049_v33 = vld [vmem:[%s19416_s10 + $0xd70] ss:$28 sps:$4 sm:$0xff]  }
 0x4c4   : > { %9535 = vmatprep.mubr.bf16.mxu0 %v19896_v9  ;;  %9109 = vmatprep.subr.bf16.mxu1 %v12994_v30  ;;  %v19904_v0 = vld [vmem:[#allocation3_spill] sm:$0xff] }
 0x4c5   : > { %v18605_v30 = vrot.slane %v5612_v56, %v19904_v0 }
 0x4c7   : > { %9110 = vmatpush1.bf16.msra.mxu1 %v12992_v26 }
 0x4c8   : > { %9111 = vmatprep.subr.bf16.mxu1 %v12999_v25  ;;  %v13020_v25 = vld [vmem:[%s19416_s10 + $0xba8] ss:$28 sps:$4 sm:$0xff]  }
 0x4ca   : > { %9073 = vmatmul.mubr.bf16.gmra.mrb[156].mxu1 %v19895_v23  ;;  %9536 = vmatmul.mubr.bf16.vlgmr.msra.gmra.mrb[220].mxu0 %v19897_v45  ;;  %v19905_v23 = vld [vmem:[#allocation5_spill] sm:$0xff] }
 0x4cb   : > { %9112 = vmatpush1.bf16.msra.mxu1 %v12997_v15  ;;  %9115 = vmatprep.mubr.bf16.mxu1 %v19896_v9  ;;  %v18608_v26 = vrot.slane %v5612_v56, %v19905_v23  ;;  %v13050_v9 = vld [vmem:[%s19416_s10 + $0xbb0] ss:$28 sps:$4 sm:$0xff]  }
 0x4cc   : > { %9543 = vmatprep.mubr.bf16.mxu0 %v19898_v13  ;;  %9113 = vmatprep.subr.bf16.mxu1 %v13002_v14  ;;  %v19906_v15 = vld [vmem:[#allocation4_spill] sm:$0xff] }
 0x4cd   : > { %11582 = vmatpush3.bf16.msra.mxu0 %v13016_v24  ;;  %v18618_v14 = vrot.slane %v5612_v56, %v19906_v15  ;;  %v19907_v24 = vld [vmem:[#allocation6_spill] sm:$0xff] }
 0x4ce   : > { %11583 = vmatprep.subr.bf16.mxu0 %v13023_v48  ;;  %v13054_v48 = vld [vmem:[%s19416_s10 + $0xda8] ss:$28 sps:$4 sm:$0xff]  }
 0x4cf   : > { %9114 = vmatpush1.bf16.msra.mxu1 %v13000_v32  ;;  %v13027_v32 = vld [vmem:[%s19416_s10 + $0xbe4] ss:$28 sps:$4 sm:$0xff]  }
 0x4d0   : > { %9196 = vmatprep.subr.bf16.mxu1 %v13005_v35 }
 0x4d1   : > { %11584 = vmatpush3.bf16.msra.mxu0 %v13024_v1 }
 0x4d2   : > { %9116 = vmatmul.mubr.bf16.vlgmr.msra.gmra.mrb[128].mxu1 %v19897_v45  ;;  %9544 = vmatmul.mubr.bf16.gmra.mrb[224].mxu0 %v19899_v63  ;;  %v18621_v45 = vrot.slane %v5612_v56, %v19907_v24  ;;  %v13028_v56 = vld [vmem:[%s19416_s10 + $0xc18] ss:$28 sps:$4 sm:$0xff]  }
 0x4d3   : > { %9197 = vmatpush1.bf16.msra.mxu1 %v13003_v10  ;;  %9125 = vmatprep.mubr.bf16.mxu1 %v19898_v13 }
 0x4d4   : > { %9551 = vmatprep.mubr.bf16.mxu0 %v19900_v43  ;;  %9198 = vmatprep.subr.bf16.mxu1 %v13008_v7 }
 0x4d5   : > { %11585 = vmatprep.subr.bf16.mxu0 %v13031_v16 }
 0x4d6   : > { %11586 = vmatpush3.bf16.msra.mxu0 %v13032_v39 }
 0x4d7   : > { %9199 = vmatpush1.bf16.msra.mxu1 %v13006_v8  ;;  %11587 = vmatprep.subr.bf16.mxu0 %v13039_v6 }
 0x4d8   : > { %9200 = vmatprep.subr.bf16.mxu1 %v13011_v5 }
 0x4da   : > { %9126 = vmatmul.mubr.bf16.gmra.mrb[132].mxu1 %v19899_v63  ;;  %9552 = vmatmul.mubr.bf16.gmra.mrb[228].mxu0 %v19901_v12 }
 0x4db   : > { %9201 = vmatpush1.bf16.msra.mxu1 %v13009_v42  ;;  %9135 = vmatprep.mubr.bf16.mxu1 %v19900_v43  ;;  %v13025_v43 = vld [vmem:[%s19416_s10 + $0xbe0] ss:$28 sps:$4 sm:$0xff]  }
 0x4dc   : > { %9559 = vmatprep.mubr.bf16.mxu0 %v19902_v18  ;;  %9202 = vmatprep.subr.bf16.mxu1 %v13014_v38 }
 0x4dd   : > { %11588 = vmatpush3.bf16.msra.mxu0 %v13040_v29 }
 0x4de   : > { %11589 = vmatprep.subr.bf16.mxu0 %v13044_v17 }
 0x4df   : > { %9203 = vmatpush1.bf16.msra.mxu1 %v13012_v2  ;;  %v13030_v2 = vld [vmem:[%s19416_s10 + $0xc1c] ss:$28 sps:$4 sm:$0xff]  }
 0x4e0   : > { %9204 = vmatprep.subr.bf16.mxu1 %v13019_v20 }
 0x4e1   : > { %11590 = vmatpush3.bf16.msra.mxu0 %v13045_v62 }
 0x4e2   : > { %9136 = vmatmul.mubr.bf16.gmra.mrb[136].mxu1 %v19901_v12  ;;  %9560 = vmatmul.mubr.bf16.gmra.mrb[232].mxu0 %v19903_v37 }
 0x4e3   : > { %9205 = vmatpush1.bf16.msra.mxu1 %v13017_v4  ;;  %9145 = vmatprep.mubr.bf16.mxu1 %v19902_v18 }
 0x4e4   : > { %9567 = vmatprep.mubr.bf16.mxu0 %v17726_v27  ;;  %9206 = vmatprep.subr.bf16.mxu1 %v13022_v28  ;;  %v13055_v28 = vld [vmem:[%s19416_s10 + $0xbe8] ss:$28 sps:$4 sm:$0xff]  }
 0x4e5   : > { %v8326_v13 = vpop.f32.mrb[96].mxu1  ;;  %v8778_v35 = vpop.f32.mrb[128].mxu0  ;;  %11591 = vmatprep.subr.bf16.mxu0 %v13049_v33  ;;  %v13059_v33 = vld [vmem:[%s19416_s10 + $0xde0] ss:$28 sps:$4 sm:$0xff]  }
 0x4e6   : > { %v11789_v1 = vadd.f32 %v8326_v13, %v18605_v30  ;;  %v11821_v10 = vadd.f32 %v8778_v35, %v18608_v26  ;;  %v8328_v7 = vpop.f32.mrb[97].mxu1  ;;  %v8780_v16 = vpop.f32.mrb[129].mxu0  ;;  %11592 = vmatpush3.bf16.msra.mxu0 %v13050_v9  ;;  %v13035_v35 = vld [vmem:[%s19416_s10 + $0xc54] ss:$28 sps:$4 sm:$0xff]  }
 0x4e7   : > { %v11790_v63 = vadd.f32 %v8328_v7, %v18618_v14  ;;  %v11822_v39 = vadd.f32 %v8780_v16, %v18621_v45  ;;  %9207 = vmatpush1.bf16.msra.mxu1 %v13020_v25  ;;  %v8330_v8 = vpop.f32.mrb[98].mxu1  ;;  %v8782_v6 = vpop.f32.mrb[130].mxu0  ;;  %11593 = vmatprep.subr.bf16.mxu0 %v13054_v48  ;;  %v13060_v7 = vld [vmem:[%s19416_s10 + $0xc20] ss:$28 sps:$4 sm:$0xff]  }
 0x4e8   : > { %v9697_v5 = vsub.f32 0.0, %v11789_v1  ;;  %v9699_v42 = vsub.f32 0.0, %v11821_v10  ;;  %v11791_v38 = vadd.f32 %v8330_v8, %v18605_v30  ;;  %v11823_v29 = vadd.f32 %v8782_v6, %v18608_v26  ;;  %v8332_v12 = vpop.f32.mrb[99].mxu1  ;;  %v8784_v17 = vpop.f32.mrb[131].mxu0  ;;  %9208 = vmatprep.subr.bf16.mxu1 %v13027_v32 }
 0x4e9   : > { %v9698_v18 = vsub.f32 0.0, %v11790_v63  ;;  %v9700_v20 = vsub.f32 0.0, %v11822_v39  ;;  %v11792_v62 = vadd.f32 %v8332_v12, %v18618_v14  ;;  %v11824_v4 = vadd.f32 %v8784_v17, %v18621_v45 }
 0x4ea   : > { %v9809_v0 = vmul.f32 1.442695, %v9697_v5  ;;  %v9813_v23 = vmul.f32 1.442695, %v9699_v42  ;;  %v9704_v9 = vsub.f32 0.0, %v11791_v38  ;;  %v9706_v25 = vsub.f32 0.0, %v11823_v29  ;;  %9146 = vmatmul.mubr.bf16.gmra.mrb[140].mxu1 %v19903_v37  ;;  %9568 = vmatmul.mubr.bf16.gmra.mrb[236].mxu0 %v17745_v50 }
 0x4eb   : > { %v9811_v15 = vmul.f32 1.442695, %v9698_v18  ;;  %v9815_v24 = vmul.f32 1.442695, %v9700_v20  ;;  %v9705_v48 = vsub.f32 0.0, %v11792_v62  ;;  %v9707_v32 = vsub.f32 0.0, %v11824_v4  ;;  %9209 = vmatpush1.bf16.msra.mxu1 %v13025_v43  ;;  %9155 = vmatprep.mubr.bf16.mxu1 %v17726_v27 }
 0x4ec   : > { %13067 = vpow2.f32 %v9809_v0  ;;  %v9823_v13 = vmul.f32 1.442695, %v9704_v9  ;;  %9575 = vmatprep.mubr.bf16.mxu0 %v17809_v58  ;;  %9210 = vmatprep.subr.bf16.mxu1 %v13030_v2  ;;  %v9827_v37 = vmul.f32 1.442695, %v9706_v25  ;;  %v13033_v29 = vld [vmem:[%s19416_s10 + $0xc50] ss:$28 sps:$4 sm:$0xff]  }
 0x4ed   : > { %13069 = vpow2.f32 %v9813_v23  ;;  %v8336_v1 = vpop.f32.mrb[100].mxu1  ;;  %v8788_v10 = vpop.f32.mrb[132].mxu0  ;;  %11594 = vmatpush3.bf16.msra.mxu0 %v13055_v28  ;;  %v9825_v27 = vmul.f32 1.442695, %v9705_v48  ;;  %v9829_v6 = vmul.f32 1.442695, %v9707_v32 }
 0x4ee   : > { %13071 = vpow2.f32 %v9811_v15  ;;  %v11793_v16 = vadd.f32 %v8336_v1, %v18605_v30  ;;  %v11825_v63 = vadd.f32 %v8788_v10, %v18608_v26  ;;  %v8338_v39 = vpop.f32.mrb[101].mxu1  ;;  %v8790_v8 = vpop.f32.mrb[133].mxu0  ;;  %11595 = vmatprep.subr.bf16.mxu0 %v13059_v33  ;;  %v13038_v62 = vld [vmem:[%s19416_s10 + $0xc8c] ss:$28 sps:$4 sm:$0xff]  }
 0x4ef   : > { %13073 = vpow2.f32 %v9815_v24  ;;  %v11794_v43 = vadd.f32 %v8338_v39, %v18618_v14  ;;  %v11826_v5 = vadd.f32 %v8790_v8, %v18621_v45  ;;  %9211 = vmatpush1.bf16.msra.mxu1 %v13028_v56  ;;  %v8340_v42 = vpop.f32.mrb[102].mxu1  ;;  %v8792_v38 = vpop.f32.mrb[134].mxu0  ;;  %v13036_v25 = vld [vmem:[%s19416_s10 + $0xc88] ss:$28 sps:$4 sm:$0xff]  }
 0x4f0   : > { %13075 = vpow2.f32 %v9823_v13  ;;  %v9711_v12 = vsub.f32 0.0, %v11793_v16  ;;  %v9713_v17 = vsub.f32 0.0, %v11825_v63  ;;  %v11795_v2 = vadd.f32 %v8340_v42, %v18605_v30  ;;  %v8342_v18 = vpop.f32.mrb[103].mxu1  ;;  %v8794_v20 = vpop.f32.mrb[135].mxu0  ;;  %9212 = vmatprep.subr.bf16.mxu1 %v13035_v35 }
 0x4f1   : > { %13077 = vpow2.f32 %v9827_v37  ;;  %v9712_v4 = vsub.f32 0.0, %v11794_v43  ;;  %v9714_v56 = vsub.f32 0.0, %v11826_v5  ;;  %11596 = vmatpush3.bf16.msra.mxu0 %v13060_v7  ;;  %v11796_v39 = vadd.f32 %v8342_v18, %v18618_v14 }
 0x4f2   : > { %13079 = vpow2.f32 %v9825_v27  ;;  %v9837_v28 = vmul.f32 1.442695, %v9711_v12  ;;  %v9841_v33 = vmul.f32 1.442695, %v9713_v17  ;;  %v9718_v0 = vsub.f32 0.0, %v11795_v2  ;;  %9156 = vmatmul.mubr.bf16.gmra.mrb[144].mxu1 %v17745_v50  ;;  %9576 = vmatmul.mubr.bf16.gmra.mrb[240].mxu0 %v17816_v36 }
 0x4f3   : > { %13081 = vpow2.f32 %v9829_v6  ;;  %v9839_v23 = vmul.f32 1.442695, %v9712_v4  ;;  %v9843_v9 = vmul.f32 1.442695, %v9714_v56  ;;  %9213 = vmatpush1.bf16.msra.mxu1 %v13033_v29  ;;  %9165 = vmatprep.mubr.bf16.mxu1 %v17809_v58  ;;  %v13043_v50 = vld [vmem:[%s19416_s10 + $0xcc4] ss:$28 sps:$4 sm:$0xff]   ;;  %v11827_v58 = vadd.f32 %v8792_v38, %v18608_v26 }
 0x4f4   : > { %13083 = vpow2.f32 %v9837_v28  ;;  %v9851_v15 = vmul.f32 1.442695, %v9718_v0  ;;  %9583 = vmatprep.mubr.bf16.mxu0 %v17887_v57  ;;  %9214 = vmatprep.subr.bf16.mxu1 %v13038_v62  ;;  %v13041_v27 = vld [vmem:[%s19416_s10 + $0xcc0] ss:$28 sps:$4 sm:$0xff]   ;;  %v18705_v18 = vadd.f32 %v8794_v20, %v18621_v45  ;;  %v13046_v62 = vld [vmem:[%s19416_s10 + $0xcf8] ss:$28 sps:$4 sm:$0xff]  }
 0x4f5   : > { %13085 = vpow2.f32 %v9841_v33  ;;  %v8346_v24 = vpop.f32.mrb[104].mxu1  ;;  %v8798_v48 = vpop.f32.mrb[136].mxu0  ;;  %v13048_v6 = vld [vmem:[%s19416_s10 + $0xcfc] ss:$28 sps:$4 sm:$0xff]   ;;  %v9720_v12 = vsub.f32 0.0, %v11827_v58 }
 0x4f6   : > { %v13068_v32 = vpop.eup %13067  ;;  %13087 = vpow2.f32 %v9839_v23  ;;  %v8348_v13 = vpop.f32.mrb[105].mxu1  ;;  %v13053_v28 = vld [vmem:[%s19416_s10 + $0xd34] ss:$28 sps:$4 sm:$0xff]  }
 0x4f7   : > { %v18685_v35 = vpop.f32.mrb[137].mxu0  ;;  %v13070_v37 = vpop.eup %13069  ;;  %v10033_v1 = vadd.f32 1.0, %v13068_v32  ;;  %13089 = vpow2.f32 %v9843_v9  ;;  %9215 = vmatpush1.bf16.msra.mxu1 %v13036_v25  ;;  %v13051_v9 = vld [vmem:[%s19416_s10 + $0xd30] ss:$28 sps:$4 sm:$0xff]   ;;  %v11829_v32 = vadd.f32 %v8798_v48, %v18608_v26 }
 0x4f8   : > { %v18687_v10 = vpop.f32.mrb[106].mxu1  ;;  %v18689_v7 = vpop.f32.mrb[138].mxu0  ;;  %v10035_v63 = vadd.f32 1.0, %v13070_v37  ;;  %13091 = vpow2.f32 %v9851_v15  ;;  %9216 = vmatprep.subr.bf16.mxu1 %v13043_v50  ;;  %v9855_v50 = vmul.f32 1.442695, %v9720_v12 }
 0x4f9   : > { %v13072_v16 = vpop.eup %13071  ;;  %v18695_v8 = vpop.f32.mrb[107].mxu1  ;;  %13093 = vrcp.f32 %v10033_v1  ;;  %v13058_v48 = vld [vmem:[%s19416_s10 + $0xd6c] ss:$28 sps:$4 sm:$0xff]  }
 0x4fa   : > { %v13074_v43 = vpop.eup %13073  ;;  %v10034_v5 = vadd.f32 1.0, %v13072_v16  ;;  %v18700_v42 = vpop.f32.mrb[139].mxu0  ;;  %13095 = vrcp.f32 %v10035_v63  ;;  %9166 = vmatmul.mubr.bf16.gmra.mrb[148].mxu1 %v17816_v36  ;;  %9584 = vmatmul.mubr.bf16.gmra.mrb[244].mxu0 %v17894_v52  ;;  %v9719_v36 = vsub.f32 0.0, %v11796_v39  ;;  %v11798_v16 = vadd.f32 %v8348_v13, %v18618_v14 }
 0x4fb   : > { %v13076_v38 = vpop.eup %13075  ;;  %v10036_v29 = vadd.f32 1.0, %v13074_v43  ;;  %9217 = vmatpush1.bf16.msra.mxu1 %v13041_v27  ;;  %9175 = vmatprep.mubr.bf16.mxu1 %v17887_v57  ;;  %v11797_v57 = vadd.f32 %v8346_v24, %v18605_v30  ;;  %v9721_v27 = vsub.f32 0.0, %v18705_v18  ;;  %v11799_v18 = vadd.f32 %v18687_v10, %v18605_v30 }
 0x4fc   : > { %v13078_v17 = vpop.eup %13077  ;;  %13097 = vrcp.f32 %v10034_v5  ;;  %v10040_v2 = vadd.f32 1.0, %v13076_v38  ;;  %9591 = vmatprep.mubr.bf16.mxu0 %v17918_v3  ;;  %9218 = vmatprep.subr.bf16.mxu1 %v13048_v6  ;;  %v9853_v5 = vmul.f32 1.442695, %v9719_v36  ;;  %v11830_v38 = vadd.f32 %v18685_v35, %v18621_v45 }
 0x4fd   : > { %v13080_v4 = vpop.eup %13079  ;;  %13099 = vrcp.f32 %v10036_v29  ;;  %v10042_v56 = vadd.f32 1.0, %v13078_v17  ;;  %v8356_v0 = vpop.f32.mrb[108].mxu1  ;;  %v11800_v10 = vadd.f32 %v18695_v8, %v18618_v14 }
 0x4fe   : > { %v13082_v20 = vpop.eup %13081  ;;  %13101 = vrcp.f32 %v10040_v2  ;;  %v10041_v33 = vadd.f32 1.0, %v13080_v4  ;;  %v18717_v23 = vpop.f32.mrb[140].mxu0  ;;  %v9725_v2 = vsub.f32 0.0, %v11797_v57  ;;  %v9727_v4 = vsub.f32 0.0, %v11829_v32 }
 0x4ff   : > { %v13084_v25 = vpop.eup %13083  ;;  %13103 = vrcp.f32 %v10042_v56  ;;  %v10043_v15 = vadd.f32 1.0, %v13082_v20  ;;  %v18723_v58 = vpop.f32.mrb[109].mxu1  ;;  %9219 = vmatpush1.bf16.msra.mxu1 %v13046_v62  ;;  %v11831_v56 = vadd.f32 %v18689_v7, %v18608_v26  ;;  %v9726_v20 = vsub.f32 0.0, %v11798_v16 }
 0x500   : > { %v18725_v37 = vpop.f32.mrb[141].mxu0  ;;  %v13086_v1 = vpop.eup %13085  ;;  %13105 = vrcp.f32 %v10041_v33  ;;  %v10047_v24 = vadd.f32 1.0, %v13084_v25  ;;  %9220 = vmatprep.subr.bf16.mxu1 %v13053_v28  ;;  %v13056_v33 = vld [vmem:[%s19416_s10 + $0xd68] ss:$28 sps:$4 sm:$0xff]   ;;  %v9728_v57 = vsub.f32 0.0, %v11830_v38  ;;  %v11832_v25 = vadd.f32 %v18700_v42, %v18621_v45 }
 0x501   : > { %v18729_v63 = vpop.f32.mrb[110].mxu1  ;;  %v18731_v39 = vpop.f32.mrb[142].mxu0  ;;  %13107 = vrcp.f32 %v10043_v15  ;;  %v10049_v43 = vadd.f32 1.0, %v13086_v1  ;;  %v9732_v15 = vsub.f32 0.0, %v11799_v18  ;;  %v11801_v32 = vadd.f32 %v8356_v0, %v18605_v30 }
 0x502   : > { %v13088_v6 = vpop.eup %13087  ;;  %v18738_v29 = vpop.f32.mrb[111].mxu1  ;;  %13109 = vrcp.f32 %v10047_v24  ;;  %9176 = vmatmul.mubr.bf16.gmra.mrb[152].mxu1 %v17894_v52  ;;  %9592 = vmatmul.mubr.bf16.gmra.mrb[248].mxu0 %v17909_v21  ;;  %v9857_v52 = vmul.f32 1.442695, %v9721_v27  ;;  %v9869_v27 = vmul.f32 1.442695, %v9727_v4  ;;  %v9734_v16 = vsub.f32 0.0, %v11831_v56 }
 0x503   : > { %v18740_v12 = vpop.f32.mrb[143].mxu0  ;;  %v13090_v13 = vpop.eup %13089  ;;  %v10048_v17 = vadd.f32 1.0, %v13088_v6  ;;  %13111 = vrcp.f32 %v10049_v43  ;;  %9221 = vmatpush1.bf16.msra.mxu1 %v13051_v9  ;;  %9185 = vmatprep.mubr.bf16.mxu1 %v17918_v3  ;;  %v13063_v3 = vld [vmem:[%s19416_s10 + $0xda4] ss:$28 sps:$4 sm:$0xff]   ;;  %v9865_v9 = vmul.f32 1.442695, %v9725_v2 }
 0x504   : > { %v13092_v62 = vpop.eup %13091  ;;  %v10050_v35 = vadd.f32 1.0, %v13090_v13  ;;  %9632 = vmatprep.mubr.bf16.mxu0 %v17916_v41  ;;  %9222 = vmatprep.subr.bf16.mxu1 %v13058_v48  ;;  %v11833_v48 = vadd.f32 %v18717_v23, %v18608_v26  ;;  %v9867_v0 = vmul.f32 1.442695, %v9726_v20  ;;  %v9733_v13 = vsub.f32 0.0, %v11800_v10 }
 0x505   : > { %v13094_v36 = vpop.eup %13093  ;;  %13113 = vrcp.f32 %v10048_v17  ;;  %v10054_v28 = vadd.f32 1.0, %v13092_v62  ;;  %v18770_v1 = vpop.f32.mrb[112].mxu1  ;;  %v9871_v23 = vmul.f32 1.442695, %v9728_v57  ;;  %v9735_v18 = vsub.f32 0.0, %v11832_v25 }
 0x506   : > { %v13096_v7 = vpop.eup %13095  ;;  %10369 = vst [vmem:[%s18747_s16] sm:$0xff] %v13094_v36  ;;  %13115 = vrcp.f32 %v10050_v35  ;;  %v18772_v24 = vpop.f32.mrb[144].mxu0  ;;  %v9879_v4 = vmul.f32 1.442695, %v9732_v15  ;;  %v9739_v56 = vsub.f32 0.0, %v11801_v32  ;;  %v9883_v10 = vmul.f32 1.442695, %v9734_v16 }
 0x507   : > { %v13098_v8 = vpop.eup %13097  ;;  %10371 = vst [vmem:[%s18747_s16 + $0x10] sm:$0xff] %v13096_v7  ;;  %13117 = vrcp.f32 %v10054_v28  ;;  %v18777_v6 = vpop.f32.mrb[113].mxu1  ;;  %9223 = vmatpush1.bf16.msra.mxu1 %v13056_v33  ;;  %v9741_v33 = vsub.f32 0.0, %v11833_v48  ;;  %v13064_v57 = vld [vmem:[%s19416_s10 + $0xdd8] ss:$28 sps:$4 sm:$0xff]  }
 0x508   : > { %v13100_v42 = vpop.eup %13099  ;;  %10370 = vst [vmem:[%s18747_s16 + $0x8] sm:$0xff] %v13098_v8  ;;  %13119 = vpow2.f32 %v9855_v50  ;;  %v18779_v43 = vpop.f32.mrb[145].mxu0  ;;  %v13061_v50 = vld [vmem:[%s19416_s10 + $0xda0] ss:$28 sps:$4 sm:$0xff]   ;;  %9224 = vmatprep.subr.bf16.mxu1 %v13063_v3  ;;  %v9893_v8 = vmul.f32 1.442695, %v9739_v56  ;;  %v11834_v56 = vadd.f32 %v18725_v37, %v18621_v45  ;;  %v18843_v37 = vadd.f32 %v18729_v63, %v18605_v30 }
 0x509   : > { %v13102_v38 = vpop.eup %13101  ;;  %10372 = vst [vmem:[%s18747_s16 + $0x18] sm:$0xff] %v13100_v42  ;;  %13121 = vpow2.f32 %v9853_v5  ;;  %v18782_v17 = vpop.f32.mrb[114].mxu1  ;;  %v13066_v5 = vld [vmem:[%s19416_s10 + $0xddc] ss:$28 sps:$4 sm:$0xff]   ;;  %v9897_v15 = vmul.f32 1.442695, %v9741_v33 }
 0x50a   : > { %v13104_v2 = vpop.eup %13103  ;;  %10376 = vst [vmem:[%s18747_s16 + $0x38] sm:$0xff] %v13102_v38  ;;  %13123 = vpow2.f32 %v9857_v52  ;;  %v18788_v62 = vpop.f32.mrb[146].mxu0  ;;  %9186 = vmatmul.mubr.bf16.gmra.mrb[156].mxu1 %v17909_v21  ;;  %9633 = vmatmul.mubr.bf16.vlgmr.msra.gmra.mrb[252].mxu0 %v19863_v49  ;;  %v9881_v52 = vmul.f32 1.442695, %v9733_v13  ;;  %v9885_v21 = vmul.f32 1.442695, %v9735_v18 }
 0x50b   : > { %v13106_v35 = vpop.eup %13105  ;;  %10378 = vst [vmem:[%s18747_s16 + $0x48] sm:$0xff] %v13104_v2  ;;  %13125 = vpow2.f32 %v9865_v9  ;;  %v18794_v36 = vpop.f32.mrb[115].mxu1  ;;  %9225 = vmatpush1.bf16.msra.mxu1 %v13061_v50  ;;  %9228 = vmatprep.mubr.bf16.mxu1 %v17916_v41  ;;  %v13520_v13 = vld [vmem:[%s19416_s10 + $0x1d8] ss:$28 sps:$4 sm:$0xff]   ;;  %v9742_v63 = vsub.f32 0.0, %v11834_v56  ;;  %v9746_v56 = vsub.f32 0.0, %v18843_v37 }
 0x50c   : > { %v18796_v28 = vpop.f32.mrb[147].mxu0  ;;  %v13108_v20 = vpop.eup %13107  ;;  %10377 = vst [vmem:[%s18747_s16 + $0x40] sm:$0xff] %v13106_v35  ;;  %13127 = vpow2.f32 %v9869_v27  ;;  %9640 = vmatprep.mubr.bf16.mxu0 %v17922_v51  ;;  %9226 = vmatprep.subr.bf16.mxu1 %v13066_v5 }
 0x50d   : > { %v13110_v7 = vpop.eup %13109  ;;  %10379 = vst [vmem:[%s18747_s16 + $0x50] sm:$0xff] %v13108_v20  ;;  %13129 = vpow2.f32 %v9867_v0  ;;  %v18809_v9 = vpop.f32.mrb[116].mxu1 }
 0x50e   : > { %v13112_v25 = vpop.eup %13111  ;;  %10383 = vst [vmem:[%s18747_s16 + $0x70] sm:$0xff] %v13110_v7  ;;  %13131 = vpow2.f32 %v9871_v23  ;;  %v18812_v32 = vpop.f32.mrb[148].mxu0  ;;  %v11802_v23 = vadd.f32 %v18723_v58, %v18618_v14  ;;  %v13521_v58 = vld [vmem:[%s19416_s10 + $0x18] ss:$28 sps:$4 sm:$0xff]  }
 0x50f   : > { %v13114_v3 = vpop.eup %13113  ;;  %10385 = vst [vmem:[%s18747_s16 + $0x80] sm:$0xff] %v13112_v25  ;;  %13133 = vpow2.f32 %v9879_v4  ;;  %v18815_v27 = vpop.f32.mrb[117].mxu1  ;;  %9227 = vmatpush1.bf16.msra.mxu1 %v13064_v57 }
 0x510   : > { %v13116_v41 = vpop.eup %13115  ;;  %10384 = vst [vmem:[%s18747_s16 + $0x78] sm:$0xff] %v13114_v3  ;;  %13135 = vpow2.f32 %v9883_v10  ;;  %v18817_v16 = vpop.f32.mrb[149].mxu0  ;;  %11645 = vmatprep.subr.bf16.mxu1 %v13520_v13  ;;  %v9740_v25 = vsub.f32 0.0, %v11802_v23  ;;  %v11835_v13 = vadd.f32 %v18731_v39, %v18608_v26  ;;  %v13523_v23 = vld [vmem:[%s19416_s10 + $0x50] ss:$28 sps:$4 sm:$0xff]  }
 0x511   : > { %v13118_v42 = vpop.eup %13117  ;;  %10386 = vst [vmem:[%s18747_s16 + $0x88] sm:$0xff] %v13116_v41  ;;  %13137 = vpow2.f32 %v9881_v52  ;;  %v18820_v38 = vpop.f32.mrb[118].mxu1 }
 0x512   : > { %v13120_v48 = vpop.eup %13119  ;;  %10390 = vst [vmem:[%s18747_s16 + $0xa8] sm:$0xff] %v13118_v42  ;;  %13139 = vpow2.f32 %v9885_v21  ;;  %v18822_v0 = vpop.f32.mrb[150].mxu0  ;;  %9229 = vmatmul.mubr.bf16.vlgmr.msra.gmra.mrb[128].mxu1 %v19863_v49  ;;  %9641 = vmatmul.mubr.bf16.gmra.mrb[0].mxu0 %v17926_v47  ;;  %v13522_v49 = vld [vmem:[%s19416_s10 + $0x210] ss:$28 sps:$4 sm:$0xff]  }
 0x513   : > { %v13122_v50 = vpop.eup %13121  ;;  %v10056_v2 = vadd.f32 1.0, %v13120_v48  ;;  %13141 = vpow2.f32 %v9893_v8  ;;  %v18829_v18 = vpop.f32.mrb[119].mxu1  ;;  %11653 = vmatpush3.bf16.msra.mxu1 %v13521_v58  ;;  %9238 = vmatprep.mubr.bf16.mxu1 %v17922_v51  ;;  %v13524_v58 = vld [vmem:[%s19416_s10 + $0x248] ss:$28 sps:$4 sm:$0xff]  }
 0x514   : > { %v18831_v5 = vpop.f32.mrb[151].mxu0  ;;  %v13124_v35 = vpop.eup %13123  ;;  %v10055_v4 = vadd.f32 1.0, %v13122_v50  ;;  %13143 = vpow2.f32 %v9897_v15  ;;  %9648 = vmatprep.mubr.bf16.mxu0 %v17936_v54  ;;  %11646 = vmatprep.subr.bf16.mxu1 %v13522_v49  ;;  %v9895_v49 = vmul.f32 1.442695, %v9740_v25  ;;  %v11837_v25 = vadd.f32 %v18772_v24, %v18608_v26 }
 0x515   : > { %v13126_v20 = vpop.eup %13125  ;;  %13145 = vrcp.f32 %v10056_v2  ;;  %v10057_v10 = vadd.f32 1.0, %v13124_v35  ;;  %v18849_v21 = vpop.f32.mrb[120].mxu1 }
 0x516   : > { %v13128_v33 = vpop.eup %13127  ;;  %13147 = vrcp.f32 %v10055_v4  ;;  %v10061_v7 = vadd.f32 1.0, %v13126_v20  ;;  %v18851_v51 = vpop.f32.mrb[152].mxu0  ;;  %v11804_v20 = vadd.f32 %v18738_v29, %v18618_v14  ;;  %v9899_v29 = vmul.f32 1.442695, %v9742_v63 }
 0x517   : > { %v13130_v52 = vpop.eup %13129  ;;  %13149 = vrcp.f32 %v10057_v10  ;;  %v10063_v57 = vadd.f32 1.0, %v13128_v33  ;;  %v18853_v41 = vpop.f32.mrb[121].mxu1  ;;  %11654 = vmatpush3.bf16.msra.mxu1 %v13523_v23  ;;  %v13525_v23 = vld [vmem:[%s19416_s10 + $0x88] ss:$28 sps:$4 sm:$0xff]  }
 0x518   : > { %v13132_v3 = vpop.eup %13131  ;;  %13151 = vrcp.f32 %v10061_v7  ;;  %v10062_v8 = vadd.f32 1.0, %v13130_v52  ;;  %v18855_v15 = vpop.f32.mrb[153].mxu0  ;;  %11647 = vmatprep.subr.bf16.mxu1 %v13524_v58  ;;  %v11836_v52 = vadd.f32 %v18740_v12, %v18621_v45 }
 0x519   : > { %v13134_v42 = vpop.eup %13133  ;;  %13153 = vrcp.f32 %v10063_v57  ;;  %v10064_v48 = vadd.f32 1.0, %v13132_v3  ;;  %v18859_v50 = vpop.f32.mrb[122].mxu1  ;;  %v11805_v3 = vadd.f32 %v18770_v1, %v18605_v30  ;;  %v9747_v1 = vsub.f32 0.0, %v11804_v20 }
 0x51a   : > { %v18861_v2 = vpop.f32.mrb[154].mxu0  ;;  %v13136_v35 = vpop.eup %13135  ;;  %13155 = vrcp.f32 %v10062_v8  ;;  %v10068_v4 = vadd.f32 1.0, %v13134_v42  ;;  %9239 = vmatmul.mubr.bf16.gmra.mrb[132].mxu1 %v17926_v47  ;;  %9649 = vmatmul.mubr.bf16.gmra.mrb[4].mxu0 %v17940_v11  ;;  %v11806_v47 = vadd.f32 %v18777_v6, %v18618_v14  ;;  %v13526_v6 = vld [vmem:[%s19416_s10 + $0x280] ss:$28 sps:$4 sm:$0xff]  }
 0x51b   : > { %v18869_v10 = vpop.f32.mrb[123].mxu1  ;;  %v18871_v39 = vpop.f32.mrb[155].mxu0  ;;  %13157 = vrcp.f32 %v10064_v48  ;;  %v10070_v7 = vadd.f32 1.0, %v13136_v35  ;;  %v9748_v48 = vsub.f32 0.0, %v11835_v13  ;;  %9248 = vmatprep.mubr.bf16.mxu1 %v17936_v54  ;;  %9656 = vmatprep.mubr.bf16.mxu0 %v17944_v19  ;;  %v9749_v54 = vsub.f32 0.0, %v11836_v52 }
 0x51c   : > { %v13138_v33 = vpop.eup %13137  ;;  %13159 = vrcp.f32 %v10068_v4  ;;  %11655 = vmatpush3.bf16.msra.mxu1 %v13525_v23  ;;  %v11838_v35 = vadd.f32 %v18779_v43, %v18621_v45  ;;  %v11807_v52 = vadd.f32 %v18782_v17, %v18605_v30  ;;  %v9909_v17 = vmul.f32 1.442695, %v9747_v1  ;;  %v13528_v1 = vld [vmem:[%s19416_s10 + $0x2b8] ss:$28 sps:$4 sm:$0xff]  }
 0x51d   : > { %v13140_v37 = vpop.eup %13139  ;;  %v10069_v57 = vadd.f32 1.0, %v13138_v33  ;;  %13161 = vrcp.f32 %v10070_v7  ;;  %v18893_v4 = vpop.f32.mrb[124].mxu1  ;;  %11648 = vmatprep.subr.bf16.mxu1 %v13526_v6  ;;  %v9907_v33 = vmul.f32 1.442695, %v9746_v56  ;;  %v9753_v7 = vsub.f32 0.0, %v11805_v3 }
 0x51e   : > { %v13142_v8 = vpop.eup %13141  ;;  %v10071_v42 = vadd.f32 1.0, %v13140_v37  ;;  %v18895_v58 = vpop.f32.mrb[156].mxu0  ;;  %v9756_v6 = vsub.f32 0.0, %v11838_v35 }
 0x51f   : > { %v13144_v12 = vpop.eup %13143  ;;  %13163 = vrcp.f32 %v10069_v57  ;;  %v10075_v63 = vadd.f32 1.0, %v13142_v8  ;;  %v18903_v37 = vpop.f32.mrb[125].mxu1  ;;  %v9911_v8 = vmul.f32 1.442695, %v9748_v48  ;;  %v13527_v48 = vld [vmem:[%s19416_s10 + $0xc0] ss:$28 sps:$4 sm:$0xff]  }
 0x520   : > { %v13146_v13 = vpop.eup %13145  ;;  %13165 = vrcp.f32 %v10071_v42  ;;  %v10077_v24 = vadd.f32 1.0, %v13144_v12  ;;  %v18905_v43 = vpop.f32.mrb[157].mxu0  ;;  %v9755_v42 = vsub.f32 0.0, %v11837_v25  ;;  %v11839_v12 = vadd.f32 %v18788_v62, %v18608_v26  ;;  %11656 = vmatpush3.bf16.msra.mxu1 %v13527_v48 }
 0x521   : > { %v13148_v20 = vpop.eup %13147  ;;  %10392 = vst [vmem:[%s18747_s16 + $0xb8] sm:$0xff] %v13146_v13  ;;  %13167 = vrcp.f32 %v10075_v63  ;;  %v18910_v23 = vpop.f32.mrb[126].mxu1  ;;  %v9754_v63 = vsub.f32 0.0, %v11806_v47  ;;  %v11808_v13 = vadd.f32 %v18794_v36, %v18618_v14  ;;  %v9913_v25 = vmul.f32 1.442695, %v9749_v54  ;;  %11649 = vmatprep.subr.bf16.mxu1 %v13528_v1 }
 0x522   : > { %v13150_v57 = vpop.eup %13149  ;;  %10391 = vst [vmem:[%s18747_s16 + $0xb0] sm:$0xff] %v13148_v20  ;;  %13169 = vrcp.f32 %v10077_v24  ;;  %v18912_v56 = vpop.f32.mrb[158].mxu0  ;;  %v9921_v47 = vmul.f32 1.442695, %v9753_v7  ;;  %v9760_v20 = vsub.f32 0.0, %v11807_v52  ;;  %9249 = vmatmul.mubr.bf16.gmra.mrb[136].mxu1 %v17940_v11  ;;  %9657 = vmatmul.mubr.bf16.gmra.mrb[8].mxu0 %v17955_v34  ;;  %v9762_v35 = vsub.f32 0.0, %v11839_v12 }
 0x523   : > { %v13152_v3 = vpop.eup %13151  ;;  %10393 = vst [vmem:[%s18747_s16 + $0xc0] sm:$0xff] %v13150_v57  ;;  %13171 = vpow2.f32 %v9895_v49  ;;  %v18917_v24 = vpop.f32.mrb[127].mxu1  ;;  %v9925_v54 = vmul.f32 1.442695, %v9755_v42  ;;  %9258 = vmatprep.mubr.bf16.mxu1 %v17944_v19  ;;  %9664 = vmatprep.mubr.bf16.mxu0 %v17959_v61  ;;  %v9761_v7 = vsub.f32 0.0, %v11808_v13  ;;  %v11840_v48 = vadd.f32 %v18796_v28, %v18621_v45 }
 0x524   : > { %v13154_v62 = vpop.eup %13153  ;;  %10397 = vst [vmem:[%s18747_s16 + $0xe0] sm:$0xff] %v13152_v3  ;;  %13173 = vpow2.f32 %v9899_v29  ;;  %v18923_v49 = vpop.f32.mrb[159].mxu0  ;;  %v13529_v11 = vld [vmem:[%s19416_s10 + $0xf8] ss:$28 sps:$4 sm:$0xff]   ;;  %v13530_v42 = vld [vmem:[%s19416_s10 + $0x2f0] ss:$28 sps:$4 sm:$0xff]  }
 0x525   : > { %v13156_v36 = vpop.eup %13155  ;;  %10399 = vst [vmem:[%s18747_s16 + $0xf0] sm:$0xff] %v13154_v62  ;;  %13175 = vpow2.f32 %v9907_v33  ;;  %v9923_v33 = vmul.f32 1.442695, %v9754_v63  ;;  %11657 = vmatpush3.bf16.msra.mxu1 %v13529_v11  ;;  %v18939_v19 = vpop.f32.mrb[160].mxu0  ;;  %v9935_v3 = vmul.f32 1.442695, %v9760_v20  ;;  %v11841_v11 = vadd.f32 %v18812_v32, %v18608_v26 }
 0x526   : > { %v13158_v29 = vpop.eup %13157  ;;  %10398 = vst [vmem:[%s18747_s16 + $0xe8] sm:$0xff] %v13156_v36  ;;  %13177 = vpow2.f32 %v9911_v8  ;;  %v9927_v8 = vmul.f32 1.442695, %v9756_v6  ;;  %11650 = vmatprep.subr.bf16.mxu1 %v13530_v42  ;;  %v9939_v13 = vmul.f32 1.442695, %v9762_v35 }
 0x527   : > { %v13160_v57 = vpop.eup %13159  ;;  %10400 = vst [vmem:[%s18747_s16 + $0xf8] sm:$0xff] %v13158_v29  ;;  %13179 = vpow2.f32 %v9909_v17  ;;  %v18945_v17 = vpop.f32.mrb[161].mxu0  ;;  %v9937_v6 = vmul.f32 1.442695, %v9761_v7  ;;  %v13531_v36 = vld [vmem:[%s19416_s10 + $0x130] ss:$28 sps:$4 sm:$0xff]   ;;  %v11809_v29 = vadd.f32 %v18809_v9, %v18605_v30  ;;  %v18973_v9 = vadd.f32 %v18815_v27, %v18618_v14 }
 0x528   : > { %v13162_v52 = vpop.eup %13161  ;;  %10404 = vst [vmem:[%s18747_s16 + $0x118] sm:$0xff] %v13160_v57  ;;  %13181 = vpow2.f32 %v9913_v25  ;;  %v18950_v62 = vpop.f32.mrb[162].mxu0  ;;  %v13532_v28 = vld [vmem:[%s19416_s10 + $0x328] ss:$28 sps:$4 sm:$0xff]   ;;  %v9763_v57 = vsub.f32 0.0, %v11840_v48 }
 0x529   : > { %v13164_v12 = vpop.eup %13163  ;;  %10406 = vst [vmem:[%s18747_s16 + $0x128] sm:$0xff] %v13162_v52  ;;  %13183 = vpow2.f32 %v9921_v47  ;;  %v18953_v1 = vpop.f32.mrb[163].mxu0  ;;  %11658 = vmatpush3.bf16.msra.mxu1 %v13531_v36  ;;  %v13534_v32 = vld [vmem:[%s19416_s10 + $0x360] ss:$28 sps:$4 sm:$0xff]  }
 0x52a   : > { %v13166_v63 = vpop.eup %13165  ;;  %10405 = vst [vmem:[%s18747_s16 + $0x120] sm:$0xff] %v13164_v12  ;;  %13185 = vpow2.f32 %v9925_v54  ;;  %11651 = vmatprep.subr.bf16.mxu1 %v13532_v28  ;;  %9259 = vmatmul.mubr.bf16.gmra.mrb[140].mxu1 %v17955_v34  ;;  %v13533_v34 = vld [vmem:[%s19416_s10 + $0x168] ss:$28 sps:$4 sm:$0xff]   ;;  %v9768_v28 = vsub.f32 0.0, %v18973_v9  ;;  %v11811_v9 = vadd.f32 %v18820_v38, %v18605_v30 }
 0x52b   : > { %v13168_v25 = vpop.eup %13167  ;;  %10407 = vst [vmem:[%s18747_s16 + $0x130] sm:$0xff] %v13166_v63  ;;  %13187 = vpow2.f32 %v9923_v33  ;;  %9665 = vmatmul.mubr.bf16.gmra.mrb[12].mxu0 %v17963_v53  ;;  %9268 = vmatprep.mubr.bf16.mxu1 %v17959_v61 }
 0x52c   : > { %v13170_v47 = vpop.eup %13169  ;;  %10411 = vst [vmem:[%s18747_s16 + $0x150] sm:$0xff] %v13168_v25  ;;  %13189 = vpow2.f32 %v9927_v8  ;;  %9672 = vmatprep.mubr.bf16.mxu0 %v17968_v44  ;;  %v18980_v8 = vadd.f32 %v18817_v16, %v18621_v45  ;;  %v18985_v25 = vmul.f32 1.442695, %v9763_v57  ;;  %v18994_v57 = vadd.f32 %v18945_v17, %v18939_v19 }
 0x52d   : > { %v13172_v20 = vpop.eup %13171  ;;  %10413 = vst [vmem:[%s18747_s16 + $0x160] sm:$0xff] %v13170_v47  ;;  %13191 = vpow2.f32 %v9935_v3  ;;  %11659 = vmatpush3.bf16.msra.mxu1 %v13533_v34  ;;  %v11411_v42 = vpop.f32.mrb[164].mxu0  ;;  %v9767_v3 = vsub.f32 0.0, %v11809_v29  ;;  %v9769_v47 = vsub.f32 0.0, %v11841_v11  ;;  %v19004_v19 = vadd.f32 %v18953_v1, %v18950_v62 }
 0x52e   : > { %v13174_v54 = vpop.eup %13173  ;;  %v10076_v35 = vadd.f32 1.0, %v13172_v20  ;;  %13193 = vpow2.f32 %v9939_v13  ;;  %11652 = vmatprep.subr.bf16.mxu1 %v13534_v32  ;;  %v11412_v63 = vpop.f32.mrb[165].mxu0 }
 0x52f   : > { %v13176_v33 = vpop.eup %13175  ;;  %v10078_v7 = vadd.f32 1.0, %v13174_v54  ;;  %13195 = vpow2.f32 %v9937_v6  ;;  %v11414_v6 = vpop.f32.mrb[166].mxu0  ;;  %v13535_v54 = vld [vmem:[%s19416_s10 + $0x1a0] ss:$28 sps:$4 sm:$0xff]   ;;  %v9949_v34 = vmul.f32 1.442695, %v9767_v3 }
 0x530   : > { %v13178_v52 = vpop.eup %13177  ;;  %13197 = vrcp.f32 %v10076_v35  ;;  %v10082_v61 = vadd.f32 1.0, %v13176_v33  ;;  %v11415_v20 = vpop.f32.mrb[167].mxu0  ;;  %v9770_v33 = vsub.f32 0.0, %v18980_v8  ;;  %v11843_v8 = vadd.f32 %v18822_v0, %v18608_v26 }
 0x531   : > { %v13180_v27 = vpop.eup %13179  ;;  %13199 = vrcp.f32 %v10078_v7  ;;  %v10084_v12 = vadd.f32 1.0, %v13178_v52  ;;  %11660 = vmatpush3.bf16.msra.mxu1 %v13535_v54  ;;  %v19010_v32 = vadd.f32 %v11415_v20, %v11414_v6  ;;  %v9953_v3 = vmul.f32 1.442695, %v9769_v47 }
 0x532   : > { %v13182_v13 = vpop.eup %13181  ;;  %13201 = vrcp.f32 %v10082_v61  ;;  %v10083_v48 = vadd.f32 1.0, %v13180_v27  ;;  %9269 = vmatmul.mubr.bf16.gmra.mrb[144].mxu1 %v17963_v53  ;;  %v19008_v53 = vadd.f32 %v11412_v63, %v11411_v42  ;;  %v11812_v0 = vadd.f32 %v18829_v18, %v18618_v14 }
 0x533   : > { %v13184_v36 = vpop.eup %13183  ;;  %13203 = vrcp.f32 %v10084_v12  ;;  %v10085_v16 = vadd.f32 1.0, %v13182_v13  ;;  %9673 = vmatmul.mubr.bf16.gmra.mrb[16].mxu0 %v17972_v31  ;;  %9278 = vmatprep.mubr.bf16.mxu1 %v17968_v44  ;;  %v9774_v13 = vsub.f32 0.0, %v11811_v9  ;;  %v9951_v20 = vmul.f32 1.442695, %v9768_v28 }
 0x534   : > { %v13186_v29 = vpop.eup %13185  ;;  %13205 = vrcp.f32 %v10083_v48  ;;  %v10089_v35 = vadd.f32 1.0, %v13184_v36  ;;  %9680 = vmatprep.mubr.bf16.mxu0 %v17976_v60  ;;  %v11844_v48 = vadd.f32 %v18831_v5, %v18621_v45  ;;  %v11813_v36 = vadd.f32 %v18849_v21, %v18605_v30 }
 0x535   : > { %v13188_v7 = vpop.eup %13187  ;;  %13207 = vrcp.f32 %v10085_v16  ;;  %v10091_v11 = vadd.f32 1.0, %v13186_v29  ;;  %v11417_v62 = vpop.f32.mrb[168].mxu0  ;;  %v9776_v54 = vsub.f32 0.0, %v11843_v8  ;;  %v11845_v5 = vadd.f32 %v18851_v51, %v18608_v26 }
 0x536   : > { %v13190_v52 = vpop.eup %13189  ;;  %13209 = vrcp.f32 %v10089_v35  ;;  %v10090_v61 = vadd.f32 1.0, %v13188_v7  ;;  %v11418_v42 = vpop.f32.mrb[169].mxu0  ;;  %v9775_v7 = vsub.f32 0.0, %v11812_v0  ;;  %v11814_v21 = vadd.f32 %v18853_v41, %v18618_v14 }
 0x537   : > { %v13192_v17 = vpop.eup %13191  ;;  %13211 = vrcp.f32 %v10091_v11  ;;  %v10092_v38 = vadd.f32 1.0, %v13190_v52  ;;  %v19018_v16 = vadd.f32 %v11418_v42, %v11417_v62  ;;  %v11420_v18 = vpop.f32.mrb[170].mxu0  ;;  %v9955_v28 = vmul.f32 1.442695, %v9770_v33 }
 0x538   : > { %v13194_v27 = vpop.eup %13193  ;;  %13213 = vrcp.f32 %v10090_v61  ;;  %v10096_v12 = vadd.f32 1.0, %v13192_v17  ;;  %v11421_v29 = vpop.f32.mrb[171].mxu0  ;;  %v9777_v52 = vsub.f32 0.0, %v11844_v48  ;;  %v11846_v51 = vadd.f32 %v18855_v15, %v18621_v45 }
 0x539   : > { %v13196_v1 = vpop.eup %13195  ;;  %13215 = vrcp.f32 %v10092_v38  ;;  %v10098_v44 = vadd.f32 1.0, %v13194_v27  ;;  %v19026_v11 = vadd.f32 %v11421_v29, %v11420_v18  ;;  %v9963_v41 = vmul.f32 1.442695, %v9774_v13 }
 0x53a   : > { %v13198_v63 = vpop.eup %13197  ;;  %13217 = vrcp.f32 %v10096_v12  ;;  %v10097_v6 = vadd.f32 1.0, %v13196_v1  ;;  %9279 = vmatmul.mubr.bf16.gmra.mrb[148].mxu1 %v17972_v31  ;;  %v9781_v8 = vsub.f32 0.0, %v11813_v36  ;;  %v9967_v15 = vmul.f32 1.442695, %v9776_v54 }
 0x53b   : > { %v13200_v47 = vpop.eup %13199  ;;  %10412 = vst [vmem:[%s18747_s16 + $0x158] sm:$0xff] %v13198_v63  ;;  %13219 = vrcp.f32 %v10098_v44  ;;  %9681 = vmatmul.mubr.bf16.gmra.mrb[20].mxu0 %v17980_v40  ;;  %9288 = vmatprep.mubr.bf16.mxu1 %v17976_v60  ;;  %v9783_v33 = vsub.f32 0.0, %v11845_v5  ;;  %v9965_v31 = vmul.f32 1.442695, %v9775_v7  ;;  %v9782_v38 = vsub.f32 0.0, %v11814_v21 }
 0x53c   : > { %v13202_v35 = vpop.eup %13201  ;;  %10414 = vst [vmem:[%s18747_s16 + $0x168] sm:$0xff] %v13200_v47  ;;  %13221 = vrcp.f32 %v10097_v6  ;;  %9688 = vmatprep.mubr.bf16.mxu0 %v17982_v46  ;;  %v9969_v60 = vmul.f32 1.442695, %v9777_v52  ;;  %v9784_v12 = vsub.f32 0.0, %v11846_v51  ;;  %v11815_v54 = vadd.f32 %v18859_v50, %v18605_v30 }
 0x53d   : > { %v13204_v9 = vpop.eup %13203  ;;  %10418 = vst [vmem:[%s18747_s16 + $0x188] sm:$0xff] %v13202_v35  ;;  %13223 = vpow2.f32 %v18985_v25  ;;  %v9981_v48 = vmul.f32 1.442695, %v9783_v33  ;;  %v9979_v6 = vmul.f32 1.442695, %v9782_v38  ;;  %v11847_v29 = vadd.f32 %v18861_v2, %v18608_v26 }
 0x53e   : > { %v13206_v61 = vpop.eup %13205  ;;  %10420 = vst [vmem:[%s18747_s16 + $0x198] sm:$0xff] %v13204_v9  ;;  %13225 = vpow2.f32 %v9949_v34  ;;  %v11423_v34 = vpop.f32.mrb[172].mxu0  ;;  %v9983_v47 = vmul.f32 1.442695, %v9784_v12  ;;  %v9788_v50 = vsub.f32 0.0, %v11815_v54  ;;  %v11816_v2 = vadd.f32 %v18869_v10, %v18618_v14 }
 0x53f   : > { %v13208_v25 = vpop.eup %13207  ;;  %10419 = vst [vmem:[%s18747_s16 + $0x190] sm:$0xff] %v13206_v61  ;;  %13227 = vpow2.f32 %v9953_v3  ;;  %v11424_v0 = vpop.f32.mrb[173].mxu0  ;;  %v9977_v3 = vmul.f32 1.442695, %v9781_v8  ;;  %v11817_v10 = vadd.f32 %v18893_v4, %v18605_v30  ;;  %v11818_v4 = vadd.f32 %v18903_v37, %v18618_v14 }
 0x540   : > { %v13210_v17 = vpop.eup %13209  ;;  %10421 = vst [vmem:[%s18747_s16 + $0x1a0] sm:$0xff] %v13208_v25  ;;  %13229 = vpow2.f32 %v9951_v20  ;;  %v19041_v1 = vadd.f32 %v11424_v0, %v11423_v34  ;;  %v11426_v44 = vpop.f32.mrb[174].mxu0  ;;  %v9790_v25 = vsub.f32 0.0, %v11847_v29  ;;  %v9991_v0 = vmul.f32 1.442695, %v9788_v50 }
 0x541   : > { %v13212_v27 = vpop.eup %13211  ;;  %10425 = vst [vmem:[%s18747_s16 + $0x1c0] sm:$0xff] %v13210_v17  ;;  %13231 = vpow2.f32 %v9955_v28  ;;  %v11427_v42 = vpop.f32.mrb[175].mxu0  ;;  %v11819_v37 = vadd.f32 %v18910_v23, %v18605_v30 }
 0x542   : > { %v13214_v62 = vpop.eup %13213  ;;  %10427 = vst [vmem:[%s18747_s16 + $0x1d0] sm:$0xff] %v13212_v27  ;;  %13233 = vpow2.f32 %v9963_v41  ;;  %v19045_v36 = vadd.f32 %v11427_v42, %v11426_v44  ;;  %9289 = vmatmul.mubr.bf16.gmra.mrb[152].mxu1 %v17980_v40  ;;  %v11849_v44 = vadd.f32 %v18895_v58, %v18608_v26  ;;  %v9795_v58 = vsub.f32 0.0, %v11817_v10 }
 0x543   : > { %v13216_v13 = vpop.eup %13215  ;;  %10426 = vst [vmem:[%s18747_s16 + $0x1c8] sm:$0xff] %v13214_v62  ;;  %13235 = vpow2.f32 %v9967_v15  ;;  %9689 = vmatmul.mubr.bf16.gmra.mrb[24].mxu0 %v17985_v22  ;;  %9298 = vmatprep.mubr.bf16.mxu1 %v17982_v46 }
 0x544   : > { %v13218_v63 = vpop.eup %13217  ;;  %10428 = vst [vmem:[%s18747_s16 + $0x1d8] sm:$0xff] %v13216_v13  ;;  %13237 = vpow2.f32 %v9965_v31  ;;  %v11848_v31 = vadd.f32 %v18871_v39, %v18621_v45  ;;  %v9995_v39 = vmul.f32 1.442695, %v9790_v25  ;;  %v10005_v25 = vmul.f32 1.442695, %v9795_v58 }
 0x545   : > { %v13220_v18 = vpop.eup %13219  ;;  %10432 = vst [vmem:[%s18747_s16 + $0x1f8] sm:$0xff] %v13218_v63  ;;  %13239 = vpow2.f32 %v9969_v60  ;;  %v11429_v40 = vpop.f32.mrb[176].mxu0 }
 0x546   : > { %v13222_v20 = vpop.eup %13221  ;;  %10434 = vst [vmem:[%s18747_s16 + $0x208] sm:$0xff] %v13220_v18  ;;  %13241 = vpow2.f32 %v9977_v3  ;;  %v11430_v28 = vpop.f32.mrb[177].mxu0  ;;  %v9791_v42 = vsub.f32 0.0, %v11848_v31 }
 0x547   : > { %v13224_v5 = vpop.eup %13223  ;;  %10433 = vst [vmem:[%s18747_s16 + $0x200] sm:$0xff] %v13222_v20  ;;  %13243 = vpow2.f32 %v9981_v48  ;;  %v19057_v61 = vadd.f32 %v11430_v28, %v11429_v40  ;;  %v11432_v46 = vpop.f32.mrb[178].mxu0  ;;  %v9797_v40 = vsub.f32 0.0, %v11849_v44  ;;  %v11851_v28 = vadd.f32 %v18912_v56, %v18608_v26 }
 0x548   : > { %v13226_v35 = vpop.eup %13225  ;;  %v10099_v7 = vadd.f32 1.0, %v13224_v5  ;;  %13245 = vpow2.f32 %v9979_v6  ;;  %v11433_v15 = vpop.f32.mrb[179].mxu0  ;;  %v9997_v23 = vmul.f32 1.442695, %v9791_v42  ;;  %v11852_v56 = vadd.f32 %v18923_v49, %v18621_v45 }
 0x549   : > { %v13228_v21 = vpop.eup %13227  ;;  %v10103_v9 = vadd.f32 1.0, %v13226_v35  ;;  %13247 = vpow2.f32 %v9983_v47  ;;  %v19063_v38 = vadd.f32 %v11433_v15, %v11432_v46  ;;  %v9796_v46 = vsub.f32 0.0, %v11818_v4 }
 0x54a   : > { %v13230_v52 = vpop.eup %13229  ;;  %13249 = vrcp.f32 %v10099_v7  ;;  %v10105_v51 = vadd.f32 1.0, %v13228_v21  ;;  %9299 = vmatmul.mubr.bf16.gmra.mrb[156].mxu1 %v17985_v22  ;;  %v9789_v22 = vsub.f32 0.0, %v11816_v2  ;;  %v9802_v2 = vsub.f32 0.0, %v11819_v37 }
 0x54b   : > { %v13232_v41 = vpop.eup %13231  ;;  %13251 = vrcp.f32 %v10103_v9  ;;  %v10104_v8 = vadd.f32 1.0, %v13230_v52  ;;  %9397 = vmatprep.mubr.bf16.mxu1 %v19878_v55  ;;  %v11850_v55 = vadd.f32 %v18905_v43, %v18621_v45 }
 0x54c   : > { %v13234_v33 = vpop.eup %13233  ;;  %13253 = vrcp.f32 %v10105_v51  ;;  %v10106_v17 = vadd.f32 1.0, %v13232_v41  ;;  %v9993_v50 = vmul.f32 1.442695, %v9789_v22  ;;  %v11820_v41 = vadd.f32 %v18917_v24, %v18618_v14 }
 0x54d   : > { %v13236_v34 = vpop.eup %13235  ;;  %13255 = vrcp.f32 %v10104_v8  ;;  %v10110_v27 = vadd.f32 1.0, %v13234_v33  ;;  %v11435_v63 = vpop.f32.mrb[180].mxu0  ;;  %v9798_v26 = vsub.f32 0.0, %v11850_v55  ;;  %v10009_v14 = vmul.f32 1.442695, %v9797_v40 }
 0x54e   : > { %v13238_v60 = vpop.eup %13237  ;;  %13257 = vrcp.f32 %v10106_v17  ;;  %v10112_v12 = vadd.f32 1.0, %v13236_v34  ;;  %v11436_v47 = vpop.f32.mrb[181].mxu0  ;;  %v10007_v17 = vmul.f32 1.442695, %v9796_v46  ;;  %v9803_v31 = vsub.f32 0.0, %v11820_v41 }
 0x54f   : > { %v13240_v62 = vpop.eup %13239  ;;  %13259 = vrcp.f32 %v10110_v27  ;;  %v10111_v3 = vadd.f32 1.0, %v13238_v60  ;;  %v19075_v5 = vadd.f32 %v11436_v47, %v11435_v63  ;;  %v11438_v29 = vpop.f32.mrb[182].mxu0  ;;  %v10011_v34 = vmul.f32 1.442695, %v9798_v26  ;;  %v19105_v63 = vld [vmem:[%s19417_s11] sm:$0xff] }
 0x550   : > { %v13242_v13 = vpop.eup %13241  ;;  %13261 = vrcp.f32 %v10112_v12  ;;  %v10113_v48 = vadd.f32 1.0, %v13240_v62  ;;  %v11439_v21 = vpop.f32.mrb[183].mxu0  ;;  %v9805_v27 = vsub.f32 0.0, %v11852_v56  ;;  %v10019_v10 = vmul.f32 1.442695, %v9802_v2 }
 0x551   : > { %v13244_v6 = vpop.eup %13243  ;;  %13263 = vrcp.f32 %v10111_v3  ;;  %v10117_v18 = vadd.f32 1.0, %v13242_v13  ;;  %v19081_v52 = vadd.f32 %v11439_v21, %v11438_v29 }
 0x552   : > { %v13246_v20 = vpop.eup %13245  ;;  %13265 = vrcp.f32 %v10113_v48  ;;  %v10119_v54 = vadd.f32 1.0, %v13244_v6  ;;  %9398 = vmatmul.mubr.bf16.vlgmr.msra.gmra.mrb[160].mxu1 %v19880_v59  ;;  %v9804_v59 = vsub.f32 0.0, %v11851_v28  ;;  %v10021_v48 = vmul.f32 1.442695, %v9803_v31  ;;  %v19908_v6 = vld [vmem:[#allocation2_spill] sm:$0xff] }
 0x553   : > { %v13248_v35 = vpop.eup %13247  ;;  %13267 = vrcp.f32 %v10117_v18  ;;  %v10118_v7 = vadd.f32 1.0, %v13246_v20  ;;  %v10025_v42 = vmul.f32 1.442695, %v9805_v27  ;;  %v19909_v18 = vsub.s32 6, %v19908_v6 }
 0x554   : > { %v13250_v9 = vpop.eup %13249  ;;  %13269 = vrcp.f32 %v10119_v54  ;;  %v10120_v43 = vadd.f32 1.0, %v13248_v35 }
 0x555   : > { %v13252_v51 = vpop.eup %13251  ;;  %10435 = vst [vmem:[%s18747_s16 + $0x210] sm:$0xff] %v13250_v9  ;;  %13271 = vrcp.f32 %v10118_v7  ;;  %v11441_v24 = vpop.f32.mrb[184].mxu0  ;;  %v19110_v4 = vrot.slane %v19105_v63, %v19909_v18 }
 0x556   : > { %v13254_v30 = vpop.eup %13253  ;;  %10439 = vst [vmem:[%s18747_s16 + $0x230] sm:$0xff] %v13252_v51  ;;  %13273 = vrcp.f32 %v10120_v43  ;;  %v11442_v45 = vpop.f32.mrb[185].mxu0 }
 0x557   : > { %v13256_v8 = vpop.eup %13255  ;;  %10441 = vst [vmem:[%s18747_s16 + $0x240] sm:$0xff] %v13254_v30  ;;  %13275 = vpow2.f32 %v9991_v0  ;;  %v19094_v60 = vadd.f32 %v11442_v45, %v11441_v24  ;;  %v11444_v12 = vpop.f32.mrb[186].mxu0  ;;  %v9344_v7 = vadd.f32 %v18994_v57, %v19110_v4  ;;  %v9347_v43 = vadd.f32 %v19004_v19, %v19110_v4 }
 0x558   : > { %v13258_v15 = vpop.eup %13257  ;;  %10440 = vst [vmem:[%s18747_s16 + $0x238] sm:$0xff] %v13256_v8  ;;  %13277 = vpow2.f32 %v9995_v39  ;;  %v11445_v62 = vpop.f32.mrb[187].mxu0  ;;  %v10023_v39 = vmul.f32 1.442695, %v9804_v59  ;;  %v9352_v31 = vadd.f32 %v19008_v53, %v19110_v4 }
 0x559   : > { %v13260_v33 = vpop.eup %13259  ;;  %10442 = vst [vmem:[%s18747_s16 + $0x248] sm:$0xff] %v13258_v15  ;;  %13279 = vpow2.f32 %v9993_v50  ;;  %v19098_v44 = vadd.f32 %v11445_v62, %v11444_v12  ;;  %v9355_v12 = vadd.f32 %v19010_v32, %v19110_v4 }
 0x55a   : > { %v13262_v49 = vpop.eup %13261  ;;  %10446 = vst [vmem:[%s18747_s16 + $0x268] sm:$0xff] %v13260_v33  ;;  %13281 = vpow2.f32 %v9997_v23 }
 0x55b   : > { %v13264_v0 = vpop.eup %13263  ;;  %10448 = vst [vmem:[%s18747_s16 + $0x278] sm:$0xff] %v13262_v49  ;;  %13283 = vpow2.f32 %v10005_v25 }
 0x55c   : > { %v13266_v3 = vpop.eup %13265  ;;  %10447 = vst [vmem:[%s18747_s16 + $0x270] sm:$0xff] %v13264_v0  ;;  %13285 = vpow2.f32 %v10009_v14 }
 0x55d   : > { %v13268_v13 = vpop.eup %13267  ;;  %10449 = vst [vmem:[%s18747_s16 + $0x280] sm:$0xff] %v13266_v3  ;;  %13287 = vpow2.f32 %v10007_v17  ;;  %v11469_v20 = vpop.f32.mrb[188].mxu0 }
 0x55e   : > { %v13270_v22 = vpop.eup %13269  ;;  %10453 = vst [vmem:[%s18747_s16 + $0x2a0] sm:$0xff] %v13268_v13  ;;  %13289 = vpow2.f32 %v10011_v34  ;;  %v11470_v58 = vpop.f32.mrb[189].mxu0 }
 0x55f   : > { %v13272_v55 = vpop.eup %13271  ;;  %10455 = vst [vmem:[%s18747_s16 + $0x2b0] sm:$0xff] %v13270_v22  ;;  %13291 = vpow2.f32 %v10019_v10  ;;  %v11471_v40 = vadd.f32 %v11470_v58, %v11469_v20  ;;  %v11472_v37 = vpop.f32.mrb[190].mxu0  ;;  %v9360_v20 = vadd.f32 %v19018_v16, %v19110_v4 }
 0x560   : > { %v13274_v47 = vpop.eup %13273  ;;  %10454 = vst [vmem:[%s18747_s16 + $0x2a8] sm:$0xff] %v13272_v55  ;;  %13293 = vpow2.f32 %v10023_v39  ;;  %v11473_v28 = vpop.f32.mrb[191].mxu0 }
 0x561   : > { %v13276_v54 = vpop.eup %13275  ;;  %10456 = vst [vmem:[%s18747_s16 + $0x2b8] sm:$0xff] %v13274_v47  ;;  %13295 = vpow2.f32 %v10021_v48  ;;  %v19119_v46 = vadd.f32 %v11471_v40, %v9344_v7  ;;  %v11474_v41 = vadd.f32 %v11473_v28, %v11472_v37  ;;  %v9363_v40 = vadd.f32 %v19026_v11, %v19110_v4 }
 0x562   : > { %v13278_v29 = vpop.eup %13277  ;;  %v10124_v35 = vadd.f32 1.0, %v13276_v54  ;;  %13297 = vpow2.f32 %v10025_v42  ;;  %v9368_v11 = vadd.f32 %v19041_v1, %v19110_v4  ;;  %v9379_v1 = vadd.f32 %v19063_v38, %v19110_v4 }
 0x563   : > { %v13280_v21 = vpop.eup %13279  ;;  %v10126_v9 = vadd.f32 1.0, %v13278_v29  ;;  %v19121_v56 = vadd.f32 %v11474_v41, %v9347_v43 }
 0x564   : > { %v13282_v51 = vpop.eup %13281  ;;  %13299 = vrcp.f32 %v10124_v35  ;;  %v10125_v50 = vadd.f32 1.0, %v13280_v21 }
 0x565   : > { %v13284_v30 = vpop.eup %13283  ;;  %13301 = vrcp.f32 %v10126_v9  ;;  %v10127_v23 = vadd.f32 1.0, %v13282_v51  ;;  %v11475_v15 = vpop.f32.mrb[192].mxu0 }
 0x566   : > { %v13286_v26 = vpop.eup %13285  ;;  %13303 = vrcp.f32 %v10125_v50  ;;  %v10131_v57 = vadd.f32 1.0, %v13284_v30  ;;  %v11476_v24 = vpop.f32.mrb[193].mxu0 }
 0x567   : > { %v13288_v8 = vpop.eup %13287  ;;  %13305 = vrcp.f32 %v10127_v23  ;;  %v10133_v25 = vadd.f32 1.0, %v13286_v26  ;;  %v11477_v45 = vadd.f32 %v11476_v24, %v11475_v15  ;;  %v11478_v49 = vpop.f32.mrb[194].mxu0 }
 0x568   : > { %v13290_v2 = vpop.eup %13289  ;;  %13307 = vrcp.f32 %v10131_v57  ;;  %v10132_v19 = vadd.f32 1.0, %v13288_v8  ;;  %v11479_v0 = vpop.f32.mrb[195].mxu0  ;;  %v9371_v8 = vadd.f32 %v19045_v36, %v19110_v4 }
 0x569   : > { %v13292_v14 = vpop.eup %13291  ;;  %13309 = vrcp.f32 %v10133_v25  ;;  %v10134_v59 = vadd.f32 1.0, %v13290_v2  ;;  %v19127_v3 = vadd.f32 %v11477_v45, %v9352_v31  ;;  %v11480_v39 = vadd.f32 %v11479_v0, %v11478_v49 }
 0x56a   : > { %v13294_v33 = vpop.eup %13293  ;;  %13311 = vrcp.f32 %v10132_v19  ;;  %v10138_v17 = vadd.f32 1.0, %v13292_v14 }
 0x56b   : > { %v13296_v34 = vpop.eup %13295  ;;  %13313 = vrcp.f32 %v10134_v59  ;;  %v10140_v27 = vadd.f32 1.0, %v13294_v33  ;;  %v19129_v48 = vadd.f32 %v11480_v39, %v9355_v12  ;;  %v9376_v59 = vadd.f32 %v19057_v61, %v19110_v4 }
 0x56c   : > { %v13298_v10 = vpop.eup %13297  ;;  %13315 = vrcp.f32 %v10138_v17  ;;  %v10139_v62 = vadd.f32 1.0, %v13296_v34  ;;  %v9387_v61 = vadd.f32 %v19081_v52, %v19110_v4 }
 0x56d   : > { %13317 = vrcp.f32 %v10140_v27  ;;  %v10141_v53 = vadd.f32 1.0, %v13298_v10  ;;  %v11481_v42 = vpop.f32.mrb[196].mxu0  ;;  %v9384_v27 = vadd.f32 %v19075_v5, %v19110_v4  ;;  %v9395_v5 = vadd.f32 %v19098_v44, %v19110_v4 }
 0x56e   : > { %v13300_v13 = vpop.eup %13299  ;;  %13319 = vrcp.f32 %v10139_v62  ;;  %v11482_v55 = vpop.f32.mrb[197].mxu0 }
 0x56f   : > { %v13302_v22 = vpop.eup %13301  ;;  %10460 = vst [vmem:[%s18747_s16 + $0x2d8] sm:$0xff] %v13300_v13  ;;  %13321 = vrcp.f32 %v10141_v53  ;;  %v11483_v54 = vadd.f32 %v11482_v55, %v11481_v42  ;;  %v11484_v58 = vpop.f32.mrb[198].mxu0 }
 0x570   : > { %v13304_v32 = vpop.eup %13303  ;;  %10462 = vst [vmem:[%s18747_s16 + $0x2e8] sm:$0xff] %v13302_v22  ;;  %v11485_v35 = vpop.f32.mrb[199].mxu0  ;;  %v9392_v22 = vadd.f32 %v19094_v60, %v19110_v4 }
 0x571   : > { %v13306_v18 = vpop.eup %13305  ;;  %10461 = vst [vmem:[%s18747_s16 + $0x2e0] sm:$0xff] %v13304_v32  ;;  %v19141_v37 = vadd.f32 %v11483_v54, %v9360_v20  ;;  %v11486_v21 = vadd.f32 %v11485_v35, %v11484_v58 }
 0x572   : > { %v13308_v47 = vpop.eup %13307  ;;  %10463 = vst [vmem:[%s18747_s16 + $0x2f0] sm:$0xff] %v13306_v18 }
 0x573   : > { %v13310_v29 = vpop.eup %13309  ;;  %10467 = vst [vmem:[%s18747_s16 + $0x310] sm:$0xff] %v13308_v47  ;;  %v19145_v43 = vadd.f32 %v11486_v21, %v9363_v40 }
 0x574   : > { %v13312_v7 = vpop.eup %13311  ;;  %10469 = vst [vmem:[%s18747_s16 + $0x320] sm:$0xff] %v13310_v29 }
 0x575   : > { %v13314_v9 = vpop.eup %13313  ;;  %10468 = vst [vmem:[%s18747_s16 + $0x318] sm:$0xff] %v13312_v7  ;;  %v11487_v50 = vpop.f32.mrb[200].mxu0 }
 0x576   : > { %v13316_v16 = vpop.eup %13315  ;;  %10470 = vst [vmem:[%s18747_s16 + $0x328] sm:$0xff] %v13314_v9  ;;  %v11488_v30 = vpop.f32.mrb[201].mxu0 }
 0x577   : > { %v13318_v28 = vpop.eup %13317  ;;  %10474 = vst [vmem:[%s18747_s16 + $0x348] sm:$0xff] %v13316_v16  ;;  %v11489_v23 = vadd.f32 %v11488_v30, %v11487_v50  ;;  %v11490_v26 = vpop.f32.mrb[202].mxu0 }
 0x578   : > { %v13320_v51 = vpop.eup %13319  ;;  %10476 = vst [vmem:[%s18747_s16 + $0x358] sm:$0xff] %v13318_v28  ;;  %v11491_v57 = vpop.f32.mrb[203].mxu0 }
 0x579   : > { %v13322_v41 = vpop.eup %13321  ;;  %10475 = vst [vmem:[%s18747_s16 + $0x350] sm:$0xff] %v13320_v51  ;;  %v19155_v25 = vadd.f32 %v11489_v23, %v9368_v11  ;;  %v11492_v2 = vadd.f32 %v11491_v57, %v11490_v26 }
 0x57a   : > { %10477 = vst [vmem:[%s18747_s16 + $0x360] sm:$0xff] %v13322_v41 }
 0x57b   : > { %v19157_v19 = vadd.f32 %v11492_v2, %v9371_v8 }
 0x57d   : > { %v11493_v15 = vpop.f32.mrb[204].mxu0 }
 0x57e   : > { %v11494_v14 = vpop.f32.mrb[205].mxu0 }
 0x57f   : > { %v11495_v24 = vadd.f32 %v11494_v14, %v11493_v15  ;;  %v11496_v33 = vpop.f32.mrb[206].mxu0 }
 0x580   : > { %v11497_v17 = vpop.f32.mrb[207].mxu0 }
 0x581   : > { %v19163_v31 = vadd.f32 %v11495_v24, %v9376_v59  ;;  %v11498_v45 = vadd.f32 %v11497_v17, %v11496_v33 }
 0x583   : > { %v19165_v36 = vadd.f32 %v11498_v45, %v9379_v1 }
 0x585   : > { %v11499_v49 = vpop.f32.mrb[208].mxu0 }
 0x586   : > { %v11500_v34 = vpop.f32.mrb[209].mxu0 }
 0x587   : > { %v11501_v12 = vadd.f32 %v11500_v34, %v11499_v49  ;;  %v11502_v0 = vpop.f32.mrb[210].mxu0 }
 0x588   : > { %v11503_v10 = vpop.f32.mrb[211].mxu0 }
 0x589   : > { %v19171_v62 = vadd.f32 %v11501_v12, %v9384_v27  ;;  %v11504_v39 = vadd.f32 %v11503_v10, %v11502_v0 }
 0x58b   : > { %v19173_v38 = vadd.f32 %v11504_v39, %v9387_v61 }
 0x58d   : > { %v11505_v53 = vpop.f32.mrb[212].mxu0 }
 0x58e   : > { %v11506_v13 = vpop.f32.mrb[213].mxu0 }
 0x58f   : > { %v11507_v32 = vadd.f32 %v11506_v13, %v11505_v53  ;;  %v11508_v42 = vpop.f32.mrb[214].mxu0 }
 0x590   : > { %v11509_v18 = vpop.f32.mrb[215].mxu0 }
 0x591   : > { %v9489_v55 = vadd.f32 %v11507_v32, %v9392_v22  ;;  %v11510_v47 = vadd.f32 %v11509_v18, %v11508_v42 }
 0x593   : > { %v9492_v20 = vadd.f32 %v11510_v47, %v9395_v5 }
 0x595   : > { %v11511_v52 = vpop.f32.mrb[216].mxu0 }
 0x596   : > { %v11512_v54 = vpop.f32.mrb[217].mxu0 }
 0x597   : > { %v19179_v58 = vadd.f32 %v11512_v54, %v11511_v52  ;;  %v11514_v29 = vpop.f32.mrb[218].mxu0 }
 0x598   : > { %v11515_v35 = vpop.f32.mrb[219].mxu0 }
 0x599   : > { %v19181_v7 = vadd.f32 %v11515_v35, %v11514_v29 }
 0x59d   : > { %v11533_v40 = vpop.f32.mrb[220].mxu0 }
 0x59e   : > { %v11534_v21 = vpop.f32.mrb[221].mxu0 }
 0x59f   : > { %v11535_v60 = vadd.f32 %v11534_v21, %v11533_v40  ;;  %v11536_v9 = vpop.f32.mrb[222].mxu0 }
 0x5a0   : > { %v11537_v16 = vpop.f32.mrb[223].mxu0 }
 0x5a1   : > { %v9538_v28 = vadd.f32 %v11535_v60, %v19119_v46  ;;  %v11538_v51 = vadd.f32 %v11537_v16, %v11536_v9 }
 0x5a3   : > { %v19185_v44 = vadd.f32 %v11538_v51, %v19121_v56 }
 0x5a5   : > { %v11539_v50 = vpop.f32.mrb[224].mxu0 }
 0x5a6   : > { %v11540_v41 = vpop.f32.mrb[225].mxu0 }
 0x5a7   : > { %v11541_v30 = vadd.f32 %v11540_v41, %v11539_v50  ;;  %v11542_v11 = vpop.f32.mrb[226].mxu0 }
 0x5a8   : > { %v11543_v23 = vpop.f32.mrb[227].mxu0 }
 0x5a9   : > { %v19188_v26 = vadd.f32 %v11541_v30, %v19127_v3  ;;  %v11544_v57 = vadd.f32 %v11543_v23, %v11542_v11 }
 0x5ab   : > { %v19191_v8 = vadd.f32 %v11544_v57, %v19129_v48 }
 0x5ad   : > { %v11545_v2 = vpop.f32.mrb[228].mxu0 }
 0x5ae   : > { %v11546_v15 = vpop.f32.mrb[229].mxu0 }
 0x5af   : > { %v11547_v14 = vadd.f32 %v11546_v15, %v11545_v2  ;;  %v11548_v46 = vpop.f32.mrb[230].mxu0 }
 0x5b0   : > { %v11549_v59 = vpop.f32.mrb[231].mxu0 }
 0x5b1   : > { %v19194_v56 = vadd.f32 %v11547_v14, %v19141_v37  ;;  %v11550_v24 = vadd.f32 %v11549_v59, %v11548_v46  ;;  %v19911_v14 = vsub.s32 5, %v19908_v6 }
 0x5b3   : > { %v19197_v33 = vadd.f32 %v11550_v24, %v19145_v43  ;;  %v19234_v46 = vrot.slane %v19105_v63, %v19911_v14 }
 0x5b5   : > { %v11551_v17 = vpop.f32.mrb[232].mxu0 }
 0x5b6   : > { %v11552_v1 = vpop.f32.mrb[233].mxu0 }
 0x5b7   : > { %v11553_v3 = vadd.f32 %v11552_v1, %v11551_v17  ;;  %v11554_v45 = vpop.f32.mrb[234].mxu0 }
 0x5b8   : > { %v11555_v49 = vpop.f32.mrb[235].mxu0 }
 0x5b9   : > { %v19200_v48 = vadd.f32 %v11553_v3, %v19155_v25  ;;  %v11556_v34 = vadd.f32 %v11555_v49, %v11554_v45 }
 0x5bb   : > { %v19203_v27 = vadd.f32 %v11556_v34, %v19157_v19 }
 0x5bd   : > { %v11557_v12 = vpop.f32.mrb[236].mxu0 }
 0x5be   : > { %v11558_v0 = vpop.f32.mrb[237].mxu0 }
 0x5bf   : > { %v11559_v37 = vadd.f32 %v11558_v0, %v11557_v12  ;;  %v11560_v10 = vpop.f32.mrb[238].mxu0 }
 0x5c0   : > { %v11561_v61 = vpop.f32.mrb[239].mxu0 }
 0x5c1   : > { %v19206_v43 = vadd.f32 %v11559_v37, %v19163_v31  ;;  %v11562_v39 = vadd.f32 %v11561_v61, %v11560_v10 }
 0x5c3   : > { %v19209_v53 = vadd.f32 %v11562_v39, %v19165_v36 }
 0x5c5   : > { %v11563_v13 = vpop.f32.mrb[240].mxu0 }
 0x5c6   : > { %v11564_v22 = vpop.f32.mrb[241].mxu0 }
 0x5c7   : > { %v11565_v25 = vadd.f32 %v11564_v22, %v11563_v13  ;;  %v11566_v32 = vpop.f32.mrb[242].mxu0 }
 0x5c8   : > { %v11567_v42 = vpop.f32.mrb[243].mxu0 }
 0x5c9   : > { %v19212_v19 = vadd.f32 %v11565_v25, %v19171_v62  ;;  %v11568_v18 = vadd.f32 %v11567_v42, %v11566_v32 }
 0x5cb   : > { %v19215_v5 = vadd.f32 %v11568_v18, %v19173_v38 }
 0x5cd   : > { %v11569_v47 = vpop.f32.mrb[244].mxu0 }
 0x5ce   : > { %v11570_v52 = vpop.f32.mrb[245].mxu0 }
 0x5cf   : > { %v11571_v31 = vadd.f32 %v11570_v52, %v11569_v47  ;;  %v11572_v54 = vpop.f32.mrb[246].mxu0 }
 0x5d0   : > { %v11573_v29 = vpop.f32.mrb[247].mxu0 }
 0x5d1   : > { %v19217_v35 = vadd.f32 %v11571_v31, %v9489_v55  ;;  %v11574_v36 = vadd.f32 %v11573_v29, %v11572_v54  ;;  %v19910_v55 = vsub.s32 4, %v19908_v6 }
 0x5d3   : > { %v19219_v40 = vadd.f32 %v11574_v36, %v9492_v20  ;;  %v19228_v20 = vrot.slane %v19105_v63, %v19910_v55 }
 0x5d5   : > { %v11575_v21 = vpop.f32.mrb[248].mxu0 }
 0x5d6   : > { %v11576_v60 = vpop.f32.mrb[249].mxu0 }
 0x5d7   : > { %v19221_v9 = vadd.f32 %v11576_v60, %v11575_v21  ;;  %v11578_v62 = vpop.f32.mrb[250].mxu0 }
 0x5d8   : > { %v11579_v16 = vpop.f32.mrb[251].mxu0 }
 0x5d9   : > { %v19223_v51 = vadd.f32 %v11579_v16, %v11578_v62 }
 0x5dd   : > { %v11597_v38 = vpop.f32.mrb[252].mxu0 }
 0x5de   : > { %v11598_v50 = vpop.f32.mrb[253].mxu0 }
 0x5df   : > { %v11599_v41 = vadd.f32 %v11598_v50, %v11597_v38  ;;  %v11600_v30 = vpop.f32.mrb[254].mxu0 }
 0x5e0   : > { %v11601_v11 = vpop.f32.mrb[255].mxu0 }
 0x5e1   : > { %v9635_v23 = vadd.f32 %v11599_v41, %v9538_v28  ;;  %v11602_v57 = vadd.f32 %v11601_v11, %v11600_v30 }
 0x5e3   : > { %v9703_v2 = vsub.f32 0.0, %v9635_v23  ;;  %v9638_v15 = vadd.f32 %v11602_v57, %v19185_v44 }
 0x5e5   : > { %v9821_v59 = vmul.f32 1.442695, %v9703_v2  ;;  %v9710_v24 = vsub.f32 0.0, %v9638_v15  ;;  %v9230_v17 = vpop.f32.mrb[128].mxu1  ;;  %v11603_v1 = vpop.f32.mrb[0].mxu0 }
 0x5e6   : > { %v11853_v28 = vadd.f32 %v9230_v17, %v19228_v20  ;;  %v9232_v3 = vpop.f32.mrb[129].mxu1  ;;  %v11604_v45 = vpop.f32.mrb[1].mxu0 }
 0x5e7   : > { %13323 = vpow2.f32 %v9821_v59  ;;  %v9835_v49 = vmul.f32 1.442695, %v9710_v24  ;;  %v11854_v34 = vadd.f32 %v9232_v3, %v19234_v46  ;;  %v11605_v12 = vadd.f32 %v11604_v45, %v11603_v1  ;;  %v9234_v0 = vpop.f32.mrb[130].mxu1  ;;  %v11606_v44 = vpop.f32.mrb[2].mxu0 }
 0x5e8   : > { %v9701_v37 = vsub.f32 0.0, %v11853_v28  ;;  %v11855_v6 = vadd.f32 %v9234_v0, %v19228_v20  ;;  %v9236_v63 = vpop.f32.mrb[131].mxu1  ;;  %v11607_v10 = vpop.f32.mrb[3].mxu0 }
 0x5e9   : > { %13325 = vpow2.f32 %v9835_v49  ;;  %v9702_v61 = vsub.f32 0.0, %v11854_v34  ;;  %v9643_v39 = vadd.f32 %v11605_v12, %v19188_v26  ;;  %v11856_v13 = vadd.f32 %v9236_v63, %v19234_v46 }
 0x5ea   : > { %v9817_v22 = vmul.f32 1.442695, %v9701_v37  ;;  %v9708_v25 = vsub.f32 0.0, %v11855_v6  ;;  %v11608_v32 = vadd.f32 %v11607_v10, %v11606_v44 }
 0x5eb   : > { %v9819_v42 = vmul.f32 1.442695, %v9702_v61  ;;  %v9717_v18 = vsub.f32 0.0, %v9643_v39  ;;  %v9709_v47 = vsub.f32 0.0, %v11856_v13 }
 0x5ec   : > { %13327 = vpow2.f32 %v9817_v22  ;;  %v9831_v52 = vmul.f32 1.442695, %v9708_v25  ;;  %v9646_v31 = vadd.f32 %v11608_v32, %v19191_v8 }
 0x5ed   : > { %13329 = vpow2.f32 %v9819_v42  ;;  %v9849_v54 = vmul.f32 1.442695, %v9717_v18  ;;  %v9833_v29 = vmul.f32 1.442695, %v9709_v47  ;;  %v9240_v36 = vpop.f32.mrb[132].mxu1  ;;  %v11609_v21 = vpop.f32.mrb[4].mxu0 }
 0x5ee   : > { %13331 = vpow2.f32 %v9831_v52  ;;  %v9724_v60 = vsub.f32 0.0, %v9646_v31  ;;  %v11857_v26 = vadd.f32 %v9240_v36, %v19228_v20  ;;  %v9242_v62 = vpop.f32.mrb[133].mxu1  ;;  %v11610_v16 = vpop.f32.mrb[5].mxu0 }
 0x5ef   : > { %13333 = vpow2.f32 %v9849_v54  ;;  %v11858_v38 = vadd.f32 %v9242_v62, %v19234_v46  ;;  %v11611_v50 = vadd.f32 %v11610_v16, %v11609_v21  ;;  %v9244_v41 = vpop.f32.mrb[134].mxu1  ;;  %v11612_v30 = vpop.f32.mrb[6].mxu0 }
 0x5f0   : > { %13335 = vpow2.f32 %v9833_v29  ;;  %v9863_v11 = vmul.f32 1.442695, %v9724_v60  ;;  %v9715_v8 = vsub.f32 0.0, %v11857_v26  ;;  %v9246_v23 = vpop.f32.mrb[135].mxu1  ;;  %v11613_v57 = vpop.f32.mrb[7].mxu0  ;;  %v11859_v14 = vadd.f32 %v9244_v41, %v19228_v20 }
 0x5f1   : > { %v13324_v55 = vpop.eup %13323  ;;  %v9716_v2 = vsub.f32 0.0, %v11858_v38  ;;  %v9651_v15 = vadd.f32 %v11611_v50, %v19194_v56  ;;  %v11614_v59 = vadd.f32 %v11613_v57, %v11612_v30  ;;  %v11860_v34 = vadd.f32 %v9246_v23, %v19234_v46 }
 0x5f2   : > { %v10039_v24 = vadd.f32 1.0, %v13324_v55  ;;  %13337 = vpow2.f32 %v9863_v11  ;;  %v9845_v17 = vmul.f32 1.442695, %v9715_v8  ;;  %v9722_v0 = vsub.f32 0.0, %v11859_v14 }
 0x5f3   : > { %v13326_v1 = vpop.eup %13325  ;;  %v9847_v28 = vmul.f32 1.442695, %v9716_v2  ;;  %v9731_v3 = vsub.f32 0.0, %v9651_v15  ;;  %v9654_v45 = vadd.f32 %v11614_v59, %v19197_v33  ;;  %v9723_v25 = vsub.f32 0.0, %v11860_v34 }
 0x5f4   : > { %13339 = vrcp.f32 %v10039_v24  ;;  %v10046_v49 = vadd.f32 1.0, %v13326_v1  ;;  %v9859_v31 = vmul.f32 1.442695, %v9722_v0 }
 0x5f5   : > { %13341 = vpow2.f32 %v9845_v17  ;;  %v9877_v12 = vmul.f32 1.442695, %v9731_v3  ;;  %v9250_v44 = vpop.f32.mrb[136].mxu1  ;;  %v11615_v37 = vpop.f32.mrb[8].mxu0  ;;  %v9738_v54 = vsub.f32 0.0, %v9654_v45 }
 0x5f6   : > { %v13328_v56 = vpop.eup %13327  ;;  %13343 = vrcp.f32 %v10046_v49  ;;  %v9252_v6 = vpop.f32.mrb[137].mxu1  ;;  %v11861_v61 = vadd.f32 %v9250_v44, %v19228_v20  ;;  %v9861_v50 = vmul.f32 1.442695, %v9723_v25 }
 0x5f7   : > { %v13330_v63 = vpop.eup %13329  ;;  %v10037_v10 = vadd.f32 1.0, %v13328_v56  ;;  %13345 = vpow2.f32 %v9847_v28  ;;  %v11616_v39 = vpop.f32.mrb[9].mxu0  ;;  %v11862_v60 = vadd.f32 %v9252_v6, %v19234_v46  ;;  %v9891_v8 = vmul.f32 1.442695, %v9738_v54 }
 0x5f8   : > { %v9254_v13 = vpop.f32.mrb[138].mxu1  ;;  %v13332_v33 = vpop.eup %13331  ;;  %v10038_v22 = vadd.f32 1.0, %v13330_v63  ;;  %13347 = vpow2.f32 %v9877_v12  ;;  %v11617_v32 = vadd.f32 %v11616_v39, %v11615_v37  ;;  %v9729_v16 = vsub.f32 0.0, %v11861_v61 }
 0x5f9   : > { %v11618_v42 = vpop.f32.mrb[10].mxu0  ;;  %v9256_v18 = vpop.f32.mrb[139].mxu1  ;;  %13349 = vrcp.f32 %v10037_v10  ;;  %v10044_v52 = vadd.f32 1.0, %v13332_v33  ;;  %v11863_v41 = vadd.f32 %v9254_v13, %v19228_v20 }
 0x5fa   : > { %v13334_v47 = vpop.eup %13333  ;;  %v11619_v29 = vpop.f32.mrb[11].mxu0  ;;  %13351 = vrcp.f32 %v10038_v22  ;;  %v9659_v26 = vadd.f32 %v11617_v32, %v19200_v48  ;;  %v11864_v23 = vadd.f32 %v9256_v18, %v19234_v46  ;;  %v9730_v48 = vsub.f32 0.0, %v11862_v60 }
 0x5fb   : > { %v13336_v36 = vpop.eup %13335  ;;  %v10053_v21 = vadd.f32 1.0, %v13334_v47  ;;  %13353 = vrcp.f32 %v10044_v52  ;;  %v11620_v30 = vadd.f32 %v11619_v29, %v11618_v42  ;;  %v9873_v17 = vmul.f32 1.442695, %v9729_v16 }
 0x5fc   : > { %v10045_v62 = vadd.f32 1.0, %v13336_v36  ;;  %v13338_v38 = vpop.eup %13337  ;;  %v9745_v1 = vsub.f32 0.0, %v9659_v26  ;;  %v9736_v12 = vsub.f32 0.0, %v11863_v41  ;;  %v9737_v37 = vsub.f32 0.0, %v11864_v23 }
 0x5fd   : > { %13355 = vrcp.f32 %v10053_v21  ;;  %v10060_v11 = vadd.f32 1.0, %v13338_v38  ;;  %v9260_v57 = vpop.f32.mrb[140].mxu1  ;;  %v9662_v15 = vadd.f32 %v11620_v30, %v19203_v27  ;;  %v9875_v61 = vmul.f32 1.442695, %v9730_v48 }
 0x5fe   : > { %13357 = vrcp.f32 %v10045_v62  ;;  %v11621_v55 = vpop.f32.mrb[12].mxu0  ;;  %v13340_v2 = vpop.eup %13339  ;;  %v11865_v0 = vadd.f32 %v9260_v57, %v19228_v20  ;;  %v9905_v22 = vmul.f32 1.442695, %v9745_v1  ;;  %v9887_v42 = vmul.f32 1.442695, %v9736_v12 }
 0x5ff   : > { %13359 = vpow2.f32 %v9859_v31  ;;  %v9262_v14 = vpop.f32.mrb[141].mxu1  ;;  %v11622_v59 = vpop.f32.mrb[13].mxu0  ;;  %10375 = vst [vmem:[%s18747_s16 + $0x30] sm:$0xff] %v13340_v2  ;;  %v9752_v39 = vsub.f32 0.0, %v9662_v15  ;;  %v9889_v47 = vmul.f32 1.442695, %v9737_v37 }
 0x600   : > { %v13342_v24 = vpop.eup %13341  ;;  %13361 = vrcp.f32 %v10060_v11  ;;  %v11623_v28 = vadd.f32 %v11622_v59, %v11621_v55  ;;  %v9264_v3 = vpop.f32.mrb[142].mxu1  ;;  %v11866_v25 = vadd.f32 %v9262_v14, %v19234_v46 }
 0x601   : > { %v11624_v45 = vpop.f32.mrb[14].mxu0  ;;  %v13344_v49 = vpop.eup %13343  ;;  %v10051_v34 = vadd.f32 1.0, %v13342_v24  ;;  %13363 = vpow2.f32 %v9861_v50  ;;  %v9919_v36 = vmul.f32 1.442695, %v9752_v39  ;;  %v11867_v21 = vadd.f32 %v9264_v3, %v19228_v20 }
 0x602   : > { %v9266_v44 = vpop.f32.mrb[143].mxu1  ;;  %v11625_v56 = vpop.f32.mrb[15].mxu0  ;;  %10382 = vst [vmem:[%s18747_s16 + $0x68] sm:$0xff] %v13344_v49  ;;  %13365 = vpow2.f32 %v9891_v8  ;;  %v19258_v6 = vadd.f32 %v11623_v28, %v19206_v43  ;;  %v9743_v43 = vsub.f32 0.0, %v11865_v0  ;;  %v9744_v62 = vsub.f32 0.0, %v11866_v25 }
 0x603   : > { %v13346_v27 = vpop.eup %13345  ;;  %13367 = vrcp.f32 %v10051_v34  ;;  %v11626_v52 = vadd.f32 %v11625_v56, %v11624_v45  ;;  %v9750_v15 = vsub.f32 0.0, %v11867_v21  ;;  %v11868_v14 = vadd.f32 %v9266_v44, %v19234_v46 }
 0x604   : > { %v13348_v63 = vpop.eup %13347  ;;  %v10052_v10 = vadd.f32 1.0, %v13346_v27  ;;  %13369 = vpow2.f32 %v9873_v17  ;;  %v9901_v30 = vmul.f32 1.442695, %v9743_v43  ;;  %v9759_v2 = vsub.f32 0.0, %v19258_v6 }
 0x605   : > { %v13350_v13 = vpop.eup %13349  ;;  %v10067_v33 = vadd.f32 1.0, %v13348_v63  ;;  %v9270_v31 = vpop.f32.mrb[144].mxu1  ;;  %v19267_v16 = vadd.f32 %v11626_v52, %v19209_v53  ;;  %v9903_v1 = vmul.f32 1.442695, %v9744_v62  ;;  %v9915_v56 = vmul.f32 1.442695, %v9750_v15 }
 0x606   : > { %v13352_v32 = vpop.eup %13351  ;;  %10373 = vst [vmem:[%s18747_s16 + $0x20] sm:$0xff] %v13350_v13  ;;  %13371 = vrcp.f32 %v10052_v10  ;;  %v11627_v54 = vpop.f32.mrb[16].mxu0  ;;  %v9933_v49 = vmul.f32 1.442695, %v9759_v2  ;;  %v9751_v27 = vsub.f32 0.0, %v11868_v14  ;;  %v11869_v10 = vadd.f32 %v9270_v31, %v19228_v20 }
 0x607   : > { %v13354_v18 = vpop.eup %13353  ;;  %10374 = vst [vmem:[%s18747_s16 + $0x28] sm:$0xff] %v13352_v32  ;;  %13373 = vrcp.f32 %v10067_v33  ;;  %v9272_v60 = vpop.f32.mrb[145].mxu1 }
 0x608   : > { %v13356_v29 = vpop.eup %13355  ;;  %10380 = vst [vmem:[%s18747_s16 + $0x58] sm:$0xff] %v13354_v18  ;;  %13375 = vpow2.f32 %v9875_v61  ;;  %v11628_v38 = vpop.f32.mrb[17].mxu0  ;;  %v19286_v61 = vadd.f32 %v9272_v60, %v19234_v46  ;;  %v9757_v60 = vsub.f32 0.0, %v11869_v10 }
 0x609   : > { %v13358_v26 = vpop.eup %13357  ;;  %10389 = vst [vmem:[%s18747_s16 + $0xa0] sm:$0xff] %v13356_v29  ;;  %13377 = vpow2.f32 %v9905_v22  ;;  %v9274_v50 = vpop.f32.mrb[146].mxu1  ;;  %v11629_v11 = vadd.f32 %v11628_v38, %v11627_v54  ;;  %v9917_v29 = vmul.f32 1.442695, %v9751_v27 }
 0x60a   : > { %v13360_v41 = vpop.eup %13359  ;;  %10381 = vst [vmem:[%s18747_s16 + $0x60] sm:$0xff] %v13358_v26  ;;  %13379 = vpow2.f32 %v9887_v42  ;;  %v11630_v8 = vpop.f32.mrb[18].mxu0  ;;  %v19293_v25 = vadd.f32 %v9274_v50, %v19228_v20  ;;  %v9758_v50 = vsub.f32 0.0, %v19286_v61 }
 0x60b   : > { %v19270_v23 = vpop.f32.mrb[147].mxu1  ;;  %v13362_v57 = vpop.eup %13361  ;;  %v10058_v55 = vadd.f32 1.0, %v13360_v41  ;;  %13381 = vpow2.f32 %v9889_v47  ;;  %v19276_v59 = vadd.f32 %v11629_v11, %v19212_v19 }
 0x60c   : > { %v11631_v48 = vpop.f32.mrb[19].mxu0  ;;  %v13364_v53 = vpop.eup %13363  ;;  %10396 = vst [vmem:[%s18747_s16 + $0xd8] sm:$0xff] %v13362_v57  ;;  %13383 = vpow2.f32 %v9919_v36  ;;  %v9764_v41 = vsub.f32 0.0, %v19293_v25 }
 0x60d   : > { %v13366_v24 = vpop.eup %13365  ;;  %13385 = vrcp.f32 %v10058_v55  ;;  %v10059_v17 = vadd.f32 1.0, %v13364_v53  ;;  %v11632_v34 = vadd.f32 %v11631_v48, %v11630_v8  ;;  %v19279_v12 = vpop.f32.mrb[148].mxu1 }
 0x60e   : > { %v13368_v28 = vpop.eup %13367  ;;  %v10074_v3 = vadd.f32 1.0, %v13366_v24  ;;  %13387 = vpow2.f32 %v9901_v30  ;;  %v11633_v0 = vpop.f32.mrb[20].mxu0 }
 0x60f   : > { %v13370_v45 = vpop.eup %13369  ;;  %10387 = vst [vmem:[%s18747_s16 + $0x90] sm:$0xff] %v13368_v28  ;;  %13389 = vrcp.f32 %v10059_v17  ;;  %v19281_v37 = vpop.f32.mrb[149].mxu1  ;;  %v19289_v39 = vadd.f32 %v11632_v34, %v19215_v5  ;;  %v9766_v5 = vsub.f32 0.0, %v19267_v16  ;;  %v9773_v28 = vsub.f32 0.0, %v19276_v59 }
 0x610   : > { %v13372_v44 = vpop.eup %13371  ;;  %13391 = vrcp.f32 %v10074_v3  ;;  %v10065_v19 = vadd.f32 1.0, %v13370_v45  ;;  %v11634_v6 = vpop.f32.mrb[21].mxu0  ;;  %v9931_v59 = vmul.f32 1.442695, %v9758_v50  ;;  %v11874_v10 = vadd.f32 %v19281_v37, %v19234_v46 }
 0x611   : > { %v13374_v63 = vpop.eup %13373  ;;  %10388 = vst [vmem:[%s18747_s16 + $0x98] sm:$0xff] %v13372_v44  ;;  %13393 = vpow2.f32 %v9903_v1  ;;  %v9284_v13 = vpop.f32.mrb[150].mxu1  ;;  %v11635_v32 = vadd.f32 %v11634_v6, %v11633_v0  ;;  %v9947_v11 = vmul.f32 1.442695, %v9766_v5  ;;  %v9929_v1 = vmul.f32 1.442695, %v9757_v60 }
 0x612   : > { %v11636_v33 = vpop.f32.mrb[22].mxu0  ;;  %v13376_v22 = vpop.eup %13375  ;;  %10403 = vst [vmem:[%s18747_s16 + $0x110] sm:$0xff] %v13374_v63  ;;  %13395 = vrcp.f32 %v10065_v19  ;;  %v19296_v42 = vadd.f32 %v9284_v13, %v19228_v20  ;;  %v9961_v13 = vmul.f32 1.442695, %v9773_v28  ;;  %v9943_v37 = vmul.f32 1.442695, %v9764_v41 }
 0x613   : > { %v9286_v43 = vpop.f32.mrb[151].mxu1  ;;  %v11637_v18 = vpop.f32.mrb[23].mxu0  ;;  %v10066_v52 = vadd.f32 1.0, %v13376_v22  ;;  %13397 = vpow2.f32 %v9933_v49  ;;  %v19300_v26 = vadd.f32 %v11635_v32, %v19217_v35  ;;  %v11872_v35 = vadd.f32 %v19270_v23, %v19234_v46 }
 0x614   : > { %v13378_v47 = vpop.eup %13377  ;;  %13399 = vpow2.f32 %v9915_v56  ;;  %v19305_v8 = vadd.f32 %v9286_v43, %v19234_v46  ;;  %v11638_v48 = vadd.f32 %v11637_v18, %v11636_v33  ;;  %v11873_v23 = vadd.f32 %v19279_v12, %v19228_v20 }
 0x615   : > { %v13380_v31 = vpop.eup %13379  ;;  %v10081_v54 = vadd.f32 1.0, %v13378_v47  ;;  %13401 = vrcp.f32 %v10066_v52  ;;  %v9290_v57 = vpop.f32.mrb[152].mxu1  ;;  %v9780_v33 = vsub.f32 0.0, %v19289_v39 }
 0x616   : > { %v13382_v36 = vpop.eup %13381  ;;  %v10072_v21 = vadd.f32 1.0, %v13380_v31  ;;  %v11639_v55 = vpop.f32.mrb[24].mxu0  ;;  %v19311_v53 = vadd.f32 %v9290_v57, %v19228_v20  ;;  %v19318_v34 = vadd.f32 %v11638_v48, %v19219_v40  ;;  %v9765_v40 = vsub.f32 0.0, %v11872_v35 }
 0x617   : > { %v13384_v62 = vpop.eup %13383  ;;  %13403 = vrcp.f32 %v10081_v54  ;;  %v10073_v38 = vadd.f32 1.0, %v13382_v36  ;;  %v9292_v15 = vpop.f32.mrb[153].mxu1  ;;  %v9771_v43 = vsub.f32 0.0, %v11873_v23  ;;  %v9772_v54 = vsub.f32 0.0, %v11874_v10 }
 0x618   : > { %v13386_v16 = vpop.eup %13385  ;;  %13405 = vrcp.f32 %v10072_v21  ;;  %v10088_v30 = vadd.f32 1.0, %v13384_v62  ;;  %v11640_v14 = vpop.f32.mrb[25].mxu0  ;;  %v19321_v0 = vadd.f32 %v9292_v15, %v19234_v46  ;;  %v9945_v39 = vmul.f32 1.442695, %v9765_v40 }
 0x619   : > { %v13388_v2 = vpop.eup %13387  ;;  %10394 = vst [vmem:[%s18747_s16 + $0xc8] sm:$0xff] %v13386_v16  ;;  %13407 = vrcp.f32 %v10073_v38  ;;  %v9294_v3 = vpop.f32.mrb[154].mxu1  ;;  %v19324_v27 = vadd.f32 %v11640_v14, %v11639_v55  ;;  %v9975_v60 = vmul.f32 1.442695, %v9780_v33  ;;  %v9957_v41 = vmul.f32 1.442695, %v9771_v43 }
 0x61a   : > { %v13390_v24 = vpop.eup %13389  ;;  %13409 = vrcp.f32 %v10088_v30  ;;  %v10079_v17 = vadd.f32 1.0, %v13388_v2  ;;  %v11642_v45 = vpop.f32.mrb[26].mxu0  ;;  %v19327_v6 = vadd.f32 %v9294_v3, %v19228_v20  ;;  %v9787_v57 = vsub.f32 0.0, %v19300_v26 }
 0x61b   : > { %v13392_v49 = vpop.eup %13391  ;;  %10395 = vst [vmem:[%s18747_s16 + $0xd0] sm:$0xff] %v13390_v24  ;;  %13411 = vpow2.f32 %v9917_v29  ;;  %v9296_v44 = vpop.f32.mrb[155].mxu1  ;;  %v9959_v35 = vmul.f32 1.442695, %v9772_v54  ;;  %v9779_v24 = vsub.f32 0.0, %v19305_v8 }
 0x61c   : > { %v11643_v19 = vpop.f32.mrb[27].mxu0  ;;  %v13394_v56 = vpop.eup %13393  ;;  %10410 = vst [vmem:[%s18747_s16 + $0x148] sm:$0xff] %v13392_v49  ;;  %13413 = vrcp.f32 %v10079_v17  ;;  %v19334_v22 = vadd.f32 %v9296_v44, %v19234_v46 }
 0x61d   : > { %v13396_v63 = vpop.eup %13395  ;;  %v10080_v12 = vadd.f32 1.0, %v13394_v56  ;;  %13415 = vpow2.f32 %v9947_v11  ;;  %v19336_v18 = vadd.f32 %v11643_v19, %v11642_v45  ;;  %v9300_v5 = vpop.f32.mrb[156].mxu1  ;;  %v9973_v56 = vmul.f32 1.442695, %v9779_v24 }
 0x61e   : > { %v13398_v61 = vpop.eup %13397  ;;  %10401 = vst [vmem:[%s18747_s16 + $0x100] sm:$0xff] %v13396_v63  ;;  %13417 = vpow2.f32 %v9929_v1  ;;  %v19340_v29 = vadd.f32 %v9300_v5, %v19228_v20  ;;  %v9302_v36 = vpop.f32.mrb[157].mxu1 }
 0x61f   : > { %v13400_v25 = vpop.eup %13399  ;;  %13419 = vrcp.f32 %v10080_v12  ;;  %v10095_v32 = vadd.f32 1.0, %v13398_v61  ;;  %v19344_v62 = vadd.f32 %v9302_v36, %v19234_v46  ;;  %v9304_v38 = vpop.f32.mrb[158].mxu1  ;;  %v9794_v61 = vsub.f32 0.0, %v19318_v34 }
 0x620   : > { %v13402_v47 = vpop.eup %13401  ;;  %v10086_v52 = vadd.f32 1.0, %v13400_v25  ;;  %13421 = vpow2.f32 %v9931_v59  ;;  %v19348_v16 = vadd.f32 %v9304_v38, %v19228_v20  ;;  %v9306_v30 = vpop.f32.mrb[159].mxu1  ;;  %v9778_v20 = vsub.f32 0.0, %v19296_v42 }
 0x621   : > { %v13404_v31 = vpop.eup %13403  ;;  %10402 = vst [vmem:[%s18747_s16 + $0x108] sm:$0xff] %v13402_v47  ;;  %13423 = vrcp.f32 %v10095_v32  ;;  %v19353_v55 = vadd.f32 %v9306_v30, %v19234_v46  ;;  %v9989_v46 = vmul.f32 1.442695, %v9787_v57  ;;  %v10003_v36 = vmul.f32 1.442695, %v9794_v61 }
 0x622   : > { %v13406_v21 = vpop.eup %13405  ;;  %10417 = vst [vmem:[%s18747_s16 + $0x180] sm:$0xff] %v13404_v31  ;;  %13425 = vrcp.f32 %v10086_v52  ;;  %v9971_v42 = vmul.f32 1.442695, %v9778_v20  ;;  %v9785_v52 = vsub.f32 0.0, %v19311_v53  ;;  %v9799_v57 = vsub.f32 0.0, %v19340_v29 }
 0x623   : > { %v13408_v50 = vpop.eup %13407  ;;  %10408 = vst [vmem:[%s18747_s16 + $0x138] sm:$0xff] %v13406_v21  ;;  %13427 = vpow2.f32 %v9961_v13  ;;  %v9807_v24 = vsub.f32 0.0, %v19353_v55 }
 0x624   : > { %v13410_v11 = vpop.eup %13409  ;;  %10409 = vst [vmem:[%s18747_s16 + $0x140] sm:$0xff] %v13408_v50  ;;  %13429 = vpow2.f32 %v9943_v37  ;;  %v9786_v37 = vsub.f32 0.0, %v19321_v0 }
 0x625   : > { %v13412_v2 = vpop.eup %13411  ;;  %10424 = vst [vmem:[%s18747_s16 + $0x1b8] sm:$0xff] %v13410_v11  ;;  %13431 = vpow2.f32 %v9945_v39  ;;  %v11447_v1 = vpop.f32.mrb[160].mxu1  ;;  %v9793_v11 = vsub.f32 0.0, %v19334_v22  ;;  %v10029_v55 = vmul.f32 1.442695, %v9807_v24 }
 0x626   : > { %v13414_v48 = vpop.eup %13413  ;;  %v10087_v15 = vadd.f32 1.0, %v13412_v2  ;;  %13433 = vpow2.f32 %v9975_v60  ;;  %v11448_v45 = vpop.f32.mrb[161].mxu1 }
 0x627   : > { %v13416_v14 = vpop.eup %13415  ;;  %10415 = vst [vmem:[%s18747_s16 + $0x170] sm:$0xff] %v13414_v48  ;;  %13435 = vpow2.f32 %v9957_v41  ;;  %v11449_v23 = vadd.f32 %v11448_v45, %v11447_v1  ;;  %v11450_v44 = vpop.f32.mrb[162].mxu1  ;;  %v9987_v41 = vmul.f32 1.442695, %v9786_v37  ;;  %v9800_v48 = vsub.f32 0.0, %v19344_v62 }
 0x628   : > { %v13418_v17 = vpop.eup %13417  ;;  %13437 = vrcp.f32 %v10087_v15  ;;  %v10102_v26 = vadd.f32 1.0, %v13416_v14  ;;  %v11451_v59 = vpop.f32.mrb[163].mxu1  ;;  %v10001_v14 = vmul.f32 1.442695, %v9793_v11 }
 0x629   : > { %v13420_v28 = vpop.eup %13419  ;;  %v10093_v3 = vadd.f32 1.0, %v13418_v17  ;;  %13439 = vpow2.f32 %v9959_v35  ;;  %v9400_v12 = vadd.f32 %v11449_v23, %v19110_v4  ;;  %v11452_v40 = vadd.f32 %v11451_v59, %v11450_v44 }
 0x62a   : > { %v13422_v49 = vpop.eup %13421  ;;  %10416 = vst [vmem:[%s18747_s16 + $0x178] sm:$0xff] %v13420_v28  ;;  %13441 = vrcp.f32 %v10102_v26  ;;  %v10013_v26 = vmul.f32 1.442695, %v9799_v57  ;;  %v10015_v62 = vmul.f32 1.442695, %v9800_v48 }
 0x62b   : > { %v13424_v19 = vpop.eup %13423  ;;  %13443 = vrcp.f32 %v10093_v3  ;;  %v10094_v8 = vadd.f32 1.0, %v13422_v49  ;;  %v9497_v25 = vadd.f32 %v19179_v58, %v9400_v12  ;;  %v9403_v32 = vadd.f32 %v11452_v40, %v19110_v4 }
 0x62c   : > { %v13426_v63 = vpop.eup %13425  ;;  %10431 = vst [vmem:[%s18747_s16 + $0x1f0] sm:$0xff] %v13424_v19  ;;  %13445 = vpow2.f32 %v9989_v46  ;;  %v9792_v4 = vsub.f32 0.0, %v19327_v6 }
 0x62d   : > { %v13428_v10 = vpop.eup %13427  ;;  %10422 = vst [vmem:[%s18747_s16 + $0x1a8] sm:$0xff] %v13426_v63  ;;  %13447 = vrcp.f32 %v10094_v8  ;;  %v9594_v34 = vadd.f32 %v19221_v9, %v9497_v25  ;;  %v9500_v39 = vadd.f32 %v19181_v7, %v9403_v32  ;;  %v9985_v9 = vmul.f32 1.442695, %v9785_v52 }
 0x62e   : > { %v13430_v13 = vpop.eup %13429  ;;  %v10109_v33 = vadd.f32 1.0, %v13428_v10  ;;  %13449 = vpow2.f32 %v9971_v42 }
 0x62f   : > { %v13432_v43 = vpop.eup %13431  ;;  %v10100_v47 = vadd.f32 1.0, %v13430_v13  ;;  %13451 = vpow2.f32 %v9973_v56  ;;  %v9691_v0 = vadd.f32 %v19324_v27, %v9594_v34  ;;  %v9597_v60 = vadd.f32 %v19223_v51, %v9500_v39 }
 0x630   : > { %v13434_v5 = vpop.eup %13433  ;;  %13453 = vrcp.f32 %v10109_v33  ;;  %v10101_v31 = vadd.f32 1.0, %v13432_v43  ;;  %v9999_v51 = vmul.f32 1.442695, %v9792_v4 }
 0x631   : > { %v13436_v54 = vpop.eup %13435  ;;  %13455 = vrcp.f32 %v10100_v47  ;;  %v10116_v58 = vadd.f32 1.0, %v13434_v5  ;;  %v9694_v6 = vadd.f32 %v19336_v18, %v9597_v60  ;;  %v9806_v18 = vsub.f32 0.0, %v19348_v16 }
 0x632   : > { %v13438_v21 = vpop.eup %13437  ;;  %13457 = vrcp.f32 %v10101_v31  ;;  %v10107_v53 = vadd.f32 1.0, %v13436_v54  ;;  %v9801_v1 = vsub.f32 0.0, %v9691_v0 }
 0x633   : > { %v13440_v38 = vpop.eup %13439  ;;  %10423 = vst [vmem:[%s18747_s16 + $0x1b0] sm:$0xff] %v13438_v21  ;;  %13459 = vrcp.f32 %v10116_v58  ;;  %v10027_v28 = vmul.f32 1.442695, %v9806_v18  ;;  %v9808_v49 = vsub.f32 0.0, %v9694_v6 }
 0x634   : > { %v13442_v7 = vpop.eup %13441  ;;  %13461 = vrcp.f32 %v10107_v53  ;;  %v10108_v50 = vadd.f32 1.0, %v13440_v38  ;;  %v10017_v23 = vmul.f32 1.442695, %v9801_v1 }
 0x635   : > { %v13444_v30 = vpop.eup %13443  ;;  %10438 = vst [vmem:[%s18747_s16 + $0x228] sm:$0xff] %v13442_v7  ;;  %13463 = vpow2.f32 %v10003_v36  ;;  %v10031_v63 = vmul.f32 1.442695, %v9808_v49 }
 0x636   : > { %v13446_v27 = vpop.eup %13445  ;;  %10429 = vst [vmem:[%s18747_s16 + $0x1e0] sm:$0xff] %v13444_v30  ;;  %13465 = vrcp.f32 %v10108_v50 }
 0x637   : > { %v13448_v2 = vpop.eup %13447  ;;  %v10123_v35 = vadd.f32 1.0, %v13446_v27  ;;  %13467 = vpow2.f32 %v9985_v9 }
 0x638   : > { %v13450_v15 = vpop.eup %13449  ;;  %10430 = vst [vmem:[%s18747_s16 + $0x1e8] sm:$0xff] %v13448_v2  ;;  %13469 = vpow2.f32 %v9987_v41 }
 0x639   : > { %v13452_v20 = vpop.eup %13451  ;;  %13471 = vrcp.f32 %v10123_v35  ;;  %v10114_v22 = vadd.f32 1.0, %v13450_v15 }
 0x63a   : > { %v13454_v29 = vpop.eup %13453  ;;  %v10115_v17 = vadd.f32 1.0, %v13452_v20  ;;  %13473 = vpow2.f32 %v9999_v51 }
 0x63b   : > { %v13456_v46 = vpop.eup %13455  ;;  %10445 = vst [vmem:[%s18747_s16 + $0x260] sm:$0xff] %v13454_v29  ;;  %13475 = vrcp.f32 %v10114_v22 }
 0x63c   : > { %v13458_v16 = vpop.eup %13457  ;;  %10436 = vst [vmem:[%s18747_s16 + $0x218] sm:$0xff] %v13456_v46  ;;  %13477 = vrcp.f32 %v10115_v17 }
 0x63d   : > { %v13460_v3 = vpop.eup %13459  ;;  %10437 = vst [vmem:[%s18747_s16 + $0x220] sm:$0xff] %v13458_v16  ;;  %13479 = vpow2.f32 %v10001_v14 }
 0x63e   : > { %v13462_v45 = vpop.eup %13461  ;;  %10452 = vst [vmem:[%s18747_s16 + $0x298] sm:$0xff] %v13460_v3  ;;  %13481 = vpow2.f32 %v10013_v26 }
 0x63f   : > { %v13464_v42 = vpop.eup %13463  ;;  %10443 = vst [vmem:[%s18747_s16 + $0x250] sm:$0xff] %v13462_v45  ;;  %13483 = vpow2.f32 %v10015_v62 }
 0x640   : > { %v13466_v44 = vpop.eup %13465  ;;  %v10130_v19 = vadd.f32 1.0, %v13464_v42  ;;  %13485 = vpow2.f32 %v10027_v28 }
 0x641   : > { %v13468_v8 = vpop.eup %13467  ;;  %10444 = vst [vmem:[%s18747_s16 + $0x258] sm:$0xff] %v13466_v44  ;;  %13487 = vpow2.f32 %v10029_v55 }
 0x642   : > { %v13470_v56 = vpop.eup %13469  ;;  %13489 = vrcp.f32 %v10130_v19  ;;  %v10121_v59 = vadd.f32 1.0, %v13468_v8 }
 0x643   : > { %v13472_v12 = vpop.eup %13471  ;;  %v10122_v40 = vadd.f32 1.0, %v13470_v56  ;;  %13491 = vpow2.f32 %v10017_v23 }
 0x644   : > { %v13474_v10 = vpop.eup %13473  ;;  %10459 = vst [vmem:[%s18747_s16 + $0x2d0] sm:$0xff] %v13472_v12  ;;  %13493 = vrcp.f32 %v10121_v59 }
 0x645   : > { %v13476_v61 = vpop.eup %13475  ;;  %13495 = vrcp.f32 %v10122_v40  ;;  %v10128_v13 = vadd.f32 1.0, %v13474_v10 }
 0x646   : > { %v13478_v33 = vpop.eup %13477  ;;  %10450 = vst [vmem:[%s18747_s16 + $0x288] sm:$0xff] %v13476_v61  ;;  %13497 = vpow2.f32 %v10031_v63 }
 0x647   : > { %v13480_v25 = vpop.eup %13479  ;;  %10451 = vst [vmem:[%s18747_s16 + $0x290] sm:$0xff] %v13478_v33  ;;  %13499 = vrcp.f32 %v10128_v13 }
 0x648   : > { %v13482_v32 = vpop.eup %13481  ;;  %v10129_v43 = vadd.f32 1.0, %v13480_v25 }
 0x649   : > { %v13484_v47 = vpop.eup %13483  ;;  %v10135_v52 = vadd.f32 1.0, %v13482_v32 }
 0x64a   : > { %v13486_v37 = vpop.eup %13485  ;;  %13501 = vrcp.f32 %v10129_v43  ;;  %v10136_v5 = vadd.f32 1.0, %v13484_v47 }
 0x64b   : > { %v13488_v31 = vpop.eup %13487  ;;  %13503 = vrcp.f32 %v10135_v52  ;;  %v10142_v34 = vadd.f32 1.0, %v13486_v37 }
 0x64c   : > { %v13490_v39 = vpop.eup %13489  ;;  %13505 = vrcp.f32 %v10136_v5  ;;  %v10143_v54 = vadd.f32 1.0, %v13488_v31 }
 0x64d   : > { %v13492_v58 = vpop.eup %13491  ;;  %10466 = vst [vmem:[%s18747_s16 + $0x308] sm:$0xff] %v13490_v39  ;;  %13507 = vrcp.f32 %v10142_v34 }
 0x64e   : > { %v13494_v36 = vpop.eup %13493  ;;  %13509 = vrcp.f32 %v10143_v54  ;;  %v10137_v4 = vadd.f32 1.0, %v13492_v58 }
 0x64f   : > { %v13496_v21 = vpop.eup %13495  ;;  %10457 = vst [vmem:[%s18747_s16 + $0x2c0] sm:$0xff] %v13494_v36 }
 0x650   : > { %v13498_v53 = vpop.eup %13497  ;;  %10458 = vst [vmem:[%s18747_s16 + $0x2c8] sm:$0xff] %v13496_v21  ;;  %13511 = vrcp.f32 %v10137_v4 }
 0x651   : > { %v13500_v0 = vpop.eup %13499  ;;  %v10144_v60 = vadd.f32 1.0, %v13498_v53 }
 0x652   : > { %10464 = vst [vmem:[%s18747_s16 + $0x2f8] sm:$0xff] %v13500_v0 }
 0x653   : > { %13513 = vrcp.f32 %v10144_v60 }
 0x654   : > { %v13502_v38 = vpop.eup %13501 }
 0x655   : > { %v13504_v9 = vpop.eup %13503  ;;  %10465 = vst [vmem:[%s18747_s16 + $0x300] sm:$0xff] %v13502_v38 }
 0x656   : > { %v13506_v7 = vpop.eup %13505  ;;  %10471 = vst [vmem:[%s18747_s16 + $0x330] sm:$0xff] %v13504_v9 }
 0x657   : > { %v13508_v50 = vpop.eup %13507  ;;  %10472 = vst [vmem:[%s18747_s16 + $0x338] sm:$0xff] %v13506_v7 }
 0x658   : > { %v13510_v41 = vpop.eup %13509  ;;  %10478 = vst [vmem:[%s18747_s16 + $0x368] sm:$0xff] %v13508_v50 }
 0x659   : > { %10479 = vst [vmem:[%s18747_s16 + $0x370] sm:$0xff] %v13510_v41 }
 0x65a   : > { %v13512_v6 = vpop.eup %13511 }
 0x65b   : > { %10473 = vst [vmem:[%s18747_s16 + $0x340] sm:$0xff] %v13512_v6 }
 0x65d   : > { %v13514_v30 = vpop.eup %13513 }
 0x65e   : > { %10480 = vst [vmem:[%s18747_s16 + $0x378] sm:$0xff] %v13514_v30 }
 0x65f PF: > { %s22_s21 = sadd.s32 1, %s13543_s21  }
 0x660   : > { %p19_p4 = scmp.ge.s32.totalorder %s22_s21, 4  }
 0x662   :  { %21 = sbr.rel (!%p19_p4) target bundleno = 1 (0x1), region = 107 }

</bundles_post_ra>
